<compile_context>
chip_gen: v6e
topology: v6e:2x2x1
jax: 0.10.0
libtpu: 0.0.40
codegen_flags: <defaults>
</compile_context>

<pallas_src>
import jax
import jax.numpy as jnp
from jax.experimental import pallas as pl
from jax.experimental.pallas import tpu as pltpu


# ----------------------------------------------------------------------------
# Pallas kernel: out = A @ W accumulated over the K grid axis directly into the
# f32 output block (resident across K), then optional BatchNorm (PyTorch
# training-mode batch stats, biased var, eps=1e-5) + LeakyReLU(0.2) fused at
# the last K step.  Cout is tiled on a "parallel" grid axis; BN stats are
# per-channel so Cout tiling is safe.
# ----------------------------------------------------------------------------
def make_conv_kernel(apply_bn: bool, apply_lrelu: bool):
    def kernel(a_ref, w_ref, scale_ref, shift_ref, o_ref):
        k = pl.program_id(1)

        @pl.when(k == 0)
        def _init():
            o_ref[...] = jnp.zeros_like(o_ref)

        # bf16 x bf16 -> f32 accumulation on the MXU.
        o_ref[...] += jnp.dot(
            a_ref[...], w_ref[...], preferred_element_type=jnp.float32
        )

        @pl.when(k == pl.num_programs(1) - 1)
        def _epilogue():
            y = o_ref[...]
            if apply_bn:
                # Single-pass batch statistics: var = E[y^2] - mean^2.
                mean = jnp.mean(y, axis=0, keepdims=True)
                var = jnp.maximum(
                    jnp.mean(y * y, axis=0, keepdims=True) - mean * mean, 0.0
                )
                y = (y - mean) * jax.lax.rsqrt(var + 1e-5)
                y = y * scale_ref[...] + shift_ref[...]
            if apply_lrelu:
                y = jnp.where(y > 0, y, 0.2 * y)
            o_ref[...] = y

    return kernel


# ----------------------------------------------------------------------------
# im2col patch extraction (indexing / reshapes only, stays in JAX).
# Patch feature ordering is (kh, kw, cin) to match the flattened weights.
# TODO(synk): fully implicit im2col (strided BlockSpec gather of the padded
# activation) is not expressible with index_map alone; patches are emitted in
# bf16 to halve the amplified activation traffic instead.
# ----------------------------------------------------------------------------
def im2col(x, k, stride, pad):
    N, H, W, C = x.shape
    xp = jnp.pad(x, ((0, 0), (pad, pad), (pad, pad), (0, 0)))
    OH = (H + 2 * pad - k) // stride + 1
    OW = (W + 2 * pad - k) // stride + 1
    oh = jnp.arange(OH) * stride
    ow = jnp.arange(OW) * stride
    kh = jnp.arange(k)
    kw = jnp.arange(k)
    I = oh[:, None, None, None] + kh[None, None, :, None]   # (OH,1,k,1)
    J = ow[None, :, None, None] + kw[None, None, None, :]   # (1,OW,1,k)
    patches = xp[:, I, J, :]                                 # (N,OH,OW,k,k,C)
    return patches.reshape(N * OH * OW, k * k * C), OH, OW


def conv_block(x, w_flat, scale, shift, *, stride, pad, bn, lrelu):
    N, H, W, C = x.shape
    ksz = 4
    patches, OH, OW = im2col(x.astype(jnp.bfloat16), ksz, stride, pad)
    M, K = patches.shape
    Cout = w_flat.shape[1]

    # K tile small enough that the K axis actually pipelines (DMA overlaps MXU).
    tk = K if K <= 512 else 512
    assert K % tk == 0
    # Cout tile: >=128 wide, 1-2 blocks -> "parallel" axis feeds both v7x TCs.
    tn = Cout if Cout <= 128 else Cout // 2
    assert Cout % tn == 0

    kernel = make_conv_kernel(bn, lrelu)

    out = pl.pallas_call(
        kernel,
        out_shape=jax.ShapeDtypeStruct((M, Cout), jnp.float32),
        grid_spec=pltpu.PrefetchScalarGridSpec(
            num_scalar_prefetch=0,
            grid=(Cout // tn, K // tk),          # (parallel Cout, arbitrary K)
            in_specs=[
                pl.BlockSpec((M, tk), lambda j, k: (0, k)),   # patches (bf16)
                pl.BlockSpec((tk, tn), lambda j, k: (k, j)),  # weights (bf16)
                pl.BlockSpec((1, tn), lambda j, k: (0, j)),   # BN gamma
                pl.BlockSpec((1, tn), lambda j, k: (0, j)),   # BN beta
            ],
            out_specs=pl.BlockSpec((M, tn), lambda j, k: (0, j)),
        ),
        compiler_params=pltpu.CompilerParams(
            dimension_semantics=("parallel", "arbitrary")
        ),
    )(patches, w_flat, scale, shift)
    return out.reshape(N, OH, OW, Cout)


# ----------------------------------------------------------------------------
# Parameters: normal(0, 0.02) conv weights (stored bf16, flattened to
# (kh*kw*Cin, Cout) matching im2col's (kh, kw, cin) feature order),
# BN gamma=1 / beta=0 (f32), last-conv bias=0.
# ----------------------------------------------------------------------------
def init_params(key):
    dims = [(128, 3), (256, 128), (512, 256), (1024, 512), (1, 1024)]
    params = {}
    for i, (cout, cin) in enumerate(dims):
        key, sub = jax.random.split(key)
        w = jax.random.normal(sub, (cout, cin, 4, 4), jnp.float32) * 0.02
        w_flat = jnp.transpose(w, (2, 3, 1, 0)).reshape(16 * cin, cout)
        params[f"w{i}"] = w_flat.astype(jnp.bfloat16)
    for i, c in [(1, 256), (2, 512), (3, 1024)]:
        params[f"gamma{i}"] = jnp.ones((1, c), jnp.float32)
        params[f"beta{i}"] = jnp.zeros((1, c), jnp.float32)
    params["bias4"] = jnp.zeros((1, 1), jnp.float32)
    return params


@jax.jit
def discriminator_forward(x_nchw, params):
    x = jnp.transpose(x_nchw, (0, 2, 3, 1))  # NCHW -> NHWC

    ones128 = jnp.ones((1, 128), jnp.float32)
    zeros128 = jnp.zeros((1, 128), jnp.float32)

    x = conv_block(x, params["w0"], ones128, zeros128,
                   stride=2, pad=1, bn=False, lrelu=True)
    x = conv_block(x, params["w1"], params["gamma1"], params["beta1"],
                   stride=2, pad=1, bn=True, lrelu=True)
    x = conv_block(x, params["w2"], params["gamma2"], params["beta2"],
                   stride=2, pad=1, bn=True, lrelu=True)
    x = conv_block(x, params["w3"], params["gamma3"], params["beta3"],
                   stride=2, pad=1, bn=True, lrelu=True)

    # Final Conv2d(1024, 1, 4, 1, 0) + bias: OH=OW=1, Cout=1 -> pure overhead
    # on the Pallas MXU path (masked lane-1 stores); left to XLA as a dot.
    N = x.shape[0]
    x_flat = x.reshape(N, -1).astype(jnp.bfloat16)   # (kh, kw, cin) ordering
    y = jnp.dot(x_flat, params["w4"],
                preferred_element_type=jnp.float32) + params["bias4"]
    return y.reshape(N, 1, 1, 1)                      # NCHW (N,1,1,1)


if __name__ == "__main__":
    key = jax.random.PRNGKey(0)
    key, xk = jax.random.split(key)
    # DCGAN discriminator expects 64x64 RGB images; batch=2 keeps it small.
    x = jax.random.normal(xk, (2, 3, 64, 64), jnp.float32)
    params = init_params(key)

    out = discriminator_forward(x, params)
    out = jax.block_until_ready(out)
    assert out.shape == (2, 1, 1, 1)
    assert bool(jnp.all(jnp.isfinite(out)))
    print("KERNEL_OK")
</pallas_src>

<mosaic_0001>
module attributes {stable_mosaic.version = 11 : i64} {
  func.func @kernel(%arg0: i32, %arg1: i32, %arg2: memref<2048x48xbf16, #tpu.memory_space<vmem>>, %arg3: memref<48x128xbf16, #tpu.memory_space<vmem>>, %arg4: memref<1x128xf32, #tpu.memory_space<vmem>>, %arg5: memref<1x128xf32, #tpu.memory_space<vmem>>, %arg6: memref<2048x128xf32, #tpu.memory_space<vmem>>) attributes {dimension_semantics = [#tpu.dimension_semantics<parallel>, #tpu.dimension_semantics<arbitrary>], iteration_bounds = array<i64: 1, 1>, scalar_prefetch = 0 : i64, scratch_operands = 0 : i64, tpu.core_type = #tpu.core_type<tc>, window_params = [{transform_indices = @transform_0, window_bounds = array<i64: 2048, 48>}, {transform_indices = @transform_1, window_bounds = array<i64: 48, 128>}, {transform_indices = @transform_2, window_bounds = array<i64: 1, 128>}, {transform_indices = @transform_3, window_bounds = array<i64: 1, 128>}, {transform_indices = @transform_4, window_bounds = array<i64: 2048, 128>}]} {
    %c0_i32 = arith.constant 0 : i32
    %0 = arith.cmpi eq, %arg1, %c0_i32 : i32
    %1 = arith.extui %0 : i1 to i32
    %c0_i32_0 = arith.constant 0 : i32
    %2 = arith.cmpi ne, %1, %c0_i32_0 : i32
    scf.if %2 {
      %cst_10 = arith.constant 0.000000e+00 : f32
      %12 = vector.broadcast %cst_10 : f32 to vector<2048x128xf32>
      %c0_11 = arith.constant 0 : index
      %c0_12 = arith.constant 0 : index
      %13 = vector.load %arg6[%c0_11, %c0_12] : memref<2048x128xf32, #tpu.memory_space<vmem>>, vector<2048x128xf32>
      tpu.vector_store %arg6[%c0_11, %c0_12], %12 {strides = array<i32>} : memref<2048x128xf32, #tpu.memory_space<vmem>>, vector<2048x128xf32>,
    } else {
    }
    %c0 = arith.constant 0 : index
    %c0_1 = arith.constant 0 : index
    %3 = vector.load %arg6[%c0, %c0_1] : memref<2048x128xf32, #tpu.memory_space<vmem>>, vector<2048x128xf32>
    %c0_2 = arith.constant 0 : index
    %c0_3 = arith.constant 0 : index
    %4 = vector.load %arg2[%c0_2, %c0_3] : memref<2048x48xbf16, #tpu.memory_space<vmem>>, vector<2048x48xbf16>
    %c0_4 = arith.constant 0 : index
    %c0_5 = arith.constant 0 : index
    %5 = vector.load %arg3[%c0_4, %c0_5] : memref<48x128xbf16, #tpu.memory_space<vmem>>, vector<48x128xbf16>
    %cst = arith.constant dense<0.000000e+00> : vector<2048x128xf32>
    %6 = tpu.matmul %4, %5, %cst {dimension_numbers = #tpu.dot_dimension_numbers<[1], [0], [0], [1], [0, 0, 1, 1], [], []>} : vector<2048x48xbf16>, vector<48x128xbf16>, vector<2048x128xf32> -> vector<2048x128xf32>
    %7 = arith.addf %3, %6 : vector<2048x128xf32>
    %c0_6 = arith.constant 0 : index
    %c0_7 = arith.constant 0 : index
    %8 = vector.load %arg6[%c0_6, %c0_7] : memref<2048x128xf32, #tpu.memory_space<vmem>>, vector<2048x128xf32>
    tpu.vector_store %arg6[%c0_6, %c0_7], %7 {strides = array<i32>} : memref<2048x128xf32, #tpu.memory_space<vmem>>, vector<2048x128xf32>,
    %c0_i32_8 = arith.constant 0 : i32
    %9 = arith.cmpi eq, %arg1, %c0_i32_8 : i32
    %10 = arith.extui %9 : i1 to i32
    %c0_i32_9 = arith.constant 0 : i32
    %11 = arith.cmpi ne, %10, %c0_i32_9 : i32
    scf.if %11 {
      %c0_10 = arith.constant 0 : index
      %c0_11 = arith.constant 0 : index
      %12 = vector.load %arg6[%c0_10, %c0_11] : memref<2048x128xf32, #tpu.memory_space<vmem>>, vector<2048x128xf32>
      %cst_12 = arith.constant 0.000000e+00 : f32
      %13 = vector.broadcast %cst_12 : f32 to vector<2048x128xf32>
      %14 = arith.cmpf ogt, %12, %13 : vector<2048x128xf32>
      %cst_13 = arith.constant 2.000000e-01 : f32
      %15 = vector.broadcast %cst_13 : f32 to vector<2048x128xf32>
      %16 = arith.mulf %15, %12 : vector<2048x128xf32>
      %17 = arith.select %14, %12, %16 : vector<2048x128xi1>, vector<2048x128xf32>
      %c0_14 = arith.constant 0 : index
      %c0_15 = arith.constant 0 : index
      %18 = vector.load %arg6[%c0_14, %c0_15] : memref<2048x128xf32, #tpu.memory_space<vmem>>, vector<2048x128xf32>
      tpu.vector_store %arg6[%c0_14, %c0_15], %17 {strides = array<i32>} : memref<2048x128xf32, #tpu.memory_space<vmem>>, vector<2048x128xf32>,
    } else {
    }
    return
  }
  func.func @transform_0(%arg0: i32, %arg1: i32) -> (i32, i32) {
    %c0_i32 = arith.constant 0 : i32
    %c0_i32_0 = arith.constant 0 : i32
    return %c0_i32, %arg1 : i32, i32
  }
  func.func @transform_1(%arg0: i32, %arg1: i32) -> (i32, i32) {
    %c0_i32 = arith.constant 0 : i32
    return %arg1, %arg0 : i32, i32
  }
  func.func @transform_2(%arg0: i32, %arg1: i32) -> (i32, i32) {
    %c0_i32 = arith.constant 0 : i32
    %c0_i32_0 = arith.constant 0 : i32
    return %c0_i32, %arg0 : i32, i32
  }
  func.func @transform_3(%arg0: i32, %arg1: i32) -> (i32, i32) {
    %c0_i32 = arith.constant 0 : i32
    %c0_i32_0 = arith.constant 0 : i32
    return %c0_i32, %arg0 : i32, i32
  }
  func.func @transform_4(%arg0: i32, %arg1: i32) -> (i32, i32) {
    %c0_i32 = arith.constant 0 : i32
    %c0_i32_0 = arith.constant 0 : i32
    return %c0_i32, %arg0 : i32, i32
  }
}

module attributes {stable_mosaic.version = 11 : i64} {
  func.func @kernel(%arg0: i32, %arg1: i32, %arg2: memref<512x512xbf16, #tpu.memory_space<vmem>>, %arg3: memref<512x128xbf16, #tpu.memory_space<vmem>>, %arg4: memref<1x128xf32, #tpu.memory_space<vmem>>, %arg5: memref<1x128xf32, #tpu.memory_space<vmem>>, %arg6: memref<512x128xf32, #tpu.memory_space<vmem>>) attributes {dimension_semantics = [#tpu.dimension_semantics<parallel>, #tpu.dimension_semantics<arbitrary>], iteration_bounds = array<i64: 2, 4>, scalar_prefetch = 0 : i64, scratch_operands = 0 : i64, tpu.core_type = #tpu.core_type<tc>, window_params = [{transform_indices = @transform_0, window_bounds = array<i64: 512, 512>}, {transform_indices = @transform_1, window_bounds = array<i64: 512, 128>}, {transform_indices = @transform_2, window_bounds = array<i64: 1, 128>}, {transform_indices = @transform_3, window_bounds = array<i64: 1, 128>}, {transform_indices = @transform_4, window_bounds = array<i64: 512, 128>}]} {
    %c0_i32 = arith.constant 0 : i32
    %0 = arith.cmpi eq, %arg1, %c0_i32 : i32
    %1 = arith.extui %0 : i1 to i32
    %c0_i32_0 = arith.constant 0 : i32
    %2 = arith.cmpi ne, %1, %c0_i32_0 : i32
    scf.if %2 {
      %cst_9 = arith.constant 0.000000e+00 : f32
      %12 = vector.broadcast %cst_9 : f32 to vector<512x128xf32>
      %c0_10 = arith.constant 0 : index
      %c0_11 = arith.constant 0 : index
      %13 = vector.load %arg6[%c0_10, %c0_11] : memref<512x128xf32, #tpu.memory_space<vmem>>, vector<512x128xf32>
      tpu.vector_store %arg6[%c0_10, %c0_11], %12 {strides = array<i32>} : memref<512x128xf32, #tpu.memory_space<vmem>>, vector<512x128xf32>,
    } else {
    }
    %c0 = arith.constant 0 : index
    %c0_1 = arith.constant 0 : index
    %3 = vector.load %arg6[%c0, %c0_1] : memref<512x128xf32, #tpu.memory_space<vmem>>, vector<512x128xf32>
    %c0_2 = arith.constant 0 : index
    %c0_3 = arith.constant 0 : index
    %4 = vector.load %arg2[%c0_2, %c0_3] : memref<512x512xbf16, #tpu.memory_space<vmem>>, vector<512x512xbf16>
    %c0_4 = arith.constant 0 : index
    %c0_5 = arith.constant 0 : index
    %5 = vector.load %arg3[%c0_4, %c0_5] : memref<512x128xbf16, #tpu.memory_space<vmem>>, vector<512x128xbf16>
    %cst = arith.constant dense<0.000000e+00> : vector<512x128xf32>
    %6 = tpu.matmul %4, %5, %cst {dimension_numbers = #tpu.dot_dimension_numbers<[1], [0], [0], [1], [0, 0, 1, 1], [], []>} : vector<512x512xbf16>, vector<512x128xbf16>, vector<512x128xf32> -> vector<512x128xf32>
    %7 = arith.addf %3, %6 : vector<512x128xf32>
    %c0_6 = arith.constant 0 : index
    %c0_7 = arith.constant 0 : index
    %8 = vector.load %arg6[%c0_6, %c0_7] : memref<512x128xf32, #tpu.memory_space<vmem>>, vector<512x128xf32>
    tpu.vector_store %arg6[%c0_6, %c0_7], %7 {strides = array<i32>} : memref<512x128xf32, #tpu.memory_space<vmem>>, vector<512x128xf32>,
    %c3_i32 = arith.constant 3 : i32
    %9 = arith.cmpi eq, %arg1, %c3_i32 : i32
    %10 = arith.extui %9 : i1 to i32
    %c0_i32_8 = arith.constant 0 : i32
    %11 = arith.cmpi ne, %10, %c0_i32_8 : i32
    scf.if %11 {
      %c0_9 = arith.constant 0 : index
      %c0_10 = arith.constant 0 : index
      %12 = vector.load %arg6[%c0_9, %c0_10] : memref<512x128xf32, #tpu.memory_space<vmem>>, vector<512x128xf32>
      %cst_11 = arith.constant dense<0.000000e+00> : vector<128xf32>
      %13 = vector.multi_reduction <add>, %12, %cst_11 [0] : vector<512x128xf32> to vector<128xf32>
      %14 = vector.shape_cast %13 : vector<128xf32> to vector<1x128xf32>
      %cst_12 = arith.constant 5.120000e+02 : f32
      %15 = vector.broadcast %cst_12 : f32 to vector<1x128xf32>
      %16 = arith.divf %14, %15 : vector<1x128xf32>
      %17 = arith.mulf %12, %12 : vector<512x128xf32>
      %cst_13 = arith.constant dense<0.000000e+00> : vector<128xf32>
      %18 = vector.multi_reduction <add>, %17, %cst_13 [0] : vector<512x128xf32> to vector<128xf32>
      %19 = vector.shape_cast %18 : vector<128xf32> to vector<1x128xf32>
      %cst_14 = arith.constant 5.120000e+02 : f32
      %20 = vector.broadcast %cst_14 : f32 to vector<1x128xf32>
      %21 = arith.divf %19, %20 : vector<1x128xf32>
      %22 = arith.mulf %16, %16 : vector<1x128xf32>
      %23 = arith.subf %21, %22 : vector<1x128xf32>
      %cst_15 = arith.constant 0.000000e+00 : f32
      %24 = vector.broadcast %cst_15 : f32 to vector<1x128xf32>
      %25 = arith.maximumf %23, %24 : vector<1x128xf32>
      %26 = vector.broadcast %16 : vector<1x128xf32> to vector<512x128xf32>
      %27 = arith.subf %12, %26 : vector<512x128xf32>
      %cst_16 = arith.constant 9.99999974E-6 : f32
      %28 = vector.broadcast %cst_16 : f32 to vector<1x128xf32>
      %29 = arith.addf %25, %28 : vector<1x128xf32>
      %30 = math.rsqrt %29 : vector<1x128xf32>
      %31 = vector.broadcast %30 : vector<1x128xf32> to vector<512x128xf32>
      %32 = arith.mulf %27, %31 : vector<512x128xf32>
      %c0_17 = arith.constant 0 : index
      %c0_18 = arith.constant 0 : index
      %33 = vector.load %arg4[%c0_17, %c0_18] : memref<1x128xf32, #tpu.memory_space<vmem>>, vector<1x128xf32>
      %34 = vector.broadcast %33 : vector<1x128xf32> to vector<512x128xf32>
      %35 = arith.mulf %32, %34 : vector<512x128xf32>
      %c0_19 = arith.constant 0 : index
      %c0_20 = arith.constant 0 : index
      %36 = vector.load %arg5[%c0_19, %c0_20] : memref<1x128xf32, #tpu.memory_space<vmem>>, vector<1x128xf32>
      %37 = vector.broadcast %36 : vector<1x128xf32> to vector<512x128xf32>
      %38 = arith.addf %35, %37 : vector<512x128xf32>
      %cst_21 = arith.constant 0.000000e+00 : f32
      %39 = vector.broadcast %cst_21 : f32 to vector<512x128xf32>
      %40 = arith.cmpf ogt, %38, %39 : vector<512x128xf32>
      %cst_22 = arith.constant 2.000000e-01 : f32
      %41 = vector.broadcast %cst_22 : f32 to vector<512x128xf32>
      %42 = arith.mulf %41, %38 : vector<512x128xf32>
      %43 = arith.select %40, %38, %42 : vector<512x128xi1>, vector<512x128xf32>
      %c0_23 = arith.constant 0 : index
      %c0_24 = arith.constant 0 : index
      %44 = vector.load %arg6[%c0_23, %c0_24] : memref<512x128xf32, #tpu.memory_space<vmem>>, vector<512x128xf32>
      tpu.vector_store %arg6[%c0_23, %c0_24], %43 {strides = array<i32>} : memref<512x128xf32, #tpu.memory_space<vmem>>, vector<512x128xf32>,
    } else {
    }
    return
  }
  func.func @transform_0(%arg0: i32, %arg1: i32) -> (i32, i32) {
    %c0_i32 = arith.constant 0 : i32
    %c0_i32_0 = arith.constant 0 : i32
    return %c0_i32, %arg1 : i32, i32
  }
  func.func @transform_1(%arg0: i32, %arg1: i32) -> (i32, i32) {
    %c0_i32 = arith.constant 0 : i32
    return %arg1, %arg0 : i32, i32
  }
  func.func @transform_2(%arg0: i32, %arg1: i32) -> (i32, i32) {
    %c0_i32 = arith.constant 0 : i32
    %c0_i32_0 = arith.constant 0 : i32
    return %c0_i32, %arg0 : i32, i32
  }
  func.func @transform_3(%arg0: i32, %arg1: i32) -> (i32, i32) {
    %c0_i32 = arith.constant 0 : i32
    %c0_i32_0 = arith.constant 0 : i32
    return %c0_i32, %arg0 : i32, i32
  }
  func.func @transform_4(%arg0: i32, %arg1: i32) -> (i32, i32) {
    %c0_i32 = arith.constant 0 : i32
    %c0_i32_0 = arith.constant 0 : i32
    return %c0_i32, %arg0 : i32, i32
  }
}

module attributes {stable_mosaic.version = 11 : i64} {
  func.func @kernel(%arg0: i32, %arg1: i32, %arg2: memref<128x512xbf16, #tpu.memory_space<vmem>>, %arg3: memref<512x256xbf16, #tpu.memory_space<vmem>>, %arg4: memref<1x256xf32, #tpu.memory_space<vmem>>, %arg5: memref<1x256xf32, #tpu.memory_space<vmem>>, %arg6: memref<128x256xf32, #tpu.memory_space<vmem>>) attributes {dimension_semantics = [#tpu.dimension_semantics<parallel>, #tpu.dimension_semantics<arbitrary>], iteration_bounds = array<i64: 2, 8>, scalar_prefetch = 0 : i64, scratch_operands = 0 : i64, tpu.core_type = #tpu.core_type<tc>, window_params = [{transform_indices = @transform_0, window_bounds = array<i64: 128, 512>}, {transform_indices = @transform_1, window_bounds = array<i64: 512, 256>}, {transform_indices = @transform_2, window_bounds = array<i64: 1, 256>}, {transform_indices = @transform_3, window_bounds = array<i64: 1, 256>}, {transform_indices = @transform_4, window_bounds = array<i64: 128, 256>}]} {
    %c0_i32 = arith.constant 0 : i32
    %0 = arith.cmpi eq, %arg1, %c0_i32 : i32
    %1 = arith.extui %0 : i1 to i32
    %c0_i32_0 = arith.constant 0 : i32
    %2 = arith.cmpi ne, %1, %c0_i32_0 : i32
    scf.if %2 {
      %cst_9 = arith.constant 0.000000e+00 : f32
      %12 = vector.broadcast %cst_9 : f32 to vector<128x256xf32>
      %c0_10 = arith.constant 0 : index
      %c0_11 = arith.constant 0 : index
      %13 = vector.load %arg6[%c0_10, %c0_11] : memref<128x256xf32, #tpu.memory_space<vmem>>, vector<128x256xf32>
      tpu.vector_store %arg6[%c0_10, %c0_11], %12 {strides = array<i32>} : memref<128x256xf32, #tpu.memory_space<vmem>>, vector<128x256xf32>,
    } else {
    }
    %c0 = arith.constant 0 : index
    %c0_1 = arith.constant 0 : index
    %3 = vector.load %arg6[%c0, %c0_1] : memref<128x256xf32, #tpu.memory_space<vmem>>, vector<128x256xf32>
    %c0_2 = arith.constant 0 : index
    %c0_3 = arith.constant 0 : index
    %4 = vector.load %arg2[%c0_2, %c0_3] : memref<128x512xbf16, #tpu.memory_space<vmem>>, vector<128x512xbf16>
    %c0_4 = arith.constant 0 : index
    %c0_5 = arith.constant 0 : index
    %5 = vector.load %arg3[%c0_4, %c0_5] : memref<512x256xbf16, #tpu.memory_space<vmem>>, vector<512x256xbf16>
    %cst = arith.constant dense<0.000000e+00> : vector<128x256xf32>
    %6 = tpu.matmul %4, %5, %cst {dimension_numbers = #tpu.dot_dimension_numbers<[1], [0], [0], [1], [0, 0, 1, 1], [], []>} : vector<128x512xbf16>, vector<512x256xbf16>, vector<128x256xf32> -> vector<128x256xf32>
    %7 = arith.addf %3, %6 : vector<128x256xf32>
    %c0_6 = arith.constant 0 : index
    %c0_7 = arith.constant 0 : index
    %8 = vector.load %arg6[%c0_6, %c0_7] : memref<128x256xf32, #tpu.memory_space<vmem>>, vector<128x256xf32>
    tpu.vector_store %arg6[%c0_6, %c0_7], %7 {strides = array<i32>} : memref<128x256xf32, #tpu.memory_space<vmem>>, vector<128x256xf32>,
    %c7_i32 = arith.constant 7 : i32
    %9 = arith.cmpi eq, %arg1, %c7_i32 : i32
    %10 = arith.extui %9 : i1 to i32
    %c0_i32_8 = arith.constant 0 : i32
    %11 = arith.cmpi ne, %10, %c0_i32_8 : i32
    scf.if %11 {
      %c0_9 = arith.constant 0 : index
      %c0_10 = arith.constant 0 : index
      %12 = vector.load %arg6[%c0_9, %c0_10] : memref<128x256xf32, #tpu.memory_space<vmem>>, vector<128x256xf32>
      %cst_11 = arith.constant dense<0.000000e+00> : vector<256xf32>
      %13 = vector.multi_reduction <add>, %12, %cst_11 [0] : vector<128x256xf32> to vector<256xf32>
      %14 = vector.shape_cast %13 : vector<256xf32> to vector<1x256xf32>
      %cst_12 = arith.constant 1.280000e+02 : f32
      %15 = vector.broadcast %cst_12 : f32 to vector<1x256xf32>
      %16 = arith.divf %14, %15 : vector<1x256xf32>
      %17 = arith.mulf %12, %12 : vector<128x256xf32>
      %cst_13 = arith.constant dense<0.000000e+00> : vector<256xf32>
      %18 = vector.multi_reduction <add>, %17, %cst_13 [0] : vector<128x256xf32> to vector<256xf32>
      %19 = vector.shape_cast %18 : vector<256xf32> to vector<1x256xf32>
      %cst_14 = arith.constant 1.280000e+02 : f32
      %20 = vector.broadcast %cst_14 : f32 to vector<1x256xf32>
      %21 = arith.divf %19, %20 : vector<1x256xf32>
      %22 = arith.mulf %16, %16 : vector<1x256xf32>
      %23 = arith.subf %21, %22 : vector<1x256xf32>
      %cst_15 = arith.constant 0.000000e+00 : f32
      %24 = vector.broadcast %cst_15 : f32 to vector<1x256xf32>
      %25 = arith.maximumf %23, %24 : vector<1x256xf32>
      %26 = vector.broadcast %16 : vector<1x256xf32> to vector<128x256xf32>
      %27 = arith.subf %12, %26 : vector<128x256xf32>
      %cst_16 = arith.constant 9.99999974E-6 : f32
      %28 = vector.broadcast %cst_16 : f32 to vector<1x256xf32>
      %29 = arith.addf %25, %28 : vector<1x256xf32>
      %30 = math.rsqrt %29 : vector<1x256xf32>
      %31 = vector.broadcast %30 : vector<1x256xf32> to vector<128x256xf32>
      %32 = arith.mulf %27, %31 : vector<128x256xf32>
      %c0_17 = arith.constant 0 : index
      %c0_18 = arith.constant 0 : index
      %33 = vector.load %arg4[%c0_17, %c0_18] : memref<1x256xf32, #tpu.memory_space<vmem>>, vector<1x256xf32>
      %34 = vector.broadcast %33 : vector<1x256xf32> to vector<128x256xf32>
      %35 = arith.mulf %32, %34 : vector<128x256xf32>
      %c0_19 = arith.constant 0 : index
      %c0_20 = arith.constant 0 : index
      %36 = vector.load %arg5[%c0_19, %c0_20] : memref<1x256xf32, #tpu.memory_space<vmem>>, vector<1x256xf32>
      %37 = vector.broadcast %36 : vector<1x256xf32> to vector<128x256xf32>
      %38 = arith.addf %35, %37 : vector<128x256xf32>
      %cst_21 = arith.constant 0.000000e+00 : f32
      %39 = vector.broadcast %cst_21 : f32 to vector<128x256xf32>
      %40 = arith.cmpf ogt, %38, %39 : vector<128x256xf32>
      %cst_22 = arith.constant 2.000000e-01 : f32
      %41 = vector.broadcast %cst_22 : f32 to vector<128x256xf32>
      %42 = arith.mulf %41, %38 : vector<128x256xf32>
      %43 = arith.select %40, %38, %42 : vector<128x256xi1>, vector<128x256xf32>
      %c0_23 = arith.constant 0 : index
      %c0_24 = arith.constant 0 : index
      %44 = vector.load %arg6[%c0_23, %c0_24] : memref<128x256xf32, #tpu.memory_space<vmem>>, vector<128x256xf32>
      tpu.vector_store %arg6[%c0_23, %c0_24], %43 {strides = array<i32>} : memref<128x256xf32, #tpu.memory_space<vmem>>, vector<128x256xf32>,
    } else {
    }
    return
  }
  func.func @transform_0(%arg0: i32, %arg1: i32) -> (i32, i32) {
    %c0_i32 = arith.constant 0 : i32
    %c0_i32_0 = arith.constant 0 : i32
    return %c0_i32, %arg1 : i32, i32
  }
  func.func @transform_1(%arg0: i32, %arg1: i32) -> (i32, i32) {
    %c0_i32 = arith.constant 0 : i32
    return %arg1, %arg0 : i32, i32
  }
  func.func @transform_2(%arg0: i32, %arg1: i32) -> (i32, i32) {
    %c0_i32 = arith.constant 0 : i32
    %c0_i32_0 = arith.constant 0 : i32
    return %c0_i32, %arg0 : i32, i32
  }
  func.func @transform_3(%arg0: i32, %arg1: i32) -> (i32, i32) {
    %c0_i32 = arith.constant 0 : i32
    %c0_i32_0 = arith.constant 0 : i32
    return %c0_i32, %arg0 : i32, i32
  }
  func.func @transform_4(%arg0: i32, %arg1: i32) -> (i32, i32) {
    %c0_i32 = arith.constant 0 : i32
    %c0_i32_0 = arith.constant 0 : i32
    return %c0_i32, %arg0 : i32, i32
  }
}

module attributes {stable_mosaic.version = 11 : i64} {
  func.func @kernel(%arg0: i32, %arg1: i32, %arg2: memref<32x512xbf16, #tpu.memory_space<vmem>>, %arg3: memref<512x512xbf16, #tpu.memory_space<vmem>>, %arg4: memref<1x512xf32, #tpu.memory_space<vmem>>, %arg5: memref<1x512xf32, #tpu.memory_space<vmem>>, %arg6: memref<32x512xf32, #tpu.memory_space<vmem>>) attributes {dimension_semantics = [#tpu.dimension_semantics<parallel>, #tpu.dimension_semantics<arbitrary>], iteration_bounds = array<i64: 2, 16>, scalar_prefetch = 0 : i64, scratch_operands = 0 : i64, tpu.core_type = #tpu.core_type<tc>, window_params = [{transform_indices = @transform_0, window_bounds = array<i64: 32, 512>}, {transform_indices = @transform_1, window_bounds = array<i64: 512, 512>}, {transform_indices = @transform_2, window_bounds = array<i64: 1, 512>}, {transform_indices = @transform_3, window_bounds = array<i64: 1, 512>}, {transform_indices = @transform_4, window_bounds = array<i64: 32, 512>}]} {
    %c0_i32 = arith.constant 0 : i32
    %0 = arith.cmpi eq, %arg1, %c0_i32 : i32
    %1 = arith.extui %0 : i1 to i32
    %c0_i32_0 = arith.constant 0 : i32
    %2 = arith.cmpi ne, %1, %c0_i32_0 : i32
    scf.if %2 {
      %cst_9 = arith.constant 0.000000e+00 : f32
      %12 = vector.broadcast %cst_9 : f32 to vector<32x512xf32>
      %c0_10 = arith.constant 0 : index
      %c0_11 = arith.constant 0 : index
      %13 = vector.load %arg6[%c0_10, %c0_11] : memref<32x512xf32, #tpu.memory_space<vmem>>, vector<32x512xf32>
      tpu.vector_store %arg6[%c0_10, %c0_11], %12 {strides = array<i32>} : memref<32x512xf32, #tpu.memory_space<vmem>>, vector<32x512xf32>,
    } else {
    }
    %c0 = arith.constant 0 : index
    %c0_1 = arith.constant 0 : index
    %3 = vector.load %arg6[%c0, %c0_1] : memref<32x512xf32, #tpu.memory_space<vmem>>, vector<32x512xf32>
    %c0_2 = arith.constant 0 : index
    %c0_3 = arith.constant 0 : index
    %4 = vector.load %arg2[%c0_2, %c0_3] : memref<32x512xbf16, #tpu.memory_space<vmem>>, vector<32x512xbf16>
    %c0_4 = arith.constant 0 : index
    %c0_5 = arith.constant 0 : index
    %5 = vector.load %arg3[%c0_4, %c0_5] : memref<512x512xbf16, #tpu.memory_space<vmem>>, vector<512x512xbf16>
    %cst = arith.constant dense<0.000000e+00> : vector<32x512xf32>
    %6 = tpu.matmul %4, %5, %cst {dimension_numbers = #tpu.dot_dimension_numbers<[1], [0], [0], [1], [0, 0, 1, 1], [], []>} : vector<32x512xbf16>, vector<512x512xbf16>, vector<32x512xf32> -> vector<32x512xf32>
    %7 = arith.addf %3, %6 : vector<32x512xf32>
    %c0_6 = arith.constant 0 : index
    %c0_7 = arith.constant 0 : index
    %8 = vector.load %arg6[%c0_6, %c0_7] : memref<32x512xf32, #tpu.memory_space<vmem>>, vector<32x512xf32>
    tpu.vector_store %arg6[%c0_6, %c0_7], %7 {strides = array<i32>} : memref<32x512xf32, #tpu.memory_space<vmem>>, vector<32x512xf32>,
    %c15_i32 = arith.constant 15 : i32
    %9 = arith.cmpi eq, %arg1, %c15_i32 : i32
    %10 = arith.extui %9 : i1 to i32
    %c0_i32_8 = arith.constant 0 : i32
    %11 = arith.cmpi ne, %10, %c0_i32_8 : i32
    scf.if %11 {
      %c0_9 = arith.constant 0 : index
      %c0_10 = arith.constant 0 : index
      %12 = vector.load %arg6[%c0_9, %c0_10] : memref<32x512xf32, #tpu.memory_space<vmem>>, vector<32x512xf32>
      %cst_11 = arith.constant dense<0.000000e+00> : vector<512xf32>
      %13 = vector.multi_reduction <add>, %12, %cst_11 [0] : vector<32x512xf32> to vector<512xf32>
      %14 = vector.shape_cast %13 : vector<512xf32> to vector<1x512xf32>
      %cst_12 = arith.constant 3.200000e+01 : f32
      %15 = vector.broadcast %cst_12 : f32 to vector<1x512xf32>
      %16 = arith.divf %14, %15 : vector<1x512xf32>
      %17 = arith.mulf %12, %12 : vector<32x512xf32>
      %cst_13 = arith.constant dense<0.000000e+00> : vector<512xf32>
      %18 = vector.multi_reduction <add>, %17, %cst_13 [0] : vector<32x512xf32> to vector<512xf32>
      %19 = vector.shape_cast %18 : vector<512xf32> to vector<1x512xf32>
      %cst_14 = arith.constant 3.200000e+01 : f32
      %20 = vector.broadcast %cst_14 : f32 to vector<1x512xf32>
      %21 = arith.divf %19, %20 : vector<1x512xf32>
      %22 = arith.mulf %16, %16 : vector<1x512xf32>
      %23 = arith.subf %21, %22 : vector<1x512xf32>
      %cst_15 = arith.constant 0.000000e+00 : f32
      %24 = vector.broadcast %cst_15 : f32 to vector<1x512xf32>
      %25 = arith.maximumf %23, %24 : vector<1x512xf32>
      %26 = vector.broadcast %16 : vector<1x512xf32> to vector<32x512xf32>
      %27 = arith.subf %12, %26 : vector<32x512xf32>
      %cst_16 = arith.constant 9.99999974E-6 : f32
      %28 = vector.broadcast %cst_16 : f32 to vector<1x512xf32>
      %29 = arith.addf %25, %28 : vector<1x512xf32>
      %30 = math.rsqrt %29 : vector<1x512xf32>
      %31 = vector.broadcast %30 : vector<1x512xf32> to vector<32x512xf32>
      %32 = arith.mulf %27, %31 : vector<32x512xf32>
      %c0_17 = arith.constant 0 : index
      %c0_18 = arith.constant 0 : index
      %33 = vector.load %arg4[%c0_17, %c0_18] : memref<1x512xf32, #tpu.memory_space<vmem>>, vector<1x512xf32>
      %34 = vector.broadcast %33 : vector<1x512xf32> to vector<32x512xf32>
      %35 = arith.mulf %32, %34 : vector<32x512xf32>
      %c0_19 = arith.constant 0 : index
      %c0_20 = arith.constant 0 : index
      %36 = vector.load %arg5[%c0_19, %c0_20] : memref<1x512xf32, #tpu.memory_space<vmem>>, vector<1x512xf32>
      %37 = vector.broadcast %36 : vector<1x512xf32> to vector<32x512xf32>
      %38 = arith.addf %35, %37 : vector<32x512xf32>
      %cst_21 = arith.constant 0.000000e+00 : f32
      %39 = vector.broadcast %cst_21 : f32 to vector<32x512xf32>
      %40 = arith.cmpf ogt, %38, %39 : vector<32x512xf32>
      %cst_22 = arith.constant 2.000000e-01 : f32
      %41 = vector.broadcast %cst_22 : f32 to vector<32x512xf32>
      %42 = arith.mulf %41, %38 : vector<32x512xf32>
      %43 = arith.select %40, %38, %42 : vector<32x512xi1>, vector<32x512xf32>
      %c0_23 = arith.constant 0 : index
      %c0_24 = arith.constant 0 : index
      %44 = vector.load %arg6[%c0_23, %c0_24] : memref<32x512xf32, #tpu.memory_space<vmem>>, vector<32x512xf32>
      tpu.vector_store %arg6[%c0_23, %c0_24], %43 {strides = array<i32>} : memref<32x512xf32, #tpu.memory_space<vmem>>, vector<32x512xf32>,
    } else {
    }
    return
  }
  func.func @transform_0(%arg0: i32, %arg1: i32) -> (i32, i32) {
    %c0_i32 = arith.constant 0 : i32
    %c0_i32_0 = arith.constant 0 : i32
    return %c0_i32, %arg1 : i32, i32
  }
  func.func @transform_1(%arg0: i32, %arg1: i32) -> (i32, i32) {
    %c0_i32 = arith.constant 0 : i32
    return %arg1, %arg0 : i32, i32
  }
  func.func @transform_2(%arg0: i32, %arg1: i32) -> (i32, i32) {
    %c0_i32 = arith.constant 0 : i32
    %c0_i32_0 = arith.constant 0 : i32
    return %c0_i32, %arg0 : i32, i32
  }
  func.func @transform_3(%arg0: i32, %arg1: i32) -> (i32, i32) {
    %c0_i32 = arith.constant 0 : i32
    %c0_i32_0 = arith.constant 0 : i32
    return %c0_i32, %arg0 : i32, i32
  }
  func.func @transform_4(%arg0: i32, %arg1: i32) -> (i32, i32) {
    %c0_i32 = arith.constant 0 : i32
    %c0_i32_0 = arith.constant 0 : i32
    return %c0_i32, %arg0 : i32, i32
  }
}

</mosaic_0001>

<bundles_post_ra>
// kernel: discriminator_forward.4
= control target key start
LH: loop header
LB: loop body
LE: loop exit
PB: predicated region body
PF: predicated region fallthrough
CT: control target
= control target key end

     0   :  { %vm1454_vm0 = vcmask 392192   ;;  %s6799_s1 = inlined_call_operand.vmem [shape: bf16[48,128], index: 1, kind: input, shape index: {}]   ;;  %s6800_s2 = inlined_call_operand.vmem [shape: f32[1,128], index: 2, kind: input, shape index: {}]   ;;  %s6801_s3 = inlined_call_operand.vmem [shape: f32[1,128], index: 3, kind: input, shape index: {}]   ;;  %s6802_s0 = inlined_call_operand.vmem [shape: bf16[2048,48], index: 0, kind: input, shape index: {}]   ;;  %s6803_s4 = inlined_call_operand.vmem [shape: f32[2048,128], index: 4, kind: output, shape index: {}]  }
   0x1   :  { %v5354_v0 = vld [vmem:[%s6799_s1 + $0x10] sm:$0xff]   ;;  %v5355_v1 = vld [vmem:[%s6799_s1 + $0x8] sm:$0xff]   ;;  %v5356_v2 = vld [vmem:[%s6799_s1] sm:$0xff]  }
   0x2   :  { %5085 = vmatprep.subr.bf16.mxu0 %v5354_v0  ;;  %5347 = vmatprep.subr.bf16.mxu1 %v5354_v0  ;;  %v5357_v3 = vld [vmem:[%s6802_s0] sm:$0xff]   ;;  %v5359_v5 = vld [vmem:[%s6802_s0 + $0x8] sm:$0xff]   ;;  %v5361_v7 = vld [vmem:[%s6802_s0 + $0x10] sm:$0xff]  }
   0x3   :  { %5086 = vmatpush3.bf16.msra.mxu0 %v5354_v0  ;;  %5350 = vmatpush3.bf16.msra.mxu1 %v5354_v0  ;;  %v5358_v4 = vld [vmem:[%s6802_s0 + $0x200] sm:$0xff]   ;;  %v5360_v6 = vld [vmem:[%s6802_s0 + $0x208] sm:$0xff]   ;;  %v5362_v8 = vld [vmem:[%s6802_s0 + $0x210] sm:$0xff]  }
   0x4   :  { %5087 = vmatprep.subr.bf16.mxu0 %v5355_v1  ;;  %5348 = vmatprep.subr.bf16.mxu1 %v5355_v1  ;;  %v5363_v9 = vld [vmem:[%s6802_s0 + $0x18] sm:$0xff]   ;;  %v5365_v11 = vld [vmem:[%s6802_s0 + $0x20] sm:$0xff]   ;;  %v5367_v13 = vld [vmem:[%s6802_s0 + $0x28] sm:$0xff]  }
   0x5   :  { %5091 = vmatprep.mubr.msk.bf16.mxu0 %vm1454_vm0, %v5357_v3  ;;  %5219 = vmatprep.mubr.msk.bf16.mxu1 %vm1454_vm0, %v5358_v4  ;;  %v5364_v10 = vld [vmem:[%s6802_s0 + $0x218] sm:$0xff]   ;;  %v5366_v12 = vld [vmem:[%s6802_s0 + $0x220] sm:$0xff]   ;;  %v5368_v14 = vld [vmem:[%s6802_s0 + $0x228] sm:$0xff]  }
   0x6   :  { %v5369_v15 = vld [vmem:[%s6802_s0 + $0x30] sm:$0xff]   ;;  %v5371_v17 = vld [vmem:[%s6802_s0 + $0x38] sm:$0xff]   ;;  %v5373_v19 = vld [vmem:[%s6802_s0 + $0x40] sm:$0xff]  }
   0x7   :  { %5088 = vmatpush3.bf16.msra.mxu0 %v5355_v1  ;;  %5351 = vmatpush3.bf16.msra.mxu1 %v5355_v1  ;;  %v5370_v16 = vld [vmem:[%s6802_s0 + $0x230] sm:$0xff]   ;;  %v5372_v18 = vld [vmem:[%s6802_s0 + $0x238] sm:$0xff]   ;;  %v5374_v20 = vld [vmem:[%s6802_s0 + $0x240] sm:$0xff]  }
   0x8   :  { %5089 = vmatprep.subr.bf16.mxu0 %v5356_v2  ;;  %5349 = vmatprep.subr.bf16.mxu1 %v5356_v2  ;;  %v5375_v21 = vld [vmem:[%s6802_s0 + $0x48] sm:$0xff]   ;;  %v5377_v23 = vld [vmem:[%s6802_s0 + $0x50] sm:$0xff]   ;;  %v5379_v25 = vld [vmem:[%s6802_s0 + $0x58] sm:$0xff]  }
   0x9   :  { %v5376_v22 = vld [vmem:[%s6802_s0 + $0x248] sm:$0xff]   ;;  %v5378_v24 = vld [vmem:[%s6802_s0 + $0x250] sm:$0xff]   ;;  %v5380_v26 = vld [vmem:[%s6802_s0 + $0x258] sm:$0xff]  }
   0xa   :  { %v5381_v27 = vld [vmem:[%s6802_s0 + $0x60] sm:$0xff]   ;;  %v5383_v29 = vld [vmem:[%s6802_s0 + $0x68] sm:$0xff]   ;;  %v5385_v31 = vld [vmem:[%s6802_s0 + $0x70] sm:$0xff]  }
   0xb   :  { %5090 = vmatpush3.bf16.msra.mxu0 %v5356_v2  ;;  %5352 = vmatpush3.bf16.msra.mxu1 %v5356_v2  ;;  %v5382_v28 = vld [vmem:[%s6802_s0 + $0x260] sm:$0xff]   ;;  %v5384_v30 = vld [vmem:[%s6802_s0 + $0x268] sm:$0xff]   ;;  %v5386_v32 = vld [vmem:[%s6802_s0 + $0x270] sm:$0xff]  }
   0xc   :  { %v5387_v33 = vld [vmem:[%s6802_s0 + $0x78] sm:$0xff]   ;;  %v5389_v35 = vld [vmem:[%s6802_s0 + $0x80] sm:$0xff]   ;;  %v5391_v37 = vld [vmem:[%s6802_s0 + $0x88] sm:$0xff]  }
   0xd   :  { %v5388_v34 = vld [vmem:[%s6802_s0 + $0x278] sm:$0xff]   ;;  %v5390_v36 = vld [vmem:[%s6802_s0 + $0x280] sm:$0xff]   ;;  %v5392_v38 = vld [vmem:[%s6802_s0 + $0x288] sm:$0xff]  }
   0xe   :  { %5092 = vmatmul.mubr.msk.bf16.vlgmr.msra.gmra.mxu0 %vm1454_vm0, %v5359_v5  ;;  %5220 = vmatmul.mubr.msk.bf16.vlgmr.msra.gmra.mxu1 %vm1454_vm0, %v5360_v6  ;;  %v5393_v39 = vld [vmem:[%s6802_s0 + $0x90] sm:$0xff]   ;;  %v5395_v41 = vld [vmem:[%s6802_s0 + $0x98] sm:$0xff]   ;;  %v5397_v43 = vld [vmem:[%s6802_s0 + $0xa0] sm:$0xff]  }
   0xf   :  { %5095 = vmatprep.mubr.msk.bf16.mxu0 %vm1454_vm0, %v5361_v7  ;;  %5223 = vmatprep.mubr.msk.bf16.mxu1 %vm1454_vm0, %v5362_v8  ;;  %v5394_v40 = vld [vmem:[%s6802_s0 + $0x290] sm:$0xff]   ;;  %v5396_v42 = vld [vmem:[%s6802_s0 + $0x298] sm:$0xff]   ;;  %v5398_v44 = vld [vmem:[%s6802_s0 + $0x2a0] sm:$0xff]  }
  0x10   :  { %v5399_v45 = vld [vmem:[%s6802_s0 + $0xa8] sm:$0xff]   ;;  %v5401_v47 = vld [vmem:[%s6802_s0 + $0xb0] sm:$0xff]   ;;  %v5403_v49 = vld [vmem:[%s6802_s0 + $0xb8] sm:$0xff]  }
  0x11   :  { %v5400_v46 = vld [vmem:[%s6802_s0 + $0x2a8] sm:$0xff]   ;;  %v5402_v48 = vld [vmem:[%s6802_s0 + $0x2b0] sm:$0xff]   ;;  %v5404_v50 = vld [vmem:[%s6802_s0 + $0x2b8] sm:$0xff]  }
  0x12   :  { %v5405_v51 = vld [vmem:[%s6802_s0 + $0xc0] sm:$0xff]   ;;  %v5407_v53 = vld [vmem:[%s6802_s0 + $0xc8] sm:$0xff]   ;;  %v5409_v55 = vld [vmem:[%s6802_s0 + $0xd0] sm:$0xff]  }
  0x13   :  { %v5406_v52 = vld [vmem:[%s6802_s0 + $0x2c0] sm:$0xff]   ;;  %v5408_v54 = vld [vmem:[%s6802_s0 + $0x2c8] sm:$0xff]   ;;  %v5410_v56 = vld [vmem:[%s6802_s0 + $0x2d0] sm:$0xff]  }
  0x14   :  { %v5411_v57 = vld [vmem:[%s6802_s0 + $0xd8] sm:$0xff]   ;;  %v5413_v59 = vld [vmem:[%s6802_s0 + $0xe0] sm:$0xff]   ;;  %v5415_v61 = vld [vmem:[%s6802_s0 + $0xe8] sm:$0xff]  }
  0x15   :  { %v5412_v58 = vld [vmem:[%s6802_s0 + $0x2d8] sm:$0xff]   ;;  %v5414_v60 = vld [vmem:[%s6802_s0 + $0x2e0] sm:$0xff]   ;;  %v5416_v62 = vld [vmem:[%s6802_s0 + $0x2e8] sm:$0xff]  }
  0x16   :  { %5096 = vmatmul.mubr.msk.bf16.gmra.mxu0 %vm1454_vm0, %v5363_v9  ;;  %5224 = vmatmul.mubr.msk.bf16.gmra.mxu1 %vm1454_vm0, %v5364_v10  ;;  %v5417_v63 = vld [vmem:[%s6802_s0 + $0xf0] sm:$0xff]   ;;  %v5419_v1 = vld [vmem:[%s6802_s0 + $0xf8] sm:$0xff]   ;;  %v5421_v3 = vld [vmem:[%s6802_s0 + $0x100] sm:$0xff]  }
  0x17   :  { %5099 = vmatprep.mubr.msk.bf16.mxu0 %vm1454_vm0, %v5365_v11  ;;  %5227 = vmatprep.mubr.msk.bf16.mxu1 %vm1454_vm0, %v5366_v12  ;;  %v5418_v0 = vld [vmem:[%s6802_s0 + $0x2f0] sm:$0xff]   ;;  %v5420_v2 = vld [vmem:[%s6802_s0 + $0x2f8] sm:$0xff]   ;;  %v5422_v4 = vld [vmem:[%s6802_s0 + $0x300] sm:$0xff]  }
  0x18   :  { %v5423_v5 = vld [vmem:[%s6802_s0 + $0x108] sm:$0xff]   ;;  %v5425_v7 = vld [vmem:[%s6802_s0 + $0x110] sm:$0xff]   ;;  %v5427_v9 = vld [vmem:[%s6802_s0 + $0x118] sm:$0xff]  }
  0x19   :  { %v5424_v6 = vld [vmem:[%s6802_s0 + $0x308] sm:$0xff]   ;;  %v5426_v8 = vld [vmem:[%s6802_s0 + $0x310] sm:$0xff]   ;;  %v5428_v10 = vld [vmem:[%s6802_s0 + $0x318] sm:$0xff]  }
  0x1a   :  { %v5429_v11 = vld [vmem:[%s6802_s0 + $0x120] sm:$0xff]  }
  0x1b   :  { %v5430_v12 = vld [vmem:[%s6802_s0 + $0x320] sm:$0xff]  }
  0x1e   :  { %5100 = vmatmul.mubr.msk.bf16.gmra.mxu0 %vm1454_vm0, %v5367_v13  ;;  %5228 = vmatmul.mubr.msk.bf16.gmra.mxu1 %vm1454_vm0, %v5368_v14  ;;  %v5431_v13 = vld [vmem:[%s6802_s0 + $0x128] sm:$0xff]  }
  0x1f   :  { %5103 = vmatprep.mubr.msk.bf16.mxu0 %vm1454_vm0, %v5369_v15  ;;  %5231 = vmatprep.mubr.msk.bf16.mxu1 %vm1454_vm0, %v5370_v16  ;;  %v5432_v14 = vld [vmem:[%s6802_s0 + $0x328] sm:$0xff]   ;;  %v5433_v15 = vld [vmem:[%s6802_s0 + $0x130] sm:$0xff]  }
  0x20   :  { %v5434_v16 = vld [vmem:[%s6802_s0 + $0x330] sm:$0xff]  }
  0x26   :  { %5104 = vmatmul.mubr.msk.bf16.gmra.mxu0 %vm1454_vm0, %v5371_v17  ;;  %5232 = vmatmul.mubr.msk.bf16.gmra.mxu1 %vm1454_vm0, %v5372_v18  ;;  %v5435_v17 = vld [vmem:[%s6802_s0 + $0x138] sm:$0xff]  }
  0x27   :  { %5107 = vmatprep.mubr.msk.bf16.mxu0 %vm1454_vm0, %v5373_v19  ;;  %5235 = vmatprep.mubr.msk.bf16.mxu1 %vm1454_vm0, %v5374_v20  ;;  %v5436_v18 = vld [vmem:[%s6802_s0 + $0x338] sm:$0xff]   ;;  %v5437_v19 = vld [vmem:[%s6802_s0 + $0x140] sm:$0xff]  }
  0x28   :  { %v5438_v20 = vld [vmem:[%s6802_s0 + $0x340] sm:$0xff]  }
  0x2e   :  { %5108 = vmatmul.mubr.msk.bf16.gmra.mxu0 %vm1454_vm0, %v5375_v21  ;;  %5236 = vmatmul.mubr.msk.bf16.gmra.mxu1 %vm1454_vm0, %v5376_v22  ;;  %v5439_v21 = vld [vmem:[%s6802_s0 + $0x148] sm:$0xff]  }
  0x2f   :  { %5111 = vmatprep.mubr.msk.bf16.mxu0 %vm1454_vm0, %v5377_v23  ;;  %5239 = vmatprep.mubr.msk.bf16.mxu1 %vm1454_vm0, %v5378_v24  ;;  %v5440_v22 = vld [vmem:[%s6802_s0 + $0x348] sm:$0xff]   ;;  %v5441_v23 = vld [vmem:[%s6802_s0 + $0x150] sm:$0xff]  }
  0x30   :  { %v5442_v24 = vld [vmem:[%s6802_s0 + $0x350] sm:$0xff]  }
  0x36   :  { %5112 = vmatmul.mubr.msk.bf16.gmra.mxu0 %vm1454_vm0, %v5379_v25  ;;  %5240 = vmatmul.mubr.msk.bf16.gmra.mxu1 %vm1454_vm0, %v5380_v26  ;;  %v5443_v25 = vld [vmem:[%s6802_s0 + $0x158] sm:$0xff]  }
  0x37   :  { %5115 = vmatprep.mubr.msk.bf16.mxu0 %vm1454_vm0, %v5381_v27  ;;  %5243 = vmatprep.mubr.msk.bf16.mxu1 %vm1454_vm0, %v5382_v28  ;;  %v5444_v26 = vld [vmem:[%s6802_s0 + $0x358] sm:$0xff]   ;;  %v5445_v27 = vld [vmem:[%s6802_s0 + $0x160] sm:$0xff]  }
  0x38   :  { %v5446_v28 = vld [vmem:[%s6802_s0 + $0x360] sm:$0xff]  }
  0x3e   :  { %5116 = vmatmul.mubr.msk.bf16.gmra.mxu0 %vm1454_vm0, %v5383_v29  ;;  %5244 = vmatmul.mubr.msk.bf16.gmra.mxu1 %vm1454_vm0, %v5384_v30  ;;  %v5447_v29 = vld [vmem:[%s6802_s0 + $0x168] sm:$0xff]  }
  0x3f   :  { %5119 = vmatprep.mubr.msk.bf16.mxu0 %vm1454_vm0, %v5385_v31  ;;  %5247 = vmatprep.mubr.msk.bf16.mxu1 %vm1454_vm0, %v5386_v32  ;;  %v5448_v30 = vld [vmem:[%s6802_s0 + $0x368] sm:$0xff]   ;;  %v5449_v31 = vld [vmem:[%s6802_s0 + $0x170] sm:$0xff]  }
  0x40   :  { %v5450_v32 = vld [vmem:[%s6802_s0 + $0x370] sm:$0xff]  }
  0x46   :  { %5120 = vmatmul.mubr.msk.bf16.gmra.mxu0 %vm1454_vm0, %v5387_v33  ;;  %5248 = vmatmul.mubr.msk.bf16.gmra.mxu1 %vm1454_vm0, %v5388_v34  ;;  %v5451_v33 = vld [vmem:[%s6802_s0 + $0x178] sm:$0xff]  }
  0x47   :  { %5123 = vmatprep.mubr.msk.bf16.mxu0 %vm1454_vm0, %v5389_v35  ;;  %5251 = vmatprep.mubr.msk.bf16.mxu1 %vm1454_vm0, %v5390_v36  ;;  %v5452_v34 = vld [vmem:[%s6802_s0 + $0x378] sm:$0xff]   ;;  %v5453_v35 = vld [vmem:[%s6802_s0 + $0x180] sm:$0xff]  }
  0x48   :  { %v5454_v36 = vld [vmem:[%s6802_s0 + $0x380] sm:$0xff]  }
  0x4e   :  { %5124 = vmatmul.mubr.msk.bf16.gmra.mxu0 %vm1454_vm0, %v5391_v37  ;;  %5252 = vmatmul.mubr.msk.bf16.gmra.mxu1 %vm1454_vm0, %v5392_v38  ;;  %v5455_v37 = vld [vmem:[%s6802_s0 + $0x188] sm:$0xff]  }
  0x4f   :  { %5127 = vmatprep.mubr.msk.bf16.mxu0 %vm1454_vm0, %v5393_v39  ;;  %5255 = vmatprep.mubr.msk.bf16.mxu1 %vm1454_vm0, %v5394_v40  ;;  %v5456_v38 = vld [vmem:[%s6802_s0 + $0x388] sm:$0xff]   ;;  %v5457_v39 = vld [vmem:[%s6802_s0 + $0x190] sm:$0xff]  }
  0x50   :  { %v5458_v40 = vld [vmem:[%s6802_s0 + $0x390] sm:$0xff]  }
  0x56   :  { %5128 = vmatmul.mubr.msk.bf16.gmra.mxu0 %vm1454_vm0, %v5395_v41  ;;  %5256 = vmatmul.mubr.msk.bf16.gmra.mxu1 %vm1454_vm0, %v5396_v42 }
  0x57   :  { %5131 = vmatprep.mubr.msk.bf16.mxu0 %vm1454_vm0, %v5397_v43  ;;  %5259 = vmatprep.mubr.msk.bf16.mxu1 %vm1454_vm0, %v5398_v44 }
  0x5e   :  { %5132 = vmatmul.mubr.msk.bf16.gmra.mxu0 %vm1454_vm0, %v5399_v45  ;;  %5260 = vmatmul.mubr.msk.bf16.gmra.mxu1 %vm1454_vm0, %v5400_v46 }
  0x5f   :  { %5135 = vmatprep.mubr.msk.bf16.mxu0 %vm1454_vm0, %v5401_v47  ;;  %5263 = vmatprep.mubr.msk.bf16.mxu1 %vm1454_vm0, %v5402_v48 }
  0x66   :  { %5136 = vmatmul.mubr.msk.bf16.gmra.mxu0 %vm1454_vm0, %v5403_v49  ;;  %5264 = vmatmul.mubr.msk.bf16.gmra.mxu1 %vm1454_vm0, %v5404_v50  ;;  %v5459_v49 = vld [vmem:[%s6802_s0 + $0x198] sm:$0xff]  }
  0x67   :  { %5139 = vmatprep.mubr.msk.bf16.mxu0 %vm1454_vm0, %v5405_v51  ;;  %5267 = vmatprep.mubr.msk.bf16.mxu1 %vm1454_vm0, %v5406_v52  ;;  %v5460_v52 = vld [vmem:[%s6802_s0 + $0x398] sm:$0xff]  }
  0x6e   :  { %5140 = vmatmul.mubr.msk.bf16.gmra.mxu0 %vm1454_vm0, %v5407_v53  ;;  %5268 = vmatmul.mubr.msk.bf16.gmra.mxu1 %vm1454_vm0, %v5408_v54  ;;  %v5461_v53 = vld [vmem:[%s6802_s0 + $0x1a0] sm:$0xff]  }
  0x6f   :  { %5143 = vmatprep.mubr.msk.bf16.mxu0 %vm1454_vm0, %v5409_v55  ;;  %5271 = vmatprep.mubr.msk.bf16.mxu1 %vm1454_vm0, %v5410_v56  ;;  %v5462_v54 = vld [vmem:[%s6802_s0 + $0x3a0] sm:$0xff]  }
  0x76   :  { %5144 = vmatmul.mubr.msk.bf16.gmra.mxu0 %vm1454_vm0, %v5411_v57  ;;  %5272 = vmatmul.mubr.msk.bf16.gmra.mxu1 %vm1454_vm0, %v5412_v58 }
  0x77   :  { %5147 = vmatprep.mubr.msk.bf16.mxu0 %vm1454_vm0, %v5413_v59  ;;  %5275 = vmatprep.mubr.msk.bf16.mxu1 %vm1454_vm0, %v5414_v60 }
  0x7e   :  { %5148 = vmatmul.mubr.msk.bf16.gmra.mxu0 %vm1454_vm0, %v5415_v61  ;;  %5276 = vmatmul.mubr.msk.bf16.gmra.mxu1 %vm1454_vm0, %v5416_v62 }
  0x7f   :  { %5151 = vmatprep.mubr.msk.bf16.mxu0 %vm1454_vm0, %v5417_v63  ;;  %5279 = vmatprep.mubr.msk.bf16.mxu1 %vm1454_vm0, %v5418_v0 }
  0x86   :  { %5152 = vmatmul.mubr.msk.bf16.gmra.mxu0 %vm1454_vm0, %v5419_v1  ;;  %5280 = vmatmul.mubr.msk.bf16.gmra.mxu1 %vm1454_vm0, %v5420_v2 }
  0x87   :  { %5155 = vmatprep.mubr.msk.bf16.mxu0 %vm1454_vm0, %v5421_v3  ;;  %5283 = vmatprep.mubr.msk.bf16.mxu1 %vm1454_vm0, %v5422_v4 }
  0x8e   :  { %5156 = vmatmul.mubr.msk.bf16.gmra.mxu0 %vm1454_vm0, %v5423_v5  ;;  %5284 = vmatmul.mubr.msk.bf16.gmra.mxu1 %vm1454_vm0, %v5424_v6 }
  0x8f   :  { %5159 = vmatprep.mubr.msk.bf16.mxu0 %vm1454_vm0, %v5425_v7  ;;  %5287 = vmatprep.mubr.msk.bf16.mxu1 %vm1454_vm0, %v5426_v8 }
  0x96   :  { %5160 = vmatmul.mubr.msk.bf16.gmra.mxu0 %vm1454_vm0, %v5427_v9  ;;  %5288 = vmatmul.mubr.msk.bf16.gmra.mxu1 %vm1454_vm0, %v5428_v10 }
  0x97   :  { %5163 = vmatprep.mubr.msk.bf16.mxu0 %vm1454_vm0, %v5429_v11  ;;  %5291 = vmatprep.mubr.msk.bf16.mxu1 %vm1454_vm0, %v5430_v12 }
  0x9e   :  { %5164 = vmatmul.mubr.msk.bf16.gmra.mxu0 %vm1454_vm0, %v5431_v13  ;;  %5292 = vmatmul.mubr.msk.bf16.gmra.mxu1 %vm1454_vm0, %v5432_v14  ;;  %v5463_v13 = vld [vmem:[%s6802_s0 + $0x1a8] sm:$0xff]  }
  0x9f   :  { %5167 = vmatprep.mubr.msk.bf16.mxu0 %vm1454_vm0, %v5433_v15  ;;  %5295 = vmatprep.mubr.msk.bf16.mxu1 %vm1454_vm0, %v5434_v16  ;;  %v5464_v16 = vld [vmem:[%s6802_s0 + $0x3a8] sm:$0xff]  }
  0xa6   :  { %5168 = vmatmul.mubr.msk.bf16.gmra.mxu0 %vm1454_vm0, %v5435_v17  ;;  %5296 = vmatmul.mubr.msk.bf16.gmra.mxu1 %vm1454_vm0, %v5436_v18  ;;  %v5465_v17 = vld [vmem:[%s6802_s0 + $0x1b0] sm:$0xff]  }
  0xa7   :  { %5171 = vmatprep.mubr.msk.bf16.mxu0 %vm1454_vm0, %v5437_v19  ;;  %5299 = vmatprep.mubr.msk.bf16.mxu1 %vm1454_vm0, %v5438_v20  ;;  %v5466_v18 = vld [vmem:[%s6802_s0 + $0x3b0] sm:$0xff]  }
  0xae   :  { %5172 = vmatmul.mubr.msk.bf16.gmra.mxu0 %vm1454_vm0, %v5439_v21  ;;  %5300 = vmatmul.mubr.msk.bf16.gmra.mxu1 %vm1454_vm0, %v5440_v22 }
  0xaf   :  { %5175 = vmatprep.mubr.msk.bf16.mxu0 %vm1454_vm0, %v5441_v23  ;;  %5303 = vmatprep.mubr.msk.bf16.mxu1 %vm1454_vm0, %v5442_v24 }
  0xb6   :  { %5176 = vmatmul.mubr.msk.bf16.gmra.mxu0 %vm1454_vm0, %v5443_v25  ;;  %5304 = vmatmul.mubr.msk.bf16.gmra.mxu1 %vm1454_vm0, %v5444_v26 }
  0xb7   :  { %5179 = vmatprep.mubr.msk.bf16.mxu0 %vm1454_vm0, %v5445_v27  ;;  %5307 = vmatprep.mubr.msk.bf16.mxu1 %vm1454_vm0, %v5446_v28 }
  0xbe   :  { %5180 = vmatmul.mubr.msk.bf16.gmra.mxu0 %vm1454_vm0, %v5447_v29  ;;  %5308 = vmatmul.mubr.msk.bf16.gmra.mxu1 %vm1454_vm0, %v5448_v30 }
  0xbf   :  { %5183 = vmatprep.mubr.msk.bf16.mxu0 %vm1454_vm0, %v5449_v31  ;;  %5311 = vmatprep.mubr.msk.bf16.mxu1 %vm1454_vm0, %v5450_v32 }
  0xc6   :  { %5184 = vmatmul.mubr.msk.bf16.gmra.mxu0 %vm1454_vm0, %v5451_v33  ;;  %5312 = vmatmul.mubr.msk.bf16.gmra.mxu1 %vm1454_vm0, %v5452_v34 }
  0xc7   :  { %5187 = vmatprep.mubr.msk.bf16.mxu0 %vm1454_vm0, %v5453_v35  ;;  %5315 = vmatprep.mubr.msk.bf16.mxu1 %vm1454_vm0, %v5454_v36 }
  0xce   :  { %v5093_v41 = vpop.f32.mrf.mxu0  ;;  %5188 = vmatmul.mubr.msk.bf16.gmra.mxu0 %vm1454_vm0, %v5455_v37  ;;  %v5221_v42 = vpop.f32.mrf.mxu1  ;;  %5316 = vmatmul.mubr.msk.bf16.gmra.mxu1 %vm1454_vm0, %v5456_v38 }
  0xcf   :  { %5191 = vmatprep.mubr.msk.bf16.mxu0 %vm1454_vm0, %v5457_v39  ;;  %5319 = vmatprep.mubr.msk.bf16.mxu1 %vm1454_vm0, %v5458_v40  ;;  %vm3669_vm1 = vcmp.gt.f32.partialorder %v5093_v41, 0.0  ;;  %v3925_v45 = vmul.f32 0.2, %v5093_v41  ;;  %vm3797_vm2 = vcmp.gt.f32.partialorder %v5221_v42, 0.0  ;;  %v4053_v46 = vmul.f32 0.2, %v5221_v42 }
  0xd0   :  { %v1873_v43 = vpop.f32.mrf.mxu0  ;;  %v2385_v44 = vpop.f32.mrf.mxu1 }
  0xd1   :  { %v4181_v50 = vsel %vm3669_vm1, %v5093_v41, %v3925_v45  ;;  %v4309_v51 = vsel %vm3797_vm2, %v5221_v42, %v4053_v46  ;;  %vm3667_vm3 = vcmp.gt.f32.partialorder %v1873_v43, 0.0  ;;  %v3923_v55 = vmul.f32 0.2, %v1873_v43  ;;  %v5467_v41 = vld [vmem:[%s6802_s0 + $0x1b8] sm:$0xff]   ;;  %v5469_v45 = vld [vmem:[%s6802_s0 + $0x1c0] sm:$0xff]  }
  0xd2   :  { %v5094_v47 = vpop.f32.mrf.mxu0  ;;  %v5222_v48 = vpop.f32.mrf.mxu1  ;;  %4437 = vst [vmem:[%s6803_s4 + $0x10] sm:$0xff] %v4181_v50  ;;  %4565 = vst [vmem:[%s6803_s4 + $0x410] sm:$0xff] %v4309_v51  ;;  %vm3795_vm4 = vcmp.gt.f32.partialorder %v2385_v44, 0.0  ;;  %v4051_v56 = vmul.f32 0.2, %v2385_v44  ;;  %v5470_v46 = vld [vmem:[%s6802_s0 + $0x3c0] sm:$0xff]  }
  0xd3   :  { %vm3670_vm5 = vcmp.gt.f32.partialorder %v5094_v47, 0.0  ;;  %v3926_v59 = vmul.f32 0.2, %v5094_v47  ;;  %vm3798_vm6 = vcmp.gt.f32.partialorder %v5222_v48, 0.0  ;;  %v4054_v60 = vmul.f32 0.2, %v5222_v48 }
  0xd4   :  { %v1876_v57 = vpop.f32.mrf.mxu0  ;;  %v2388_v58 = vpop.f32.mrf.mxu1  ;;  %v4179_v61 = vsel %vm3667_vm3, %v1873_v43, %v3923_v55  ;;  %v4307_v62 = vsel %vm3795_vm4, %v2385_v44, %v4051_v56  ;;  %v5468_v44 = vld [vmem:[%s6802_s0 + $0x3b8] sm:$0xff]  }
  0xd5   :  { %4435 = vst [vmem:[%s6803_s4] sm:$0xff] %v4179_v61  ;;  %4563 = vst [vmem:[%s6803_s4 + $0x400] sm:$0xff] %v4307_v62  ;;  %v4182_v1 = vsel %vm3670_vm5, %v5094_v47, %v3926_v59  ;;  %v4310_v2 = vsel %vm3798_vm6, %v5222_v48, %v4054_v60  ;;  %vm3668_vm7 = vcmp.gt.f32.partialorder %v1876_v57, 0.0  ;;  %v3924_v3 = vmul.f32 0.2, %v1876_v57 }
  0xd6   :  { %v5097_v63 = vpop.f32.mrf.mxu0  ;;  %5192 = vmatmul.mubr.msk.bf16.gmra.mxu0 %vm1454_vm0, %v5459_v49  ;;  %v5225_v0 = vpop.f32.mrf.mxu1  ;;  %5320 = vmatmul.mubr.msk.bf16.gmra.mxu1 %vm1454_vm0, %v5460_v52  ;;  %4438 = vst [vmem:[%s6803_s4 + $0x18] sm:$0xff] %v4182_v1  ;;  %4566 = vst [vmem:[%s6803_s4 + $0x418] sm:$0xff] %v4310_v2  ;;  %vm3796_vm8 = vcmp.gt.f32.partialorder %v2388_v58, 0.0  ;;  %v4052_v4 = vmul.f32 0.2, %v2388_v58 }
  0xd7   :  { %5195 = vmatprep.mubr.msk.bf16.mxu0 %vm1454_vm0, %v5461_v53  ;;  %5323 = vmatprep.mubr.msk.bf16.mxu1 %vm1454_vm0, %v5462_v54  ;;  %vm3673_vm9 = vcmp.gt.f32.partialorder %v5097_v63, 0.0  ;;  %v3929_v7 = vmul.f32 0.2, %v5097_v63  ;;  %vm3801_vm10 = vcmp.gt.f32.partialorder %v5225_v0, 0.0  ;;  %v4057_v8 = vmul.f32 0.2, %v5225_v0 }
  0xd8   :  { %v1889_v5 = vpop.f32.mrf.mxu0  ;;  %v2401_v6 = vpop.f32.mrf.mxu1  ;;  %v4180_v9 = vsel %vm3668_vm7, %v1876_v57, %v3924_v3  ;;  %v4308_v10 = vsel %vm3796_vm8, %v2388_v58, %v4052_v4 }
  0xd9   :  { %4436 = vst [vmem:[%s6803_s4 + $0x8] sm:$0xff] %v4180_v9  ;;  %4564 = vst [vmem:[%s6803_s4 + $0x408] sm:$0xff] %v4308_v10  ;;  %v4185_v14 = vsel %vm3673_vm9, %v5097_v63, %v3929_v7  ;;  %v4313_v15 = vsel %vm3801_vm10, %v5225_v0, %v4057_v8  ;;  %vm3671_vm11 = vcmp.gt.f32.partialorder %v1889_v5, 0.0  ;;  %v3927_v19 = vmul.f32 0.2, %v1889_v5  ;;  %v5472_v8 = vld [vmem:[%s6802_s0 + $0x3c8] sm:$0xff]  }
  0xda   :  { %v5098_v11 = vpop.f32.mrf.mxu0  ;;  %v5226_v12 = vpop.f32.mrf.mxu1  ;;  %4441 = vst [vmem:[%s6803_s4 + $0x30] sm:$0xff] %v4185_v14  ;;  %4569 = vst [vmem:[%s6803_s4 + $0x430] sm:$0xff] %v4313_v15  ;;  %vm3799_vm12 = vcmp.gt.f32.partialorder %v2401_v6, 0.0  ;;  %v4055_v20 = vmul.f32 0.2, %v2401_v6  ;;  %v5473_v9 = vld [vmem:[%s6802_s0 + $0x1d0] sm:$0xff]  }
  0xdb   :  { %vm3674_vm13 = vcmp.gt.f32.partialorder %v5098_v11, 0.0  ;;  %v3930_v23 = vmul.f32 0.2, %v5098_v11  ;;  %vm3802_vm14 = vcmp.gt.f32.partialorder %v5226_v12, 0.0  ;;  %v4058_v24 = vmul.f32 0.2, %v5226_v12 }
  0xdc   :  { %v1892_v21 = vpop.f32.mrf.mxu0  ;;  %v2404_v22 = vpop.f32.mrf.mxu1  ;;  %v4183_v25 = vsel %vm3671_vm11, %v1889_v5, %v3927_v19  ;;  %v4311_v26 = vsel %vm3799_vm12, %v2401_v6, %v4055_v20  ;;  %v5471_v5 = vld [vmem:[%s6802_s0 + $0x1c8] sm:$0xff]   ;;  %v5474_v10 = vld [vmem:[%s6802_s0 + $0x3d0] sm:$0xff]  }
  0xdd   :  { %4439 = vst [vmem:[%s6803_s4 + $0x20] sm:$0xff] %v4183_v25  ;;  %4567 = vst [vmem:[%s6803_s4 + $0x420] sm:$0xff] %v4311_v26  ;;  %v4186_v29 = vsel %vm3674_vm13, %v5098_v11, %v3930_v23  ;;  %v4314_v30 = vsel %vm3802_vm14, %v5226_v12, %v4058_v24  ;;  %vm3672_vm15 = vcmp.gt.f32.partialorder %v1892_v21, 0.0  ;;  %v3928_v31 = vmul.f32 0.2, %v1892_v21 }
  0xde   :  { %v5101_v27 = vpop.f32.mrf.mxu0  ;;  %5196 = vmatmul.mubr.msk.bf16.gmra.mxu0 %vm1454_vm0, %v5463_v13  ;;  %v5229_v28 = vpop.f32.mrf.mxu1  ;;  %5324 = vmatmul.mubr.msk.bf16.gmra.mxu1 %vm1454_vm0, %v5464_v16  ;;  %4442 = vst [vmem:[%s6803_s4 + $0x38] sm:$0xff] %v4186_v29  ;;  %4570 = vst [vmem:[%s6803_s4 + $0x438] sm:$0xff] %v4314_v30  ;;  %vm3800_vm1 = vcmp.gt.f32.partialorder %v2404_v22, 0.0  ;;  %v4056_v32 = vmul.f32 0.2, %v2404_v22 }
  0xdf   :  { %5199 = vmatprep.mubr.msk.bf16.mxu0 %vm1454_vm0, %v5465_v17  ;;  %5327 = vmatprep.mubr.msk.bf16.mxu1 %vm1454_vm0, %v5466_v18  ;;  %vm3677_vm2 = vcmp.gt.f32.partialorder %v5101_v27, 0.0  ;;  %v3933_v35 = vmul.f32 0.2, %v5101_v27  ;;  %vm3805_vm3 = vcmp.gt.f32.partialorder %v5229_v28, 0.0  ;;  %v4061_v36 = vmul.f32 0.2, %v5229_v28 }
  0xe0   :  { %v1905_v33 = vpop.f32.mrf.mxu0  ;;  %v2417_v34 = vpop.f32.mrf.mxu1  ;;  %v4184_v37 = vsel %vm3672_vm15, %v1892_v21, %v3928_v31  ;;  %v4312_v38 = vsel %vm3800_vm1, %v2404_v22, %v4056_v32 }
  0xe1   :  { %4440 = vst [vmem:[%s6803_s4 + $0x28] sm:$0xff] %v4184_v37  ;;  %4568 = vst [vmem:[%s6803_s4 + $0x428] sm:$0xff] %v4312_v38  ;;  %v4189_v42 = vsel %vm3677_vm2, %v5101_v27, %v3933_v35  ;;  %v4317_v43 = vsel %vm3805_vm3, %v5229_v28, %v4061_v36  ;;  %vm3675_vm4 = vcmp.gt.f32.partialorder %v1905_v33, 0.0  ;;  %v3931_v47 = vmul.f32 0.2, %v1905_v33  ;;  %v5476_v36 = vld [vmem:[%s6802_s0 + $0x3d8] sm:$0xff]  }
  0xe2   :  { %v5102_v39 = vpop.f32.mrf.mxu0  ;;  %v5230_v40 = vpop.f32.mrf.mxu1  ;;  %4445 = vst [vmem:[%s6803_s4 + $0x50] sm:$0xff] %v4189_v42  ;;  %4573 = vst [vmem:[%s6803_s4 + $0x450] sm:$0xff] %v4317_v43  ;;  %vm3803_vm5 = vcmp.gt.f32.partialorder %v2417_v34, 0.0  ;;  %v4059_v48 = vmul.f32 0.2, %v2417_v34  ;;  %v5477_v37 = vld [vmem:[%s6802_s0 + $0x1e0] sm:$0xff]  }
  0xe3   :  { %vm3678_vm6 = vcmp.gt.f32.partialorder %v5102_v39, 0.0  ;;  %v3934_v51 = vmul.f32 0.2, %v5102_v39  ;;  %vm3806_vm7 = vcmp.gt.f32.partialorder %v5230_v40, 0.0  ;;  %v4062_v52 = vmul.f32 0.2, %v5230_v40 }
  0xe4   :  { %v1908_v49 = vpop.f32.mrf.mxu0  ;;  %v2420_v50 = vpop.f32.mrf.mxu1  ;;  %v4187_v53 = vsel %vm3675_vm4, %v1905_v33, %v3931_v47  ;;  %v4315_v54 = vsel %vm3803_vm5, %v2417_v34, %v4059_v48  ;;  %v5475_v33 = vld [vmem:[%s6802_s0 + $0x1d8] sm:$0xff]   ;;  %v5478_v38 = vld [vmem:[%s6802_s0 + $0x3e0] sm:$0xff]  }
  0xe5   :  { %4443 = vst [vmem:[%s6803_s4 + $0x40] sm:$0xff] %v4187_v53  ;;  %4571 = vst [vmem:[%s6803_s4 + $0x440] sm:$0xff] %v4315_v54  ;;  %v4190_v57 = vsel %vm3678_vm6, %v5102_v39, %v3934_v51  ;;  %v4318_v58 = vsel %vm3806_vm7, %v5230_v40, %v4062_v52  ;;  %vm3676_vm8 = vcmp.gt.f32.partialorder %v1908_v49, 0.0  ;;  %v3932_v59 = vmul.f32 0.2, %v1908_v49 }
  0xe6   :  { %v5105_v55 = vpop.f32.mrf.mxu0  ;;  %5200 = vmatmul.mubr.msk.bf16.gmra.mxu0 %vm1454_vm0, %v5467_v41  ;;  %v5233_v56 = vpop.f32.mrf.mxu1  ;;  %5328 = vmatmul.mubr.msk.bf16.gmra.mxu1 %vm1454_vm0, %v5468_v44  ;;  %4446 = vst [vmem:[%s6803_s4 + $0x58] sm:$0xff] %v4190_v57  ;;  %4574 = vst [vmem:[%s6803_s4 + $0x458] sm:$0xff] %v4318_v58  ;;  %vm3804_vm9 = vcmp.gt.f32.partialorder %v2420_v50, 0.0  ;;  %v4060_v60 = vmul.f32 0.2, %v2420_v50 }
  0xe7   :  { %5203 = vmatprep.mubr.msk.bf16.mxu0 %vm1454_vm0, %v5469_v45  ;;  %5331 = vmatprep.mubr.msk.bf16.mxu1 %vm1454_vm0, %v5470_v46  ;;  %vm3681_vm10 = vcmp.gt.f32.partialorder %v5105_v55, 0.0  ;;  %v3937_v63 = vmul.f32 0.2, %v5105_v55  ;;  %vm3809_vm11 = vcmp.gt.f32.partialorder %v5233_v56, 0.0  ;;  %v4065_v0 = vmul.f32 0.2, %v5233_v56 }
  0xe8   :  { %v1921_v61 = vpop.f32.mrf.mxu0  ;;  %v2433_v62 = vpop.f32.mrf.mxu1  ;;  %v4188_v1 = vsel %vm3676_vm8, %v1908_v49, %v3932_v59  ;;  %v4316_v2 = vsel %vm3804_vm9, %v2420_v50, %v4060_v60 }
  0xe9   :  { %4444 = vst [vmem:[%s6803_s4 + $0x48] sm:$0xff] %v4188_v1  ;;  %4572 = vst [vmem:[%s6803_s4 + $0x448] sm:$0xff] %v4316_v2  ;;  %v4193_v6 = vsel %vm3681_vm10, %v5105_v55, %v3937_v63  ;;  %v4321_v7 = vsel %vm3809_vm11, %v5233_v56, %v4065_v0  ;;  %vm3679_vm12 = vcmp.gt.f32.partialorder %v1921_v61, 0.0  ;;  %v3935_v11 = vmul.f32 0.2, %v1921_v61  ;;  %v5480_v0 = vld [vmem:[%s6802_s0 + $0x3e8] sm:$0xff]  }
  0xea   :  { %v5106_v3 = vpop.f32.mrf.mxu0  ;;  %v5234_v4 = vpop.f32.mrf.mxu1  ;;  %4449 = vst [vmem:[%s6803_s4 + $0x70] sm:$0xff] %v4193_v6  ;;  %4577 = vst [vmem:[%s6803_s4 + $0x470] sm:$0xff] %v4321_v7  ;;  %vm3807_vm13 = vcmp.gt.f32.partialorder %v2433_v62, 0.0  ;;  %v4063_v12 = vmul.f32 0.2, %v2433_v62  ;;  %v5481_v1 = vld [vmem:[%s6802_s0 + $0x1f0] sm:$0xff]  }
  0xeb   :  { %vm3682_vm14 = vcmp.gt.f32.partialorder %v5106_v3, 0.0  ;;  %v3938_v15 = vmul.f32 0.2, %v5106_v3  ;;  %vm3810_vm15 = vcmp.gt.f32.partialorder %v5234_v4, 0.0  ;;  %v4066_v16 = vmul.f32 0.2, %v5234_v4 }
  0xec   :  { %v1924_v13 = vpop.f32.mrf.mxu0  ;;  %v2436_v14 = vpop.f32.mrf.mxu1  ;;  %v4191_v17 = vsel %vm3679_vm12, %v1921_v61, %v3935_v11  ;;  %v4319_v18 = vsel %vm3807_vm13, %v2433_v62, %v4063_v12  ;;  %v5479_v61 = vld [vmem:[%s6802_s0 + $0x1e8] sm:$0xff]   ;;  %v5482_v2 = vld [vmem:[%s6802_s0 + $0x3f0] sm:$0xff]  }
  0xed   :  { %4447 = vst [vmem:[%s6803_s4 + $0x60] sm:$0xff] %v4191_v17  ;;  %4575 = vst [vmem:[%s6803_s4 + $0x460] sm:$0xff] %v4319_v18  ;;  %v4194_v21 = vsel %vm3682_vm14, %v5106_v3, %v3938_v15  ;;  %v4322_v22 = vsel %vm3810_vm15, %v5234_v4, %v4066_v16  ;;  %vm3680_vm1 = vcmp.gt.f32.partialorder %v1924_v13, 0.0  ;;  %v3936_v23 = vmul.f32 0.2, %v1924_v13 }
  0xee   :  { %v5109_v19 = vpop.f32.mrf.mxu0  ;;  %5204 = vmatmul.mubr.msk.bf16.gmra.mxu0 %vm1454_vm0, %v5471_v5  ;;  %v5237_v20 = vpop.f32.mrf.mxu1  ;;  %5332 = vmatmul.mubr.msk.bf16.gmra.mxu1 %vm1454_vm0, %v5472_v8  ;;  %4450 = vst [vmem:[%s6803_s4 + $0x78] sm:$0xff] %v4194_v21  ;;  %4578 = vst [vmem:[%s6803_s4 + $0x478] sm:$0xff] %v4322_v22  ;;  %vm3808_vm2 = vcmp.gt.f32.partialorder %v2436_v14, 0.0  ;;  %v4064_v24 = vmul.f32 0.2, %v2436_v14 }
  0xef   :  { %5207 = vmatprep.mubr.msk.bf16.mxu0 %vm1454_vm0, %v5473_v9  ;;  %5335 = vmatprep.mubr.msk.bf16.mxu1 %vm1454_vm0, %v5474_v10  ;;  %vm3685_vm3 = vcmp.gt.f32.partialorder %v5109_v19, 0.0  ;;  %v3941_v27 = vmul.f32 0.2, %v5109_v19  ;;  %vm3813_vm4 = vcmp.gt.f32.partialorder %v5237_v20, 0.0  ;;  %v4069_v28 = vmul.f32 0.2, %v5237_v20 }
  0xf0   :  { %v1937_v25 = vpop.f32.mrf.mxu0  ;;  %v2449_v26 = vpop.f32.mrf.mxu1  ;;  %v4192_v29 = vsel %vm3680_vm1, %v1924_v13, %v3936_v23  ;;  %v4320_v30 = vsel %vm3808_vm2, %v2436_v14, %v4064_v24 }
  0xf1   :  { %4448 = vst [vmem:[%s6803_s4 + $0x68] sm:$0xff] %v4192_v29  ;;  %4576 = vst [vmem:[%s6803_s4 + $0x468] sm:$0xff] %v4320_v30  ;;  %v4197_v34 = vsel %vm3685_vm3, %v5109_v19, %v3941_v27  ;;  %v4325_v35 = vsel %vm3813_vm4, %v5237_v20, %v4069_v28  ;;  %vm3683_vm5 = vcmp.gt.f32.partialorder %v1937_v25, 0.0  ;;  %v3939_v39 = vmul.f32 0.2, %v1937_v25  ;;  %v5484_v28 = vld [vmem:[%s6802_s0 + $0x3f8] sm:$0xff]  }
  0xf2   :  { %v5110_v31 = vpop.f32.mrf.mxu0  ;;  %v5238_v32 = vpop.f32.mrf.mxu1  ;;  %4453 = vst [vmem:[%s6803_s4 + $0x90] sm:$0xff] %v4197_v34  ;;  %4581 = vst [vmem:[%s6803_s4 + $0x490] sm:$0xff] %v4325_v35  ;;  %vm3811_vm6 = vcmp.gt.f32.partialorder %v2449_v26, 0.0  ;;  %v4067_v40 = vmul.f32 0.2, %v2449_v26 }
  0xf3   :  { %vm3686_vm7 = vcmp.gt.f32.partialorder %v5110_v31, 0.0  ;;  %v3942_v43 = vmul.f32 0.2, %v5110_v31  ;;  %vm3814_vm8 = vcmp.gt.f32.partialorder %v5238_v32, 0.0  ;;  %v4070_v44 = vmul.f32 0.2, %v5238_v32 }
  0xf4   :  { %v1940_v41 = vpop.f32.mrf.mxu0  ;;  %v2452_v42 = vpop.f32.mrf.mxu1  ;;  %v4195_v45 = vsel %vm3683_vm5, %v1937_v25, %v3939_v39  ;;  %v4323_v46 = vsel %vm3811_vm6, %v2449_v26, %v4067_v40  ;;  %v5483_v25 = vld [vmem:[%s6802_s0 + $0x1f8] sm:$0xff]  }
  0xf5   :  { %4451 = vst [vmem:[%s6803_s4 + $0x80] sm:$0xff] %v4195_v45  ;;  %4579 = vst [vmem:[%s6803_s4 + $0x480] sm:$0xff] %v4323_v46  ;;  %v4198_v49 = vsel %vm3686_vm7, %v5110_v31, %v3942_v43  ;;  %v4326_v50 = vsel %vm3814_vm8, %v5238_v32, %v4070_v44  ;;  %vm3684_vm9 = vcmp.gt.f32.partialorder %v1940_v41, 0.0  ;;  %v3940_v51 = vmul.f32 0.2, %v1940_v41 }
  0xf6   :  { %v5113_v47 = vpop.f32.mrf.mxu0  ;;  %5208 = vmatmul.mubr.msk.bf16.gmra.mxu0 %vm1454_vm0, %v5475_v33  ;;  %v5241_v48 = vpop.f32.mrf.mxu1  ;;  %5336 = vmatmul.mubr.msk.bf16.gmra.mxu1 %vm1454_vm0, %v5476_v36  ;;  %4454 = vst [vmem:[%s6803_s4 + $0x98] sm:$0xff] %v4198_v49  ;;  %4582 = vst [vmem:[%s6803_s4 + $0x498] sm:$0xff] %v4326_v50  ;;  %vm3812_vm10 = vcmp.gt.f32.partialorder %v2452_v42, 0.0  ;;  %v4068_v52 = vmul.f32 0.2, %v2452_v42 }
  0xf7   :  { %5211 = vmatprep.mubr.msk.bf16.mxu0 %vm1454_vm0, %v5477_v37  ;;  %5339 = vmatprep.mubr.msk.bf16.mxu1 %vm1454_vm0, %v5478_v38  ;;  %vm3689_vm11 = vcmp.gt.f32.partialorder %v5113_v47, 0.0  ;;  %v3945_v55 = vmul.f32 0.2, %v5113_v47  ;;  %vm3817_vm12 = vcmp.gt.f32.partialorder %v5241_v48, 0.0  ;;  %v4073_v56 = vmul.f32 0.2, %v5241_v48 }
  0xf8   :  { %v1953_v53 = vpop.f32.mrf.mxu0  ;;  %v2465_v54 = vpop.f32.mrf.mxu1  ;;  %v4196_v57 = vsel %vm3684_vm9, %v1940_v41, %v3940_v51  ;;  %v4324_v58 = vsel %vm3812_vm10, %v2452_v42, %v4068_v52 }
  0xf9   :  { %4452 = vst [vmem:[%s6803_s4 + $0x88] sm:$0xff] %v4196_v57  ;;  %4580 = vst [vmem:[%s6803_s4 + $0x488] sm:$0xff] %v4324_v58  ;;  %v4201_v62 = vsel %vm3689_vm11, %v5113_v47, %v3945_v55  ;;  %v4329_v63 = vsel %vm3817_vm12, %v5241_v48, %v4073_v56  ;;  %vm3687_vm13 = vcmp.gt.f32.partialorder %v1953_v53, 0.0  ;;  %v3943_v3 = vmul.f32 0.2, %v1953_v53 }
  0xfa   :  { %v5114_v59 = vpop.f32.mrf.mxu0  ;;  %v5242_v60 = vpop.f32.mrf.mxu1  ;;  %4457 = vst [vmem:[%s6803_s4 + $0xb0] sm:$0xff] %v4201_v62  ;;  %4585 = vst [vmem:[%s6803_s4 + $0x4b0] sm:$0xff] %v4329_v63  ;;  %vm3815_vm14 = vcmp.gt.f32.partialorder %v2465_v54, 0.0  ;;  %v4071_v4 = vmul.f32 0.2, %v2465_v54 }
  0xfb   :  { %vm3690_vm15 = vcmp.gt.f32.partialorder %v5114_v59, 0.0  ;;  %v3946_v7 = vmul.f32 0.2, %v5114_v59  ;;  %vm3818_vm1 = vcmp.gt.f32.partialorder %v5242_v60, 0.0  ;;  %v4074_v8 = vmul.f32 0.2, %v5242_v60 }
  0xfc   :  { %v1956_v5 = vpop.f32.mrf.mxu0  ;;  %v2468_v6 = vpop.f32.mrf.mxu1  ;;  %v4199_v9 = vsel %vm3687_vm13, %v1953_v53, %v3943_v3  ;;  %v4327_v10 = vsel %vm3815_vm14, %v2465_v54, %v4071_v4 }
  0xfd   :  { %4455 = vst [vmem:[%s6803_s4 + $0xa0] sm:$0xff] %v4199_v9  ;;  %4583 = vst [vmem:[%s6803_s4 + $0x4a0] sm:$0xff] %v4327_v10  ;;  %v4202_v13 = vsel %vm3690_vm15, %v5114_v59, %v3946_v7  ;;  %v4330_v14 = vsel %vm3818_vm1, %v5242_v60, %v4074_v8  ;;  %vm3688_vm2 = vcmp.gt.f32.partialorder %v1956_v5, 0.0  ;;  %v3944_v15 = vmul.f32 0.2, %v1956_v5 }
  0xfe   :  { %v5117_v11 = vpop.f32.mrf.mxu0  ;;  %5212 = vmatmul.mubr.msk.bf16.gmra.mxu0 %vm1454_vm0, %v5479_v61  ;;  %v5245_v12 = vpop.f32.mrf.mxu1  ;;  %5340 = vmatmul.mubr.msk.bf16.gmra.mxu1 %vm1454_vm0, %v5480_v0  ;;  %4458 = vst [vmem:[%s6803_s4 + $0xb8] sm:$0xff] %v4202_v13  ;;  %4586 = vst [vmem:[%s6803_s4 + $0x4b8] sm:$0xff] %v4330_v14  ;;  %vm3816_vm3 = vcmp.gt.f32.partialorder %v2468_v6, 0.0  ;;  %v4072_v16 = vmul.f32 0.2, %v2468_v6 }
  0xff   :  { %5215 = vmatprep.mubr.msk.bf16.mxu0 %vm1454_vm0, %v5481_v1  ;;  %5343 = vmatprep.mubr.msk.bf16.mxu1 %vm1454_vm0, %v5482_v2  ;;  %vm3693_vm4 = vcmp.gt.f32.partialorder %v5117_v11, 0.0  ;;  %v3949_v19 = vmul.f32 0.2, %v5117_v11  ;;  %vm3821_vm5 = vcmp.gt.f32.partialorder %v5245_v12, 0.0  ;;  %v4077_v20 = vmul.f32 0.2, %v5245_v12 }
 0x100   :  { %v1969_v17 = vpop.f32.mrf.mxu0  ;;  %v2481_v18 = vpop.f32.mrf.mxu1  ;;  %v4200_v21 = vsel %vm3688_vm2, %v1956_v5, %v3944_v15  ;;  %v4328_v22 = vsel %vm3816_vm3, %v2468_v6, %v4072_v16 }
 0x101   :  { %4456 = vst [vmem:[%s6803_s4 + $0xa8] sm:$0xff] %v4200_v21  ;;  %4584 = vst [vmem:[%s6803_s4 + $0x4a8] sm:$0xff] %v4328_v22  ;;  %v4205_v26 = vsel %vm3693_vm4, %v5117_v11, %v3949_v19  ;;  %v4333_v27 = vsel %vm3821_vm5, %v5245_v12, %v4077_v20  ;;  %vm3691_vm6 = vcmp.gt.f32.partialorder %v1969_v17, 0.0  ;;  %v3947_v29 = vmul.f32 0.2, %v1969_v17 }
 0x102   :  { %v5118_v23 = vpop.f32.mrf.mxu0  ;;  %v5246_v24 = vpop.f32.mrf.mxu1  ;;  %4461 = vst [vmem:[%s6803_s4 + $0xd0] sm:$0xff] %v4205_v26  ;;  %4589 = vst [vmem:[%s6803_s4 + $0x4d0] sm:$0xff] %v4333_v27  ;;  %vm3819_vm7 = vcmp.gt.f32.partialorder %v2481_v18, 0.0  ;;  %v4075_v30 = vmul.f32 0.2, %v2481_v18 }
 0x103   :  { %vm3694_vm8 = vcmp.gt.f32.partialorder %v5118_v23, 0.0  ;;  %v3950_v33 = vmul.f32 0.2, %v5118_v23  ;;  %vm3822_vm9 = vcmp.gt.f32.partialorder %v5246_v24, 0.0  ;;  %v4078_v34 = vmul.f32 0.2, %v5246_v24 }
 0x104   :  { %v1972_v31 = vpop.f32.mrf.mxu0  ;;  %v2484_v32 = vpop.f32.mrf.mxu1  ;;  %v4203_v35 = vsel %vm3691_vm6, %v1969_v17, %v3947_v29  ;;  %v4331_v36 = vsel %vm3819_vm7, %v2481_v18, %v4075_v30 }
 0x105   :  { %4459 = vst [vmem:[%s6803_s4 + $0xc0] sm:$0xff] %v4203_v35  ;;  %4587 = vst [vmem:[%s6803_s4 + $0x4c0] sm:$0xff] %v4331_v36  ;;  %v4206_v39 = vsel %vm3694_vm8, %v5118_v23, %v3950_v33  ;;  %v4334_v40 = vsel %vm3822_vm9, %v5246_v24, %v4078_v34  ;;  %vm3692_vm10 = vcmp.gt.f32.partialorder %v1972_v31, 0.0  ;;  %v3948_v41 = vmul.f32 0.2, %v1972_v31 }
 0x106   :  { %v5121_v37 = vpop.f32.mrf.mxu0  ;;  %5216 = vmatmul.mubr.msk.bf16.gmra.mxu0 %vm1454_vm0, %v5483_v25  ;;  %v5249_v38 = vpop.f32.mrf.mxu1  ;;  %5344 = vmatmul.mubr.msk.bf16.gmra.mxu1 %vm1454_vm0, %v5484_v28  ;;  %4462 = vst [vmem:[%s6803_s4 + $0xd8] sm:$0xff] %v4206_v39  ;;  %4590 = vst [vmem:[%s6803_s4 + $0x4d8] sm:$0xff] %v4334_v40  ;;  %vm3820_vm11 = vcmp.gt.f32.partialorder %v2484_v32, 0.0  ;;  %v4076_v42 = vmul.f32 0.2, %v2484_v32 }
 0x107   :  { %vm3697_vm12 = vcmp.gt.f32.partialorder %v5121_v37, 0.0  ;;  %v3953_v45 = vmul.f32 0.2, %v5121_v37  ;;  %vm3825_vm13 = vcmp.gt.f32.partialorder %v5249_v38, 0.0  ;;  %v4081_v46 = vmul.f32 0.2, %v5249_v38 }
 0x108   :  { %v1985_v43 = vpop.f32.mrf.mxu0  ;;  %v2497_v44 = vpop.f32.mrf.mxu1  ;;  %v4204_v47 = vsel %vm3692_vm10, %v1972_v31, %v3948_v41  ;;  %v4332_v48 = vsel %vm3820_vm11, %v2484_v32, %v4076_v42 }
 0x109   :  { %4460 = vst [vmem:[%s6803_s4 + $0xc8] sm:$0xff] %v4204_v47  ;;  %4588 = vst [vmem:[%s6803_s4 + $0x4c8] sm:$0xff] %v4332_v48  ;;  %v4209_v51 = vsel %vm3697_vm12, %v5121_v37, %v3953_v45  ;;  %v4337_v52 = vsel %vm3825_vm13, %v5249_v38, %v4081_v46  ;;  %vm3695_vm0 = vcmp.gt.f32.partialorder %v1985_v43, 0.0  ;;  %v3951_v53 = vmul.f32 0.2, %v1985_v43 }
 0x10a   :  { %v5122_v49 = vpop.f32.mrf.mxu0  ;;  %v5250_v50 = vpop.f32.mrf.mxu1  ;;  %4465 = vst [vmem:[%s6803_s4 + $0xf0] sm:$0xff] %v4209_v51  ;;  %4593 = vst [vmem:[%s6803_s4 + $0x4f0] sm:$0xff] %v4337_v52  ;;  %vm3823_vm14 = vcmp.gt.f32.partialorder %v2497_v44, 0.0  ;;  %v4079_v54 = vmul.f32 0.2, %v2497_v44 }
 0x10b   :  { %vm3698_vm15 = vcmp.gt.f32.partialorder %v5122_v49, 0.0  ;;  %v3954_v57 = vmul.f32 0.2, %v5122_v49  ;;  %vm3826_vm1 = vcmp.gt.f32.partialorder %v5250_v50, 0.0  ;;  %v4082_v58 = vmul.f32 0.2, %v5250_v50 }
 0x10c   :  { %v1988_v55 = vpop.f32.mrf.mxu0  ;;  %v2500_v56 = vpop.f32.mrf.mxu1  ;;  %v4207_v59 = vsel %vm3695_vm0, %v1985_v43, %v3951_v53  ;;  %v4335_v60 = vsel %vm3823_vm14, %v2497_v44, %v4079_v54 }
 0x10d   :  { %4463 = vst [vmem:[%s6803_s4 + $0xe0] sm:$0xff] %v4207_v59  ;;  %4591 = vst [vmem:[%s6803_s4 + $0x4e0] sm:$0xff] %v4335_v60  ;;  %v4210_v63 = vsel %vm3698_vm15, %v5122_v49, %v3954_v57  ;;  %v4338_v0 = vsel %vm3826_vm1, %v5250_v50, %v4082_v58  ;;  %vm3696_vm2 = vcmp.gt.f32.partialorder %v1988_v55, 0.0  ;;  %v3952_v1 = vmul.f32 0.2, %v1988_v55 }
 0x10e   :  { %v5125_v61 = vpop.f32.mrf.mxu0  ;;  %v5253_v62 = vpop.f32.mrf.mxu1  ;;  %4466 = vst [vmem:[%s6803_s4 + $0xf8] sm:$0xff] %v4210_v63  ;;  %4594 = vst [vmem:[%s6803_s4 + $0x4f8] sm:$0xff] %v4338_v0  ;;  %vm3824_vm3 = vcmp.gt.f32.partialorder %v2500_v56, 0.0  ;;  %v4080_v2 = vmul.f32 0.2, %v2500_v56 }
 0x10f   :  { %vm3701_vm4 = vcmp.gt.f32.partialorder %v5125_v61, 0.0  ;;  %v3957_v5 = vmul.f32 0.2, %v5125_v61  ;;  %vm3829_vm5 = vcmp.gt.f32.partialorder %v5253_v62, 0.0  ;;  %v4085_v6 = vmul.f32 0.2, %v5253_v62 }
 0x110   :  { %v2001_v3 = vpop.f32.mrf.mxu0  ;;  %v2513_v4 = vpop.f32.mrf.mxu1  ;;  %v4208_v7 = vsel %vm3696_vm2, %v1988_v55, %v3952_v1  ;;  %v4336_v8 = vsel %vm3824_vm3, %v2500_v56, %v4080_v2 }
 0x111   :  { %4464 = vst [vmem:[%s6803_s4 + $0xe8] sm:$0xff] %v4208_v7  ;;  %4592 = vst [vmem:[%s6803_s4 + $0x4e8] sm:$0xff] %v4336_v8  ;;  %v4213_v11 = vsel %vm3701_vm4, %v5125_v61, %v3957_v5  ;;  %v4341_v12 = vsel %vm3829_vm5, %v5253_v62, %v4085_v6  ;;  %vm3699_vm6 = vcmp.gt.f32.partialorder %v2001_v3, 0.0  ;;  %v3955_v13 = vmul.f32 0.2, %v2001_v3 }
 0x112   :  { %v5126_v9 = vpop.f32.mrf.mxu0  ;;  %v5254_v10 = vpop.f32.mrf.mxu1  ;;  %4469 = vst [vmem:[%s6803_s4 + $0x110] sm:$0xff] %v4213_v11  ;;  %4597 = vst [vmem:[%s6803_s4 + $0x510] sm:$0xff] %v4341_v12  ;;  %vm3827_vm7 = vcmp.gt.f32.partialorder %v2513_v4, 0.0  ;;  %v4083_v14 = vmul.f32 0.2, %v2513_v4 }
 0x113   :  { %vm3702_vm8 = vcmp.gt.f32.partialorder %v5126_v9, 0.0  ;;  %v3958_v17 = vmul.f32 0.2, %v5126_v9  ;;  %vm3830_vm9 = vcmp.gt.f32.partialorder %v5254_v10, 0.0  ;;  %v4086_v18 = vmul.f32 0.2, %v5254_v10 }
 0x114   :  { %v2004_v15 = vpop.f32.mrf.mxu0  ;;  %v2516_v16 = vpop.f32.mrf.mxu1  ;;  %v4211_v19 = vsel %vm3699_vm6, %v2001_v3, %v3955_v13  ;;  %v4339_v20 = vsel %vm3827_vm7, %v2513_v4, %v4083_v14 }
 0x115   :  { %4467 = vst [vmem:[%s6803_s4 + $0x100] sm:$0xff] %v4211_v19  ;;  %4595 = vst [vmem:[%s6803_s4 + $0x500] sm:$0xff] %v4339_v20  ;;  %v4214_v23 = vsel %vm3702_vm8, %v5126_v9, %v3958_v17  ;;  %v4342_v24 = vsel %vm3830_vm9, %v5254_v10, %v4086_v18  ;;  %vm3700_vm10 = vcmp.gt.f32.partialorder %v2004_v15, 0.0  ;;  %v3956_v25 = vmul.f32 0.2, %v2004_v15 }
 0x116   :  { %v5129_v21 = vpop.f32.mrf.mxu0  ;;  %v5257_v22 = vpop.f32.mrf.mxu1  ;;  %4470 = vst [vmem:[%s6803_s4 + $0x118] sm:$0xff] %v4214_v23  ;;  %4598 = vst [vmem:[%s6803_s4 + $0x518] sm:$0xff] %v4342_v24  ;;  %vm3828_vm11 = vcmp.gt.f32.partialorder %v2516_v16, 0.0  ;;  %v4084_v26 = vmul.f32 0.2, %v2516_v16 }
 0x117   :  { %vm3705_vm12 = vcmp.gt.f32.partialorder %v5129_v21, 0.0  ;;  %v3961_v29 = vmul.f32 0.2, %v5129_v21  ;;  %vm3833_vm13 = vcmp.gt.f32.partialorder %v5257_v22, 0.0  ;;  %v4089_v30 = vmul.f32 0.2, %v5257_v22 }
 0x118   :  { %v2017_v27 = vpop.f32.mrf.mxu0  ;;  %v2529_v28 = vpop.f32.mrf.mxu1  ;;  %v4212_v31 = vsel %vm3700_vm10, %v2004_v15, %v3956_v25  ;;  %v4340_v32 = vsel %vm3828_vm11, %v2516_v16, %v4084_v26 }
 0x119   :  { %4468 = vst [vmem:[%s6803_s4 + $0x108] sm:$0xff] %v4212_v31  ;;  %4596 = vst [vmem:[%s6803_s4 + $0x508] sm:$0xff] %v4340_v32  ;;  %v4217_v35 = vsel %vm3705_vm12, %v5129_v21, %v3961_v29  ;;  %v4345_v36 = vsel %vm3833_vm13, %v5257_v22, %v4089_v30  ;;  %vm3703_vm0 = vcmp.gt.f32.partialorder %v2017_v27, 0.0  ;;  %v3959_v37 = vmul.f32 0.2, %v2017_v27 }
 0x11a   :  { %v5130_v33 = vpop.f32.mrf.mxu0  ;;  %v5258_v34 = vpop.f32.mrf.mxu1  ;;  %4473 = vst [vmem:[%s6803_s4 + $0x130] sm:$0xff] %v4217_v35  ;;  %4601 = vst [vmem:[%s6803_s4 + $0x530] sm:$0xff] %v4345_v36  ;;  %vm3831_vm14 = vcmp.gt.f32.partialorder %v2529_v28, 0.0  ;;  %v4087_v38 = vmul.f32 0.2, %v2529_v28 }
 0x11b   :  { %vm3706_vm15 = vcmp.gt.f32.partialorder %v5130_v33, 0.0  ;;  %v3962_v41 = vmul.f32 0.2, %v5130_v33  ;;  %vm3834_vm1 = vcmp.gt.f32.partialorder %v5258_v34, 0.0  ;;  %v4090_v42 = vmul.f32 0.2, %v5258_v34 }
 0x11c   :  { %v2020_v39 = vpop.f32.mrf.mxu0  ;;  %v2532_v40 = vpop.f32.mrf.mxu1  ;;  %v4215_v43 = vsel %vm3703_vm0, %v2017_v27, %v3959_v37  ;;  %v4343_v44 = vsel %vm3831_vm14, %v2529_v28, %v4087_v38 }
 0x11d   :  { %4471 = vst [vmem:[%s6803_s4 + $0x120] sm:$0xff] %v4215_v43  ;;  %4599 = vst [vmem:[%s6803_s4 + $0x520] sm:$0xff] %v4343_v44  ;;  %v4218_v47 = vsel %vm3706_vm15, %v5130_v33, %v3962_v41  ;;  %v4346_v48 = vsel %vm3834_vm1, %v5258_v34, %v4090_v42  ;;  %vm3704_vm2 = vcmp.gt.f32.partialorder %v2020_v39, 0.0  ;;  %v3960_v49 = vmul.f32 0.2, %v2020_v39 }
 0x11e   :  { %v5133_v45 = vpop.f32.mrf.mxu0  ;;  %v5261_v46 = vpop.f32.mrf.mxu1  ;;  %4474 = vst [vmem:[%s6803_s4 + $0x138] sm:$0xff] %v4218_v47  ;;  %4602 = vst [vmem:[%s6803_s4 + $0x538] sm:$0xff] %v4346_v48  ;;  %vm3832_vm3 = vcmp.gt.f32.partialorder %v2532_v40, 0.0  ;;  %v4088_v50 = vmul.f32 0.2, %v2532_v40 }
 0x11f   :  { %vm3709_vm4 = vcmp.gt.f32.partialorder %v5133_v45, 0.0  ;;  %v3965_v53 = vmul.f32 0.2, %v5133_v45  ;;  %vm3837_vm5 = vcmp.gt.f32.partialorder %v5261_v46, 0.0  ;;  %v4093_v54 = vmul.f32 0.2, %v5261_v46 }
 0x120   :  { %v2033_v51 = vpop.f32.mrf.mxu0  ;;  %v2545_v52 = vpop.f32.mrf.mxu1  ;;  %v4216_v55 = vsel %vm3704_vm2, %v2020_v39, %v3960_v49  ;;  %v4344_v56 = vsel %vm3832_vm3, %v2532_v40, %v4088_v50 }
 0x121   :  { %4472 = vst [vmem:[%s6803_s4 + $0x128] sm:$0xff] %v4216_v55  ;;  %4600 = vst [vmem:[%s6803_s4 + $0x528] sm:$0xff] %v4344_v56  ;;  %v4221_v59 = vsel %vm3709_vm4, %v5133_v45, %v3965_v53  ;;  %v4349_v60 = vsel %vm3837_vm5, %v5261_v46, %v4093_v54  ;;  %vm3707_vm6 = vcmp.gt.f32.partialorder %v2033_v51, 0.0  ;;  %v3963_v61 = vmul.f32 0.2, %v2033_v51 }
 0x122   :  { %v5134_v57 = vpop.f32.mrf.mxu0  ;;  %v5262_v58 = vpop.f32.mrf.mxu1  ;;  %4477 = vst [vmem:[%s6803_s4 + $0x150] sm:$0xff] %v4221_v59  ;;  %4605 = vst [vmem:[%s6803_s4 + $0x550] sm:$0xff] %v4349_v60  ;;  %vm3835_vm7 = vcmp.gt.f32.partialorder %v2545_v52, 0.0  ;;  %v4091_v62 = vmul.f32 0.2, %v2545_v52 }
 0x123   :  { %vm3710_vm8 = vcmp.gt.f32.partialorder %v5134_v57, 0.0  ;;  %v3966_v1 = vmul.f32 0.2, %v5134_v57  ;;  %vm3838_vm9 = vcmp.gt.f32.partialorder %v5262_v58, 0.0  ;;  %v4094_v2 = vmul.f32 0.2, %v5262_v58 }
 0x124   :  { %v2036_v63 = vpop.f32.mrf.mxu0  ;;  %v2548_v0 = vpop.f32.mrf.mxu1  ;;  %v4219_v3 = vsel %vm3707_vm6, %v2033_v51, %v3963_v61  ;;  %v4347_v4 = vsel %vm3835_vm7, %v2545_v52, %v4091_v62 }
 0x125   :  { %4475 = vst [vmem:[%s6803_s4 + $0x140] sm:$0xff] %v4219_v3  ;;  %4603 = vst [vmem:[%s6803_s4 + $0x540] sm:$0xff] %v4347_v4  ;;  %v4222_v7 = vsel %vm3710_vm8, %v5134_v57, %v3966_v1  ;;  %v4350_v8 = vsel %vm3838_vm9, %v5262_v58, %v4094_v2  ;;  %vm3708_vm10 = vcmp.gt.f32.partialorder %v2036_v63, 0.0  ;;  %v3964_v9 = vmul.f32 0.2, %v2036_v63 }
 0x126   :  { %v5137_v5 = vpop.f32.mrf.mxu0  ;;  %v5265_v6 = vpop.f32.mrf.mxu1  ;;  %4478 = vst [vmem:[%s6803_s4 + $0x158] sm:$0xff] %v4222_v7  ;;  %4606 = vst [vmem:[%s6803_s4 + $0x558] sm:$0xff] %v4350_v8  ;;  %vm3836_vm11 = vcmp.gt.f32.partialorder %v2548_v0, 0.0  ;;  %v4092_v10 = vmul.f32 0.2, %v2548_v0 }
 0x127   :  { %vm3713_vm12 = vcmp.gt.f32.partialorder %v5137_v5, 0.0  ;;  %v3969_v13 = vmul.f32 0.2, %v5137_v5  ;;  %vm3841_vm13 = vcmp.gt.f32.partialorder %v5265_v6, 0.0  ;;  %v4097_v14 = vmul.f32 0.2, %v5265_v6 }
 0x128   :  { %v2049_v11 = vpop.f32.mrf.mxu0  ;;  %v2561_v12 = vpop.f32.mrf.mxu1  ;;  %v4220_v15 = vsel %vm3708_vm10, %v2036_v63, %v3964_v9  ;;  %v4348_v16 = vsel %vm3836_vm11, %v2548_v0, %v4092_v10 }
 0x129   :  { %4476 = vst [vmem:[%s6803_s4 + $0x148] sm:$0xff] %v4220_v15  ;;  %4604 = vst [vmem:[%s6803_s4 + $0x548] sm:$0xff] %v4348_v16  ;;  %v4225_v19 = vsel %vm3713_vm12, %v5137_v5, %v3969_v13  ;;  %v4353_v20 = vsel %vm3841_vm13, %v5265_v6, %v4097_v14  ;;  %vm3711_vm0 = vcmp.gt.f32.partialorder %v2049_v11, 0.0  ;;  %v3967_v21 = vmul.f32 0.2, %v2049_v11 }
 0x12a   :  { %v5138_v17 = vpop.f32.mrf.mxu0  ;;  %v5266_v18 = vpop.f32.mrf.mxu1  ;;  %4481 = vst [vmem:[%s6803_s4 + $0x170] sm:$0xff] %v4225_v19  ;;  %4609 = vst [vmem:[%s6803_s4 + $0x570] sm:$0xff] %v4353_v20  ;;  %vm3839_vm14 = vcmp.gt.f32.partialorder %v2561_v12, 0.0  ;;  %v4095_v22 = vmul.f32 0.2, %v2561_v12 }
 0x12b   :  { %vm3714_vm15 = vcmp.gt.f32.partialorder %v5138_v17, 0.0  ;;  %v3970_v25 = vmul.f32 0.2, %v5138_v17  ;;  %vm3842_vm1 = vcmp.gt.f32.partialorder %v5266_v18, 0.0  ;;  %v4098_v26 = vmul.f32 0.2, %v5266_v18 }
 0x12c   :  { %v2052_v23 = vpop.f32.mrf.mxu0  ;;  %v2564_v24 = vpop.f32.mrf.mxu1  ;;  %v4223_v27 = vsel %vm3711_vm0, %v2049_v11, %v3967_v21  ;;  %v4351_v28 = vsel %vm3839_vm14, %v2561_v12, %v4095_v22 }
 0x12d   :  { %4479 = vst [vmem:[%s6803_s4 + $0x160] sm:$0xff] %v4223_v27  ;;  %4607 = vst [vmem:[%s6803_s4 + $0x560] sm:$0xff] %v4351_v28  ;;  %v4226_v31 = vsel %vm3714_vm15, %v5138_v17, %v3970_v25  ;;  %v4354_v32 = vsel %vm3842_vm1, %v5266_v18, %v4098_v26  ;;  %vm3712_vm2 = vcmp.gt.f32.partialorder %v2052_v23, 0.0  ;;  %v3968_v33 = vmul.f32 0.2, %v2052_v23 }
 0x12e   :  { %v5141_v29 = vpop.f32.mrf.mxu0  ;;  %v5269_v30 = vpop.f32.mrf.mxu1  ;;  %4482 = vst [vmem:[%s6803_s4 + $0x178] sm:$0xff] %v4226_v31  ;;  %4610 = vst [vmem:[%s6803_s4 + $0x578] sm:$0xff] %v4354_v32  ;;  %vm3840_vm3 = vcmp.gt.f32.partialorder %v2564_v24, 0.0  ;;  %v4096_v34 = vmul.f32 0.2, %v2564_v24 }
 0x12f   :  { %vm3717_vm4 = vcmp.gt.f32.partialorder %v5141_v29, 0.0  ;;  %v3973_v37 = vmul.f32 0.2, %v5141_v29  ;;  %vm3845_vm5 = vcmp.gt.f32.partialorder %v5269_v30, 0.0  ;;  %v4101_v38 = vmul.f32 0.2, %v5269_v30 }
 0x130   :  { %v2065_v35 = vpop.f32.mrf.mxu0  ;;  %v2577_v36 = vpop.f32.mrf.mxu1  ;;  %v4224_v39 = vsel %vm3712_vm2, %v2052_v23, %v3968_v33  ;;  %v4352_v40 = vsel %vm3840_vm3, %v2564_v24, %v4096_v34 }
 0x131   :  { %4480 = vst [vmem:[%s6803_s4 + $0x168] sm:$0xff] %v4224_v39  ;;  %4608 = vst [vmem:[%s6803_s4 + $0x568] sm:$0xff] %v4352_v40  ;;  %v4229_v43 = vsel %vm3717_vm4, %v5141_v29, %v3973_v37  ;;  %v4357_v44 = vsel %vm3845_vm5, %v5269_v30, %v4101_v38  ;;  %vm3715_vm6 = vcmp.gt.f32.partialorder %v2065_v35, 0.0  ;;  %v3971_v45 = vmul.f32 0.2, %v2065_v35 }
 0x132   :  { %v5142_v41 = vpop.f32.mrf.mxu0  ;;  %v5270_v42 = vpop.f32.mrf.mxu1  ;;  %4485 = vst [vmem:[%s6803_s4 + $0x190] sm:$0xff] %v4229_v43  ;;  %4613 = vst [vmem:[%s6803_s4 + $0x590] sm:$0xff] %v4357_v44  ;;  %vm3843_vm7 = vcmp.gt.f32.partialorder %v2577_v36, 0.0  ;;  %v4099_v46 = vmul.f32 0.2, %v2577_v36 }
 0x133   :  { %vm3718_vm8 = vcmp.gt.f32.partialorder %v5142_v41, 0.0  ;;  %v3974_v49 = vmul.f32 0.2, %v5142_v41  ;;  %vm3846_vm9 = vcmp.gt.f32.partialorder %v5270_v42, 0.0  ;;  %v4102_v50 = vmul.f32 0.2, %v5270_v42 }
 0x134   :  { %v2068_v47 = vpop.f32.mrf.mxu0  ;;  %v2580_v48 = vpop.f32.mrf.mxu1  ;;  %v4227_v51 = vsel %vm3715_vm6, %v2065_v35, %v3971_v45  ;;  %v4355_v52 = vsel %vm3843_vm7, %v2577_v36, %v4099_v46 }
 0x135   :  { %4483 = vst [vmem:[%s6803_s4 + $0x180] sm:$0xff] %v4227_v51  ;;  %4611 = vst [vmem:[%s6803_s4 + $0x580] sm:$0xff] %v4355_v52  ;;  %v4230_v55 = vsel %vm3718_vm8, %v5142_v41, %v3974_v49  ;;  %v4358_v56 = vsel %vm3846_vm9, %v5270_v42, %v4102_v50  ;;  %vm3716_vm10 = vcmp.gt.f32.partialorder %v2068_v47, 0.0  ;;  %v3972_v57 = vmul.f32 0.2, %v2068_v47 }
 0x136   :  { %v5145_v53 = vpop.f32.mrf.mxu0  ;;  %v5273_v54 = vpop.f32.mrf.mxu1  ;;  %4486 = vst [vmem:[%s6803_s4 + $0x198] sm:$0xff] %v4230_v55  ;;  %4614 = vst [vmem:[%s6803_s4 + $0x598] sm:$0xff] %v4358_v56  ;;  %vm3844_vm11 = vcmp.gt.f32.partialorder %v2580_v48, 0.0  ;;  %v4100_v58 = vmul.f32 0.2, %v2580_v48 }
 0x137   :  { %vm3721_vm12 = vcmp.gt.f32.partialorder %v5145_v53, 0.0  ;;  %v3977_v61 = vmul.f32 0.2, %v5145_v53  ;;  %vm3849_vm13 = vcmp.gt.f32.partialorder %v5273_v54, 0.0  ;;  %v4105_v62 = vmul.f32 0.2, %v5273_v54 }
 0x138   :  { %v2081_v59 = vpop.f32.mrf.mxu0  ;;  %v2593_v60 = vpop.f32.mrf.mxu1  ;;  %v4228_v63 = vsel %vm3716_vm10, %v2068_v47, %v3972_v57  ;;  %v4356_v0 = vsel %vm3844_vm11, %v2580_v48, %v4100_v58 }
 0x139   :  { %4484 = vst [vmem:[%s6803_s4 + $0x188] sm:$0xff] %v4228_v63  ;;  %4612 = vst [vmem:[%s6803_s4 + $0x588] sm:$0xff] %v4356_v0  ;;  %v4233_v3 = vsel %vm3721_vm12, %v5145_v53, %v3977_v61  ;;  %v4361_v4 = vsel %vm3849_vm13, %v5273_v54, %v4105_v62  ;;  %vm3719_vm0 = vcmp.gt.f32.partialorder %v2081_v59, 0.0  ;;  %v3975_v5 = vmul.f32 0.2, %v2081_v59 }
 0x13a   :  { %v5146_v1 = vpop.f32.mrf.mxu0  ;;  %v5274_v2 = vpop.f32.mrf.mxu1  ;;  %4489 = vst [vmem:[%s6803_s4 + $0x1b0] sm:$0xff] %v4233_v3  ;;  %4617 = vst [vmem:[%s6803_s4 + $0x5b0] sm:$0xff] %v4361_v4  ;;  %vm3847_vm14 = vcmp.gt.f32.partialorder %v2593_v60, 0.0  ;;  %v4103_v6 = vmul.f32 0.2, %v2593_v60 }
 0x13b   :  { %vm3722_vm15 = vcmp.gt.f32.partialorder %v5146_v1, 0.0  ;;  %v3978_v9 = vmul.f32 0.2, %v5146_v1  ;;  %vm3850_vm1 = vcmp.gt.f32.partialorder %v5274_v2, 0.0  ;;  %v4106_v10 = vmul.f32 0.2, %v5274_v2 }
 0x13c   :  { %v2084_v7 = vpop.f32.mrf.mxu0  ;;  %v2596_v8 = vpop.f32.mrf.mxu1  ;;  %v4231_v11 = vsel %vm3719_vm0, %v2081_v59, %v3975_v5  ;;  %v4359_v12 = vsel %vm3847_vm14, %v2593_v60, %v4103_v6 }
 0x13d   :  { %4487 = vst [vmem:[%s6803_s4 + $0x1a0] sm:$0xff] %v4231_v11  ;;  %4615 = vst [vmem:[%s6803_s4 + $0x5a0] sm:$0xff] %v4359_v12  ;;  %v4234_v15 = vsel %vm3722_vm15, %v5146_v1, %v3978_v9  ;;  %v4362_v16 = vsel %vm3850_vm1, %v5274_v2, %v4106_v10  ;;  %vm3720_vm2 = vcmp.gt.f32.partialorder %v2084_v7, 0.0  ;;  %v3976_v17 = vmul.f32 0.2, %v2084_v7 }
 0x13e   :  { %v5149_v13 = vpop.f32.mrf.mxu0  ;;  %v5277_v14 = vpop.f32.mrf.mxu1  ;;  %4490 = vst [vmem:[%s6803_s4 + $0x1b8] sm:$0xff] %v4234_v15  ;;  %4618 = vst [vmem:[%s6803_s4 + $0x5b8] sm:$0xff] %v4362_v16  ;;  %vm3848_vm3 = vcmp.gt.f32.partialorder %v2596_v8, 0.0  ;;  %v4104_v18 = vmul.f32 0.2, %v2596_v8 }
 0x13f   :  { %vm3725_vm4 = vcmp.gt.f32.partialorder %v5149_v13, 0.0  ;;  %v3981_v21 = vmul.f32 0.2, %v5149_v13  ;;  %vm3853_vm5 = vcmp.gt.f32.partialorder %v5277_v14, 0.0  ;;  %v4109_v22 = vmul.f32 0.2, %v5277_v14 }
 0x140   :  { %v2097_v19 = vpop.f32.mrf.mxu0  ;;  %v2609_v20 = vpop.f32.mrf.mxu1  ;;  %v4232_v23 = vsel %vm3720_vm2, %v2084_v7, %v3976_v17  ;;  %v4360_v24 = vsel %vm3848_vm3, %v2596_v8, %v4104_v18 }
 0x141   :  { %4488 = vst [vmem:[%s6803_s4 + $0x1a8] sm:$0xff] %v4232_v23  ;;  %4616 = vst [vmem:[%s6803_s4 + $0x5a8] sm:$0xff] %v4360_v24  ;;  %v4237_v27 = vsel %vm3725_vm4, %v5149_v13, %v3981_v21  ;;  %v4365_v28 = vsel %vm3853_vm5, %v5277_v14, %v4109_v22  ;;  %vm3723_vm6 = vcmp.gt.f32.partialorder %v2097_v19, 0.0  ;;  %v3979_v29 = vmul.f32 0.2, %v2097_v19 }
 0x142   :  { %v5150_v25 = vpop.f32.mrf.mxu0  ;;  %v5278_v26 = vpop.f32.mrf.mxu1  ;;  %4493 = vst [vmem:[%s6803_s4 + $0x1d0] sm:$0xff] %v4237_v27  ;;  %4621 = vst [vmem:[%s6803_s4 + $0x5d0] sm:$0xff] %v4365_v28  ;;  %vm3851_vm7 = vcmp.gt.f32.partialorder %v2609_v20, 0.0  ;;  %v4107_v30 = vmul.f32 0.2, %v2609_v20 }
 0x143   :  { %vm3726_vm8 = vcmp.gt.f32.partialorder %v5150_v25, 0.0  ;;  %v3982_v33 = vmul.f32 0.2, %v5150_v25  ;;  %vm3854_vm9 = vcmp.gt.f32.partialorder %v5278_v26, 0.0  ;;  %v4110_v34 = vmul.f32 0.2, %v5278_v26 }
 0x144   :  { %v2100_v31 = vpop.f32.mrf.mxu0  ;;  %v2612_v32 = vpop.f32.mrf.mxu1  ;;  %v4235_v35 = vsel %vm3723_vm6, %v2097_v19, %v3979_v29  ;;  %v4363_v36 = vsel %vm3851_vm7, %v2609_v20, %v4107_v30 }
 0x145   :  { %4491 = vst [vmem:[%s6803_s4 + $0x1c0] sm:$0xff] %v4235_v35  ;;  %4619 = vst [vmem:[%s6803_s4 + $0x5c0] sm:$0xff] %v4363_v36  ;;  %v4238_v39 = vsel %vm3726_vm8, %v5150_v25, %v3982_v33  ;;  %v4366_v40 = vsel %vm3854_vm9, %v5278_v26, %v4110_v34  ;;  %vm3724_vm10 = vcmp.gt.f32.partialorder %v2100_v31, 0.0  ;;  %v3980_v41 = vmul.f32 0.2, %v2100_v31 }
 0x146   :  { %v5153_v37 = vpop.f32.mrf.mxu0  ;;  %v5281_v38 = vpop.f32.mrf.mxu1  ;;  %4494 = vst [vmem:[%s6803_s4 + $0x1d8] sm:$0xff] %v4238_v39  ;;  %4622 = vst [vmem:[%s6803_s4 + $0x5d8] sm:$0xff] %v4366_v40  ;;  %vm3852_vm11 = vcmp.gt.f32.partialorder %v2612_v32, 0.0  ;;  %v4108_v42 = vmul.f32 0.2, %v2612_v32 }
 0x147   :  { %vm3729_vm12 = vcmp.gt.f32.partialorder %v5153_v37, 0.0  ;;  %v3985_v45 = vmul.f32 0.2, %v5153_v37  ;;  %vm3857_vm13 = vcmp.gt.f32.partialorder %v5281_v38, 0.0  ;;  %v4113_v46 = vmul.f32 0.2, %v5281_v38 }
 0x148   :  { %v2113_v43 = vpop.f32.mrf.mxu0  ;;  %v2625_v44 = vpop.f32.mrf.mxu1  ;;  %v4236_v47 = vsel %vm3724_vm10, %v2100_v31, %v3980_v41  ;;  %v4364_v48 = vsel %vm3852_vm11, %v2612_v32, %v4108_v42 }
 0x149   :  { %4492 = vst [vmem:[%s6803_s4 + $0x1c8] sm:$0xff] %v4236_v47  ;;  %4620 = vst [vmem:[%s6803_s4 + $0x5c8] sm:$0xff] %v4364_v48  ;;  %v4241_v51 = vsel %vm3729_vm12, %v5153_v37, %v3985_v45  ;;  %v4369_v52 = vsel %vm3857_vm13, %v5281_v38, %v4113_v46  ;;  %vm3727_vm0 = vcmp.gt.f32.partialorder %v2113_v43, 0.0  ;;  %v3983_v53 = vmul.f32 0.2, %v2113_v43 }
 0x14a   :  { %v5154_v49 = vpop.f32.mrf.mxu0  ;;  %v5282_v50 = vpop.f32.mrf.mxu1  ;;  %4497 = vst [vmem:[%s6803_s4 + $0x1f0] sm:$0xff] %v4241_v51  ;;  %4625 = vst [vmem:[%s6803_s4 + $0x5f0] sm:$0xff] %v4369_v52  ;;  %vm3855_vm14 = vcmp.gt.f32.partialorder %v2625_v44, 0.0  ;;  %v4111_v54 = vmul.f32 0.2, %v2625_v44 }
 0x14b   :  { %vm3730_vm15 = vcmp.gt.f32.partialorder %v5154_v49, 0.0  ;;  %v3986_v57 = vmul.f32 0.2, %v5154_v49  ;;  %vm3858_vm1 = vcmp.gt.f32.partialorder %v5282_v50, 0.0  ;;  %v4114_v58 = vmul.f32 0.2, %v5282_v50 }
 0x14c   :  { %v2116_v55 = vpop.f32.mrf.mxu0  ;;  %v2628_v56 = vpop.f32.mrf.mxu1  ;;  %v4239_v59 = vsel %vm3727_vm0, %v2113_v43, %v3983_v53  ;;  %v4367_v60 = vsel %vm3855_vm14, %v2625_v44, %v4111_v54 }
 0x14d   :  { %4495 = vst [vmem:[%s6803_s4 + $0x1e0] sm:$0xff] %v4239_v59  ;;  %4623 = vst [vmem:[%s6803_s4 + $0x5e0] sm:$0xff] %v4367_v60  ;;  %v4242_v63 = vsel %vm3730_vm15, %v5154_v49, %v3986_v57  ;;  %v4370_v0 = vsel %vm3858_vm1, %v5282_v50, %v4114_v58  ;;  %vm3728_vm2 = vcmp.gt.f32.partialorder %v2116_v55, 0.0  ;;  %v3984_v1 = vmul.f32 0.2, %v2116_v55 }
 0x14e   :  { %v5157_v61 = vpop.f32.mrf.mxu0  ;;  %v5285_v62 = vpop.f32.mrf.mxu1  ;;  %4498 = vst [vmem:[%s6803_s4 + $0x1f8] sm:$0xff] %v4242_v63  ;;  %4626 = vst [vmem:[%s6803_s4 + $0x5f8] sm:$0xff] %v4370_v0  ;;  %vm3856_vm3 = vcmp.gt.f32.partialorder %v2628_v56, 0.0  ;;  %v4112_v2 = vmul.f32 0.2, %v2628_v56 }
 0x14f   :  { %vm3733_vm4 = vcmp.gt.f32.partialorder %v5157_v61, 0.0  ;;  %v3989_v5 = vmul.f32 0.2, %v5157_v61  ;;  %vm3861_vm5 = vcmp.gt.f32.partialorder %v5285_v62, 0.0  ;;  %v4117_v6 = vmul.f32 0.2, %v5285_v62 }
 0x150   :  { %v2129_v3 = vpop.f32.mrf.mxu0  ;;  %v2641_v4 = vpop.f32.mrf.mxu1  ;;  %v4240_v7 = vsel %vm3728_vm2, %v2116_v55, %v3984_v1  ;;  %v4368_v8 = vsel %vm3856_vm3, %v2628_v56, %v4112_v2 }
 0x151   :  { %4496 = vst [vmem:[%s6803_s4 + $0x1e8] sm:$0xff] %v4240_v7  ;;  %4624 = vst [vmem:[%s6803_s4 + $0x5e8] sm:$0xff] %v4368_v8  ;;  %v4245_v11 = vsel %vm3733_vm4, %v5157_v61, %v3989_v5  ;;  %v4373_v12 = vsel %vm3861_vm5, %v5285_v62, %v4117_v6  ;;  %vm3731_vm6 = vcmp.gt.f32.partialorder %v2129_v3, 0.0  ;;  %v3987_v13 = vmul.f32 0.2, %v2129_v3 }
 0x152   :  { %v5158_v9 = vpop.f32.mrf.mxu0  ;;  %v5286_v10 = vpop.f32.mrf.mxu1  ;;  %4501 = vst [vmem:[%s6803_s4 + $0x210] sm:$0xff] %v4245_v11  ;;  %4629 = vst [vmem:[%s6803_s4 + $0x610] sm:$0xff] %v4373_v12  ;;  %vm3859_vm7 = vcmp.gt.f32.partialorder %v2641_v4, 0.0  ;;  %v4115_v14 = vmul.f32 0.2, %v2641_v4 }
 0x153   :  { %vm3734_vm8 = vcmp.gt.f32.partialorder %v5158_v9, 0.0  ;;  %v3990_v17 = vmul.f32 0.2, %v5158_v9  ;;  %vm3862_vm9 = vcmp.gt.f32.partialorder %v5286_v10, 0.0  ;;  %v4118_v18 = vmul.f32 0.2, %v5286_v10 }
 0x154   :  { %v2132_v15 = vpop.f32.mrf.mxu0  ;;  %v2644_v16 = vpop.f32.mrf.mxu1  ;;  %v4243_v19 = vsel %vm3731_vm6, %v2129_v3, %v3987_v13  ;;  %v4371_v20 = vsel %vm3859_vm7, %v2641_v4, %v4115_v14 }
 0x155   :  { %4499 = vst [vmem:[%s6803_s4 + $0x200] sm:$0xff] %v4243_v19  ;;  %4627 = vst [vmem:[%s6803_s4 + $0x600] sm:$0xff] %v4371_v20  ;;  %v4246_v23 = vsel %vm3734_vm8, %v5158_v9, %v3990_v17  ;;  %v4374_v24 = vsel %vm3862_vm9, %v5286_v10, %v4118_v18  ;;  %vm3732_vm10 = vcmp.gt.f32.partialorder %v2132_v15, 0.0  ;;  %v3988_v25 = vmul.f32 0.2, %v2132_v15 }
 0x156   :  { %v5161_v21 = vpop.f32.mrf.mxu0  ;;  %v5289_v22 = vpop.f32.mrf.mxu1  ;;  %4502 = vst [vmem:[%s6803_s4 + $0x218] sm:$0xff] %v4246_v23  ;;  %4630 = vst [vmem:[%s6803_s4 + $0x618] sm:$0xff] %v4374_v24  ;;  %vm3860_vm11 = vcmp.gt.f32.partialorder %v2644_v16, 0.0  ;;  %v4116_v26 = vmul.f32 0.2, %v2644_v16 }
 0x157   :  { %vm3737_vm12 = vcmp.gt.f32.partialorder %v5161_v21, 0.0  ;;  %v3993_v29 = vmul.f32 0.2, %v5161_v21  ;;  %vm3865_vm13 = vcmp.gt.f32.partialorder %v5289_v22, 0.0  ;;  %v4121_v30 = vmul.f32 0.2, %v5289_v22 }
 0x158   :  { %v2145_v27 = vpop.f32.mrf.mxu0  ;;  %v2657_v28 = vpop.f32.mrf.mxu1  ;;  %v4244_v31 = vsel %vm3732_vm10, %v2132_v15, %v3988_v25  ;;  %v4372_v32 = vsel %vm3860_vm11, %v2644_v16, %v4116_v26 }
 0x159   :  { %4500 = vst [vmem:[%s6803_s4 + $0x208] sm:$0xff] %v4244_v31  ;;  %4628 = vst [vmem:[%s6803_s4 + $0x608] sm:$0xff] %v4372_v32  ;;  %v4249_v35 = vsel %vm3737_vm12, %v5161_v21, %v3993_v29  ;;  %v4377_v36 = vsel %vm3865_vm13, %v5289_v22, %v4121_v30  ;;  %vm3735_vm0 = vcmp.gt.f32.partialorder %v2145_v27, 0.0  ;;  %v3991_v37 = vmul.f32 0.2, %v2145_v27 }
 0x15a   :  { %v5162_v33 = vpop.f32.mrf.mxu0  ;;  %v5290_v34 = vpop.f32.mrf.mxu1  ;;  %4505 = vst [vmem:[%s6803_s4 + $0x230] sm:$0xff] %v4249_v35  ;;  %4633 = vst [vmem:[%s6803_s4 + $0x630] sm:$0xff] %v4377_v36  ;;  %vm3863_vm14 = vcmp.gt.f32.partialorder %v2657_v28, 0.0  ;;  %v4119_v38 = vmul.f32 0.2, %v2657_v28 }
 0x15b   :  { %vm3738_vm15 = vcmp.gt.f32.partialorder %v5162_v33, 0.0  ;;  %v3994_v41 = vmul.f32 0.2, %v5162_v33  ;;  %vm3866_vm1 = vcmp.gt.f32.partialorder %v5290_v34, 0.0  ;;  %v4122_v42 = vmul.f32 0.2, %v5290_v34 }
 0x15c   :  { %v2148_v39 = vpop.f32.mrf.mxu0  ;;  %v2660_v40 = vpop.f32.mrf.mxu1  ;;  %v4247_v43 = vsel %vm3735_vm0, %v2145_v27, %v3991_v37  ;;  %v4375_v44 = vsel %vm3863_vm14, %v2657_v28, %v4119_v38 }
 0x15d   :  { %4503 = vst [vmem:[%s6803_s4 + $0x220] sm:$0xff] %v4247_v43  ;;  %4631 = vst [vmem:[%s6803_s4 + $0x620] sm:$0xff] %v4375_v44  ;;  %v4250_v47 = vsel %vm3738_vm15, %v5162_v33, %v3994_v41  ;;  %v4378_v48 = vsel %vm3866_vm1, %v5290_v34, %v4122_v42  ;;  %vm3736_vm2 = vcmp.gt.f32.partialorder %v2148_v39, 0.0  ;;  %v3992_v49 = vmul.f32 0.2, %v2148_v39 }
 0x15e   :  { %v5165_v45 = vpop.f32.mrf.mxu0  ;;  %v5293_v46 = vpop.f32.mrf.mxu1  ;;  %4506 = vst [vmem:[%s6803_s4 + $0x238] sm:$0xff] %v4250_v47  ;;  %4634 = vst [vmem:[%s6803_s4 + $0x638] sm:$0xff] %v4378_v48  ;;  %vm3864_vm3 = vcmp.gt.f32.partialorder %v2660_v40, 0.0  ;;  %v4120_v50 = vmul.f32 0.2, %v2660_v40 }
 0x15f   :  { %vm3741_vm4 = vcmp.gt.f32.partialorder %v5165_v45, 0.0  ;;  %v3997_v53 = vmul.f32 0.2, %v5165_v45  ;;  %vm3869_vm5 = vcmp.gt.f32.partialorder %v5293_v46, 0.0  ;;  %v4125_v54 = vmul.f32 0.2, %v5293_v46 }
 0x160   :  { %v2161_v51 = vpop.f32.mrf.mxu0  ;;  %v2673_v52 = vpop.f32.mrf.mxu1  ;;  %v4248_v55 = vsel %vm3736_vm2, %v2148_v39, %v3992_v49  ;;  %v4376_v56 = vsel %vm3864_vm3, %v2660_v40, %v4120_v50 }
 0x161   :  { %4504 = vst [vmem:[%s6803_s4 + $0x228] sm:$0xff] %v4248_v55  ;;  %4632 = vst [vmem:[%s6803_s4 + $0x628] sm:$0xff] %v4376_v56  ;;  %v4253_v59 = vsel %vm3741_vm4, %v5165_v45, %v3997_v53  ;;  %v4381_v60 = vsel %vm3869_vm5, %v5293_v46, %v4125_v54  ;;  %vm3739_vm6 = vcmp.gt.f32.partialorder %v2161_v51, 0.0  ;;  %v3995_v61 = vmul.f32 0.2, %v2161_v51 }
 0x162   :  { %v5166_v57 = vpop.f32.mrf.mxu0  ;;  %v5294_v58 = vpop.f32.mrf.mxu1  ;;  %4509 = vst [vmem:[%s6803_s4 + $0x250] sm:$0xff] %v4253_v59  ;;  %4637 = vst [vmem:[%s6803_s4 + $0x650] sm:$0xff] %v4381_v60  ;;  %vm3867_vm7 = vcmp.gt.f32.partialorder %v2673_v52, 0.0  ;;  %v4123_v62 = vmul.f32 0.2, %v2673_v52 }
 0x163   :  { %vm3742_vm8 = vcmp.gt.f32.partialorder %v5166_v57, 0.0  ;;  %v3998_v1 = vmul.f32 0.2, %v5166_v57  ;;  %vm3870_vm9 = vcmp.gt.f32.partialorder %v5294_v58, 0.0  ;;  %v4126_v2 = vmul.f32 0.2, %v5294_v58 }
 0x164   :  { %v2164_v63 = vpop.f32.mrf.mxu0  ;;  %v2676_v0 = vpop.f32.mrf.mxu1  ;;  %v4251_v3 = vsel %vm3739_vm6, %v2161_v51, %v3995_v61  ;;  %v4379_v4 = vsel %vm3867_vm7, %v2673_v52, %v4123_v62 }
 0x165   :  { %4507 = vst [vmem:[%s6803_s4 + $0x240] sm:$0xff] %v4251_v3  ;;  %4635 = vst [vmem:[%s6803_s4 + $0x640] sm:$0xff] %v4379_v4  ;;  %v4254_v7 = vsel %vm3742_vm8, %v5166_v57, %v3998_v1  ;;  %v4382_v8 = vsel %vm3870_vm9, %v5294_v58, %v4126_v2  ;;  %vm3740_vm10 = vcmp.gt.f32.partialorder %v2164_v63, 0.0  ;;  %v3996_v9 = vmul.f32 0.2, %v2164_v63 }
 0x166   :  { %v5169_v5 = vpop.f32.mrf.mxu0  ;;  %v5297_v6 = vpop.f32.mrf.mxu1  ;;  %4510 = vst [vmem:[%s6803_s4 + $0x258] sm:$0xff] %v4254_v7  ;;  %4638 = vst [vmem:[%s6803_s4 + $0x658] sm:$0xff] %v4382_v8  ;;  %vm3868_vm11 = vcmp.gt.f32.partialorder %v2676_v0, 0.0  ;;  %v4124_v10 = vmul.f32 0.2, %v2676_v0 }
 0x167   :  { %vm3745_vm12 = vcmp.gt.f32.partialorder %v5169_v5, 0.0  ;;  %v4001_v13 = vmul.f32 0.2, %v5169_v5  ;;  %vm3873_vm13 = vcmp.gt.f32.partialorder %v5297_v6, 0.0  ;;  %v4129_v14 = vmul.f32 0.2, %v5297_v6 }
 0x168   :  { %v2177_v11 = vpop.f32.mrf.mxu0  ;;  %v2689_v12 = vpop.f32.mrf.mxu1  ;;  %v4252_v15 = vsel %vm3740_vm10, %v2164_v63, %v3996_v9  ;;  %v4380_v16 = vsel %vm3868_vm11, %v2676_v0, %v4124_v10 }
 0x169   :  { %4508 = vst [vmem:[%s6803_s4 + $0x248] sm:$0xff] %v4252_v15  ;;  %4636 = vst [vmem:[%s6803_s4 + $0x648] sm:$0xff] %v4380_v16  ;;  %v4257_v19 = vsel %vm3745_vm12, %v5169_v5, %v4001_v13  ;;  %v4385_v20 = vsel %vm3873_vm13, %v5297_v6, %v4129_v14  ;;  %vm3743_vm0 = vcmp.gt.f32.partialorder %v2177_v11, 0.0  ;;  %v3999_v21 = vmul.f32 0.2, %v2177_v11 }
 0x16a   :  { %v5170_v17 = vpop.f32.mrf.mxu0  ;;  %v5298_v18 = vpop.f32.mrf.mxu1  ;;  %4513 = vst [vmem:[%s6803_s4 + $0x270] sm:$0xff] %v4257_v19  ;;  %4641 = vst [vmem:[%s6803_s4 + $0x670] sm:$0xff] %v4385_v20  ;;  %vm3871_vm14 = vcmp.gt.f32.partialorder %v2689_v12, 0.0  ;;  %v4127_v22 = vmul.f32 0.2, %v2689_v12 }
 0x16b   :  { %vm3746_vm15 = vcmp.gt.f32.partialorder %v5170_v17, 0.0  ;;  %v4002_v25 = vmul.f32 0.2, %v5170_v17  ;;  %vm3874_vm1 = vcmp.gt.f32.partialorder %v5298_v18, 0.0  ;;  %v4130_v26 = vmul.f32 0.2, %v5298_v18 }
 0x16c   :  { %v2180_v23 = vpop.f32.mrf.mxu0  ;;  %v2692_v24 = vpop.f32.mrf.mxu1  ;;  %v4255_v27 = vsel %vm3743_vm0, %v2177_v11, %v3999_v21  ;;  %v4383_v28 = vsel %vm3871_vm14, %v2689_v12, %v4127_v22 }
 0x16d   :  { %4511 = vst [vmem:[%s6803_s4 + $0x260] sm:$0xff] %v4255_v27  ;;  %4639 = vst [vmem:[%s6803_s4 + $0x660] sm:$0xff] %v4383_v28  ;;  %v4258_v31 = vsel %vm3746_vm15, %v5170_v17, %v4002_v25  ;;  %v4386_v32 = vsel %vm3874_vm1, %v5298_v18, %v4130_v26  ;;  %vm3744_vm2 = vcmp.gt.f32.partialorder %v2180_v23, 0.0  ;;  %v4000_v33 = vmul.f32 0.2, %v2180_v23 }
 0x16e   :  { %v5173_v29 = vpop.f32.mrf.mxu0  ;;  %v5301_v30 = vpop.f32.mrf.mxu1  ;;  %4514 = vst [vmem:[%s6803_s4 + $0x278] sm:$0xff] %v4258_v31  ;;  %4642 = vst [vmem:[%s6803_s4 + $0x678] sm:$0xff] %v4386_v32  ;;  %vm3872_vm3 = vcmp.gt.f32.partialorder %v2692_v24, 0.0  ;;  %v4128_v34 = vmul.f32 0.2, %v2692_v24 }
 0x16f   :  { %vm3749_vm4 = vcmp.gt.f32.partialorder %v5173_v29, 0.0  ;;  %v4005_v37 = vmul.f32 0.2, %v5173_v29  ;;  %vm3877_vm5 = vcmp.gt.f32.partialorder %v5301_v30, 0.0  ;;  %v4133_v38 = vmul.f32 0.2, %v5301_v30 }
 0x170   :  { %v2193_v35 = vpop.f32.mrf.mxu0  ;;  %v2705_v36 = vpop.f32.mrf.mxu1  ;;  %v4256_v39 = vsel %vm3744_vm2, %v2180_v23, %v4000_v33  ;;  %v4384_v40 = vsel %vm3872_vm3, %v2692_v24, %v4128_v34 }
 0x171   :  { %4512 = vst [vmem:[%s6803_s4 + $0x268] sm:$0xff] %v4256_v39  ;;  %4640 = vst [vmem:[%s6803_s4 + $0x668] sm:$0xff] %v4384_v40  ;;  %v4261_v43 = vsel %vm3749_vm4, %v5173_v29, %v4005_v37  ;;  %v4389_v44 = vsel %vm3877_vm5, %v5301_v30, %v4133_v38  ;;  %vm3747_vm6 = vcmp.gt.f32.partialorder %v2193_v35, 0.0  ;;  %v4003_v45 = vmul.f32 0.2, %v2193_v35 }
 0x172   :  { %v5174_v41 = vpop.f32.mrf.mxu0  ;;  %v5302_v42 = vpop.f32.mrf.mxu1  ;;  %4517 = vst [vmem:[%s6803_s4 + $0x290] sm:$0xff] %v4261_v43  ;;  %4645 = vst [vmem:[%s6803_s4 + $0x690] sm:$0xff] %v4389_v44  ;;  %vm3875_vm7 = vcmp.gt.f32.partialorder %v2705_v36, 0.0  ;;  %v4131_v46 = vmul.f32 0.2, %v2705_v36 }
 0x173   :  { %vm3750_vm8 = vcmp.gt.f32.partialorder %v5174_v41, 0.0  ;;  %v4006_v49 = vmul.f32 0.2, %v5174_v41  ;;  %vm3878_vm9 = vcmp.gt.f32.partialorder %v5302_v42, 0.0  ;;  %v4134_v50 = vmul.f32 0.2, %v5302_v42 }
 0x174   :  { %v2196_v47 = vpop.f32.mrf.mxu0  ;;  %v2708_v48 = vpop.f32.mrf.mxu1  ;;  %v4259_v51 = vsel %vm3747_vm6, %v2193_v35, %v4003_v45  ;;  %v4387_v52 = vsel %vm3875_vm7, %v2705_v36, %v4131_v46 }
 0x175   :  { %4515 = vst [vmem:[%s6803_s4 + $0x280] sm:$0xff] %v4259_v51  ;;  %4643 = vst [vmem:[%s6803_s4 + $0x680] sm:$0xff] %v4387_v52  ;;  %v4262_v55 = vsel %vm3750_vm8, %v5174_v41, %v4006_v49  ;;  %v4390_v56 = vsel %vm3878_vm9, %v5302_v42, %v4134_v50  ;;  %vm3748_vm10 = vcmp.gt.f32.partialorder %v2196_v47, 0.0  ;;  %v4004_v57 = vmul.f32 0.2, %v2196_v47 }
 0x176   :  { %v5177_v53 = vpop.f32.mrf.mxu0  ;;  %v5305_v54 = vpop.f32.mrf.mxu1  ;;  %4518 = vst [vmem:[%s6803_s4 + $0x298] sm:$0xff] %v4262_v55  ;;  %4646 = vst [vmem:[%s6803_s4 + $0x698] sm:$0xff] %v4390_v56  ;;  %vm3876_vm11 = vcmp.gt.f32.partialorder %v2708_v48, 0.0  ;;  %v4132_v58 = vmul.f32 0.2, %v2708_v48 }
 0x177   :  { %vm3753_vm12 = vcmp.gt.f32.partialorder %v5177_v53, 0.0  ;;  %v4009_v61 = vmul.f32 0.2, %v5177_v53  ;;  %vm3881_vm13 = vcmp.gt.f32.partialorder %v5305_v54, 0.0  ;;  %v4137_v62 = vmul.f32 0.2, %v5305_v54 }
 0x178   :  { %v2209_v59 = vpop.f32.mrf.mxu0  ;;  %v2721_v60 = vpop.f32.mrf.mxu1  ;;  %v4260_v63 = vsel %vm3748_vm10, %v2196_v47, %v4004_v57  ;;  %v4388_v0 = vsel %vm3876_vm11, %v2708_v48, %v4132_v58 }
 0x179   :  { %4516 = vst [vmem:[%s6803_s4 + $0x288] sm:$0xff] %v4260_v63  ;;  %4644 = vst [vmem:[%s6803_s4 + $0x688] sm:$0xff] %v4388_v0  ;;  %v4265_v3 = vsel %vm3753_vm12, %v5177_v53, %v4009_v61  ;;  %v4393_v4 = vsel %vm3881_vm13, %v5305_v54, %v4137_v62  ;;  %vm3751_vm0 = vcmp.gt.f32.partialorder %v2209_v59, 0.0  ;;  %v4007_v5 = vmul.f32 0.2, %v2209_v59 }
 0x17a   :  { %v5178_v1 = vpop.f32.mrf.mxu0  ;;  %v5306_v2 = vpop.f32.mrf.mxu1  ;;  %4521 = vst [vmem:[%s6803_s4 + $0x2b0] sm:$0xff] %v4265_v3  ;;  %4649 = vst [vmem:[%s6803_s4 + $0x6b0] sm:$0xff] %v4393_v4  ;;  %vm3879_vm14 = vcmp.gt.f32.partialorder %v2721_v60, 0.0  ;;  %v4135_v6 = vmul.f32 0.2, %v2721_v60 }
 0x17b   :  { %vm3754_vm15 = vcmp.gt.f32.partialorder %v5178_v1, 0.0  ;;  %v4010_v9 = vmul.f32 0.2, %v5178_v1  ;;  %vm3882_vm1 = vcmp.gt.f32.partialorder %v5306_v2, 0.0  ;;  %v4138_v10 = vmul.f32 0.2, %v5306_v2 }
 0x17c   :  { %v2212_v7 = vpop.f32.mrf.mxu0  ;;  %v2724_v8 = vpop.f32.mrf.mxu1  ;;  %v4263_v11 = vsel %vm3751_vm0, %v2209_v59, %v4007_v5  ;;  %v4391_v12 = vsel %vm3879_vm14, %v2721_v60, %v4135_v6 }
 0x17d   :  { %4519 = vst [vmem:[%s6803_s4 + $0x2a0] sm:$0xff] %v4263_v11  ;;  %4647 = vst [vmem:[%s6803_s4 + $0x6a0] sm:$0xff] %v4391_v12  ;;  %v4266_v15 = vsel %vm3754_vm15, %v5178_v1, %v4010_v9  ;;  %v4394_v16 = vsel %vm3882_vm1, %v5306_v2, %v4138_v10  ;;  %vm3752_vm2 = vcmp.gt.f32.partialorder %v2212_v7, 0.0  ;;  %v4008_v17 = vmul.f32 0.2, %v2212_v7 }
 0x17e   :  { %v5181_v13 = vpop.f32.mrf.mxu0  ;;  %v5309_v14 = vpop.f32.mrf.mxu1  ;;  %4522 = vst [vmem:[%s6803_s4 + $0x2b8] sm:$0xff] %v4266_v15  ;;  %4650 = vst [vmem:[%s6803_s4 + $0x6b8] sm:$0xff] %v4394_v16  ;;  %vm3880_vm3 = vcmp.gt.f32.partialorder %v2724_v8, 0.0  ;;  %v4136_v18 = vmul.f32 0.2, %v2724_v8 }
 0x17f   :  { %vm3757_vm4 = vcmp.gt.f32.partialorder %v5181_v13, 0.0  ;;  %v4013_v21 = vmul.f32 0.2, %v5181_v13  ;;  %vm3885_vm5 = vcmp.gt.f32.partialorder %v5309_v14, 0.0  ;;  %v4141_v22 = vmul.f32 0.2, %v5309_v14 }
 0x180   :  { %v2225_v19 = vpop.f32.mrf.mxu0  ;;  %v2737_v20 = vpop.f32.mrf.mxu1  ;;  %v4264_v23 = vsel %vm3752_vm2, %v2212_v7, %v4008_v17  ;;  %v4392_v24 = vsel %vm3880_vm3, %v2724_v8, %v4136_v18 }
 0x181   :  { %4520 = vst [vmem:[%s6803_s4 + $0x2a8] sm:$0xff] %v4264_v23  ;;  %4648 = vst [vmem:[%s6803_s4 + $0x6a8] sm:$0xff] %v4392_v24  ;;  %v4269_v27 = vsel %vm3757_vm4, %v5181_v13, %v4013_v21  ;;  %v4397_v28 = vsel %vm3885_vm5, %v5309_v14, %v4141_v22  ;;  %vm3755_vm6 = vcmp.gt.f32.partialorder %v2225_v19, 0.0  ;;  %v4011_v29 = vmul.f32 0.2, %v2225_v19 }
 0x182   :  { %v5182_v25 = vpop.f32.mrf.mxu0  ;;  %v5310_v26 = vpop.f32.mrf.mxu1  ;;  %4525 = vst [vmem:[%s6803_s4 + $0x2d0] sm:$0xff] %v4269_v27  ;;  %4653 = vst [vmem:[%s6803_s4 + $0x6d0] sm:$0xff] %v4397_v28  ;;  %vm3883_vm7 = vcmp.gt.f32.partialorder %v2737_v20, 0.0  ;;  %v4139_v30 = vmul.f32 0.2, %v2737_v20 }
 0x183   :  { %vm3758_vm8 = vcmp.gt.f32.partialorder %v5182_v25, 0.0  ;;  %v4014_v33 = vmul.f32 0.2, %v5182_v25  ;;  %vm3886_vm9 = vcmp.gt.f32.partialorder %v5310_v26, 0.0  ;;  %v4142_v34 = vmul.f32 0.2, %v5310_v26 }
 0x184   :  { %v2228_v31 = vpop.f32.mrf.mxu0  ;;  %v2740_v32 = vpop.f32.mrf.mxu1  ;;  %v4267_v35 = vsel %vm3755_vm6, %v2225_v19, %v4011_v29  ;;  %v4395_v36 = vsel %vm3883_vm7, %v2737_v20, %v4139_v30 }
 0x185   :  { %4523 = vst [vmem:[%s6803_s4 + $0x2c0] sm:$0xff] %v4267_v35  ;;  %4651 = vst [vmem:[%s6803_s4 + $0x6c0] sm:$0xff] %v4395_v36  ;;  %v4270_v39 = vsel %vm3758_vm8, %v5182_v25, %v4014_v33  ;;  %v4398_v40 = vsel %vm3886_vm9, %v5310_v26, %v4142_v34  ;;  %vm3756_vm10 = vcmp.gt.f32.partialorder %v2228_v31, 0.0  ;;  %v4012_v41 = vmul.f32 0.2, %v2228_v31 }
 0x186   :  { %v5185_v37 = vpop.f32.mrf.mxu0  ;;  %v5313_v38 = vpop.f32.mrf.mxu1  ;;  %4526 = vst [vmem:[%s6803_s4 + $0x2d8] sm:$0xff] %v4270_v39  ;;  %4654 = vst [vmem:[%s6803_s4 + $0x6d8] sm:$0xff] %v4398_v40  ;;  %vm3884_vm11 = vcmp.gt.f32.partialorder %v2740_v32, 0.0  ;;  %v4140_v42 = vmul.f32 0.2, %v2740_v32 }
 0x187   :  { %vm3761_vm12 = vcmp.gt.f32.partialorder %v5185_v37, 0.0  ;;  %v4017_v45 = vmul.f32 0.2, %v5185_v37  ;;  %vm3889_vm13 = vcmp.gt.f32.partialorder %v5313_v38, 0.0  ;;  %v4145_v46 = vmul.f32 0.2, %v5313_v38 }
 0x188   :  { %v2241_v43 = vpop.f32.mrf.mxu0  ;;  %v2753_v44 = vpop.f32.mrf.mxu1  ;;  %v4268_v47 = vsel %vm3756_vm10, %v2228_v31, %v4012_v41  ;;  %v4396_v48 = vsel %vm3884_vm11, %v2740_v32, %v4140_v42 }
 0x189   :  { %4524 = vst [vmem:[%s6803_s4 + $0x2c8] sm:$0xff] %v4268_v47  ;;  %4652 = vst [vmem:[%s6803_s4 + $0x6c8] sm:$0xff] %v4396_v48  ;;  %v4273_v51 = vsel %vm3761_vm12, %v5185_v37, %v4017_v45  ;;  %v4401_v52 = vsel %vm3889_vm13, %v5313_v38, %v4145_v46  ;;  %vm3759_vm0 = vcmp.gt.f32.partialorder %v2241_v43, 0.0  ;;  %v4015_v53 = vmul.f32 0.2, %v2241_v43 }
 0x18a   :  { %v5186_v49 = vpop.f32.mrf.mxu0  ;;  %v5314_v50 = vpop.f32.mrf.mxu1  ;;  %4529 = vst [vmem:[%s6803_s4 + $0x2f0] sm:$0xff] %v4273_v51  ;;  %4657 = vst [vmem:[%s6803_s4 + $0x6f0] sm:$0xff] %v4401_v52  ;;  %vm3887_vm14 = vcmp.gt.f32.partialorder %v2753_v44, 0.0  ;;  %v4143_v54 = vmul.f32 0.2, %v2753_v44 }
 0x18b   :  { %vm3762_vm15 = vcmp.gt.f32.partialorder %v5186_v49, 0.0  ;;  %v4018_v57 = vmul.f32 0.2, %v5186_v49  ;;  %vm3890_vm1 = vcmp.gt.f32.partialorder %v5314_v50, 0.0  ;;  %v4146_v58 = vmul.f32 0.2, %v5314_v50 }
 0x18c   :  { %v2244_v55 = vpop.f32.mrf.mxu0  ;;  %v2756_v56 = vpop.f32.mrf.mxu1  ;;  %v4271_v59 = vsel %vm3759_vm0, %v2241_v43, %v4015_v53  ;;  %v4399_v60 = vsel %vm3887_vm14, %v2753_v44, %v4143_v54 }
 0x18d   :  { %4527 = vst [vmem:[%s6803_s4 + $0x2e0] sm:$0xff] %v4271_v59  ;;  %4655 = vst [vmem:[%s6803_s4 + $0x6e0] sm:$0xff] %v4399_v60  ;;  %v4274_v63 = vsel %vm3762_vm15, %v5186_v49, %v4018_v57  ;;  %v4402_v0 = vsel %vm3890_vm1, %v5314_v50, %v4146_v58  ;;  %vm3760_vm2 = vcmp.gt.f32.partialorder %v2244_v55, 0.0  ;;  %v4016_v1 = vmul.f32 0.2, %v2244_v55 }
 0x18e   :  { %v5189_v61 = vpop.f32.mrf.mxu0  ;;  %v5317_v62 = vpop.f32.mrf.mxu1  ;;  %4530 = vst [vmem:[%s6803_s4 + $0x2f8] sm:$0xff] %v4274_v63  ;;  %4658 = vst [vmem:[%s6803_s4 + $0x6f8] sm:$0xff] %v4402_v0  ;;  %vm3888_vm3 = vcmp.gt.f32.partialorder %v2756_v56, 0.0  ;;  %v4144_v2 = vmul.f32 0.2, %v2756_v56 }
 0x18f   :  { %vm3765_vm4 = vcmp.gt.f32.partialorder %v5189_v61, 0.0  ;;  %v4021_v5 = vmul.f32 0.2, %v5189_v61  ;;  %vm3893_vm5 = vcmp.gt.f32.partialorder %v5317_v62, 0.0  ;;  %v4149_v6 = vmul.f32 0.2, %v5317_v62 }
 0x190   :  { %v2257_v3 = vpop.f32.mrf.mxu0  ;;  %v2769_v4 = vpop.f32.mrf.mxu1  ;;  %v4272_v7 = vsel %vm3760_vm2, %v2244_v55, %v4016_v1  ;;  %v4400_v8 = vsel %vm3888_vm3, %v2756_v56, %v4144_v2 }
 0x191   :  { %4528 = vst [vmem:[%s6803_s4 + $0x2e8] sm:$0xff] %v4272_v7  ;;  %4656 = vst [vmem:[%s6803_s4 + $0x6e8] sm:$0xff] %v4400_v8  ;;  %v4277_v11 = vsel %vm3765_vm4, %v5189_v61, %v4021_v5  ;;  %v4405_v12 = vsel %vm3893_vm5, %v5317_v62, %v4149_v6  ;;  %vm3763_vm6 = vcmp.gt.f32.partialorder %v2257_v3, 0.0  ;;  %v4019_v13 = vmul.f32 0.2, %v2257_v3 }
 0x192   :  { %v5190_v9 = vpop.f32.mrf.mxu0  ;;  %v5318_v10 = vpop.f32.mrf.mxu1  ;;  %4533 = vst [vmem:[%s6803_s4 + $0x310] sm:$0xff] %v4277_v11  ;;  %4661 = vst [vmem:[%s6803_s4 + $0x710] sm:$0xff] %v4405_v12  ;;  %vm3891_vm7 = vcmp.gt.f32.partialorder %v2769_v4, 0.0  ;;  %v4147_v14 = vmul.f32 0.2, %v2769_v4 }
 0x193   :  { %vm3766_vm8 = vcmp.gt.f32.partialorder %v5190_v9, 0.0  ;;  %v4022_v17 = vmul.f32 0.2, %v5190_v9  ;;  %vm3894_vm9 = vcmp.gt.f32.partialorder %v5318_v10, 0.0  ;;  %v4150_v18 = vmul.f32 0.2, %v5318_v10 }
 0x194   :  { %v2260_v15 = vpop.f32.mrf.mxu0  ;;  %v2772_v16 = vpop.f32.mrf.mxu1  ;;  %v4275_v19 = vsel %vm3763_vm6, %v2257_v3, %v4019_v13  ;;  %v4403_v20 = vsel %vm3891_vm7, %v2769_v4, %v4147_v14 }
 0x195   :  { %4531 = vst [vmem:[%s6803_s4 + $0x300] sm:$0xff] %v4275_v19  ;;  %4659 = vst [vmem:[%s6803_s4 + $0x700] sm:$0xff] %v4403_v20  ;;  %v4278_v22 = vsel %vm3766_vm8, %v5190_v9, %v4022_v17  ;;  %v4406_v23 = vsel %vm3894_vm9, %v5318_v10, %v4150_v18  ;;  %vm3764_vm10 = vcmp.gt.f32.partialorder %v2260_v15, 0.0  ;;  %v4020_v25 = vmul.f32 0.2, %v2260_v15 }
 0x196   :  { %v5193_v21 = vpop.f32.mrf.mxu0  ;;  %v5321_v24 = vpop.f32.mrf.mxu1  ;;  %4534 = vst [vmem:[%s6803_s4 + $0x318] sm:$0xff] %v4278_v22  ;;  %4662 = vst [vmem:[%s6803_s4 + $0x718] sm:$0xff] %v4406_v23  ;;  %vm3892_vm11 = vcmp.gt.f32.partialorder %v2772_v16, 0.0  ;;  %v4148_v26 = vmul.f32 0.2, %v2772_v16 }
 0x197   :  { %vm3769_vm12 = vcmp.gt.f32.partialorder %v5193_v21, 0.0  ;;  %v4025_v28 = vmul.f32 0.2, %v5193_v21  ;;  %v4276_v30 = vsel %vm3764_vm10, %v2260_v15, %v4020_v25  ;;  %vm3897_vm13 = vcmp.gt.f32.partialorder %v5321_v24, 0.0 }
 0x198   :  { %v2273_v27 = vpop.f32.mrf.mxu0  ;;  %v2785_v29 = vpop.f32.mrf.mxu1  ;;  %v4404_v31 = vsel %vm3892_vm11, %v2772_v16, %v4148_v26  ;;  %4532 = vst [vmem:[%s6803_s4 + $0x308] sm:$0xff] %v4276_v30  ;;  %v4153_v34 = vmul.f32 0.2, %v5321_v24 }
 0x199   :  { %4660 = vst [vmem:[%s6803_s4 + $0x708] sm:$0xff] %v4404_v31  ;;  %v4281_v33 = vsel %vm3769_vm12, %v5193_v21, %v4025_v28  ;;  %vm3767_vm0 = vcmp.gt.f32.partialorder %v2273_v27, 0.0  ;;  %v4023_v36 = vmul.f32 0.2, %v2273_v27  ;;  %vm3895_vm14 = vcmp.gt.f32.partialorder %v2785_v29, 0.0 }
 0x19a   :  { %v5194_v32 = vpop.f32.mrf.mxu0  ;;  %v5322_v35 = vpop.f32.mrf.mxu1  ;;  %4537 = vst [vmem:[%s6803_s4 + $0x330] sm:$0xff] %v4281_v33  ;;  %v4151_v37 = vmul.f32 0.2, %v2785_v29  ;;  %v4409_v39 = vsel %vm3897_vm13, %v5321_v24, %v4153_v34 }
 0x19b   :  { %4665 = vst [vmem:[%s6803_s4 + $0x730] sm:$0xff] %v4409_v39  ;;  %v4279_v41 = vsel %vm3767_vm0, %v2273_v27, %v4023_v36  ;;  %vm3770_vm15 = vcmp.gt.f32.partialorder %v5194_v32, 0.0  ;;  %v4026_v43 = vmul.f32 0.2, %v5194_v32  ;;  %vm3898_vm1 = vcmp.gt.f32.partialorder %v5322_v35, 0.0 }
 0x19c   :  { %v2276_v38 = vpop.f32.mrf.mxu0  ;;  %v2788_v40 = vpop.f32.mrf.mxu1  ;;  %v4407_v42 = vsel %vm3895_vm14, %v2785_v29, %v4151_v37  ;;  %4535 = vst [vmem:[%s6803_s4 + $0x320] sm:$0xff] %v4279_v41  ;;  %v4154_v45 = vmul.f32 0.2, %v5322_v35 }
 0x19d   :  { %4663 = vst [vmem:[%s6803_s4 + $0x720] sm:$0xff] %v4407_v42  ;;  %vm3768_vm2 = vcmp.gt.f32.partialorder %v2276_v38, 0.0  ;;  %v4024_v46 = vmul.f32 0.2, %v2276_v38  ;;  %v4282_v48 = vsel %vm3770_vm15, %v5194_v32, %v4026_v43  ;;  %vm3896_vm3 = vcmp.gt.f32.partialorder %v2788_v40, 0.0 }
 0x19e   :  { %v5197_v44 = vpop.f32.mrf.mxu0  ;;  %v5325_v47 = vpop.f32.mrf.mxu1  ;;  %4538 = vst [vmem:[%s6803_s4 + $0x338] sm:$0xff] %v4282_v48  ;;  %v4410_v50 = vsel %vm3898_vm1, %v5322_v35, %v4154_v45  ;;  %v4152_v53 = vmul.f32 0.2, %v2788_v40 }
 0x19f   :  { %v4280_v51 = vsel %vm3768_vm2, %v2276_v38, %v4024_v46  ;;  %4666 = vst [vmem:[%s6803_s4 + $0x738] sm:$0xff] %v4410_v50  ;;  %vm3773_vm4 = vcmp.gt.f32.partialorder %v5197_v44, 0.0  ;;  %v4029_v54 = vmul.f32 0.2, %v5197_v44  ;;  %vm3901_vm5 = vcmp.gt.f32.partialorder %v5325_v47, 0.0 }
 0x1a0   :  { %v2289_v49 = vpop.f32.mrf.mxu0  ;;  %v2801_v52 = vpop.f32.mrf.mxu1  ;;  %4536 = vst [vmem:[%s6803_s4 + $0x328] sm:$0xff] %v4280_v51  ;;  %v4157_v56 = vmul.f32 0.2, %v5325_v47  ;;  %v4408_v59 = vsel %vm3896_vm3, %v2788_v40, %v4152_v53 }
 0x1a1   :  { %vm3771_vm6 = vcmp.gt.f32.partialorder %v2289_v49, 0.0  ;;  %v4027_v57 = vmul.f32 0.2, %v2289_v49  ;;  %v4285_v60 = vsel %vm3773_vm4, %v5197_v44, %v4029_v54  ;;  %4664 = vst [vmem:[%s6803_s4 + $0x728] sm:$0xff] %v4408_v59  ;;  %vm3899_vm7 = vcmp.gt.f32.partialorder %v2801_v52, 0.0 }
 0x1a2   :  { %v5198_v55 = vpop.f32.mrf.mxu0  ;;  %v5326_v58 = vpop.f32.mrf.mxu1  ;;  %4541 = vst [vmem:[%s6803_s4 + $0x350] sm:$0xff] %v4285_v60  ;;  %v4413_v62 = vsel %vm3901_vm5, %v5325_v47, %v4157_v56  ;;  %v4155_v1 = vmul.f32 0.2, %v2801_v52 }
 0x1a3   :  { %v4283_v63 = vsel %vm3771_vm6, %v2289_v49, %v4027_v57  ;;  %4669 = vst [vmem:[%s6803_s4 + $0x750] sm:$0xff] %v4413_v62  ;;  %vm3774_vm8 = vcmp.gt.f32.partialorder %v5198_v55, 0.0  ;;  %v4030_v2 = vmul.f32 0.2, %v5198_v55  ;;  %vm3902_vm9 = vcmp.gt.f32.partialorder %v5326_v58, 0.0 }
 0x1a4   :  { %v2292_v61 = vpop.f32.mrf.mxu0  ;;  %v2804_v0 = vpop.f32.mrf.mxu1  ;;  %4539 = vst [vmem:[%s6803_s4 + $0x340] sm:$0xff] %v4283_v63  ;;  %v4158_v4 = vmul.f32 0.2, %v5326_v58  ;;  %v4411_v7 = vsel %vm3899_vm7, %v2801_v52, %v4155_v1 }
 0x1a5   :  { %vm3772_vm10 = vcmp.gt.f32.partialorder %v2292_v61, 0.0  ;;  %v4028_v5 = vmul.f32 0.2, %v2292_v61  ;;  %v4286_v8 = vsel %vm3774_vm8, %v5198_v55, %v4030_v2  ;;  %4667 = vst [vmem:[%s6803_s4 + $0x740] sm:$0xff] %v4411_v7  ;;  %vm3900_vm11 = vcmp.gt.f32.partialorder %v2804_v0, 0.0 }
 0x1a6   :  { %v5201_v3 = vpop.f32.mrf.mxu0  ;;  %v5329_v6 = vpop.f32.mrf.mxu1  ;;  %4542 = vst [vmem:[%s6803_s4 + $0x358] sm:$0xff] %v4286_v8  ;;  %v4414_v10 = vsel %vm3902_vm9, %v5326_v58, %v4158_v4  ;;  %v4156_v13 = vmul.f32 0.2, %v2804_v0 }
 0x1a7   :  { %v4284_v11 = vsel %vm3772_vm10, %v2292_v61, %v4028_v5  ;;  %4670 = vst [vmem:[%s6803_s4 + $0x758] sm:$0xff] %v4414_v10  ;;  %vm3777_vm12 = vcmp.gt.f32.partialorder %v5201_v3, 0.0  ;;  %v4033_v14 = vmul.f32 0.2, %v5201_v3  ;;  %vm3905_vm13 = vcmp.gt.f32.partialorder %v5329_v6, 0.0 }
 0x1a8   :  { %v2305_v9 = vpop.f32.mrf.mxu0  ;;  %v2817_v12 = vpop.f32.mrf.mxu1  ;;  %4540 = vst [vmem:[%s6803_s4 + $0x348] sm:$0xff] %v4284_v11  ;;  %v4161_v16 = vmul.f32 0.2, %v5329_v6  ;;  %v4412_v19 = vsel %vm3900_vm11, %v2804_v0, %v4156_v13 }
 0x1a9   :  { %vm3775_vm0 = vcmp.gt.f32.partialorder %v2305_v9, 0.0  ;;  %v4031_v17 = vmul.f32 0.2, %v2305_v9  ;;  %v4289_v20 = vsel %vm3777_vm12, %v5201_v3, %v4033_v14  ;;  %4668 = vst [vmem:[%s6803_s4 + $0x748] sm:$0xff] %v4412_v19  ;;  %vm3903_vm14 = vcmp.gt.f32.partialorder %v2817_v12, 0.0 }
 0x1aa   :  { %v5202_v15 = vpop.f32.mrf.mxu0  ;;  %v5330_v18 = vpop.f32.mrf.mxu1  ;;  %4545 = vst [vmem:[%s6803_s4 + $0x370] sm:$0xff] %v4289_v20  ;;  %v4417_v22 = vsel %vm3905_vm13, %v5329_v6, %v4161_v16  ;;  %v4159_v25 = vmul.f32 0.2, %v2817_v12 }
 0x1ab   :  { %v4287_v23 = vsel %vm3775_vm0, %v2305_v9, %v4031_v17  ;;  %4673 = vst [vmem:[%s6803_s4 + $0x770] sm:$0xff] %v4417_v22  ;;  %vm3778_vm15 = vcmp.gt.f32.partialorder %v5202_v15, 0.0  ;;  %v4034_v26 = vmul.f32 0.2, %v5202_v15  ;;  %vm3906_vm1 = vcmp.gt.f32.partialorder %v5330_v18, 0.0 }
 0x1ac   :  { %v2308_v21 = vpop.f32.mrf.mxu0  ;;  %v2820_v24 = vpop.f32.mrf.mxu1  ;;  %4543 = vst [vmem:[%s6803_s4 + $0x360] sm:$0xff] %v4287_v23  ;;  %v4162_v28 = vmul.f32 0.2, %v5330_v18  ;;  %v4415_v31 = vsel %vm3903_vm14, %v2817_v12, %v4159_v25 }
 0x1ad   :  { %vm3776_vm2 = vcmp.gt.f32.partialorder %v2308_v21, 0.0  ;;  %v4032_v29 = vmul.f32 0.2, %v2308_v21  ;;  %v4290_v32 = vsel %vm3778_vm15, %v5202_v15, %v4034_v26  ;;  %4671 = vst [vmem:[%s6803_s4 + $0x760] sm:$0xff] %v4415_v31  ;;  %vm3904_vm3 = vcmp.gt.f32.partialorder %v2820_v24, 0.0 }
 0x1ae   :  { %v5205_v27 = vpop.f32.mrf.mxu0  ;;  %v5333_v30 = vpop.f32.mrf.mxu1  ;;  %4546 = vst [vmem:[%s6803_s4 + $0x378] sm:$0xff] %v4290_v32  ;;  %v4418_v34 = vsel %vm3906_vm1, %v5330_v18, %v4162_v28  ;;  %v4160_v37 = vmul.f32 0.2, %v2820_v24 }
 0x1af   :  { %v4288_v35 = vsel %vm3776_vm2, %v2308_v21, %v4032_v29  ;;  %4674 = vst [vmem:[%s6803_s4 + $0x778] sm:$0xff] %v4418_v34  ;;  %vm3781_vm4 = vcmp.gt.f32.partialorder %v5205_v27, 0.0  ;;  %v4037_v38 = vmul.f32 0.2, %v5205_v27  ;;  %vm3909_vm5 = vcmp.gt.f32.partialorder %v5333_v30, 0.0 }
 0x1b0   :  { %v2321_v33 = vpop.f32.mrf.mxu0  ;;  %v2833_v36 = vpop.f32.mrf.mxu1  ;;  %4544 = vst [vmem:[%s6803_s4 + $0x368] sm:$0xff] %v4288_v35  ;;  %v4165_v40 = vmul.f32 0.2, %v5333_v30  ;;  %v4416_v43 = vsel %vm3904_vm3, %v2820_v24, %v4160_v37 }
 0x1b1   :  { %vm3779_vm6 = vcmp.gt.f32.partialorder %v2321_v33, 0.0  ;;  %v4035_v41 = vmul.f32 0.2, %v2321_v33  ;;  %v4293_v44 = vsel %vm3781_vm4, %v5205_v27, %v4037_v38  ;;  %4672 = vst [vmem:[%s6803_s4 + $0x768] sm:$0xff] %v4416_v43  ;;  %vm3907_vm7 = vcmp.gt.f32.partialorder %v2833_v36, 0.0 }
 0x1b2   :  { %v5206_v39 = vpop.f32.mrf.mxu0  ;;  %v5334_v42 = vpop.f32.mrf.mxu1  ;;  %4549 = vst [vmem:[%s6803_s4 + $0x390] sm:$0xff] %v4293_v44  ;;  %v4421_v46 = vsel %vm3909_vm5, %v5333_v30, %v4165_v40  ;;  %v4163_v49 = vmul.f32 0.2, %v2833_v36 }
 0x1b3   :  { %v4291_v47 = vsel %vm3779_vm6, %v2321_v33, %v4035_v41  ;;  %4677 = vst [vmem:[%s6803_s4 + $0x790] sm:$0xff] %v4421_v46  ;;  %vm3782_vm8 = vcmp.gt.f32.partialorder %v5206_v39, 0.0  ;;  %v4038_v50 = vmul.f32 0.2, %v5206_v39  ;;  %vm3910_vm9 = vcmp.gt.f32.partialorder %v5334_v42, 0.0 }
 0x1b4   :  { %v2324_v45 = vpop.f32.mrf.mxu0  ;;  %v2836_v48 = vpop.f32.mrf.mxu1  ;;  %4547 = vst [vmem:[%s6803_s4 + $0x380] sm:$0xff] %v4291_v47  ;;  %v4166_v52 = vmul.f32 0.2, %v5334_v42  ;;  %v4419_v55 = vsel %vm3907_vm7, %v2833_v36, %v4163_v49 }
 0x1b5   :  { %vm3780_vm10 = vcmp.gt.f32.partialorder %v2324_v45, 0.0  ;;  %v4036_v53 = vmul.f32 0.2, %v2324_v45  ;;  %v4294_v56 = vsel %vm3782_vm8, %v5206_v39, %v4038_v50  ;;  %4675 = vst [vmem:[%s6803_s4 + $0x780] sm:$0xff] %v4419_v55  ;;  %vm3908_vm11 = vcmp.gt.f32.partialorder %v2836_v48, 0.0 }
 0x1b6   :  { %v5209_v51 = vpop.f32.mrf.mxu0  ;;  %v5337_v54 = vpop.f32.mrf.mxu1  ;;  %4550 = vst [vmem:[%s6803_s4 + $0x398] sm:$0xff] %v4294_v56  ;;  %v4422_v58 = vsel %vm3910_vm9, %v5334_v42, %v4166_v52  ;;  %v4164_v61 = vmul.f32 0.2, %v2836_v48 }
 0x1b7   :  { %v4292_v59 = vsel %vm3780_vm10, %v2324_v45, %v4036_v53  ;;  %4678 = vst [vmem:[%s6803_s4 + $0x798] sm:$0xff] %v4422_v58  ;;  %vm3785_vm12 = vcmp.gt.f32.partialorder %v5209_v51, 0.0  ;;  %v4041_v62 = vmul.f32 0.2, %v5209_v51  ;;  %vm3913_vm13 = vcmp.gt.f32.partialorder %v5337_v54, 0.0 }
 0x1b8   :  { %v2337_v57 = vpop.f32.mrf.mxu0  ;;  %v2849_v60 = vpop.f32.mrf.mxu1  ;;  %4548 = vst [vmem:[%s6803_s4 + $0x388] sm:$0xff] %v4292_v59  ;;  %v4169_v0 = vmul.f32 0.2, %v5337_v54  ;;  %v4420_v3 = vsel %vm3908_vm11, %v2836_v48, %v4164_v61 }
 0x1b9   :  { %vm3783_vm0 = vcmp.gt.f32.partialorder %v2337_v57, 0.0  ;;  %v4039_v1 = vmul.f32 0.2, %v2337_v57  ;;  %v4297_v4 = vsel %vm3785_vm12, %v5209_v51, %v4041_v62  ;;  %4676 = vst [vmem:[%s6803_s4 + $0x788] sm:$0xff] %v4420_v3  ;;  %vm3911_vm14 = vcmp.gt.f32.partialorder %v2849_v60, 0.0 }
 0x1ba   :  { %v5210_v63 = vpop.f32.mrf.mxu0  ;;  %v5338_v2 = vpop.f32.mrf.mxu1  ;;  %4553 = vst [vmem:[%s6803_s4 + $0x3b0] sm:$0xff] %v4297_v4  ;;  %v4425_v6 = vsel %vm3913_vm13, %v5337_v54, %v4169_v0  ;;  %v4167_v9 = vmul.f32 0.2, %v2849_v60 }
 0x1bb   :  { %v4295_v7 = vsel %vm3783_vm0, %v2337_v57, %v4039_v1  ;;  %4681 = vst [vmem:[%s6803_s4 + $0x7b0] sm:$0xff] %v4425_v6  ;;  %vm3786_vm15 = vcmp.gt.f32.partialorder %v5210_v63, 0.0  ;;  %v4042_v10 = vmul.f32 0.2, %v5210_v63  ;;  %vm3914_vm1 = vcmp.gt.f32.partialorder %v5338_v2, 0.0 }
 0x1bc   :  { %v2340_v5 = vpop.f32.mrf.mxu0  ;;  %v2852_v8 = vpop.f32.mrf.mxu1  ;;  %4551 = vst [vmem:[%s6803_s4 + $0x3a0] sm:$0xff] %v4295_v7  ;;  %v4170_v12 = vmul.f32 0.2, %v5338_v2  ;;  %v4423_v15 = vsel %vm3911_vm14, %v2849_v60, %v4167_v9 }
 0x1bd   :  { %vm3784_vm2 = vcmp.gt.f32.partialorder %v2340_v5, 0.0  ;;  %v4040_v13 = vmul.f32 0.2, %v2340_v5  ;;  %v4298_v16 = vsel %vm3786_vm15, %v5210_v63, %v4042_v10  ;;  %4679 = vst [vmem:[%s6803_s4 + $0x7a0] sm:$0xff] %v4423_v15  ;;  %vm3912_vm3 = vcmp.gt.f32.partialorder %v2852_v8, 0.0 }
 0x1be   :  { %v5213_v11 = vpop.f32.mrf.mxu0  ;;  %v5341_v14 = vpop.f32.mrf.mxu1  ;;  %4554 = vst [vmem:[%s6803_s4 + $0x3b8] sm:$0xff] %v4298_v16  ;;  %v4426_v18 = vsel %vm3914_vm1, %v5338_v2, %v4170_v12  ;;  %v4168_v21 = vmul.f32 0.2, %v2852_v8 }
 0x1bf   :  { %v4296_v19 = vsel %vm3784_vm2, %v2340_v5, %v4040_v13  ;;  %4682 = vst [vmem:[%s6803_s4 + $0x7b8] sm:$0xff] %v4426_v18  ;;  %vm3789_vm4 = vcmp.gt.f32.partialorder %v5213_v11, 0.0  ;;  %v4045_v22 = vmul.f32 0.2, %v5213_v11  ;;  %vm3917_vm5 = vcmp.gt.f32.partialorder %v5341_v14, 0.0 }
 0x1c0   :  { %v2353_v17 = vpop.f32.mrf.mxu0  ;;  %v2865_v20 = vpop.f32.mrf.mxu1  ;;  %4552 = vst [vmem:[%s6803_s4 + $0x3a8] sm:$0xff] %v4296_v19  ;;  %v4173_v24 = vmul.f32 0.2, %v5341_v14  ;;  %v4424_v27 = vsel %vm3912_vm3, %v2852_v8, %v4168_v21 }
 0x1c1   :  { %vm3787_vm6 = vcmp.gt.f32.partialorder %v2353_v17, 0.0  ;;  %v4043_v25 = vmul.f32 0.2, %v2353_v17  ;;  %v4301_v28 = vsel %vm3789_vm4, %v5213_v11, %v4045_v22  ;;  %4680 = vst [vmem:[%s6803_s4 + $0x7a8] sm:$0xff] %v4424_v27  ;;  %vm3915_vm7 = vcmp.gt.f32.partialorder %v2865_v20, 0.0 }
 0x1c2   :  { %v5214_v23 = vpop.f32.mrf.mxu0  ;;  %v5342_v26 = vpop.f32.mrf.mxu1  ;;  %4557 = vst [vmem:[%s6803_s4 + $0x3d0] sm:$0xff] %v4301_v28  ;;  %v4429_v30 = vsel %vm3917_vm5, %v5341_v14, %v4173_v24  ;;  %v4171_v33 = vmul.f32 0.2, %v2865_v20 }
 0x1c3   :  { %v4299_v31 = vsel %vm3787_vm6, %v2353_v17, %v4043_v25  ;;  %4685 = vst [vmem:[%s6803_s4 + $0x7d0] sm:$0xff] %v4429_v30  ;;  %vm3790_vm8 = vcmp.gt.f32.partialorder %v5214_v23, 0.0  ;;  %v4046_v34 = vmul.f32 0.2, %v5214_v23  ;;  %vm3918_vm9 = vcmp.gt.f32.partialorder %v5342_v26, 0.0 }
 0x1c4   :  { %v2356_v29 = vpop.f32.mrf.mxu0  ;;  %v2868_v32 = vpop.f32.mrf.mxu1  ;;  %4555 = vst [vmem:[%s6803_s4 + $0x3c0] sm:$0xff] %v4299_v31  ;;  %v4174_v36 = vmul.f32 0.2, %v5342_v26  ;;  %v4427_v39 = vsel %vm3915_vm7, %v2865_v20, %v4171_v33 }
 0x1c5   :  { %vm3788_vm10 = vcmp.gt.f32.partialorder %v2356_v29, 0.0  ;;  %v4044_v37 = vmul.f32 0.2, %v2356_v29  ;;  %v4302_v40 = vsel %vm3790_vm8, %v5214_v23, %v4046_v34  ;;  %4683 = vst [vmem:[%s6803_s4 + $0x7c0] sm:$0xff] %v4427_v39  ;;  %vm3916_vm11 = vcmp.gt.f32.partialorder %v2868_v32, 0.0 }
 0x1c6   :  { %v5217_v35 = vpop.f32.mrf.mxu0  ;;  %v5345_v38 = vpop.f32.mrf.mxu1  ;;  %4558 = vst [vmem:[%s6803_s4 + $0x3d8] sm:$0xff] %v4302_v40  ;;  %v4430_v42 = vsel %vm3918_vm9, %v5342_v26, %v4174_v36  ;;  %v4172_v45 = vmul.f32 0.2, %v2868_v32 }
 0x1c7   :  { %v4300_v43 = vsel %vm3788_vm10, %v2356_v29, %v4044_v37  ;;  %4686 = vst [vmem:[%s6803_s4 + $0x7d8] sm:$0xff] %v4430_v42  ;;  %vm3793_vm12 = vcmp.gt.f32.partialorder %v5217_v35, 0.0  ;;  %v4049_v46 = vmul.f32 0.2, %v5217_v35  ;;  %vm3921_vm13 = vcmp.gt.f32.partialorder %v5345_v38, 0.0 }
 0x1c8   :  { %v2369_v41 = vpop.f32.mrf.mxu0  ;;  %v2881_v44 = vpop.f32.mrf.mxu1  ;;  %4556 = vst [vmem:[%s6803_s4 + $0x3c8] sm:$0xff] %v4300_v43  ;;  %v4177_v48 = vmul.f32 0.2, %v5345_v38  ;;  %v4428_v51 = vsel %vm3916_vm11, %v2868_v32, %v4172_v45 }
 0x1c9   :  { %vm3791_vm0 = vcmp.gt.f32.partialorder %v2369_v41, 0.0  ;;  %v4047_v49 = vmul.f32 0.2, %v2369_v41  ;;  %v4305_v52 = vsel %vm3793_vm12, %v5217_v35, %v4049_v46  ;;  %4684 = vst [vmem:[%s6803_s4 + $0x7c8] sm:$0xff] %v4428_v51  ;;  %vm3919_vm14 = vcmp.gt.f32.partialorder %v2881_v44, 0.0 }
 0x1ca   :  { %v5218_v47 = vpop.f32.mrf.mxu0  ;;  %v5346_v50 = vpop.f32.mrf.mxu1  ;;  %4561 = vst [vmem:[%s6803_s4 + $0x3f0] sm:$0xff] %v4305_v52  ;;  %v4433_v54 = vsel %vm3921_vm13, %v5345_v38, %v4177_v48  ;;  %v4175_v57 = vmul.f32 0.2, %v2881_v44 }
 0x1cb   :  { %v4303_v55 = vsel %vm3791_vm0, %v2369_v41, %v4047_v49  ;;  %4689 = vst [vmem:[%s6803_s4 + $0x7f0] sm:$0xff] %v4433_v54  ;;  %vm3794_vm15 = vcmp.gt.f32.partialorder %v5218_v47, 0.0  ;;  %v4050_v58 = vmul.f32 0.2, %v5218_v47  ;;  %vm3922_vm1 = vcmp.gt.f32.partialorder %v5346_v50, 0.0 }
 0x1cc   :  { %v2372_v53 = vpop.f32.mrf.mxu0  ;;  %v2884_v56 = vpop.f32.mrf.mxu1  ;;  %4559 = vst [vmem:[%s6803_s4 + $0x3e0] sm:$0xff] %v4303_v55  ;;  %v4178_v59 = vmul.f32 0.2, %v5346_v50  ;;  %v4431_v61 = vsel %vm3919_vm14, %v2881_v44, %v4175_v57 }
 0x1cd   :  { %vm3792_vm2 = vcmp.gt.f32.partialorder %v2372_v53, 0.0  ;;  %v4048_v60 = vmul.f32 0.2, %v2372_v53  ;;  %v4306_v62 = vsel %vm3794_vm15, %v5218_v47, %v4050_v58  ;;  %4687 = vst [vmem:[%s6803_s4 + $0x7e0] sm:$0xff] %v4431_v61  ;;  %vm3920_vm3 = vcmp.gt.f32.partialorder %v2884_v56, 0.0 }
 0x1ce   :  { %4562 = vst [vmem:[%s6803_s4 + $0x3f8] sm:$0xff] %v4306_v62  ;;  %v4434_v63 = vsel %vm3922_vm1, %v5346_v50, %v4178_v59  ;;  %v4176_v1 = vmul.f32 0.2, %v2884_v56 }
 0x1cf   :  { %v4304_v0 = vsel %vm3792_vm2, %v2372_v53, %v4048_v60  ;;  %4690 = vst [vmem:[%s6803_s4 + $0x7f8] sm:$0xff] %v4434_v63 }
 0x1d0   :  { %4560 = vst [vmem:[%s6803_s4 + $0x3e8] sm:$0xff] %v4304_v0  ;;  %v4432_v2 = vsel %vm3920_vm3, %v2884_v56, %v4176_v1 }
 0x1d1   :  { %4688 = vst [vmem:[%s6803_s4 + $0x7e8] sm:$0xff] %v4432_v2 }

// kernel: discriminator_forward.5
= control target key start
LH: loop header
LB: loop body
LE: loop exit
PB: predicated region body
PF: predicated region fallthrough
CT: control target
= control target key end

     0   :  { %s6639_s0 = inlined_call_operand.vmem [shape: bf16[512,2048], index: 0, kind: input, shape index: {}]   ;;  %s6640_s1 = inlined_call_operand.vmem [shape: bf16[2048,256], index: 1, kind: input, shape index: {}]   ;;  %s6641_s2 = inlined_call_operand.vmem [shape: f32[1,256], index: 2, kind: input, shape index: {}]   ;;  %s6642_s3 = inlined_call_operand.vmem [shape: f32[1,256], index: 3, kind: input, shape index: {}]   ;;  %s6643_s4 = inlined_call_operand.vmem [shape: f32[512,256], index: 4, kind: output, shape index: {}]  }
   0x1   :  { %6692 = sst [smem:[#allocation31_spill]] %s6639_s0 }
   0x2   :  { %6693 = sst [smem:[#allocation32_spill]] %s6640_s1 }
   0x3   :  { %s4511_s15 = smov 0   ;;  %s4513_s16 = smov 0  }
   0x4   :  { %s4515_s17 = smov 0   ;;  %s4517_s18 = smov 0  }
   0x5   :  { %s4519_s19 = smov 0   ;;  %s4521_s20 = smov 0  }
   0x6   :  { %s4523_s21 = smov 0   ;;  %s4525_s22 = smov 0  }
   0x7   :  { %s4527_s23 = smov 0   ;;  %s4529_s24 = smov 0  }
   0x8   :  { %s4531_s25 = smov 0  }
   0x9 LB: > { %6694 = sst [smem:[#allocation5_spill]] %s4478_s24  ;;  %s3895_s26 = sadd.s32 4294967295, %s4482_s25   ;;  %s4482_s25 = sphi %s4531_s25, %s14_s25   ;;  %s4478_s24 = sphi %s4529_s24, %s6829_s24   ;;  %s4474_s23 = sphi %s4527_s23, %s6837_s23   ;;  %s4470_s22 = sphi %s4525_s22, %s6827_s22   ;;  %s4466_s21 = sphi %s4523_s21, %s6836_s21   ;;  %s4462_s20 = sphi %s4521_s20, %s6835_s20   ;;  %s4458_s19 = sphi %s4519_s19, %s6834_s19   ;;  %s4454_s18 = sphi %s4517_s18, %s6833_s18   ;;  %s4450_s17 = sphi %s4515_s17, %s6832_s17   ;;  %s4446_s16 = sphi %s4513_s16, %s6831_s16   ;;  %s4442_s15 = sphi %s4511_s15, %s6830_s15  }
   0xa   : > { %s23_s27 = sadd.s32 1, %s4474_s23  ;;  %s26_s28 = sadd.s32 1, %s4478_s24 }
   0xb   : > { %p24_p0 = scmp.ge.s32.totalorder %s23_s27, 4  ;;  %s33_s29 = sadd.s32 1, %s4462_s20 }
   0xc   : > { %p40_p1 = scmp.ne.s32.totalorder %s4462_s20, %s4458_s19  ;;  %p41_p2 = scmp.eq.s32.totalorder %s4482_s25, 0 }
   0xd   : > { %s6839_s27 = smov (%p24_p0, %s23_s27), 0  ;;  %s6841_s28 = smov (!%p24_p0, %s26_s28), %s4478_s24 }
   0xe   : > { %6695 = sst [smem:[#allocation6_spill]] %s6839_s27  ;;  %s30_s30 = ssub.s32 %s4474_s23, %s6839_s27 }
   0xf   : > { %p28_p3 = scmp.ge.s32.totalorder %s6841_s28, 2  ;;  %p31_p4 = scmp.eq.s32.totalorder %s30_s30, 0 }
  0x10   : > { %p4578_p5 = por %p41_p2, %p40_p1  ;;  %s61_s6 = sadd.s32 1, %s4454_s18 }
  0x11   : > { %s6843_s28 = smov (%p28_p3, %s6841_s28), 0  ;;  %p68_p6 = scmp.ne.s32.totalorder %s4454_s18, %s4450_s17 }
  0x12   : > { %6697 = sst [smem:[#allocation7_spill]] %s6843_s28  ;;  %s57_s8 = ssub.s32 %s4478_s24, %s6843_s28 }
  0x13   : > { %s4586_s7 = scalar_select %p31_p4, %s4462_s20, %s33_s29  }
  0x14   : > { %s58_s9 = sor.u32 %s57_s8, %s30_s30  ;;  %p137_p7 = scmp.eq.s32.totalorder %s57_s8, 0 }
  0x15   : > { %p59_p8 = scmp.eq.s32.totalorder %s58_s9, 0  ;;  %p4592_p9 = por %p68_p6, %p41_p2 }
  0x16   : > { %s139_s11 = sadd.s32 1, %s4446_s16  ;;  %p149_p10 = scmp.ne.s32.totalorder %s4446_s16, %s4442_s15 }
  0x17   : > { %s4600_s12 = scalar_select %p59_p8, %s4454_s18, %s61_s6  }
  0x18   : > { %s4603_s13 = scalar_select %p137_p7, %s4446_s16, %s139_s11  }
  0x19   : > { %p150_p11 = scmp.eq.s32.totalorder %s3895_s26, 7  ;;  %p3898_p13 = scmp.ge.s32.totalorder %s4482_s25, 8 }
  0x1b   : > { %p4605_p12 = por %p150_p11, %p149_p10  ;;  %172 = sbr.rel (%p3898_p13) target bundleno = 158 (0x9e), region = 16 }
  0x20   : > { %175 = sbr.rel (!%p4578_p5) target bundleno = 106 (0x6a), region = 20  ;;  %s177_s29 = sand.u32 (%p4578_p5), 1, %s4462_s20  }
  0x21   : > { %s4078_s30 = sshll.u32 (%p4578_p5), %s4474_s23, 4  ;;  %s3899_s8 = sshll.u32 (%p4578_p5), %s177_s29, 10 }
  0x22   : > { %s6700_s0 = sld [smem:[#allocation31_spill]] (%p4578_p5)  ;;  %s4622_s26 = scalar_lea.vmem (%p4578_p5), [#allocation2], %s3899_s8 }
  0x28   : > { %s4617_s11 = scalar_lea.vmem %s6700_s0, %s4078_s30 }
  0x29   : > { %v195_v0 = vld [vmem:[%s4617_s11] sm:$0xff]  ;;  %v197_v1 = vld [vmem:[%s4617_s11 + $0x8] sm:$0xff] }
  0x2a   : > { %v199_v2 = vld [vmem:[%s4617_s11 + $0x40] sm:$0xff]  ;;  %196 = vst [vmem:[%s4622_s26] sm:$0xff] %v195_v0  ;;  %198 = vst [vmem:[%s4622_s26 + $0x8] sm:$0xff] %v197_v1  ;;  %v201_v3 = vld [vmem:[%s4617_s11 + $0x48] sm:$0xff] }
  0x2b   : > { %200 = vst [vmem:[%s4622_s26 + $0x10] sm:$0xff] %v199_v2  ;;  %v203_v4 = vld [vmem:[%s4617_s11 + $0x80] sm:$0xff]  ;;  %v205_v5 = vld [vmem:[%s4617_s11 + $0x88] sm:$0xff]  ;;  %202 = vst [vmem:[%s4622_s26 + $0x18] sm:$0xff] %v201_v3 }
  0x2c   : > { %204 = vst [vmem:[%s4622_s26 + $0x20] sm:$0xff] %v203_v4  ;;  %206 = vst [vmem:[%s4622_s26 + $0x28] sm:$0xff] %v205_v5  ;;  %v207_v6 = vld [vmem:[%s4617_s11 + $0xc0] sm:$0xff]  ;;  %v209_v7 = vld [vmem:[%s4617_s11 + $0xc8] sm:$0xff] }
  0x2d   : > { %v211_v8 = vld [vmem:[%s4617_s11 + $0x100] sm:$0xff]  ;;  %208 = vst [vmem:[%s4622_s26 + $0x30] sm:$0xff] %v207_v6  ;;  %210 = vst [vmem:[%s4622_s26 + $0x38] sm:$0xff] %v209_v7  ;;  %v213_v9 = vld [vmem:[%s4617_s11 + $0x108] sm:$0xff] }
  0x2e   : > { %212 = vst [vmem:[%s4622_s26 + $0x40] sm:$0xff] %v211_v8  ;;  %v215_v10 = vld [vmem:[%s4617_s11 + $0x140] sm:$0xff]  ;;  %v217_v11 = vld [vmem:[%s4617_s11 + $0x148] sm:$0xff]  ;;  %214 = vst [vmem:[%s4622_s26 + $0x48] sm:$0xff] %v213_v9 }
  0x2f   : > { %216 = vst [vmem:[%s4622_s26 + $0x50] sm:$0xff] %v215_v10  ;;  %218 = vst [vmem:[%s4622_s26 + $0x58] sm:$0xff] %v217_v11  ;;  %v219_v12 = vld [vmem:[%s4617_s11 + $0x180] sm:$0xff]  ;;  %v221_v13 = vld [vmem:[%s4617_s11 + $0x188] sm:$0xff] }
  0x30   : > { %v223_v14 = vld [vmem:[%s4617_s11 + $0x1c0] sm:$0xff]  ;;  %220 = vst [vmem:[%s4622_s26 + $0x60] sm:$0xff] %v219_v12  ;;  %222 = vst [vmem:[%s4622_s26 + $0x68] sm:$0xff] %v221_v13  ;;  %v225_v15 = vld [vmem:[%s4617_s11 + $0x1c8] sm:$0xff] }
  0x31   : > { %224 = vst [vmem:[%s4622_s26 + $0x70] sm:$0xff] %v223_v14  ;;  %v227_v16 = vld [vmem:[%s4617_s11 + $0x200] sm:$0xff]  ;;  %v229_v17 = vld [vmem:[%s4617_s11 + $0x208] sm:$0xff]  ;;  %226 = vst [vmem:[%s4622_s26 + $0x78] sm:$0xff] %v225_v15 }
  0x32   : > { %228 = vst [vmem:[%s4622_s26 + $0x80] sm:$0xff] %v227_v16  ;;  %230 = vst [vmem:[%s4622_s26 + $0x88] sm:$0xff] %v229_v17  ;;  %v231_v18 = vld [vmem:[%s4617_s11 + $0x240] sm:$0xff]  ;;  %v233_v19 = vld [vmem:[%s4617_s11 + $0x248] sm:$0xff] }
  0x33   : > { %v235_v20 = vld [vmem:[%s4617_s11 + $0x280] sm:$0xff]  ;;  %232 = vst [vmem:[%s4622_s26 + $0x90] sm:$0xff] %v231_v18  ;;  %234 = vst [vmem:[%s4622_s26 + $0x98] sm:$0xff] %v233_v19  ;;  %v237_v21 = vld [vmem:[%s4617_s11 + $0x288] sm:$0xff] }
  0x34   : > { %236 = vst [vmem:[%s4622_s26 + $0xa0] sm:$0xff] %v235_v20  ;;  %v239_v22 = vld [vmem:[%s4617_s11 + $0x2c0] sm:$0xff]  ;;  %v241_v23 = vld [vmem:[%s4617_s11 + $0x2c8] sm:$0xff]  ;;  %238 = vst [vmem:[%s4622_s26 + $0xa8] sm:$0xff] %v237_v21 }
  0x35   : > { %240 = vst [vmem:[%s4622_s26 + $0xb0] sm:$0xff] %v239_v22  ;;  %242 = vst [vmem:[%s4622_s26 + $0xb8] sm:$0xff] %v241_v23  ;;  %v243_v24 = vld [vmem:[%s4617_s11 + $0x300] sm:$0xff]  ;;  %v245_v25 = vld [vmem:[%s4617_s11 + $0x308] sm:$0xff] }
  0x36   : > { %v247_v26 = vld [vmem:[%s4617_s11 + $0x340] sm:$0xff]  ;;  %244 = vst [vmem:[%s4622_s26 + $0xc0] sm:$0xff] %v243_v24  ;;  %246 = vst [vmem:[%s4622_s26 + $0xc8] sm:$0xff] %v245_v25  ;;  %v249_v27 = vld [vmem:[%s4617_s11 + $0x348] sm:$0xff] }
  0x37   : > { %248 = vst [vmem:[%s4622_s26 + $0xd0] sm:$0xff] %v247_v26  ;;  %v251_v28 = vld [vmem:[%s4617_s11 + $0x380] sm:$0xff]  ;;  %v253_v29 = vld [vmem:[%s4617_s11 + $0x388] sm:$0xff]  ;;  %250 = vst [vmem:[%s4622_s26 + $0xd8] sm:$0xff] %v249_v27 }
  0x38   : > { %252 = vst [vmem:[%s4622_s26 + $0xe0] sm:$0xff] %v251_v28  ;;  %254 = vst [vmem:[%s4622_s26 + $0xe8] sm:$0xff] %v253_v29  ;;  %v255_v30 = vld [vmem:[%s4617_s11 + $0x3c0] sm:$0xff]  ;;  %v257_v31 = vld [vmem:[%s4617_s11 + $0x3c8] sm:$0xff] }
  0x39   : > { %v259_v32 = vld [vmem:[%s4617_s11 + $0x400] sm:$0xff]  ;;  %256 = vst [vmem:[%s4622_s26 + $0xf0] sm:$0xff] %v255_v30  ;;  %258 = vst [vmem:[%s4622_s26 + $0xf8] sm:$0xff] %v257_v31  ;;  %v261_v33 = vld [vmem:[%s4617_s11 + $0x408] sm:$0xff] }
  0x3a   : > { %260 = vst [vmem:[%s4622_s26 + $0x100] sm:$0xff] %v259_v32  ;;  %v263_v34 = vld [vmem:[%s4617_s11 + $0x440] sm:$0xff]  ;;  %v265_v35 = vld [vmem:[%s4617_s11 + $0x448] sm:$0xff]  ;;  %262 = vst [vmem:[%s4622_s26 + $0x108] sm:$0xff] %v261_v33 }
  0x3b   : > { %264 = vst [vmem:[%s4622_s26 + $0x110] sm:$0xff] %v263_v34  ;;  %266 = vst [vmem:[%s4622_s26 + $0x118] sm:$0xff] %v265_v35  ;;  %v267_v36 = vld [vmem:[%s4617_s11 + $0x480] sm:$0xff]  ;;  %v269_v37 = vld [vmem:[%s4617_s11 + $0x488] sm:$0xff] }
  0x3c   : > { %v271_v38 = vld [vmem:[%s4617_s11 + $0x4c0] sm:$0xff]  ;;  %268 = vst [vmem:[%s4622_s26 + $0x120] sm:$0xff] %v267_v36  ;;  %270 = vst [vmem:[%s4622_s26 + $0x128] sm:$0xff] %v269_v37  ;;  %v273_v39 = vld [vmem:[%s4617_s11 + $0x4c8] sm:$0xff] }
  0x3d   : > { %272 = vst [vmem:[%s4622_s26 + $0x130] sm:$0xff] %v271_v38  ;;  %v275_v40 = vld [vmem:[%s4617_s11 + $0x500] sm:$0xff]  ;;  %v277_v41 = vld [vmem:[%s4617_s11 + $0x508] sm:$0xff]  ;;  %274 = vst [vmem:[%s4622_s26 + $0x138] sm:$0xff] %v273_v39 }
  0x3e   : > { %276 = vst [vmem:[%s4622_s26 + $0x140] sm:$0xff] %v275_v40  ;;  %278 = vst [vmem:[%s4622_s26 + $0x148] sm:$0xff] %v277_v41  ;;  %v279_v42 = vld [vmem:[%s4617_s11 + $0x540] sm:$0xff]  ;;  %v281_v43 = vld [vmem:[%s4617_s11 + $0x548] sm:$0xff] }
  0x3f   : > { %v283_v44 = vld [vmem:[%s4617_s11 + $0x580] sm:$0xff]  ;;  %280 = vst [vmem:[%s4622_s26 + $0x150] sm:$0xff] %v279_v42  ;;  %282 = vst [vmem:[%s4622_s26 + $0x158] sm:$0xff] %v281_v43  ;;  %v285_v45 = vld [vmem:[%s4617_s11 + $0x588] sm:$0xff] }
  0x40   : > { %284 = vst [vmem:[%s4622_s26 + $0x160] sm:$0xff] %v283_v44  ;;  %v287_v46 = vld [vmem:[%s4617_s11 + $0x5c0] sm:$0xff]  ;;  %v289_v47 = vld [vmem:[%s4617_s11 + $0x5c8] sm:$0xff]  ;;  %286 = vst [vmem:[%s4622_s26 + $0x168] sm:$0xff] %v285_v45 }
  0x41   : > { %288 = vst [vmem:[%s4622_s26 + $0x170] sm:$0xff] %v287_v46  ;;  %290 = vst [vmem:[%s4622_s26 + $0x178] sm:$0xff] %v289_v47  ;;  %v291_v48 = vld [vmem:[%s4617_s11 + $0x600] sm:$0xff]  ;;  %v293_v49 = vld [vmem:[%s4617_s11 + $0x608] sm:$0xff] }
  0x42   : > { %v295_v50 = vld [vmem:[%s4617_s11 + $0x640] sm:$0xff]  ;;  %292 = vst [vmem:[%s4622_s26 + $0x180] sm:$0xff] %v291_v48  ;;  %294 = vst [vmem:[%s4622_s26 + $0x188] sm:$0xff] %v293_v49  ;;  %v297_v51 = vld [vmem:[%s4617_s11 + $0x648] sm:$0xff] }
  0x43   : > { %296 = vst [vmem:[%s4622_s26 + $0x190] sm:$0xff] %v295_v50  ;;  %v299_v52 = vld [vmem:[%s4617_s11 + $0x680] sm:$0xff]  ;;  %v301_v53 = vld [vmem:[%s4617_s11 + $0x688] sm:$0xff]  ;;  %298 = vst [vmem:[%s4622_s26 + $0x198] sm:$0xff] %v297_v51 }
  0x44   : > { %300 = vst [vmem:[%s4622_s26 + $0x1a0] sm:$0xff] %v299_v52  ;;  %302 = vst [vmem:[%s4622_s26 + $0x1a8] sm:$0xff] %v301_v53  ;;  %v303_v54 = vld [vmem:[%s4617_s11 + $0x6c0] sm:$0xff]  ;;  %v305_v55 = vld [vmem:[%s4617_s11 + $0x6c8] sm:$0xff] }
  0x45   : > { %v307_v56 = vld [vmem:[%s4617_s11 + $0x700] sm:$0xff]  ;;  %304 = vst [vmem:[%s4622_s26 + $0x1b0] sm:$0xff] %v303_v54  ;;  %306 = vst [vmem:[%s4622_s26 + $0x1b8] sm:$0xff] %v305_v55  ;;  %v309_v57 = vld [vmem:[%s4617_s11 + $0x708] sm:$0xff] }
  0x46   : > { %308 = vst [vmem:[%s4622_s26 + $0x1c0] sm:$0xff] %v307_v56  ;;  %v311_v58 = vld [vmem:[%s4617_s11 + $0x740] sm:$0xff]  ;;  %v313_v59 = vld [vmem:[%s4617_s11 + $0x748] sm:$0xff]  ;;  %310 = vst [vmem:[%s4622_s26 + $0x1c8] sm:$0xff] %v309_v57 }
  0x47   : > { %312 = vst [vmem:[%s4622_s26 + $0x1d0] sm:$0xff] %v311_v58  ;;  %314 = vst [vmem:[%s4622_s26 + $0x1d8] sm:$0xff] %v313_v59  ;;  %v315_v60 = vld [vmem:[%s4617_s11 + $0x780] sm:$0xff]  ;;  %v317_v61 = vld [vmem:[%s4617_s11 + $0x788] sm:$0xff] }
  0x48   : > { %v319_v62 = vld [vmem:[%s4617_s11 + $0x7c0] sm:$0xff]  ;;  %316 = vst [vmem:[%s4622_s26 + $0x1e0] sm:$0xff] %v315_v60  ;;  %318 = vst [vmem:[%s4622_s26 + $0x1e8] sm:$0xff] %v317_v61  ;;  %v321_v63 = vld [vmem:[%s4617_s11 + $0x7c8] sm:$0xff] }
  0x49   : > { %320 = vst [vmem:[%s4622_s26 + $0x1f0] sm:$0xff] %v319_v62  ;;  %v323_v0 = vld [vmem:[%s4617_s11 + $0x800] sm:$0xff]  ;;  %v325_v1 = vld [vmem:[%s4617_s11 + $0x808] sm:$0xff]  ;;  %322 = vst [vmem:[%s4622_s26 + $0x1f8] sm:$0xff] %v321_v63 }
  0x4a   : > { %324 = vst [vmem:[%s4622_s26 + $0x200] sm:$0xff] %v323_v0  ;;  %326 = vst [vmem:[%s4622_s26 + $0x208] sm:$0xff] %v325_v1  ;;  %v327_v2 = vld [vmem:[%s4617_s11 + $0x840] sm:$0xff]  ;;  %v329_v3 = vld [vmem:[%s4617_s11 + $0x848] sm:$0xff] }
  0x4b   : > { %v331_v4 = vld [vmem:[%s4617_s11 + $0x880] sm:$0xff]  ;;  %328 = vst [vmem:[%s4622_s26 + $0x210] sm:$0xff] %v327_v2  ;;  %330 = vst [vmem:[%s4622_s26 + $0x218] sm:$0xff] %v329_v3  ;;  %v333_v5 = vld [vmem:[%s4617_s11 + $0x888] sm:$0xff] }
  0x4c   : > { %332 = vst [vmem:[%s4622_s26 + $0x220] sm:$0xff] %v331_v4  ;;  %v335_v6 = vld [vmem:[%s4617_s11 + $0x8c0] sm:$0xff]  ;;  %v337_v7 = vld [vmem:[%s4617_s11 + $0x8c8] sm:$0xff]  ;;  %334 = vst [vmem:[%s4622_s26 + $0x228] sm:$0xff] %v333_v5 }
  0x4d   : > { %336 = vst [vmem:[%s4622_s26 + $0x230] sm:$0xff] %v335_v6  ;;  %338 = vst [vmem:[%s4622_s26 + $0x238] sm:$0xff] %v337_v7  ;;  %v339_v8 = vld [vmem:[%s4617_s11 + $0x900] sm:$0xff]  ;;  %v341_v9 = vld [vmem:[%s4617_s11 + $0x908] sm:$0xff] }
  0x4e   : > { %v343_v10 = vld [vmem:[%s4617_s11 + $0x940] sm:$0xff]  ;;  %340 = vst [vmem:[%s4622_s26 + $0x240] sm:$0xff] %v339_v8  ;;  %342 = vst [vmem:[%s4622_s26 + $0x248] sm:$0xff] %v341_v9  ;;  %v345_v11 = vld [vmem:[%s4617_s11 + $0x948] sm:$0xff] }
  0x4f   : > { %344 = vst [vmem:[%s4622_s26 + $0x250] sm:$0xff] %v343_v10  ;;  %v347_v12 = vld [vmem:[%s4617_s11 + $0x980] sm:$0xff]  ;;  %v349_v13 = vld [vmem:[%s4617_s11 + $0x988] sm:$0xff]  ;;  %346 = vst [vmem:[%s4622_s26 + $0x258] sm:$0xff] %v345_v11 }
  0x50   : > { %348 = vst [vmem:[%s4622_s26 + $0x260] sm:$0xff] %v347_v12  ;;  %350 = vst [vmem:[%s4622_s26 + $0x268] sm:$0xff] %v349_v13  ;;  %v351_v14 = vld [vmem:[%s4617_s11 + $0x9c0] sm:$0xff]  ;;  %v353_v15 = vld [vmem:[%s4617_s11 + $0x9c8] sm:$0xff] }
  0x51   : > { %v355_v16 = vld [vmem:[%s4617_s11 + $0xa00] sm:$0xff]  ;;  %352 = vst [vmem:[%s4622_s26 + $0x270] sm:$0xff] %v351_v14  ;;  %354 = vst [vmem:[%s4622_s26 + $0x278] sm:$0xff] %v353_v15  ;;  %v357_v17 = vld [vmem:[%s4617_s11 + $0xa08] sm:$0xff] }
  0x52   : > { %356 = vst [vmem:[%s4622_s26 + $0x280] sm:$0xff] %v355_v16  ;;  %v359_v18 = vld [vmem:[%s4617_s11 + $0xa40] sm:$0xff]  ;;  %v361_v19 = vld [vmem:[%s4617_s11 + $0xa48] sm:$0xff]  ;;  %358 = vst [vmem:[%s4622_s26 + $0x288] sm:$0xff] %v357_v17 }
  0x53   : > { %360 = vst [vmem:[%s4622_s26 + $0x290] sm:$0xff] %v359_v18  ;;  %362 = vst [vmem:[%s4622_s26 + $0x298] sm:$0xff] %v361_v19  ;;  %v363_v20 = vld [vmem:[%s4617_s11 + $0xa80] sm:$0xff]  ;;  %v365_v21 = vld [vmem:[%s4617_s11 + $0xa88] sm:$0xff] }
  0x54   : > { %v367_v22 = vld [vmem:[%s4617_s11 + $0xac0] sm:$0xff]  ;;  %364 = vst [vmem:[%s4622_s26 + $0x2a0] sm:$0xff] %v363_v20  ;;  %366 = vst [vmem:[%s4622_s26 + $0x2a8] sm:$0xff] %v365_v21  ;;  %v369_v23 = vld [vmem:[%s4617_s11 + $0xac8] sm:$0xff] }
  0x55   : > { %368 = vst [vmem:[%s4622_s26 + $0x2b0] sm:$0xff] %v367_v22  ;;  %v371_v24 = vld [vmem:[%s4617_s11 + $0xb00] sm:$0xff]  ;;  %v373_v25 = vld [vmem:[%s4617_s11 + $0xb08] sm:$0xff]  ;;  %370 = vst [vmem:[%s4622_s26 + $0x2b8] sm:$0xff] %v369_v23 }
  0x56   : > { %372 = vst [vmem:[%s4622_s26 + $0x2c0] sm:$0xff] %v371_v24  ;;  %374 = vst [vmem:[%s4622_s26 + $0x2c8] sm:$0xff] %v373_v25  ;;  %v375_v26 = vld [vmem:[%s4617_s11 + $0xb40] sm:$0xff]  ;;  %v377_v27 = vld [vmem:[%s4617_s11 + $0xb48] sm:$0xff] }
  0x57   : > { %v379_v28 = vld [vmem:[%s4617_s11 + $0xb80] sm:$0xff]  ;;  %376 = vst [vmem:[%s4622_s26 + $0x2d0] sm:$0xff] %v375_v26  ;;  %378 = vst [vmem:[%s4622_s26 + $0x2d8] sm:$0xff] %v377_v27  ;;  %v381_v29 = vld [vmem:[%s4617_s11 + $0xb88] sm:$0xff] }
  0x58   : > { %380 = vst [vmem:[%s4622_s26 + $0x2e0] sm:$0xff] %v379_v28  ;;  %v383_v30 = vld [vmem:[%s4617_s11 + $0xbc0] sm:$0xff]  ;;  %v385_v31 = vld [vmem:[%s4617_s11 + $0xbc8] sm:$0xff]  ;;  %382 = vst [vmem:[%s4622_s26 + $0x2e8] sm:$0xff] %v381_v29 }
  0x59   : > { %384 = vst [vmem:[%s4622_s26 + $0x2f0] sm:$0xff] %v383_v30  ;;  %386 = vst [vmem:[%s4622_s26 + $0x2f8] sm:$0xff] %v385_v31  ;;  %v387_v32 = vld [vmem:[%s4617_s11 + $0xc00] sm:$0xff]  ;;  %v389_v33 = vld [vmem:[%s4617_s11 + $0xc08] sm:$0xff] }
  0x5a   : > { %v391_v34 = vld [vmem:[%s4617_s11 + $0xc40] sm:$0xff]  ;;  %388 = vst [vmem:[%s4622_s26 + $0x300] sm:$0xff] %v387_v32  ;;  %390 = vst [vmem:[%s4622_s26 + $0x308] sm:$0xff] %v389_v33  ;;  %v393_v35 = vld [vmem:[%s4617_s11 + $0xc48] sm:$0xff] }
  0x5b   : > { %392 = vst [vmem:[%s4622_s26 + $0x310] sm:$0xff] %v391_v34  ;;  %v395_v36 = vld [vmem:[%s4617_s11 + $0xc80] sm:$0xff]  ;;  %v397_v37 = vld [vmem:[%s4617_s11 + $0xc88] sm:$0xff]  ;;  %394 = vst [vmem:[%s4622_s26 + $0x318] sm:$0xff] %v393_v35 }
  0x5c   : > { %396 = vst [vmem:[%s4622_s26 + $0x320] sm:$0xff] %v395_v36  ;;  %398 = vst [vmem:[%s4622_s26 + $0x328] sm:$0xff] %v397_v37  ;;  %v399_v38 = vld [vmem:[%s4617_s11 + $0xcc0] sm:$0xff]  ;;  %v401_v39 = vld [vmem:[%s4617_s11 + $0xcc8] sm:$0xff] }
  0x5d   : > { %v403_v40 = vld [vmem:[%s4617_s11 + $0xd00] sm:$0xff]  ;;  %400 = vst [vmem:[%s4622_s26 + $0x330] sm:$0xff] %v399_v38  ;;  %402 = vst [vmem:[%s4622_s26 + $0x338] sm:$0xff] %v401_v39  ;;  %v405_v41 = vld [vmem:[%s4617_s11 + $0xd08] sm:$0xff] }
  0x5e   : > { %404 = vst [vmem:[%s4622_s26 + $0x340] sm:$0xff] %v403_v40  ;;  %v407_v42 = vld [vmem:[%s4617_s11 + $0xd40] sm:$0xff]  ;;  %v409_v43 = vld [vmem:[%s4617_s11 + $0xd48] sm:$0xff]  ;;  %406 = vst [vmem:[%s4622_s26 + $0x348] sm:$0xff] %v405_v41 }
  0x5f   : > { %408 = vst [vmem:[%s4622_s26 + $0x350] sm:$0xff] %v407_v42  ;;  %410 = vst [vmem:[%s4622_s26 + $0x358] sm:$0xff] %v409_v43  ;;  %v411_v44 = vld [vmem:[%s4617_s11 + $0xd80] sm:$0xff]  ;;  %v413_v45 = vld [vmem:[%s4617_s11 + $0xd88] sm:$0xff] }
  0x60   : > { %v415_v46 = vld [vmem:[%s4617_s11 + $0xdc0] sm:$0xff]  ;;  %412 = vst [vmem:[%s4622_s26 + $0x360] sm:$0xff] %v411_v44  ;;  %414 = vst [vmem:[%s4622_s26 + $0x368] sm:$0xff] %v413_v45  ;;  %v417_v47 = vld [vmem:[%s4617_s11 + $0xdc8] sm:$0xff] }
  0x61   : > { %416 = vst [vmem:[%s4622_s26 + $0x370] sm:$0xff] %v415_v46  ;;  %v419_v48 = vld [vmem:[%s4617_s11 + $0xe00] sm:$0xff]  ;;  %v421_v49 = vld [vmem:[%s4617_s11 + $0xe08] sm:$0xff]  ;;  %418 = vst [vmem:[%s4622_s26 + $0x378] sm:$0xff] %v417_v47 }
  0x62   : > { %420 = vst [vmem:[%s4622_s26 + $0x380] sm:$0xff] %v419_v48  ;;  %422 = vst [vmem:[%s4622_s26 + $0x388] sm:$0xff] %v421_v49  ;;  %v423_v50 = vld [vmem:[%s4617_s11 + $0xe40] sm:$0xff]  ;;  %v425_v51 = vld [vmem:[%s4617_s11 + $0xe48] sm:$0xff] }
  0x63   : > { %v427_v52 = vld [vmem:[%s4617_s11 + $0xe80] sm:$0xff]  ;;  %424 = vst [vmem:[%s4622_s26 + $0x390] sm:$0xff] %v423_v50  ;;  %426 = vst [vmem:[%s4622_s26 + $0x398] sm:$0xff] %v425_v51  ;;  %v429_v53 = vld [vmem:[%s4617_s11 + $0xe88] sm:$0xff] }
  0x64   : > { %428 = vst [vmem:[%s4622_s26 + $0x3a0] sm:$0xff] %v427_v52  ;;  %v431_v54 = vld [vmem:[%s4617_s11 + $0xec0] sm:$0xff]  ;;  %v433_v55 = vld [vmem:[%s4617_s11 + $0xec8] sm:$0xff]  ;;  %430 = vst [vmem:[%s4622_s26 + $0x3a8] sm:$0xff] %v429_v53 }
  0x65   : > { %432 = vst [vmem:[%s4622_s26 + $0x3b0] sm:$0xff] %v431_v54  ;;  %434 = vst [vmem:[%s4622_s26 + $0x3b8] sm:$0xff] %v433_v55  ;;  %v435_v56 = vld [vmem:[%s4617_s11 + $0xf00] sm:$0xff]  ;;  %v437_v57 = vld [vmem:[%s4617_s11 + $0xf08] sm:$0xff] }
  0x66   : > { %v439_v58 = vld [vmem:[%s4617_s11 + $0xf40] sm:$0xff]  ;;  %436 = vst [vmem:[%s4622_s26 + $0x3c0] sm:$0xff] %v435_v56  ;;  %438 = vst [vmem:[%s4622_s26 + $0x3c8] sm:$0xff] %v437_v57  ;;  %v441_v59 = vld [vmem:[%s4617_s11 + $0xf48] sm:$0xff] }
  0x67   : > { %440 = vst [vmem:[%s4622_s26 + $0x3d0] sm:$0xff] %v439_v58  ;;  %v443_v60 = vld [vmem:[%s4617_s11 + $0xf80] sm:$0xff]  ;;  %v445_v61 = vld [vmem:[%s4617_s11 + $0xf88] sm:$0xff]  ;;  %442 = vst [vmem:[%s4622_s26 + $0x3d8] sm:$0xff] %v441_v59 }
  0x68   : > { %444 = vst [vmem:[%s4622_s26 + $0x3e0] sm:$0xff] %v443_v60  ;;  %446 = vst [vmem:[%s4622_s26 + $0x3e8] sm:$0xff] %v445_v61  ;;  %v447_v62 = vld [vmem:[%s4617_s11 + $0xfc0] sm:$0xff]  ;;  %v449_v63 = vld [vmem:[%s4617_s11 + $0xfc8] sm:$0xff] }
  0x69   : > { %448 = vst [vmem:[%s4622_s26 + $0x3f0] sm:$0xff] %v447_v62  ;;  %450 = vst [vmem:[%s4622_s26 + $0x3f8] sm:$0xff] %v449_v63 }
  0x6a PF: > { %456 = sbr.rel (!%p4592_p9) target bundleno = 158 (0x9e), region = 43  ;;  %s458_s5 = sand.u32 (%p4592_p9), 1, %s4454_s18  }
  0x6b   : > { %s4079_s29 = sshll.u32 (%p4592_p9), %s4474_s23, 7  ;;  %s3902_s30 = sshll.u32 (%p4592_p9), %s458_s5, 8 }
  0x6c   : > { %s463_s8 = sadd.s32 (%p4592_p9), %s4478_s24, %s4079_s29  ;;  %s6701_s1 = sld [smem:[#allocation32_spill]] (%p4592_p9) }
  0x6d   : > { %s3905_s6 = sshll.u32 (%p4592_p9), %s463_s8, 2  ;;  %s4890_s10 = scalar_lea.vmem (%p4592_p9), [#allocation3], %s3902_s30 }
  0x72   : > { %s4885_s28 = scalar_lea.vmem %s6701_s1, %s3905_s6 }
  0x73   : > { %v482_v0 = vld [vmem:[%s4885_s28] sm:$0xf]  ;;  %v484_v1 = vld [vmem:[%s4885_s28 + $0x8] sm:$0xf]  ;;  %v486_v2 = vld [vmem:[%s4885_s28 + $0x10] sm:$0xf] }
  0x74   : > { %483 = vst [vmem:[%s4890_s10] sm:$0xf] %v482_v0  ;;  %485 = vst [vmem:[%s4890_s10 + $0x4] sm:$0xf] %v484_v1  ;;  %v488_v3 = vld [vmem:[%s4885_s28 + $0x18] sm:$0xf] }
  0x75   : > { %487 = vst [vmem:[%s4890_s10 + $0x8] sm:$0xf] %v486_v2  ;;  %v490_v4 = vld [vmem:[%s4885_s28 + $0x20] sm:$0xf]  ;;  %v492_v5 = vld [vmem:[%s4885_s28 + $0x28] sm:$0xf] }
  0x76   : > { %489 = vst [vmem:[%s4890_s10 + $0xc] sm:$0xf] %v488_v3  ;;  %491 = vst [vmem:[%s4890_s10 + $0x10] sm:$0xf] %v490_v4  ;;  %v494_v6 = vld [vmem:[%s4885_s28 + $0x30] sm:$0xf] }
  0x77   : > { %493 = vst [vmem:[%s4890_s10 + $0x14] sm:$0xf] %v492_v5  ;;  %v496_v7 = vld [vmem:[%s4885_s28 + $0x38] sm:$0xf]  ;;  %v498_v8 = vld [vmem:[%s4885_s28 + $0x40] sm:$0xf] }
  0x78   : > { %495 = vst [vmem:[%s4890_s10 + $0x18] sm:$0xf] %v494_v6  ;;  %497 = vst [vmem:[%s4890_s10 + $0x1c] sm:$0xf] %v496_v7  ;;  %v500_v9 = vld [vmem:[%s4885_s28 + $0x48] sm:$0xf] }
  0x79   : > { %499 = vst [vmem:[%s4890_s10 + $0x20] sm:$0xf] %v498_v8  ;;  %v502_v10 = vld [vmem:[%s4885_s28 + $0x50] sm:$0xf]  ;;  %v504_v11 = vld [vmem:[%s4885_s28 + $0x58] sm:$0xf] }
  0x7a   : > { %501 = vst [vmem:[%s4890_s10 + $0x24] sm:$0xf] %v500_v9  ;;  %503 = vst [vmem:[%s4890_s10 + $0x28] sm:$0xf] %v502_v10  ;;  %v506_v12 = vld [vmem:[%s4885_s28 + $0x60] sm:$0xf] }
  0x7b   : > { %505 = vst [vmem:[%s4890_s10 + $0x2c] sm:$0xf] %v504_v11  ;;  %v508_v13 = vld [vmem:[%s4885_s28 + $0x68] sm:$0xf]  ;;  %v510_v14 = vld [vmem:[%s4885_s28 + $0x70] sm:$0xf] }
  0x7c   : > { %507 = vst [vmem:[%s4890_s10 + $0x30] sm:$0xf] %v506_v12  ;;  %509 = vst [vmem:[%s4890_s10 + $0x34] sm:$0xf] %v508_v13  ;;  %v512_v15 = vld [vmem:[%s4885_s28 + $0x78] sm:$0xf] }
  0x7d   : > { %511 = vst [vmem:[%s4890_s10 + $0x38] sm:$0xf] %v510_v14  ;;  %v514_v16 = vld [vmem:[%s4885_s28 + $0x80] sm:$0xf]  ;;  %v516_v17 = vld [vmem:[%s4885_s28 + $0x88] sm:$0xf] }
  0x7e   : > { %513 = vst [vmem:[%s4890_s10 + $0x3c] sm:$0xf] %v512_v15  ;;  %515 = vst [vmem:[%s4890_s10 + $0x40] sm:$0xf] %v514_v16  ;;  %v518_v18 = vld [vmem:[%s4885_s28 + $0x90] sm:$0xf] }
  0x7f   : > { %517 = vst [vmem:[%s4890_s10 + $0x44] sm:$0xf] %v516_v17  ;;  %v520_v19 = vld [vmem:[%s4885_s28 + $0x98] sm:$0xf]  ;;  %v522_v20 = vld [vmem:[%s4885_s28 + $0xa0] sm:$0xf] }
  0x80   : > { %519 = vst [vmem:[%s4890_s10 + $0x48] sm:$0xf] %v518_v18  ;;  %521 = vst [vmem:[%s4890_s10 + $0x4c] sm:$0xf] %v520_v19  ;;  %v524_v21 = vld [vmem:[%s4885_s28 + $0xa8] sm:$0xf] }
  0x81   : > { %523 = vst [vmem:[%s4890_s10 + $0x50] sm:$0xf] %v522_v20  ;;  %v526_v22 = vld [vmem:[%s4885_s28 + $0xb0] sm:$0xf]  ;;  %v528_v23 = vld [vmem:[%s4885_s28 + $0xb8] sm:$0xf] }
  0x82   : > { %525 = vst [vmem:[%s4890_s10 + $0x54] sm:$0xf] %v524_v21  ;;  %527 = vst [vmem:[%s4890_s10 + $0x58] sm:$0xf] %v526_v22  ;;  %v530_v24 = vld [vmem:[%s4885_s28 + $0xc0] sm:$0xf] }
  0x83   : > { %529 = vst [vmem:[%s4890_s10 + $0x5c] sm:$0xf] %v528_v23  ;;  %v532_v25 = vld [vmem:[%s4885_s28 + $0xc8] sm:$0xf]  ;;  %v534_v26 = vld [vmem:[%s4885_s28 + $0xd0] sm:$0xf] }
  0x84   : > { %531 = vst [vmem:[%s4890_s10 + $0x60] sm:$0xf] %v530_v24  ;;  %533 = vst [vmem:[%s4890_s10 + $0x64] sm:$0xf] %v532_v25  ;;  %v536_v27 = vld [vmem:[%s4885_s28 + $0xd8] sm:$0xf] }
  0x85   : > { %535 = vst [vmem:[%s4890_s10 + $0x68] sm:$0xf] %v534_v26  ;;  %v538_v28 = vld [vmem:[%s4885_s28 + $0xe0] sm:$0xf]  ;;  %v540_v29 = vld [vmem:[%s4885_s28 + $0xe8] sm:$0xf] }
  0x86   : > { %537 = vst [vmem:[%s4890_s10 + $0x6c] sm:$0xf] %v536_v27  ;;  %539 = vst [vmem:[%s4890_s10 + $0x70] sm:$0xf] %v538_v28  ;;  %v542_v30 = vld [vmem:[%s4885_s28 + $0xf0] sm:$0xf] }
  0x87   : > { %541 = vst [vmem:[%s4890_s10 + $0x74] sm:$0xf] %v540_v29  ;;  %v544_v31 = vld [vmem:[%s4885_s28 + $0xf8] sm:$0xf]  ;;  %v546_v32 = vld [vmem:[%s4885_s28 + $0x100] sm:$0xf] }
  0x88   : > { %543 = vst [vmem:[%s4890_s10 + $0x78] sm:$0xf] %v542_v30  ;;  %545 = vst [vmem:[%s4890_s10 + $0x7c] sm:$0xf] %v544_v31  ;;  %v548_v33 = vld [vmem:[%s4885_s28 + $0x108] sm:$0xf] }
  0x89   : > { %547 = vst [vmem:[%s4890_s10 + $0x80] sm:$0xf] %v546_v32  ;;  %v550_v34 = vld [vmem:[%s4885_s28 + $0x110] sm:$0xf]  ;;  %v552_v35 = vld [vmem:[%s4885_s28 + $0x118] sm:$0xf] }
  0x8a   : > { %549 = vst [vmem:[%s4890_s10 + $0x84] sm:$0xf] %v548_v33  ;;  %551 = vst [vmem:[%s4890_s10 + $0x88] sm:$0xf] %v550_v34  ;;  %v554_v36 = vld [vmem:[%s4885_s28 + $0x120] sm:$0xf] }
  0x8b   : > { %553 = vst [vmem:[%s4890_s10 + $0x8c] sm:$0xf] %v552_v35  ;;  %v556_v37 = vld [vmem:[%s4885_s28 + $0x128] sm:$0xf]  ;;  %v558_v38 = vld [vmem:[%s4885_s28 + $0x130] sm:$0xf] }
  0x8c   : > { %555 = vst [vmem:[%s4890_s10 + $0x90] sm:$0xf] %v554_v36  ;;  %557 = vst [vmem:[%s4890_s10 + $0x94] sm:$0xf] %v556_v37  ;;  %v560_v39 = vld [vmem:[%s4885_s28 + $0x138] sm:$0xf] }
  0x8d   : > { %559 = vst [vmem:[%s4890_s10 + $0x98] sm:$0xf] %v558_v38  ;;  %v562_v40 = vld [vmem:[%s4885_s28 + $0x140] sm:$0xf]  ;;  %v564_v41 = vld [vmem:[%s4885_s28 + $0x148] sm:$0xf] }
  0x8e   : > { %561 = vst [vmem:[%s4890_s10 + $0x9c] sm:$0xf] %v560_v39  ;;  %563 = vst [vmem:[%s4890_s10 + $0xa0] sm:$0xf] %v562_v40  ;;  %v566_v42 = vld [vmem:[%s4885_s28 + $0x150] sm:$0xf] }
  0x8f   : > { %565 = vst [vmem:[%s4890_s10 + $0xa4] sm:$0xf] %v564_v41  ;;  %v568_v43 = vld [vmem:[%s4885_s28 + $0x158] sm:$0xf]  ;;  %v570_v44 = vld [vmem:[%s4885_s28 + $0x160] sm:$0xf] }
  0x90   : > { %567 = vst [vmem:[%s4890_s10 + $0xa8] sm:$0xf] %v566_v42  ;;  %569 = vst [vmem:[%s4890_s10 + $0xac] sm:$0xf] %v568_v43  ;;  %v572_v45 = vld [vmem:[%s4885_s28 + $0x168] sm:$0xf] }
  0x91   : > { %571 = vst [vmem:[%s4890_s10 + $0xb0] sm:$0xf] %v570_v44  ;;  %v574_v46 = vld [vmem:[%s4885_s28 + $0x170] sm:$0xf]  ;;  %v576_v47 = vld [vmem:[%s4885_s28 + $0x178] sm:$0xf] }
  0x92   : > { %573 = vst [vmem:[%s4890_s10 + $0xb4] sm:$0xf] %v572_v45  ;;  %575 = vst [vmem:[%s4890_s10 + $0xb8] sm:$0xf] %v574_v46  ;;  %v578_v48 = vld [vmem:[%s4885_s28 + $0x180] sm:$0xf] }
  0x93   : > { %577 = vst [vmem:[%s4890_s10 + $0xbc] sm:$0xf] %v576_v47  ;;  %v580_v49 = vld [vmem:[%s4885_s28 + $0x188] sm:$0xf]  ;;  %v582_v50 = vld [vmem:[%s4885_s28 + $0x190] sm:$0xf] }
  0x94   : > { %579 = vst [vmem:[%s4890_s10 + $0xc0] sm:$0xf] %v578_v48  ;;  %581 = vst [vmem:[%s4890_s10 + $0xc4] sm:$0xf] %v580_v49  ;;  %v584_v51 = vld [vmem:[%s4885_s28 + $0x198] sm:$0xf] }
  0x95   : > { %583 = vst [vmem:[%s4890_s10 + $0xc8] sm:$0xf] %v582_v50  ;;  %v586_v52 = vld [vmem:[%s4885_s28 + $0x1a0] sm:$0xf]  ;;  %v588_v53 = vld [vmem:[%s4885_s28 + $0x1a8] sm:$0xf] }
  0x96   : > { %585 = vst [vmem:[%s4890_s10 + $0xcc] sm:$0xf] %v584_v51  ;;  %587 = vst [vmem:[%s4890_s10 + $0xd0] sm:$0xf] %v586_v52  ;;  %v590_v54 = vld [vmem:[%s4885_s28 + $0x1b0] sm:$0xf] }
  0x97   : > { %589 = vst [vmem:[%s4890_s10 + $0xd4] sm:$0xf] %v588_v53  ;;  %v592_v55 = vld [vmem:[%s4885_s28 + $0x1b8] sm:$0xf]  ;;  %v594_v56 = vld [vmem:[%s4885_s28 + $0x1c0] sm:$0xf] }
  0x98   : > { %591 = vst [vmem:[%s4890_s10 + $0xd8] sm:$0xf] %v590_v54  ;;  %593 = vst [vmem:[%s4890_s10 + $0xdc] sm:$0xf] %v592_v55  ;;  %v596_v57 = vld [vmem:[%s4885_s28 + $0x1c8] sm:$0xf] }
  0x99   : > { %595 = vst [vmem:[%s4890_s10 + $0xe0] sm:$0xf] %v594_v56  ;;  %v598_v58 = vld [vmem:[%s4885_s28 + $0x1d0] sm:$0xf]  ;;  %v600_v59 = vld [vmem:[%s4885_s28 + $0x1d8] sm:$0xf] }
  0x9a   : > { %597 = vst [vmem:[%s4890_s10 + $0xe4] sm:$0xf] %v596_v57  ;;  %599 = vst [vmem:[%s4890_s10 + $0xe8] sm:$0xf] %v598_v58  ;;  %v602_v60 = vld [vmem:[%s4885_s28 + $0x1e0] sm:$0xf] }
  0x9b   : > { %601 = vst [vmem:[%s4890_s10 + $0xec] sm:$0xf] %v600_v59  ;;  %v604_v61 = vld [vmem:[%s4885_s28 + $0x1e8] sm:$0xf]  ;;  %v606_v62 = vld [vmem:[%s4885_s28 + $0x1f0] sm:$0xf] }
  0x9c   : > { %603 = vst [vmem:[%s4890_s10 + $0xf0] sm:$0xf] %v602_v60  ;;  %605 = vst [vmem:[%s4890_s10 + $0xf4] sm:$0xf] %v604_v61  ;;  %v608_v63 = vld [vmem:[%s4885_s28 + $0x1f8] sm:$0xf] }
  0x9d   : > { %607 = vst [vmem:[%s4890_s10 + $0xf8] sm:$0xf] %v606_v62  ;;  %609 = vst [vmem:[%s4890_s10 + $0xfc] sm:$0xf] %v608_v63 }
  0x9e PF: > { %p3906_p0 = scmp.ge.s32.totalorder %s4482_s25, 1  ;;  %p772_p1 = scmp.lt.s32.totalorder %s4482_s25, 9 }
  0xa0   : > { %p773_p2 = pnand %p3906_p0, %p772_p1 }
  0xa1   : > { %s779_s0 = sand.u32 (!%p773_p2), 1, %s4458_s19   ;;  %s786_s11 = sand.u32 (!%p773_p2), 1, %s4450_s17  }
  0xa2   : > { %776 = sbr.rel (%p773_p2) target bundleno = 1033 (0x409), region = 92  ;;  %s3907_s26 = sshll.u32 (!%p773_p2), %s779_s0, 10 }
  0xa3   : > { %s3908_s5 = sshll.u32 (!%p773_p2), %s786_s11, 8  ;;  %s817_s29 = sand.u32 (!%p773_p2), 1, %s4442_s15  }
  0xa4   : > { %p822_p3 = scmp.lt.s32.totalorder (!%p773_p2), %s4470_s22, 1  ;;  %s3909_s28 = sshll.u32 (!%p773_p2), %s817_s29, 9 }
  0xa5   : > { %s5034_s24 = scalar_lea.vmem (!%p773_p2), [#allocation2], %s3907_s26  ;;  %s5036_s17 = scalar_lea.vmem (!%p773_p2), [#allocation3], %s3908_s5 }
  0xa6   : > { %s5038_s19 = scalar_lea.vmem (!%p773_p2), [#allocation4], %s3909_s28  ;;  %p3910_p4 = scmp.ne.s32.totalorder (!%p773_p2), %s4466_s21, 0 }
  0xa7   : > { %s5024_s30 = scalar_select %p822_p3, %s4470_s22, 1 }
  0xa8   : > { %832 = sbr.rel (%p3910_p4) target bundleno = 206 (0xce), region = 104 }
  0xa9   : > { %s824_s9 = scalar_lea.vmem %s6641_s2, %s5024_s30  ;;  %s827_s27 = scalar_lea.vmem %s6642_s3, %s5024_s30 }
  0xad   : > { %v4484_v0 = vmov 0.0  }
  0xae   : > { %833 = vst [vmem:[%s5038_s19] sm:$0xff] %v4484_v0  ;;  %834 = vst [vmem:[%s5038_s19 + $0x8] sm:$0xff] %v4484_v0 }
  0xaf   : > { %835 = vst [vmem:[%s5038_s19 + $0x10] sm:$0xff] %v4484_v0  ;;  %836 = vst [vmem:[%s5038_s19 + $0x18] sm:$0xff] %v4484_v0 }
  0xb0   : > { %837 = vst [vmem:[%s5038_s19 + $0x20] sm:$0xff] %v4484_v0  ;;  %838 = vst [vmem:[%s5038_s19 + $0x28] sm:$0xff] %v4484_v0 }
  0xb1   : > { %839 = vst [vmem:[%s5038_s19 + $0x30] sm:$0xff] %v4484_v0  ;;  %840 = vst [vmem:[%s5038_s19 + $0x38] sm:$0xff] %v4484_v0 }
  0xb2   : > { %841 = vst [vmem:[%s5038_s19 + $0x40] sm:$0xff] %v4484_v0  ;;  %842 = vst [vmem:[%s5038_s19 + $0x48] sm:$0xff] %v4484_v0 }
  0xb3   : > { %843 = vst [vmem:[%s5038_s19 + $0x50] sm:$0xff] %v4484_v0  ;;  %844 = vst [vmem:[%s5038_s19 + $0x58] sm:$0xff] %v4484_v0 }
  0xb4   : > { %845 = vst [vmem:[%s5038_s19 + $0x60] sm:$0xff] %v4484_v0  ;;  %846 = vst [vmem:[%s5038_s19 + $0x68] sm:$0xff] %v4484_v0 }
  0xb5   : > { %847 = vst [vmem:[%s5038_s19 + $0x70] sm:$0xff] %v4484_v0  ;;  %848 = vst [vmem:[%s5038_s19 + $0x78] sm:$0xff] %v4484_v0 }
  0xb6   : > { %849 = vst [vmem:[%s5038_s19 + $0x80] sm:$0xff] %v4484_v0  ;;  %850 = vst [vmem:[%s5038_s19 + $0x88] sm:$0xff] %v4484_v0 }
  0xb7   : > { %851 = vst [vmem:[%s5038_s19 + $0x90] sm:$0xff] %v4484_v0  ;;  %852 = vst [vmem:[%s5038_s19 + $0x98] sm:$0xff] %v4484_v0 }
  0xb8   : > { %853 = vst [vmem:[%s5038_s19 + $0xa0] sm:$0xff] %v4484_v0  ;;  %854 = vst [vmem:[%s5038_s19 + $0xa8] sm:$0xff] %v4484_v0 }
  0xb9   : > { %855 = vst [vmem:[%s5038_s19 + $0xb0] sm:$0xff] %v4484_v0  ;;  %856 = vst [vmem:[%s5038_s19 + $0xb8] sm:$0xff] %v4484_v0 }
  0xba   : > { %857 = vst [vmem:[%s5038_s19 + $0xc0] sm:$0xff] %v4484_v0  ;;  %858 = vst [vmem:[%s5038_s19 + $0xc8] sm:$0xff] %v4484_v0 }
  0xbb   : > { %859 = vst [vmem:[%s5038_s19 + $0xd0] sm:$0xff] %v4484_v0  ;;  %860 = vst [vmem:[%s5038_s19 + $0xd8] sm:$0xff] %v4484_v0 }
  0xbc   : > { %861 = vst [vmem:[%s5038_s19 + $0xe0] sm:$0xff] %v4484_v0  ;;  %862 = vst [vmem:[%s5038_s19 + $0xe8] sm:$0xff] %v4484_v0 }
  0xbd   : > { %863 = vst [vmem:[%s5038_s19 + $0xf0] sm:$0xff] %v4484_v0  ;;  %864 = vst [vmem:[%s5038_s19 + $0xf8] sm:$0xff] %v4484_v0 }
  0xbe   : > { %865 = vst [vmem:[%s5038_s19 + $0x100] sm:$0xff] %v4484_v0  ;;  %866 = vst [vmem:[%s5038_s19 + $0x108] sm:$0xff] %v4484_v0 }
  0xbf   : > { %867 = vst [vmem:[%s5038_s19 + $0x110] sm:$0xff] %v4484_v0  ;;  %868 = vst [vmem:[%s5038_s19 + $0x118] sm:$0xff] %v4484_v0 }
  0xc0   : > { %869 = vst [vmem:[%s5038_s19 + $0x120] sm:$0xff] %v4484_v0  ;;  %870 = vst [vmem:[%s5038_s19 + $0x128] sm:$0xff] %v4484_v0 }
  0xc1   : > { %871 = vst [vmem:[%s5038_s19 + $0x130] sm:$0xff] %v4484_v0  ;;  %872 = vst [vmem:[%s5038_s19 + $0x138] sm:$0xff] %v4484_v0 }
  0xc2   : > { %873 = vst [vmem:[%s5038_s19 + $0x140] sm:$0xff] %v4484_v0  ;;  %874 = vst [vmem:[%s5038_s19 + $0x148] sm:$0xff] %v4484_v0 }
  0xc3   : > { %875 = vst [vmem:[%s5038_s19 + $0x150] sm:$0xff] %v4484_v0  ;;  %876 = vst [vmem:[%s5038_s19 + $0x158] sm:$0xff] %v4484_v0 }
  0xc4   : > { %877 = vst [vmem:[%s5038_s19 + $0x160] sm:$0xff] %v4484_v0  ;;  %878 = vst [vmem:[%s5038_s19 + $0x168] sm:$0xff] %v4484_v0 }
  0xc5   : > { %879 = vst [vmem:[%s5038_s19 + $0x170] sm:$0xff] %v4484_v0  ;;  %880 = vst [vmem:[%s5038_s19 + $0x178] sm:$0xff] %v4484_v0 }
  0xc6   : > { %881 = vst [vmem:[%s5038_s19 + $0x180] sm:$0xff] %v4484_v0  ;;  %882 = vst [vmem:[%s5038_s19 + $0x188] sm:$0xff] %v4484_v0 }
  0xc7   : > { %883 = vst [vmem:[%s5038_s19 + $0x190] sm:$0xff] %v4484_v0  ;;  %884 = vst [vmem:[%s5038_s19 + $0x198] sm:$0xff] %v4484_v0 }
  0xc8   : > { %885 = vst [vmem:[%s5038_s19 + $0x1a0] sm:$0xff] %v4484_v0  ;;  %886 = vst [vmem:[%s5038_s19 + $0x1a8] sm:$0xff] %v4484_v0 }
  0xc9   : > { %887 = vst [vmem:[%s5038_s19 + $0x1b0] sm:$0xff] %v4484_v0  ;;  %888 = vst [vmem:[%s5038_s19 + $0x1b8] sm:$0xff] %v4484_v0 }
  0xca   : > { %889 = vst [vmem:[%s5038_s19 + $0x1c0] sm:$0xff] %v4484_v0  ;;  %890 = vst [vmem:[%s5038_s19 + $0x1c8] sm:$0xff] %v4484_v0 }
  0xcb   : > { %891 = vst [vmem:[%s5038_s19 + $0x1d0] sm:$0xff] %v4484_v0  ;;  %892 = vst [vmem:[%s5038_s19 + $0x1d8] sm:$0xff] %v4484_v0 }
  0xcc   : > { %893 = vst [vmem:[%s5038_s19 + $0x1e0] sm:$0xff] %v4484_v0  ;;  %894 = vst [vmem:[%s5038_s19 + $0x1e8] sm:$0xff] %v4484_v0 }
  0xcd   : > { %895 = vst [vmem:[%s5038_s19 + $0x1f0] sm:$0xff] %v4484_v0  ;;  %896 = vst [vmem:[%s5038_s19 + $0x1f8] sm:$0xff] %v4484_v0 }
  0xce PF: > { %v4170_v1 = vld [vmem:[%s5036_s17 + $0x38] sm:$0xff]   ;;  %v4485_v2 = vmov 0   ;;  %v4172_v4 = vld [vmem:[%s5036_s17 + $0x30] sm:$0xff]   ;;  %v4174_v6 = vld [vmem:[%s5036_s17 + $0x28] sm:$0xff]   ;;  %p4071_p5 = scmp.ne.s32.totalorder %s4466_s21, 3 }
  0xcf   : > { %1985 = vmatprep.subr.bf16.mxu0 %v4485_v2  ;;  %2274 = vmatprep.subr.bf16.mxu1 %v4485_v2  ;;  %v4171_v3 = vld [vmem:[%s5036_s17 + $0xb8] sm:$0xff]   ;;  %v4173_v5 = vld [vmem:[%s5036_s17 + $0xb0] sm:$0xff]   ;;  %v4175_v7 = vld [vmem:[%s5036_s17 + $0xa8] sm:$0xff]  }
  0xd0   : > { %1986 = vmatpush1.bf16.msra.mxu0 %v4170_v1  ;;  %2275 = vmatpush1.bf16.msra.mxu1 %v4171_v3  ;;  %v4176_v8 = vld [vmem:[%s5036_s17 + $0x20] sm:$0xff]   ;;  %v4178_v10 = vld [vmem:[%s5036_s17 + $0x18] sm:$0xff]   ;;  %v4180_v12 = vld [vmem:[%s5036_s17 + $0x10] sm:$0xff]  }
  0xd1   : > { %1987 = vmatprep.subr.bf16.mxu0 %v4485_v2  ;;  %2276 = vmatprep.subr.bf16.mxu1 %v4485_v2  ;;  %v4177_v9 = vld [vmem:[%s5036_s17 + $0xa0] sm:$0xff]   ;;  %v4179_v11 = vld [vmem:[%s5036_s17 + $0x98] sm:$0xff]   ;;  %v4181_v13 = vld [vmem:[%s5036_s17 + $0x90] sm:$0xff]  }
  0xd2   : > { %v4182_v14 = vld [vmem:[%s5036_s17 + $0x8] sm:$0xff]   ;;  %v4184_v16 = vld [vmem:[%s5036_s17] sm:$0xff]   ;;  %v4186_v18 = vld [vmem:[%s5036_s17 + $0x78] sm:$0xff]  }
  0xd3   : > { %v4183_v15 = vld [vmem:[%s5036_s17 + $0x88] sm:$0xff]   ;;  %v4185_v17 = vld [vmem:[%s5036_s17 + $0x80] sm:$0xff]   ;;  %v4187_v19 = vld [vmem:[%s5036_s17 + $0xf8] sm:$0xff]  }
  0xd4   : > { %1988 = vmatpush1.bf16.msra.mxu0 %v4172_v4  ;;  %2277 = vmatpush1.bf16.msra.mxu1 %v4173_v5  ;;  %v4204_v20 = vld [vmem:[%s5034_s24 + $0x4] ss:$16 sps:$4 sm:$0xff]   ;;  %v4207_v22 = vld [vmem:[%s5034_s24 + $0xc] ss:$16 sps:$4 sm:$0xff]   ;;  %v4202_v36 = vld [vmem:[%s5034_s24] ss:$16 sps:$4 sm:$0xff]  }
  0xd5   : > { %1989 = vmatprep.subr.bf16.mxu0 %v4485_v2  ;;  %2278 = vmatprep.subr.bf16.mxu1 %v4485_v2  ;;  %v4188_v21 = vld [vmem:[%s5036_s17 + $0x70] sm:$0xff]   ;;  %v4190_v24 = vld [vmem:[%s5036_s17 + $0x68] sm:$0xff]   ;;  %v4192_v26 = vld [vmem:[%s5036_s17 + $0x60] sm:$0xff]  }
  0xd6   : > { %v4189_v23 = vld [vmem:[%s5036_s17 + $0xf0] sm:$0xff]   ;;  %2017 = vmatprep.mubr.bf16.mxu0 %v4204_v20  ;;  %2306 = vmatprep.mubr.bf16.mxu1 %v4207_v22  ;;  %v4191_v25 = vld [vmem:[%s5036_s17 + $0xe8] sm:$0xff]   ;;  %v4193_v27 = vld [vmem:[%s5036_s17 + $0xe0] sm:$0xff]  }
  0xd7   : > { %v4194_v28 = vld [vmem:[%s5036_s17 + $0x58] sm:$0xff]   ;;  %v4196_v30 = vld [vmem:[%s5036_s17 + $0x50] sm:$0xff]   ;;  %v4198_v32 = vld [vmem:[%s5036_s17 + $0x48] sm:$0xff]  }
  0xd8   : > { %1990 = vmatpush1.bf16.msra.mxu0 %v4174_v6  ;;  %2279 = vmatpush1.bf16.msra.mxu1 %v4175_v7  ;;  %v4195_v29 = vld [vmem:[%s5036_s17 + $0xd8] sm:$0xff]   ;;  %v4197_v31 = vld [vmem:[%s5036_s17 + $0xd0] sm:$0xff]   ;;  %v4199_v33 = vld [vmem:[%s5036_s17 + $0xc8] sm:$0xff]  }
  0xd9   : > { %1991 = vmatprep.subr.bf16.mxu0 %v4485_v2  ;;  %2280 = vmatprep.subr.bf16.mxu1 %v4485_v2  ;;  %v4200_v34 = vld [vmem:[%s5036_s17 + $0x40] sm:$0xff]   ;;  %v4205_v37 = vld [vmem:[%s5034_s24 + $0x8] ss:$16 sps:$4 sm:$0xff]   ;;  %v4210_v39 = vld [vmem:[%s5034_s24 + $0x2c] ss:$16 sps:$4 sm:$0xff]  }
  0xda   : > { %v4201_v35 = vld [vmem:[%s5036_s17 + $0xc0] sm:$0xff]   ;;  %v4213_v41 = vld [vmem:[%s5034_s24 + $0x28] ss:$16 sps:$4 sm:$0xff]   ;;  %v4216_v43 = vld [vmem:[%s5034_s24 + $0x4c] ss:$16 sps:$4 sm:$0xff]  }
  0xdb   : > { %v4208_v38 = vld [vmem:[%s5034_s24 + $0x24] ss:$16 sps:$4 sm:$0xff]   ;;  %v4212_v40 = vld [vmem:[%s5034_s24 + $0x20] ss:$16 sps:$4 sm:$0xff]   ;;  %v4219_v45 = vld [vmem:[%s5034_s24 + $0x48] ss:$16 sps:$4 sm:$0xff]  }
  0xdc   : > { %1992 = vmatpush1.bf16.msra.mxu0 %v4176_v8  ;;  %2281 = vmatpush1.bf16.msra.mxu1 %v4177_v9  ;;  %v4214_v42 = vld [vmem:[%s5034_s24 + $0x44] ss:$16 sps:$4 sm:$0xff]   ;;  %v4218_v44 = vld [vmem:[%s5034_s24 + $0x40] ss:$16 sps:$4 sm:$0xff]   ;;  %v4222_v47 = vld [vmem:[%s5034_s24 + $0x6c] ss:$16 sps:$4 sm:$0xff]  }
  0xdd   : > { %1993 = vmatprep.subr.bf16.mxu0 %v4485_v2  ;;  %2282 = vmatprep.subr.bf16.mxu1 %v4485_v2  ;;  %v4220_v46 = vld [vmem:[%s5034_s24 + $0x64] ss:$16 sps:$4 sm:$0xff]   ;;  %v4224_v48 = vld [vmem:[%s5034_s24 + $0x60] ss:$16 sps:$4 sm:$0xff]   ;;  %v4225_v49 = vld [vmem:[%s5034_s24 + $0x68] ss:$16 sps:$4 sm:$0xff]  }
  0xde   : > { %v4226_v50 = vld [vmem:[%s5034_s24 + $0x84] ss:$16 sps:$4 sm:$0xff]   ;;  %v4228_v51 = vld [vmem:[%s5034_s24 + $0x8c] ss:$16 sps:$4 sm:$0xff]   ;;  %v4230_v52 = vld [vmem:[%s5034_s24 + $0x80] ss:$16 sps:$4 sm:$0xff]  }
  0xdf   : > { %v4231_v53 = vld [vmem:[%s5034_s24 + $0x88] ss:$16 sps:$4 sm:$0xff]   ;;  %v4232_v54 = vld [vmem:[%s5034_s24 + $0xa4] ss:$16 sps:$4 sm:$0xff]   ;;  %v4234_v55 = vld [vmem:[%s5034_s24 + $0xac] ss:$16 sps:$4 sm:$0xff]  }
  0xe0   : > { %1994 = vmatpush1.bf16.msra.mxu0 %v4178_v10  ;;  %2283 = vmatpush1.bf16.msra.mxu1 %v4179_v11  ;;  %v4236_v56 = vld [vmem:[%s5034_s24 + $0xa0] ss:$16 sps:$4 sm:$0xff]   ;;  %v4237_v57 = vld [vmem:[%s5034_s24 + $0xa8] ss:$16 sps:$4 sm:$0xff]   ;;  %v4238_v58 = vld [vmem:[%s5034_s24 + $0xc4] ss:$16 sps:$4 sm:$0xff]  }
  0xe1   : > { %1995 = vmatprep.subr.bf16.mxu0 %v4485_v2  ;;  %2284 = vmatprep.subr.bf16.mxu1 %v4485_v2  ;;  %v4240_v59 = vld [vmem:[%s5034_s24 + $0xcc] ss:$16 sps:$4 sm:$0xff]   ;;  %v4242_v60 = vld [vmem:[%s5034_s24 + $0xc0] ss:$16 sps:$4 sm:$0xff]   ;;  %v4243_v61 = vld [vmem:[%s5034_s24 + $0xc8] ss:$16 sps:$4 sm:$0xff]  }
  0xe2   : > { %v4244_v62 = vld [vmem:[%s5034_s24 + $0xe4] ss:$16 sps:$4 sm:$0xff]   ;;  %v4246_v63 = vld [vmem:[%s5034_s24 + $0xec] ss:$16 sps:$4 sm:$0xff]   ;;  %v4248_v0 = vld [vmem:[%s5034_s24 + $0xe0] ss:$16 sps:$4 sm:$0xff]  }
  0xe3   : > { %v4249_v1 = vld [vmem:[%s5034_s24 + $0xe8] ss:$16 sps:$4 sm:$0xff]   ;;  %v4252_v3 = vld [vmem:[%s5034_s24 + $0x10c] ss:$16 sps:$4 sm:$0xff]   ;;  %v4254_v4 = vld [vmem:[%s5034_s24 + $0x100] ss:$16 sps:$4 sm:$0xff]  }
  0xe4   : > { %1996 = vmatpush1.bf16.msra.mxu0 %v4180_v12  ;;  %2285 = vmatpush1.bf16.msra.mxu1 %v4181_v13  ;;  %v4255_v5 = vld [vmem:[%s5034_s24 + $0x108] ss:$16 sps:$4 sm:$0xff]   ;;  %v4256_v6 = vld [vmem:[%s5034_s24 + $0x124] ss:$16 sps:$4 sm:$0xff]   ;;  %v4258_v7 = vld [vmem:[%s5034_s24 + $0x12c] ss:$16 sps:$4 sm:$0xff]  }
  0xe5   : > { %1997 = vmatprep.subr.bf16.mxu0 %v4485_v2  ;;  %2286 = vmatprep.subr.bf16.mxu1 %v4485_v2  ;;  %v4260_v8 = vld [vmem:[%s5034_s24 + $0x120] ss:$16 sps:$4 sm:$0xff]   ;;  %v4261_v9 = vld [vmem:[%s5034_s24 + $0x128] ss:$16 sps:$4 sm:$0xff]   ;;  %v4262_v10 = vld [vmem:[%s5034_s24 + $0x144] ss:$16 sps:$4 sm:$0xff]  }
  0xe6   : > { %v4264_v11 = vld [vmem:[%s5034_s24 + $0x14c] ss:$16 sps:$4 sm:$0xff]   ;;  %v4266_v12 = vld [vmem:[%s5034_s24 + $0x140] ss:$16 sps:$4 sm:$0xff]   ;;  %v4267_v13 = vld [vmem:[%s5034_s24 + $0x148] ss:$16 sps:$4 sm:$0xff]  }
  0xe7   : > { %v4278_v20 = vld [vmem:[%s5034_s24 + $0x180] ss:$16 sps:$4 sm:$0xff]   ;;  %v4280_v22 = vld [vmem:[%s5034_s24 + $0x1a4] ss:$16 sps:$4 sm:$0xff]  }
  0xe8   : > { %1998 = vmatpush1.bf16.msra.mxu0 %v4182_v14  ;;  %2287 = vmatpush1.bf16.msra.mxu1 %v4183_v15  ;;  %v4268_v14 = vld [vmem:[%s5034_s24 + $0x164] ss:$16 sps:$4 sm:$0xff]   ;;  %v4270_v15 = vld [vmem:[%s5034_s24 + $0x16c] ss:$16 sps:$4 sm:$0xff]  }
  0xe9   : > { %1999 = vmatprep.subr.bf16.mxu0 %v4485_v2  ;;  %2288 = vmatprep.subr.bf16.mxu1 %v4485_v2 }
  0xec   : > { %2000 = vmatpush1.bf16.msra.mxu0 %v4184_v16  ;;  %2289 = vmatpush1.bf16.msra.mxu1 %v4185_v17  ;;  %v4272_v16 = vld [vmem:[%s5034_s24 + $0x160] ss:$16 sps:$4 sm:$0xff]   ;;  %v4273_v17 = vld [vmem:[%s5034_s24 + $0x168] ss:$16 sps:$4 sm:$0xff]  }
  0xed   : > { %2001 = vmatprep.subr.bf16.mxu0 %v4485_v2  ;;  %2290 = vmatprep.subr.bf16.mxu1 %v4485_v2 }
  0xf0   : > { %2002 = vmatpush2.bf16.msra.mxu0 %v4186_v18  ;;  %2291 = vmatpush2.bf16.msra.mxu1 %v4187_v19  ;;  %v4274_v18 = vld [vmem:[%s5034_s24 + $0x184] ss:$16 sps:$4 sm:$0xff]   ;;  %v4276_v19 = vld [vmem:[%s5034_s24 + $0x18c] ss:$16 sps:$4 sm:$0xff]  }
  0xf1   : > { %2003 = vmatprep.subr.bf16.mxu0 %v4485_v2  ;;  %2292 = vmatprep.subr.bf16.mxu1 %v4485_v2 }
  0xf4   : > { %2004 = vmatpush2.bf16.msra.mxu0 %v4188_v21  ;;  %2293 = vmatpush2.bf16.msra.mxu1 %v4189_v23  ;;  %v4279_v21 = vld [vmem:[%s5034_s24 + $0x188] ss:$16 sps:$4 sm:$0xff]   ;;  %v4282_v23 = vld [vmem:[%s5034_s24 + $0x1ac] ss:$16 sps:$4 sm:$0xff]  }
  0xf5   : > { %2005 = vmatprep.subr.bf16.mxu0 %v4485_v2  ;;  %2294 = vmatprep.subr.bf16.mxu1 %v4485_v2 }
  0xf8   : > { %2006 = vmatpush2.bf16.msra.mxu0 %v4190_v24  ;;  %2295 = vmatpush2.bf16.msra.mxu1 %v4191_v25  ;;  %v4284_v24 = vld [vmem:[%s5034_s24 + $0x1a0] ss:$16 sps:$4 sm:$0xff]   ;;  %v4285_v25 = vld [vmem:[%s5034_s24 + $0x1a8] ss:$16 sps:$4 sm:$0xff]  }
  0xf9   : > { %2007 = vmatprep.subr.bf16.mxu0 %v4485_v2  ;;  %2296 = vmatprep.subr.bf16.mxu1 %v4485_v2 }
  0xfc   : > { %2008 = vmatpush2.bf16.msra.mxu0 %v4192_v26  ;;  %2297 = vmatpush2.bf16.msra.mxu1 %v4193_v27  ;;  %v4286_v26 = vld [vmem:[%s5034_s24 + $0x1c4] ss:$16 sps:$4 sm:$0xff]   ;;  %v4288_v27 = vld [vmem:[%s5034_s24 + $0x1cc] ss:$16 sps:$4 sm:$0xff]  }
  0xfd   : > { %2009 = vmatprep.subr.bf16.mxu0 %v4485_v2  ;;  %2298 = vmatprep.subr.bf16.mxu1 %v4485_v2 }
 0x100   : > { %2010 = vmatpush2.bf16.msra.mxu0 %v4194_v28  ;;  %2299 = vmatpush2.bf16.msra.mxu1 %v4195_v29  ;;  %v4290_v28 = vld [vmem:[%s5034_s24 + $0x1c0] ss:$16 sps:$4 sm:$0xff]   ;;  %v4291_v29 = vld [vmem:[%s5034_s24 + $0x1c8] ss:$16 sps:$4 sm:$0xff]  }
 0x101   : > { %2011 = vmatprep.subr.bf16.mxu0 %v4485_v2  ;;  %2300 = vmatprep.subr.bf16.mxu1 %v4485_v2 }
 0x104   : > { %2012 = vmatpush2.bf16.msra.mxu0 %v4196_v30  ;;  %2301 = vmatpush2.bf16.msra.mxu1 %v4197_v31  ;;  %v4292_v30 = vld [vmem:[%s5034_s24 + $0x1e4] ss:$16 sps:$4 sm:$0xff]   ;;  %v4294_v31 = vld [vmem:[%s5034_s24 + $0x1ec] ss:$16 sps:$4 sm:$0xff]  }
 0x105   : > { %2013 = vmatprep.subr.bf16.mxu0 %v4485_v2  ;;  %2302 = vmatprep.subr.bf16.mxu1 %v4485_v2 }
 0x108   : > { %2014 = vmatpush2.bf16.msra.mxu0 %v4198_v32  ;;  %2303 = vmatpush2.bf16.msra.mxu1 %v4199_v33  ;;  %v4296_v32 = vld [vmem:[%s5034_s24 + $0x1e0] ss:$16 sps:$4 sm:$0xff]   ;;  %v4297_v33 = vld [vmem:[%s5034_s24 + $0x1e8] ss:$16 sps:$4 sm:$0xff]  }
 0x109   : > { %2015 = vmatprep.subr.bf16.mxu0 %v4485_v2  ;;  %2304 = vmatprep.subr.bf16.mxu1 %v4485_v2  ;;  %v4250_v2 = vld [vmem:[%s5034_s24 + $0x104] ss:$16 sps:$4 sm:$0xff]  }
 0x10c   : > { %2016 = vmatpush2.bf16.msra.mxu0 %v4200_v34  ;;  %2305 = vmatpush2.bf16.msra.mxu1 %v4201_v35  ;;  %v4298_v34 = vld [vmem:[%s5034_s24 + $0x204] ss:$16 sps:$4 sm:$0xff]   ;;  %v4300_v35 = vld [vmem:[%s5034_s24 + $0x20c] ss:$16 sps:$4 sm:$0xff]  }
 0x10f   : > { %2018 = vmatmul.mubr.bf16.vlgmr.msra.gmra.mxu0 %v4202_v36  ;;  %2307 = vmatmul.mubr.bf16.vlgmr.msra.gmra.mxu1 %v4205_v37  ;;  %v4302_v36 = vld [vmem:[%s5034_s24 + $0x200] ss:$16 sps:$4 sm:$0xff]   ;;  %v4303_v37 = vld [vmem:[%s5034_s24 + $0x208] ss:$16 sps:$4 sm:$0xff]  }
 0x110   : > { %2025 = vmatprep.mubr.bf16.mxu0 %v4208_v38  ;;  %2314 = vmatprep.mubr.bf16.mxu1 %v4210_v39  ;;  %v4304_v38 = vld [vmem:[%s5034_s24 + $0x224] ss:$16 sps:$4 sm:$0xff]   ;;  %v4306_v39 = vld [vmem:[%s5034_s24 + $0x22c] ss:$16 sps:$4 sm:$0xff]  }
 0x117   : > { %2026 = vmatmul.mubr.bf16.gmra.mxu0 %v4212_v40  ;;  %2315 = vmatmul.mubr.bf16.gmra.mxu1 %v4213_v41  ;;  %v4308_v40 = vld [vmem:[%s5034_s24 + $0x220] ss:$16 sps:$4 sm:$0xff]   ;;  %v4309_v41 = vld [vmem:[%s5034_s24 + $0x228] ss:$16 sps:$4 sm:$0xff]  }
 0x118   : > { %2033 = vmatprep.mubr.bf16.mxu0 %v4214_v42  ;;  %2322 = vmatprep.mubr.bf16.mxu1 %v4216_v43  ;;  %v4310_v42 = vld [vmem:[%s5034_s24 + $0x244] ss:$16 sps:$4 sm:$0xff]   ;;  %v4312_v43 = vld [vmem:[%s5034_s24 + $0x24c] ss:$16 sps:$4 sm:$0xff]  }
 0x11f   : > { %2034 = vmatmul.mubr.bf16.gmra.mxu0 %v4218_v44  ;;  %2323 = vmatmul.mubr.bf16.gmra.mxu1 %v4219_v45  ;;  %v4314_v44 = vld [vmem:[%s5034_s24 + $0x240] ss:$16 sps:$4 sm:$0xff]   ;;  %v4315_v45 = vld [vmem:[%s5034_s24 + $0x248] ss:$16 sps:$4 sm:$0xff]  }
 0x120   : > { %2041 = vmatprep.mubr.bf16.mxu0 %v4220_v46  ;;  %2330 = vmatprep.mubr.bf16.mxu1 %v4222_v47  ;;  %v4316_v46 = vld [vmem:[%s5034_s24 + $0x264] ss:$16 sps:$4 sm:$0xff]   ;;  %v4318_v47 = vld [vmem:[%s5034_s24 + $0x26c] ss:$16 sps:$4 sm:$0xff]  }
 0x127   : > { %2042 = vmatmul.mubr.bf16.gmra.mxu0 %v4224_v48  ;;  %2331 = vmatmul.mubr.bf16.gmra.mxu1 %v4225_v49  ;;  %v4320_v48 = vld [vmem:[%s5034_s24 + $0x260] ss:$16 sps:$4 sm:$0xff]   ;;  %v4321_v49 = vld [vmem:[%s5034_s24 + $0x268] ss:$16 sps:$4 sm:$0xff]  }
 0x128   : > { %2049 = vmatprep.mubr.bf16.mxu0 %v4226_v50  ;;  %2338 = vmatprep.mubr.bf16.mxu1 %v4228_v51  ;;  %v4322_v50 = vld [vmem:[%s5034_s24 + $0x284] ss:$16 sps:$4 sm:$0xff]   ;;  %v4324_v51 = vld [vmem:[%s5034_s24 + $0x28c] ss:$16 sps:$4 sm:$0xff]  }
 0x12f   : > { %2050 = vmatmul.mubr.bf16.gmra.mxu0 %v4230_v52  ;;  %2339 = vmatmul.mubr.bf16.gmra.mxu1 %v4231_v53  ;;  %v4326_v52 = vld [vmem:[%s5034_s24 + $0x280] ss:$16 sps:$4 sm:$0xff]   ;;  %v4327_v53 = vld [vmem:[%s5034_s24 + $0x288] ss:$16 sps:$4 sm:$0xff]  }
 0x130   : > { %2057 = vmatprep.mubr.bf16.mxu0 %v4232_v54  ;;  %2346 = vmatprep.mubr.bf16.mxu1 %v4234_v55  ;;  %v4328_v54 = vld [vmem:[%s5034_s24 + $0x2a4] ss:$16 sps:$4 sm:$0xff]   ;;  %v4330_v55 = vld [vmem:[%s5034_s24 + $0x2ac] ss:$16 sps:$4 sm:$0xff]  }
 0x137   : > { %2058 = vmatmul.mubr.bf16.gmra.mxu0 %v4236_v56  ;;  %2347 = vmatmul.mubr.bf16.gmra.mxu1 %v4237_v57  ;;  %v4332_v56 = vld [vmem:[%s5034_s24 + $0x2a0] ss:$16 sps:$4 sm:$0xff]   ;;  %v4333_v57 = vld [vmem:[%s5034_s24 + $0x2a8] ss:$16 sps:$4 sm:$0xff]  }
 0x138   : > { %2065 = vmatprep.mubr.bf16.mxu0 %v4238_v58  ;;  %2354 = vmatprep.mubr.bf16.mxu1 %v4240_v59  ;;  %v4334_v58 = vld [vmem:[%s5034_s24 + $0x2c4] ss:$16 sps:$4 sm:$0xff]   ;;  %v4336_v59 = vld [vmem:[%s5034_s24 + $0x2cc] ss:$16 sps:$4 sm:$0xff]  }
 0x13f   : > { %2066 = vmatmul.mubr.bf16.gmra.mxu0 %v4242_v60  ;;  %2355 = vmatmul.mubr.bf16.gmra.mxu1 %v4243_v61  ;;  %v4338_v60 = vld [vmem:[%s5034_s24 + $0x2c0] ss:$16 sps:$4 sm:$0xff]   ;;  %v4339_v61 = vld [vmem:[%s5034_s24 + $0x2c8] ss:$16 sps:$4 sm:$0xff]  }
 0x140   : > { %2073 = vmatprep.mubr.bf16.mxu0 %v4244_v62  ;;  %2362 = vmatprep.mubr.bf16.mxu1 %v4246_v63  ;;  %v4340_v62 = vld [vmem:[%s5034_s24 + $0x2e4] ss:$16 sps:$4 sm:$0xff]   ;;  %v4342_v63 = vld [vmem:[%s5034_s24 + $0x2ec] ss:$16 sps:$4 sm:$0xff]  }
 0x147   : > { %2074 = vmatmul.mubr.bf16.gmra.mxu0 %v4248_v0  ;;  %2363 = vmatmul.mubr.bf16.gmra.mxu1 %v4249_v1  ;;  %v4344_v0 = vld [vmem:[%s5034_s24 + $0x2e0] ss:$16 sps:$4 sm:$0xff]   ;;  %v4345_v1 = vld [vmem:[%s5034_s24 + $0x2e8] ss:$16 sps:$4 sm:$0xff]  }
 0x148   : > { %2081 = vmatprep.mubr.bf16.mxu0 %v4250_v2  ;;  %2370 = vmatprep.mubr.bf16.mxu1 %v4252_v3  ;;  %v4346_v2 = vld [vmem:[%s5034_s24 + $0x304] ss:$16 sps:$4 sm:$0xff]   ;;  %v4348_v3 = vld [vmem:[%s5034_s24 + $0x30c] ss:$16 sps:$4 sm:$0xff]  }
 0x14f   : > { %2082 = vmatmul.mubr.bf16.gmra.mxu0 %v4254_v4  ;;  %2371 = vmatmul.mubr.bf16.gmra.mxu1 %v4255_v5  ;;  %v4350_v4 = vld [vmem:[%s5034_s24 + $0x300] ss:$16 sps:$4 sm:$0xff]   ;;  %v4351_v5 = vld [vmem:[%s5034_s24 + $0x308] ss:$16 sps:$4 sm:$0xff]  }
 0x150   : > { %2089 = vmatprep.mubr.bf16.mxu0 %v4256_v6  ;;  %2378 = vmatprep.mubr.bf16.mxu1 %v4258_v7  ;;  %v4352_v6 = vld [vmem:[%s5034_s24 + $0x324] ss:$16 sps:$4 sm:$0xff]   ;;  %v4354_v7 = vld [vmem:[%s5034_s24 + $0x32c] ss:$16 sps:$4 sm:$0xff]  }
 0x157   : > { %2090 = vmatmul.mubr.bf16.gmra.mxu0 %v4260_v8  ;;  %2379 = vmatmul.mubr.bf16.gmra.mxu1 %v4261_v9  ;;  %v897_v9 = vld [vmem:[%s5038_s19] sm:$0xff] }
 0x158   : > { %2097 = vmatprep.mubr.bf16.mxu0 %v4262_v10  ;;  %2386 = vmatprep.mubr.bf16.mxu1 %v4264_v11 }
 0x15f   : > { %2098 = vmatmul.mubr.bf16.gmra.mxu0 %v4266_v12  ;;  %2387 = vmatmul.mubr.bf16.gmra.mxu1 %v4267_v13 }
 0x160   : > { %2105 = vmatprep.mubr.bf16.mxu0 %v4268_v14  ;;  %2394 = vmatprep.mubr.bf16.mxu1 %v4270_v15 }
 0x167   : > { %2106 = vmatmul.mubr.bf16.gmra.mxu0 %v4272_v16  ;;  %2395 = vmatmul.mubr.bf16.gmra.mxu1 %v4273_v17  ;;  %v4356_v16 = vld [vmem:[%s5034_s24 + $0x320] ss:$16 sps:$4 sm:$0xff]   ;;  %v898_v17 = vld [vmem:[%s5038_s19 + $0x8] sm:$0xff] }
 0x168   : > { %2113 = vmatprep.mubr.bf16.mxu0 %v4274_v18  ;;  %2402 = vmatprep.mubr.bf16.mxu1 %v4276_v19  ;;  %v4357_v19 = vld [vmem:[%s5034_s24 + $0x328] ss:$16 sps:$4 sm:$0xff]  }
 0x16f   : > { %2114 = vmatmul.mubr.bf16.gmra.mxu0 %v4278_v20  ;;  %2403 = vmatmul.mubr.bf16.gmra.mxu1 %v4279_v21  ;;  %v4358_v20 = vld [vmem:[%s5034_s24 + $0x344] ss:$16 sps:$4 sm:$0xff]  }
 0x170   : > { %2121 = vmatprep.mubr.bf16.mxu0 %v4280_v22  ;;  %2410 = vmatprep.mubr.bf16.mxu1 %v4282_v23  ;;  %v4360_v23 = vld [vmem:[%s5034_s24 + $0x34c] ss:$16 sps:$4 sm:$0xff]  }
 0x177   : > { %2122 = vmatmul.mubr.bf16.gmra.mxu0 %v4284_v24  ;;  %2411 = vmatmul.mubr.bf16.gmra.mxu1 %v4285_v25 }
 0x178   : > { %2129 = vmatprep.mubr.bf16.mxu0 %v4286_v26  ;;  %2418 = vmatprep.mubr.bf16.mxu1 %v4288_v27  ;;  %v899_v27 = vld [vmem:[%s5038_s19 + $0x10] sm:$0xff] }
 0x17f   : > { %2130 = vmatmul.mubr.bf16.gmra.mxu0 %v4290_v28  ;;  %2419 = vmatmul.mubr.bf16.gmra.mxu1 %v4291_v29 }
 0x180   : > { %2137 = vmatprep.mubr.bf16.mxu0 %v4292_v30  ;;  %2426 = vmatprep.mubr.bf16.mxu1 %v4294_v31 }
 0x187   : > { %2138 = vmatmul.mubr.bf16.gmra.mxu0 %v4296_v32  ;;  %2427 = vmatmul.mubr.bf16.gmra.mxu1 %v4297_v33 }
 0x188   : > { %2145 = vmatprep.mubr.bf16.mxu0 %v4298_v34  ;;  %2434 = vmatprep.mubr.bf16.mxu1 %v4300_v35  ;;  %v4362_v34 = vld [vmem:[%s5034_s24 + $0x340] ss:$16 sps:$4 sm:$0xff]   ;;  %v900_v35 = vld [vmem:[%s5038_s19 + $0x18] sm:$0xff] }
 0x18f   : > { %2146 = vmatmul.mubr.bf16.gmra.mxu0 %v4302_v36  ;;  %2435 = vmatmul.mubr.bf16.gmra.mxu1 %v4303_v37  ;;  %v4363_v37 = vld [vmem:[%s5034_s24 + $0x348] ss:$16 sps:$4 sm:$0xff]  }
 0x190   : > { %2153 = vmatprep.mubr.bf16.mxu0 %v4304_v38  ;;  %2442 = vmatprep.mubr.bf16.mxu1 %v4306_v39  ;;  %v4364_v38 = vld [vmem:[%s5034_s24 + $0x364] ss:$16 sps:$4 sm:$0xff]  }
 0x197   : > { %2154 = vmatmul.mubr.bf16.gmra.mxu0 %v4308_v40  ;;  %2443 = vmatmul.mubr.bf16.gmra.mxu1 %v4309_v41  ;;  %v4366_v41 = vld [vmem:[%s5034_s24 + $0x36c] ss:$16 sps:$4 sm:$0xff]  }
 0x198   : > { %2161 = vmatprep.mubr.bf16.mxu0 %v4310_v42  ;;  %2450 = vmatprep.mubr.bf16.mxu1 %v4312_v43 }
 0x19f   : > { %2162 = vmatmul.mubr.bf16.gmra.mxu0 %v4314_v44  ;;  %2451 = vmatmul.mubr.bf16.gmra.mxu1 %v4315_v45  ;;  %v901_v45 = vld [vmem:[%s5038_s19 + $0x20] sm:$0xff] }
 0x1a0   : > { %2169 = vmatprep.mubr.bf16.mxu0 %v4316_v46  ;;  %2458 = vmatprep.mubr.bf16.mxu1 %v4318_v47 }
 0x1a7   : > { %2170 = vmatmul.mubr.bf16.gmra.mxu0 %v4320_v48  ;;  %2459 = vmatmul.mubr.bf16.gmra.mxu1 %v4321_v49 }
 0x1a8   : > { %2177 = vmatprep.mubr.bf16.mxu0 %v4322_v50  ;;  %2466 = vmatprep.mubr.bf16.mxu1 %v4324_v51 }
 0x1af   : > { %2178 = vmatmul.mubr.bf16.gmra.mxu0 %v4326_v52  ;;  %2467 = vmatmul.mubr.bf16.gmra.mxu1 %v4327_v53  ;;  %v4368_v52 = vld [vmem:[%s5034_s24 + $0x360] ss:$16 sps:$4 sm:$0xff]   ;;  %v902_v53 = vld [vmem:[%s5038_s19 + $0x28] sm:$0xff] }
 0x1b0   : > { %2185 = vmatprep.mubr.bf16.mxu0 %v4328_v54  ;;  %2474 = vmatprep.mubr.bf16.mxu1 %v4330_v55  ;;  %v4369_v55 = vld [vmem:[%s5034_s24 + $0x368] ss:$16 sps:$4 sm:$0xff]  }
 0x1b7   : > { %2186 = vmatmul.mubr.bf16.gmra.mxu0 %v4332_v56  ;;  %2475 = vmatmul.mubr.bf16.gmra.mxu1 %v4333_v57  ;;  %v4372_v56 = vld [vmem:[%s5034_s24 + $0x384] ss:$16 sps:$4 sm:$0xff]  }
 0x1b8   : > { %2193 = vmatprep.mubr.bf16.mxu0 %v4334_v58  ;;  %2482 = vmatprep.mubr.bf16.mxu1 %v4336_v59  ;;  %v4375_v59 = vld [vmem:[%s5034_s24 + $0x38c] ss:$16 sps:$4 sm:$0xff]  }
 0x1bf   : > { %2194 = vmatmul.mubr.bf16.gmra.mxu0 %v4338_v60  ;;  %2483 = vmatmul.mubr.bf16.gmra.mxu1 %v4339_v61 }
 0x1c0   : > { %2201 = vmatprep.mubr.bf16.mxu0 %v4340_v62  ;;  %2490 = vmatprep.mubr.bf16.mxu1 %v4342_v63  ;;  %v903_v63 = vld [vmem:[%s5038_s19 + $0x30] sm:$0xff] }
 0x1c7   : > { %2202 = vmatmul.mubr.bf16.gmra.mxu0 %v4344_v0  ;;  %2491 = vmatmul.mubr.bf16.gmra.mxu1 %v4345_v1 }
 0x1c8   : > { %2209 = vmatprep.mubr.bf16.mxu0 %v4346_v2  ;;  %2498 = vmatprep.mubr.bf16.mxu1 %v4348_v3 }
 0x1cf   : > { %v2019_v8 = vpop.f32.mrf.mxu0  ;;  %2210 = vmatmul.mubr.bf16.gmra.mxu0 %v4350_v4  ;;  %v2308_v10 = vpop.f32.mrf.mxu1  ;;  %2499 = vmatmul.mubr.bf16.gmra.mxu1 %v4351_v5 }
 0x1d0   : > { %2217 = vmatprep.mubr.bf16.mxu0 %v4352_v6  ;;  %v2309_v11 = vadd.f32 %v2308_v10, %v2019_v8  ;;  %2506 = vmatprep.mubr.bf16.mxu1 %v4354_v7  ;;  %v4370_v6 = vld [vmem:[%s5034_s24 + $0x380] ss:$16 sps:$4 sm:$0xff]   ;;  %v904_v7 = vld [vmem:[%s5038_s19 + $0x38] sm:$0xff]  ;;  %v4378_v10 = vld [vmem:[%s5034_s24 + $0x3a4] ss:$16 sps:$4 sm:$0xff]  }
 0x1d1   : > { %v2021_v12 = vpop.f32.mrf.mxu0  ;;  %v2310_v13 = vpop.f32.mrf.mxu1 }
 0x1d2   : > { %v2563_v14 = vadd.f32 %v2309_v11, %v897_v9  ;;  %v4373_v9 = vld [vmem:[%s5034_s24 + $0x388] ss:$16 sps:$4 sm:$0xff]   ;;  %v4381_v13 = vld [vmem:[%s5034_s24 + $0x3ac] ss:$16 sps:$4 sm:$0xff]  }
 0x1d3   : > { %v2022_v15 = vpop.f32.mrf.mxu0  ;;  %v2311_v18 = vpop.f32.mrf.mxu1 }
 0x1d4   : > { %2627 = vst [vmem:[%s5038_s19] sm:$0xff] %v2563_v14  ;;  %v2312_v21 = vadd.f32 %v2311_v18, %v2022_v15 }
 0x1d5   : > { %v2024_v22 = vpop.f32.mrf.mxu0  ;;  %v2313_v24 = vpop.f32.mrf.mxu1 }
 0x1d6   : > { %v2564_v25 = vadd.f32 %v2312_v21, %v898_v17  ;;  %v905_v17 = vld [vmem:[%s5038_s19 + $0x40] sm:$0xff] }
 0x1d7   : > { %v2027_v26 = vpop.f32.mrf.mxu0  ;;  %2218 = vmatmul.mubr.bf16.gmra.mxu0 %v4356_v16  ;;  %v2316_v28 = vpop.f32.mrf.mxu1  ;;  %2507 = vmatmul.mubr.bf16.gmra.mxu1 %v4357_v19  ;;  %v4376_v24 = vld [vmem:[%s5034_s24 + $0x3a0] ss:$16 sps:$4 sm:$0xff]  }
 0x1d8   : > { %2225 = vmatprep.mubr.bf16.mxu0 %v4358_v20  ;;  %2628 = vst [vmem:[%s5038_s19 + $0x8] sm:$0xff] %v2564_v25  ;;  %v2317_v29 = vadd.f32 %v2316_v28, %v2027_v26  ;;  %2514 = vmatprep.mubr.bf16.mxu1 %v4360_v23  ;;  %v906_v25 = vld [vmem:[%s5038_s19 + $0x48] sm:$0xff]  ;;  %v4384_v28 = vld [vmem:[%s5034_s24 + $0x3c4] ss:$16 sps:$4 sm:$0xff]  }
 0x1d9   : > { %v2029_v30 = vpop.f32.mrf.mxu0  ;;  %v2318_v31 = vpop.f32.mrf.mxu1 }
 0x1da   : > { %v2565_v32 = vadd.f32 %v2317_v29, %v899_v27  ;;  %v4379_v27 = vld [vmem:[%s5034_s24 + $0x3a8] ss:$16 sps:$4 sm:$0xff]   ;;  %v4387_v31 = vld [vmem:[%s5034_s24 + $0x3cc] ss:$16 sps:$4 sm:$0xff]  }
 0x1db   : > { %v2030_v33 = vpop.f32.mrf.mxu0  ;;  %v2319_v36 = vpop.f32.mrf.mxu1 }
 0x1dc   : > { %2629 = vst [vmem:[%s5038_s19 + $0x10] sm:$0xff] %v2565_v32  ;;  %v2320_v39 = vadd.f32 %v2319_v36, %v2030_v33 }
 0x1dd   : > { %v2032_v40 = vpop.f32.mrf.mxu0  ;;  %v2321_v42 = vpop.f32.mrf.mxu1 }
 0x1de   : > { %v2566_v43 = vadd.f32 %v2320_v39, %v900_v35  ;;  %v907_v35 = vld [vmem:[%s5038_s19 + $0x50] sm:$0xff] }
 0x1df   : > { %v2035_v44 = vpop.f32.mrf.mxu0  ;;  %2226 = vmatmul.mubr.bf16.gmra.mxu0 %v4362_v34  ;;  %v2324_v46 = vpop.f32.mrf.mxu1  ;;  %2515 = vmatmul.mubr.bf16.gmra.mxu1 %v4363_v37  ;;  %v4382_v42 = vld [vmem:[%s5034_s24 + $0x3c0] ss:$16 sps:$4 sm:$0xff]  }
 0x1e0   : > { %2233 = vmatprep.mubr.bf16.mxu0 %v4364_v38  ;;  %2630 = vst [vmem:[%s5038_s19 + $0x18] sm:$0xff] %v2566_v43  ;;  %v2325_v47 = vadd.f32 %v2324_v46, %v2035_v44  ;;  %2522 = vmatprep.mubr.bf16.mxu1 %v4366_v41  ;;  %v908_v43 = vld [vmem:[%s5038_s19 + $0x58] sm:$0xff]  ;;  %v4390_v46 = vld [vmem:[%s5034_s24 + $0x3e4] ss:$16 sps:$4 sm:$0xff]  }
 0x1e1   : > { %v2037_v48 = vpop.f32.mrf.mxu0  ;;  %v2326_v49 = vpop.f32.mrf.mxu1 }
 0x1e2   : > { %v2567_v50 = vadd.f32 %v2325_v47, %v901_v45  ;;  %v4385_v45 = vld [vmem:[%s5034_s24 + $0x3c8] ss:$16 sps:$4 sm:$0xff]   ;;  %v4393_v49 = vld [vmem:[%s5034_s24 + $0x3ec] ss:$16 sps:$4 sm:$0xff]  }
 0x1e3   : > { %v2038_v51 = vpop.f32.mrf.mxu0  ;;  %v2327_v54 = vpop.f32.mrf.mxu1 }
 0x1e4   : > { %2631 = vst [vmem:[%s5038_s19 + $0x20] sm:$0xff] %v2567_v50  ;;  %v2328_v57 = vadd.f32 %v2327_v54, %v2038_v51 }
 0x1e5   : > { %v2040_v58 = vpop.f32.mrf.mxu0  ;;  %v2329_v60 = vpop.f32.mrf.mxu1 }
 0x1e6   : > { %v2568_v61 = vadd.f32 %v2328_v57, %v902_v53  ;;  %v909_v53 = vld [vmem:[%s5038_s19 + $0x60] sm:$0xff] }
 0x1e7   : > { %v2043_v62 = vpop.f32.mrf.mxu0  ;;  %2234 = vmatmul.mubr.bf16.gmra.mxu0 %v4368_v52  ;;  %v2332_v0 = vpop.f32.mrf.mxu1  ;;  %2523 = vmatmul.mubr.bf16.gmra.mxu1 %v4369_v55  ;;  %v4388_v60 = vld [vmem:[%s5034_s24 + $0x3e0] ss:$16 sps:$4 sm:$0xff]  }
 0x1e8   : > { %2241 = vmatprep.mubr.bf16.mxu0 %v4372_v56  ;;  %2632 = vst [vmem:[%s5038_s19 + $0x28] sm:$0xff] %v2568_v61  ;;  %v2333_v1 = vadd.f32 %v2332_v0, %v2043_v62  ;;  %2530 = vmatprep.mubr.bf16.mxu1 %v4375_v59  ;;  %v910_v61 = vld [vmem:[%s5038_s19 + $0x68] sm:$0xff] }
 0x1e9   : > { %v2045_v2 = vpop.f32.mrf.mxu0  ;;  %v2334_v3 = vpop.f32.mrf.mxu1 }
 0x1ea   : > { %v2569_v4 = vadd.f32 %v2333_v1, %v903_v63  ;;  %v4391_v63 = vld [vmem:[%s5034_s24 + $0x3e8] ss:$16 sps:$4 sm:$0xff]  }
 0x1eb   : > { %v2046_v5 = vpop.f32.mrf.mxu0  ;;  %v2335_v8 = vpop.f32.mrf.mxu1 }
 0x1ec   : > { %2633 = vst [vmem:[%s5038_s19 + $0x30] sm:$0xff] %v2569_v4  ;;  %v2336_v11 = vadd.f32 %v2335_v8, %v2046_v5  ;;  %v911_v5 = vld [vmem:[%s5038_s19 + $0x70] sm:$0xff] }
 0x1ed   : > { %v2048_v12 = vpop.f32.mrf.mxu0  ;;  %v2337_v14 = vpop.f32.mrf.mxu1 }
 0x1ee   : > { %v2570_v15 = vadd.f32 %v2336_v11, %v904_v7  ;;  %v912_v12 = vld [vmem:[%s5038_s19 + $0x78] sm:$0xff] }
 0x1ef   : > { %v2051_v16 = vpop.f32.mrf.mxu0  ;;  %2242 = vmatmul.mubr.bf16.gmra.mxu0 %v4370_v6  ;;  %v2340_v18 = vpop.f32.mrf.mxu1  ;;  %2531 = vmatmul.mubr.bf16.gmra.mxu1 %v4373_v9 }
 0x1f0   : > { %2249 = vmatprep.mubr.bf16.mxu0 %v4378_v10  ;;  %2634 = vst [vmem:[%s5038_s19 + $0x38] sm:$0xff] %v2570_v15  ;;  %v2341_v19 = vadd.f32 %v2340_v18, %v2051_v16  ;;  %2538 = vmatprep.mubr.bf16.mxu1 %v4381_v13 }
 0x1f1   : > { %v2053_v20 = vpop.f32.mrf.mxu0  ;;  %v2342_v21 = vpop.f32.mrf.mxu1 }
 0x1f2   : > { %v2571_v22 = vadd.f32 %v2341_v19, %v905_v17  ;;  %v913_v19 = vld [vmem:[%s5038_s19 + $0x80] sm:$0xff] }
 0x1f3   : > { %v2054_v23 = vpop.f32.mrf.mxu0  ;;  %v2343_v26 = vpop.f32.mrf.mxu1 }
 0x1f4   : > { %2635 = vst [vmem:[%s5038_s19 + $0x40] sm:$0xff] %v2571_v22  ;;  %v2344_v29 = vadd.f32 %v2343_v26, %v2054_v23  ;;  %v914_v26 = vld [vmem:[%s5038_s19 + $0x88] sm:$0xff] }
 0x1f5   : > { %v2056_v30 = vpop.f32.mrf.mxu0  ;;  %v2345_v32 = vpop.f32.mrf.mxu1 }
 0x1f6   : > { %v2572_v33 = vadd.f32 %v2344_v29, %v906_v25 }
 0x1f7   : > { %v2059_v34 = vpop.f32.mrf.mxu0  ;;  %2250 = vmatmul.mubr.bf16.gmra.mxu0 %v4376_v24  ;;  %v2348_v36 = vpop.f32.mrf.mxu1  ;;  %2539 = vmatmul.mubr.bf16.gmra.mxu1 %v4379_v27 }
 0x1f8   : > { %2257 = vmatprep.mubr.bf16.mxu0 %v4384_v28  ;;  %2636 = vst [vmem:[%s5038_s19 + $0x48] sm:$0xff] %v2572_v33  ;;  %v2349_v37 = vadd.f32 %v2348_v36, %v2059_v34  ;;  %2546 = vmatprep.mubr.bf16.mxu1 %v4387_v31  ;;  %v915_v33 = vld [vmem:[%s5038_s19 + $0x90] sm:$0xff] }
 0x1f9   : > { %v2061_v38 = vpop.f32.mrf.mxu0  ;;  %v2350_v39 = vpop.f32.mrf.mxu1 }
 0x1fa   : > { %v2573_v40 = vadd.f32 %v2349_v37, %v907_v35 }
 0x1fb   : > { %v2062_v41 = vpop.f32.mrf.mxu0  ;;  %v2351_v44 = vpop.f32.mrf.mxu1 }
 0x1fc   : > { %2637 = vst [vmem:[%s5038_s19 + $0x50] sm:$0xff] %v2573_v40  ;;  %v2352_v47 = vadd.f32 %v2351_v44, %v2062_v41  ;;  %v916_v40 = vld [vmem:[%s5038_s19 + $0x98] sm:$0xff] }
 0x1fd   : > { %v2064_v48 = vpop.f32.mrf.mxu0  ;;  %v2353_v50 = vpop.f32.mrf.mxu1 }
 0x1fe   : > { %v2574_v51 = vadd.f32 %v2352_v47, %v908_v43  ;;  %v917_v47 = vld [vmem:[%s5038_s19 + $0xa0] sm:$0xff] }
 0x1ff   : > { %v2067_v52 = vpop.f32.mrf.mxu0  ;;  %2258 = vmatmul.mubr.bf16.gmra.mxu0 %v4382_v42  ;;  %v2356_v54 = vpop.f32.mrf.mxu1  ;;  %2547 = vmatmul.mubr.bf16.gmra.mxu1 %v4385_v45 }
 0x200   : > { %2265 = vmatprep.mubr.bf16.mxu0 %v4390_v46  ;;  %2638 = vst [vmem:[%s5038_s19 + $0x58] sm:$0xff] %v2574_v51  ;;  %v2357_v55 = vadd.f32 %v2356_v54, %v2067_v52  ;;  %2554 = vmatprep.mubr.bf16.mxu1 %v4393_v49  ;;  %v918_v54 = vld [vmem:[%s5038_s19 + $0xa8] sm:$0xff] }
 0x201   : > { %v2069_v56 = vpop.f32.mrf.mxu0  ;;  %v2358_v57 = vpop.f32.mrf.mxu1 }
 0x202   : > { %v2575_v58 = vadd.f32 %v2357_v55, %v909_v53 }
 0x203   : > { %v2070_v59 = vpop.f32.mrf.mxu0  ;;  %v2359_v62 = vpop.f32.mrf.mxu1 }
 0x204   : > { %2639 = vst [vmem:[%s5038_s19 + $0x60] sm:$0xff] %v2575_v58  ;;  %v2360_v0 = vadd.f32 %v2359_v62, %v2070_v59 }
 0x205   : > { %v2072_v1 = vpop.f32.mrf.mxu0  ;;  %v2361_v2 = vpop.f32.mrf.mxu1 }
 0x206   : > { %v2576_v3 = vadd.f32 %v2360_v0, %v910_v61  ;;  %v919_v61 = vld [vmem:[%s5038_s19 + $0xb0] sm:$0xff] }
 0x207   : > { %v2075_v4 = vpop.f32.mrf.mxu0  ;;  %2266 = vmatmul.mubr.bf16.gmra.mxu0 %v4388_v60  ;;  %v2364_v6 = vpop.f32.mrf.mxu1  ;;  %2555 = vmatmul.mubr.bf16.gmra.mxu1 %v4391_v63 }
 0x208   : > { %2640 = vst [vmem:[%s5038_s19 + $0x68] sm:$0xff] %v2576_v3  ;;  %v2365_v7 = vadd.f32 %v2364_v6, %v2075_v4  ;;  %v920_v4 = vld [vmem:[%s5038_s19 + $0xb8] sm:$0xff] }
 0x209   : > { %v2077_v8 = vpop.f32.mrf.mxu0  ;;  %v2366_v9 = vpop.f32.mrf.mxu1 }
 0x20a   : > { %v2577_v10 = vadd.f32 %v2365_v7, %v911_v5 }
 0x20b   : > { %v2078_v11 = vpop.f32.mrf.mxu0  ;;  %v2367_v13 = vpop.f32.mrf.mxu1 }
 0x20c   : > { %2641 = vst [vmem:[%s5038_s19 + $0x70] sm:$0xff] %v2577_v10  ;;  %v2368_v14 = vadd.f32 %v2367_v13, %v2078_v11  ;;  %v921_v11 = vld [vmem:[%s5038_s19 + $0xc0] sm:$0xff] }
 0x20d   : > { %v2080_v15 = vpop.f32.mrf.mxu0  ;;  %v2369_v16 = vpop.f32.mrf.mxu1 }
 0x20e   : > { %v2578_v17 = vadd.f32 %v2368_v14, %v912_v12 }
 0x20f   : > { %v2083_v18 = vpop.f32.mrf.mxu0  ;;  %v2372_v20 = vpop.f32.mrf.mxu1 }
 0x210   : > { %2642 = vst [vmem:[%s5038_s19 + $0x78] sm:$0xff] %v2578_v17  ;;  %v2373_v21 = vadd.f32 %v2372_v20, %v2083_v18  ;;  %v922_v18 = vld [vmem:[%s5038_s19 + $0xc8] sm:$0xff] }
 0x211   : > { %v2085_v22 = vpop.f32.mrf.mxu0  ;;  %v2374_v23 = vpop.f32.mrf.mxu1 }
 0x212   : > { %v2579_v24 = vadd.f32 %v2373_v21, %v913_v19 }
 0x213   : > { %v2086_v25 = vpop.f32.mrf.mxu0  ;;  %v2375_v27 = vpop.f32.mrf.mxu1 }
 0x214   : > { %2643 = vst [vmem:[%s5038_s19 + $0x80] sm:$0xff] %v2579_v24  ;;  %v2376_v28 = vadd.f32 %v2375_v27, %v2086_v25  ;;  %v923_v25 = vld [vmem:[%s5038_s19 + $0xd0] sm:$0xff] }
 0x215   : > { %v2088_v29 = vpop.f32.mrf.mxu0  ;;  %v2377_v30 = vpop.f32.mrf.mxu1 }
 0x216   : > { %v2580_v31 = vadd.f32 %v2376_v28, %v914_v26 }
 0x217   : > { %v2091_v32 = vpop.f32.mrf.mxu0  ;;  %v2380_v34 = vpop.f32.mrf.mxu1 }
 0x218   : > { %2644 = vst [vmem:[%s5038_s19 + $0x88] sm:$0xff] %v2580_v31  ;;  %v2381_v35 = vadd.f32 %v2380_v34, %v2091_v32  ;;  %v924_v32 = vld [vmem:[%s5038_s19 + $0xd8] sm:$0xff] }
 0x219   : > { %v2093_v36 = vpop.f32.mrf.mxu0  ;;  %v2382_v37 = vpop.f32.mrf.mxu1 }
 0x21a   : > { %v2581_v38 = vadd.f32 %v2381_v35, %v915_v33 }
 0x21b   : > { %v2094_v39 = vpop.f32.mrf.mxu0  ;;  %v2383_v41 = vpop.f32.mrf.mxu1 }
 0x21c   : > { %2645 = vst [vmem:[%s5038_s19 + $0x90] sm:$0xff] %v2581_v38  ;;  %v2384_v42 = vadd.f32 %v2383_v41, %v2094_v39  ;;  %v925_v39 = vld [vmem:[%s5038_s19 + $0xe0] sm:$0xff] }
 0x21d   : > { %v2096_v43 = vpop.f32.mrf.mxu0  ;;  %v2385_v44 = vpop.f32.mrf.mxu1 }
 0x21e   : > { %v2582_v45 = vadd.f32 %v2384_v42, %v916_v40 }
 0x21f   : > { %v2099_v46 = vpop.f32.mrf.mxu0  ;;  %v2388_v48 = vpop.f32.mrf.mxu1 }
 0x220   : > { %2646 = vst [vmem:[%s5038_s19 + $0x98] sm:$0xff] %v2582_v45  ;;  %v2389_v49 = vadd.f32 %v2388_v48, %v2099_v46  ;;  %v926_v46 = vld [vmem:[%s5038_s19 + $0xe8] sm:$0xff] }
 0x221   : > { %v2101_v50 = vpop.f32.mrf.mxu0  ;;  %v2390_v51 = vpop.f32.mrf.mxu1 }
 0x222   : > { %v2583_v52 = vadd.f32 %v2389_v49, %v917_v47 }
 0x223   : > { %v2102_v53 = vpop.f32.mrf.mxu0  ;;  %v2391_v55 = vpop.f32.mrf.mxu1 }
 0x224   : > { %2647 = vst [vmem:[%s5038_s19 + $0xa0] sm:$0xff] %v2583_v52  ;;  %v2392_v56 = vadd.f32 %v2391_v55, %v2102_v53  ;;  %v927_v53 = vld [vmem:[%s5038_s19 + $0xf0] sm:$0xff] }
 0x225   : > { %v2104_v57 = vpop.f32.mrf.mxu0  ;;  %v2393_v58 = vpop.f32.mrf.mxu1 }
 0x226   : > { %v2584_v59 = vadd.f32 %v2392_v56, %v918_v54 }
 0x227   : > { %v2107_v60 = vpop.f32.mrf.mxu0  ;;  %v2396_v62 = vpop.f32.mrf.mxu1 }
 0x228   : > { %2648 = vst [vmem:[%s5038_s19 + $0xa8] sm:$0xff] %v2584_v59  ;;  %v2397_v63 = vadd.f32 %v2396_v62, %v2107_v60  ;;  %v928_v60 = vld [vmem:[%s5038_s19 + $0xf8] sm:$0xff] }
 0x229   : > { %v2109_v0 = vpop.f32.mrf.mxu0  ;;  %v2398_v1 = vpop.f32.mrf.mxu1 }
 0x22a   : > { %v2585_v2 = vadd.f32 %v2397_v63, %v919_v61 }
 0x22b   : > { %v2110_v3 = vpop.f32.mrf.mxu0  ;;  %v2399_v5 = vpop.f32.mrf.mxu1 }
 0x22c   : > { %2649 = vst [vmem:[%s5038_s19 + $0xb0] sm:$0xff] %v2585_v2  ;;  %v2400_v6 = vadd.f32 %v2399_v5, %v2110_v3  ;;  %v929_v3 = vld [vmem:[%s5038_s19 + $0x100] sm:$0xff] }
 0x22d   : > { %v2112_v7 = vpop.f32.mrf.mxu0  ;;  %v2401_v8 = vpop.f32.mrf.mxu1 }
 0x22e   : > { %v2586_v9 = vadd.f32 %v2400_v6, %v920_v4 }
 0x22f   : > { %v2115_v10 = vpop.f32.mrf.mxu0  ;;  %v2404_v12 = vpop.f32.mrf.mxu1 }
 0x230   : > { %2650 = vst [vmem:[%s5038_s19 + $0xb8] sm:$0xff] %v2586_v9  ;;  %v2405_v13 = vadd.f32 %v2404_v12, %v2115_v10  ;;  %v930_v10 = vld [vmem:[%s5038_s19 + $0x108] sm:$0xff] }
 0x231   : > { %v2117_v14 = vpop.f32.mrf.mxu0  ;;  %v2406_v15 = vpop.f32.mrf.mxu1 }
 0x232   : > { %v2587_v16 = vadd.f32 %v2405_v13, %v921_v11 }
 0x233   : > { %v2118_v17 = vpop.f32.mrf.mxu0  ;;  %v2407_v19 = vpop.f32.mrf.mxu1 }
 0x234   : > { %2651 = vst [vmem:[%s5038_s19 + $0xc0] sm:$0xff] %v2587_v16  ;;  %v2408_v20 = vadd.f32 %v2407_v19, %v2118_v17  ;;  %v931_v17 = vld [vmem:[%s5038_s19 + $0x110] sm:$0xff] }
 0x235   : > { %v2120_v21 = vpop.f32.mrf.mxu0  ;;  %v2409_v22 = vpop.f32.mrf.mxu1 }
 0x236   : > { %v2588_v23 = vadd.f32 %v2408_v20, %v922_v18 }
 0x237   : > { %v2123_v24 = vpop.f32.mrf.mxu0  ;;  %v2412_v26 = vpop.f32.mrf.mxu1 }
 0x238   : > { %2652 = vst [vmem:[%s5038_s19 + $0xc8] sm:$0xff] %v2588_v23  ;;  %v2413_v27 = vadd.f32 %v2412_v26, %v2123_v24  ;;  %v932_v24 = vld [vmem:[%s5038_s19 + $0x118] sm:$0xff] }
 0x239   : > { %v2125_v28 = vpop.f32.mrf.mxu0  ;;  %v2414_v29 = vpop.f32.mrf.mxu1 }
 0x23a   : > { %v2589_v30 = vadd.f32 %v2413_v27, %v923_v25 }
 0x23b   : > { %v2126_v31 = vpop.f32.mrf.mxu0  ;;  %v2415_v33 = vpop.f32.mrf.mxu1 }
 0x23c   : > { %2653 = vst [vmem:[%s5038_s19 + $0xd0] sm:$0xff] %v2589_v30  ;;  %v2416_v34 = vadd.f32 %v2415_v33, %v2126_v31  ;;  %v933_v31 = vld [vmem:[%s5038_s19 + $0x120] sm:$0xff] }
 0x23d   : > { %v2128_v35 = vpop.f32.mrf.mxu0  ;;  %v2417_v36 = vpop.f32.mrf.mxu1 }
 0x23e   : > { %v2590_v37 = vadd.f32 %v2416_v34, %v924_v32 }
 0x23f   : > { %v2131_v38 = vpop.f32.mrf.mxu0  ;;  %v2420_v40 = vpop.f32.mrf.mxu1 }
 0x240   : > { %2654 = vst [vmem:[%s5038_s19 + $0xd8] sm:$0xff] %v2590_v37  ;;  %v2421_v41 = vadd.f32 %v2420_v40, %v2131_v38  ;;  %v934_v38 = vld [vmem:[%s5038_s19 + $0x128] sm:$0xff] }
 0x241   : > { %v2133_v42 = vpop.f32.mrf.mxu0  ;;  %v2422_v43 = vpop.f32.mrf.mxu1 }
 0x242   : > { %v2591_v44 = vadd.f32 %v2421_v41, %v925_v39 }
 0x243   : > { %v2134_v45 = vpop.f32.mrf.mxu0  ;;  %v2423_v47 = vpop.f32.mrf.mxu1 }
 0x244   : > { %2655 = vst [vmem:[%s5038_s19 + $0xe0] sm:$0xff] %v2591_v44  ;;  %v2424_v48 = vadd.f32 %v2423_v47, %v2134_v45  ;;  %v935_v45 = vld [vmem:[%s5038_s19 + $0x130] sm:$0xff] }
 0x245   : > { %v2136_v49 = vpop.f32.mrf.mxu0  ;;  %v2425_v50 = vpop.f32.mrf.mxu1 }
 0x246   : > { %v2592_v51 = vadd.f32 %v2424_v48, %v926_v46 }
 0x247   : > { %v2139_v52 = vpop.f32.mrf.mxu0  ;;  %v2428_v54 = vpop.f32.mrf.mxu1 }
 0x248   : > { %2656 = vst [vmem:[%s5038_s19 + $0xe8] sm:$0xff] %v2592_v51  ;;  %v2429_v55 = vadd.f32 %v2428_v54, %v2139_v52  ;;  %v936_v52 = vld [vmem:[%s5038_s19 + $0x138] sm:$0xff] }
 0x249   : > { %v2141_v56 = vpop.f32.mrf.mxu0  ;;  %v2430_v57 = vpop.f32.mrf.mxu1 }
 0x24a   : > { %v2593_v58 = vadd.f32 %v2429_v55, %v927_v53 }
 0x24b   : > { %v2142_v59 = vpop.f32.mrf.mxu0  ;;  %v2431_v61 = vpop.f32.mrf.mxu1 }
 0x24c   : > { %2657 = vst [vmem:[%s5038_s19 + $0xf0] sm:$0xff] %v2593_v58  ;;  %v2432_v62 = vadd.f32 %v2431_v61, %v2142_v59  ;;  %v937_v59 = vld [vmem:[%s5038_s19 + $0x140] sm:$0xff] }
 0x24d   : > { %v2144_v63 = vpop.f32.mrf.mxu0  ;;  %v2433_v0 = vpop.f32.mrf.mxu1 }
 0x24e   : > { %v2594_v1 = vadd.f32 %v2432_v62, %v928_v60 }
 0x24f   : > { %v2147_v2 = vpop.f32.mrf.mxu0  ;;  %v2436_v4 = vpop.f32.mrf.mxu1 }
 0x250   : > { %2658 = vst [vmem:[%s5038_s19 + $0xf8] sm:$0xff] %v2594_v1  ;;  %v2437_v5 = vadd.f32 %v2436_v4, %v2147_v2  ;;  %v938_v2 = vld [vmem:[%s5038_s19 + $0x148] sm:$0xff] }
 0x251   : > { %v2149_v6 = vpop.f32.mrf.mxu0  ;;  %v2438_v7 = vpop.f32.mrf.mxu1 }
 0x252   : > { %v2595_v8 = vadd.f32 %v2437_v5, %v929_v3 }
 0x253   : > { %v2150_v9 = vpop.f32.mrf.mxu0  ;;  %v2439_v11 = vpop.f32.mrf.mxu1 }
 0x254   : > { %2659 = vst [vmem:[%s5038_s19 + $0x100] sm:$0xff] %v2595_v8  ;;  %v2440_v12 = vadd.f32 %v2439_v11, %v2150_v9  ;;  %v939_v9 = vld [vmem:[%s5038_s19 + $0x150] sm:$0xff] }
 0x255   : > { %v2152_v13 = vpop.f32.mrf.mxu0  ;;  %v2441_v14 = vpop.f32.mrf.mxu1 }
 0x256   : > { %v2596_v15 = vadd.f32 %v2440_v12, %v930_v10 }
 0x257   : > { %v2155_v16 = vpop.f32.mrf.mxu0  ;;  %v2444_v18 = vpop.f32.mrf.mxu1 }
 0x258   : > { %2660 = vst [vmem:[%s5038_s19 + $0x108] sm:$0xff] %v2596_v15  ;;  %v2445_v19 = vadd.f32 %v2444_v18, %v2155_v16  ;;  %v940_v16 = vld [vmem:[%s5038_s19 + $0x158] sm:$0xff] }
 0x259   : > { %v2157_v20 = vpop.f32.mrf.mxu0  ;;  %v2446_v21 = vpop.f32.mrf.mxu1 }
 0x25a   : > { %v2597_v22 = vadd.f32 %v2445_v19, %v931_v17 }
 0x25b   : > { %v2158_v23 = vpop.f32.mrf.mxu0  ;;  %v2447_v25 = vpop.f32.mrf.mxu1 }
 0x25c   : > { %2661 = vst [vmem:[%s5038_s19 + $0x110] sm:$0xff] %v2597_v22  ;;  %v2448_v26 = vadd.f32 %v2447_v25, %v2158_v23  ;;  %v941_v23 = vld [vmem:[%s5038_s19 + $0x160] sm:$0xff] }
 0x25d   : > { %v2160_v27 = vpop.f32.mrf.mxu0  ;;  %v2449_v28 = vpop.f32.mrf.mxu1 }
 0x25e   : > { %v2598_v29 = vadd.f32 %v2448_v26, %v932_v24 }
 0x25f   : > { %v2163_v30 = vpop.f32.mrf.mxu0  ;;  %v2452_v32 = vpop.f32.mrf.mxu1 }
 0x260   : > { %2662 = vst [vmem:[%s5038_s19 + $0x118] sm:$0xff] %v2598_v29  ;;  %v2453_v33 = vadd.f32 %v2452_v32, %v2163_v30  ;;  %v942_v30 = vld [vmem:[%s5038_s19 + $0x168] sm:$0xff] }
 0x261   : > { %v2165_v34 = vpop.f32.mrf.mxu0  ;;  %v2454_v35 = vpop.f32.mrf.mxu1 }
 0x262   : > { %v2599_v36 = vadd.f32 %v2453_v33, %v933_v31 }
 0x263   : > { %v2166_v37 = vpop.f32.mrf.mxu0  ;;  %v2455_v39 = vpop.f32.mrf.mxu1 }
 0x264   : > { %2663 = vst [vmem:[%s5038_s19 + $0x120] sm:$0xff] %v2599_v36  ;;  %v2456_v40 = vadd.f32 %v2455_v39, %v2166_v37  ;;  %v943_v37 = vld [vmem:[%s5038_s19 + $0x170] sm:$0xff] }
 0x265   : > { %v2168_v41 = vpop.f32.mrf.mxu0  ;;  %v2457_v42 = vpop.f32.mrf.mxu1 }
 0x266   : > { %v2600_v43 = vadd.f32 %v2456_v40, %v934_v38 }
 0x267   : > { %v2171_v44 = vpop.f32.mrf.mxu0  ;;  %v2460_v46 = vpop.f32.mrf.mxu1 }
 0x268   : > { %2664 = vst [vmem:[%s5038_s19 + $0x128] sm:$0xff] %v2600_v43  ;;  %v2461_v47 = vadd.f32 %v2460_v46, %v2171_v44  ;;  %v944_v44 = vld [vmem:[%s5038_s19 + $0x178] sm:$0xff] }
 0x269   : > { %v2173_v48 = vpop.f32.mrf.mxu0  ;;  %v2462_v49 = vpop.f32.mrf.mxu1 }
 0x26a   : > { %v2601_v50 = vadd.f32 %v2461_v47, %v935_v45 }
 0x26b   : > { %v2174_v51 = vpop.f32.mrf.mxu0  ;;  %v2463_v53 = vpop.f32.mrf.mxu1 }
 0x26c   : > { %2665 = vst [vmem:[%s5038_s19 + $0x130] sm:$0xff] %v2601_v50  ;;  %v2464_v54 = vadd.f32 %v2463_v53, %v2174_v51  ;;  %v945_v51 = vld [vmem:[%s5038_s19 + $0x180] sm:$0xff] }
 0x26d   : > { %v2176_v55 = vpop.f32.mrf.mxu0  ;;  %v2465_v56 = vpop.f32.mrf.mxu1 }
 0x26e   : > { %v2602_v57 = vadd.f32 %v2464_v54, %v936_v52 }
 0x26f   : > { %v2179_v58 = vpop.f32.mrf.mxu0  ;;  %v2468_v60 = vpop.f32.mrf.mxu1 }
 0x270   : > { %2666 = vst [vmem:[%s5038_s19 + $0x138] sm:$0xff] %v2602_v57  ;;  %v2469_v61 = vadd.f32 %v2468_v60, %v2179_v58  ;;  %v946_v58 = vld [vmem:[%s5038_s19 + $0x188] sm:$0xff] }
 0x271   : > { %v2181_v62 = vpop.f32.mrf.mxu0  ;;  %v2470_v63 = vpop.f32.mrf.mxu1 }
 0x272   : > { %v2603_v0 = vadd.f32 %v2469_v61, %v937_v59 }
 0x273   : > { %v2182_v1 = vpop.f32.mrf.mxu0  ;;  %v2471_v3 = vpop.f32.mrf.mxu1 }
 0x274   : > { %2667 = vst [vmem:[%s5038_s19 + $0x140] sm:$0xff] %v2603_v0  ;;  %v2472_v4 = vadd.f32 %v2471_v3, %v2182_v1  ;;  %v947_v1 = vld [vmem:[%s5038_s19 + $0x190] sm:$0xff] }
 0x275   : > { %v2184_v5 = vpop.f32.mrf.mxu0  ;;  %v2473_v6 = vpop.f32.mrf.mxu1 }
 0x276   : > { %v2604_v7 = vadd.f32 %v2472_v4, %v938_v2 }
 0x277   : > { %v2187_v8 = vpop.f32.mrf.mxu0  ;;  %v2476_v10 = vpop.f32.mrf.mxu1 }
 0x278   : > { %2668 = vst [vmem:[%s5038_s19 + $0x148] sm:$0xff] %v2604_v7  ;;  %v2477_v11 = vadd.f32 %v2476_v10, %v2187_v8  ;;  %v948_v8 = vld [vmem:[%s5038_s19 + $0x198] sm:$0xff] }
 0x279   : > { %v2189_v12 = vpop.f32.mrf.mxu0  ;;  %v2478_v13 = vpop.f32.mrf.mxu1 }
 0x27a   : > { %v2605_v14 = vadd.f32 %v2477_v11, %v939_v9 }
 0x27b   : > { %v2190_v15 = vpop.f32.mrf.mxu0  ;;  %v2479_v17 = vpop.f32.mrf.mxu1 }
 0x27c   : > { %2669 = vst [vmem:[%s5038_s19 + $0x150] sm:$0xff] %v2605_v14  ;;  %v2480_v18 = vadd.f32 %v2479_v17, %v2190_v15  ;;  %v949_v15 = vld [vmem:[%s5038_s19 + $0x1a0] sm:$0xff] }
 0x27d   : > { %v2192_v19 = vpop.f32.mrf.mxu0  ;;  %v2481_v20 = vpop.f32.mrf.mxu1 }
 0x27e   : > { %v2606_v21 = vadd.f32 %v2480_v18, %v940_v16 }
 0x27f   : > { %v2195_v22 = vpop.f32.mrf.mxu0  ;;  %v2484_v24 = vpop.f32.mrf.mxu1 }
 0x280   : > { %2670 = vst [vmem:[%s5038_s19 + $0x158] sm:$0xff] %v2606_v21  ;;  %v2485_v25 = vadd.f32 %v2484_v24, %v2195_v22  ;;  %v950_v22 = vld [vmem:[%s5038_s19 + $0x1a8] sm:$0xff] }
 0x281   : > { %v2197_v26 = vpop.f32.mrf.mxu0  ;;  %v2486_v27 = vpop.f32.mrf.mxu1 }
 0x282   : > { %v2607_v28 = vadd.f32 %v2485_v25, %v941_v23 }
 0x283   : > { %v2198_v29 = vpop.f32.mrf.mxu0  ;;  %v2487_v31 = vpop.f32.mrf.mxu1 }
 0x284   : > { %2671 = vst [vmem:[%s5038_s19 + $0x160] sm:$0xff] %v2607_v28  ;;  %v2488_v32 = vadd.f32 %v2487_v31, %v2198_v29  ;;  %v951_v29 = vld [vmem:[%s5038_s19 + $0x1b0] sm:$0xff] }
 0x285   : > { %v2200_v33 = vpop.f32.mrf.mxu0  ;;  %v2489_v34 = vpop.f32.mrf.mxu1 }
 0x286   : > { %v2608_v35 = vadd.f32 %v2488_v32, %v942_v30 }
 0x287   : > { %v2203_v36 = vpop.f32.mrf.mxu0  ;;  %v2492_v38 = vpop.f32.mrf.mxu1 }
 0x288   : > { %2672 = vst [vmem:[%s5038_s19 + $0x168] sm:$0xff] %v2608_v35  ;;  %v2493_v39 = vadd.f32 %v2492_v38, %v2203_v36  ;;  %v952_v36 = vld [vmem:[%s5038_s19 + $0x1b8] sm:$0xff] }
 0x289   : > { %v2205_v40 = vpop.f32.mrf.mxu0  ;;  %v2494_v41 = vpop.f32.mrf.mxu1 }
 0x28a   : > { %v2609_v42 = vadd.f32 %v2493_v39, %v943_v37 }
 0x28b   : > { %v2206_v43 = vpop.f32.mrf.mxu0  ;;  %v2495_v45 = vpop.f32.mrf.mxu1 }
 0x28c   : > { %2673 = vst [vmem:[%s5038_s19 + $0x170] sm:$0xff] %v2609_v42  ;;  %v2496_v46 = vadd.f32 %v2495_v45, %v2206_v43  ;;  %v953_v43 = vld [vmem:[%s5038_s19 + $0x1c0] sm:$0xff] }
 0x28d   : > { %v2208_v47 = vpop.f32.mrf.mxu0  ;;  %v2497_v48 = vpop.f32.mrf.mxu1 }
 0x28e   : > { %v2610_v49 = vadd.f32 %v2496_v46, %v944_v44 }
 0x28f   : > { %v2211_v50 = vpop.f32.mrf.mxu0  ;;  %v2500_v52 = vpop.f32.mrf.mxu1 }
 0x290   : > { %2674 = vst [vmem:[%s5038_s19 + $0x178] sm:$0xff] %v2610_v49  ;;  %v2501_v53 = vadd.f32 %v2500_v52, %v2211_v50  ;;  %v954_v50 = vld [vmem:[%s5038_s19 + $0x1c8] sm:$0xff] }
 0x291   : > { %v2213_v54 = vpop.f32.mrf.mxu0  ;;  %v2502_v55 = vpop.f32.mrf.mxu1 }
 0x292   : > { %v2611_v56 = vadd.f32 %v2501_v53, %v945_v51 }
 0x293   : > { %v2214_v57 = vpop.f32.mrf.mxu0  ;;  %v2503_v59 = vpop.f32.mrf.mxu1 }
 0x294   : > { %2675 = vst [vmem:[%s5038_s19 + $0x180] sm:$0xff] %v2611_v56  ;;  %v2504_v60 = vadd.f32 %v2503_v59, %v2214_v57  ;;  %v955_v57 = vld [vmem:[%s5038_s19 + $0x1d0] sm:$0xff] }
 0x295   : > { %v2216_v61 = vpop.f32.mrf.mxu0  ;;  %v2505_v62 = vpop.f32.mrf.mxu1 }
 0x296   : > { %v2612_v63 = vadd.f32 %v2504_v60, %v946_v58 }
 0x297   : > { %v2219_v0 = vpop.f32.mrf.mxu0  ;;  %v2508_v2 = vpop.f32.mrf.mxu1 }
 0x298   : > { %2676 = vst [vmem:[%s5038_s19 + $0x188] sm:$0xff] %v2612_v63  ;;  %v2509_v3 = vadd.f32 %v2508_v2, %v2219_v0  ;;  %v956_v0 = vld [vmem:[%s5038_s19 + $0x1d8] sm:$0xff] }
 0x299   : > { %v2221_v4 = vpop.f32.mrf.mxu0  ;;  %v2510_v5 = vpop.f32.mrf.mxu1 }
 0x29a   : > { %v2613_v6 = vadd.f32 %v2509_v3, %v947_v1 }
 0x29b   : > { %v2222_v7 = vpop.f32.mrf.mxu0  ;;  %v2511_v9 = vpop.f32.mrf.mxu1 }
 0x29c   : > { %2677 = vst [vmem:[%s5038_s19 + $0x190] sm:$0xff] %v2613_v6  ;;  %v2512_v10 = vadd.f32 %v2511_v9, %v2222_v7  ;;  %v957_v7 = vld [vmem:[%s5038_s19 + $0x1e0] sm:$0xff] }
 0x29d   : > { %v2224_v11 = vpop.f32.mrf.mxu0  ;;  %v2513_v12 = vpop.f32.mrf.mxu1 }
 0x29e   : > { %v2614_v13 = vadd.f32 %v2512_v10, %v948_v8 }
 0x29f   : > { %v2227_v14 = vpop.f32.mrf.mxu0  ;;  %v2516_v16 = vpop.f32.mrf.mxu1 }
 0x2a0   : > { %2678 = vst [vmem:[%s5038_s19 + $0x198] sm:$0xff] %v2614_v13  ;;  %v2517_v17 = vadd.f32 %v2516_v16, %v2227_v14  ;;  %v958_v14 = vld [vmem:[%s5038_s19 + $0x1e8] sm:$0xff] }
 0x2a1   : > { %v2229_v18 = vpop.f32.mrf.mxu0  ;;  %v2518_v19 = vpop.f32.mrf.mxu1 }
 0x2a2   : > { %v2615_v20 = vadd.f32 %v2517_v17, %v949_v15 }
 0x2a3   : > { %v2230_v21 = vpop.f32.mrf.mxu0  ;;  %v2519_v23 = vpop.f32.mrf.mxu1 }
 0x2a4   : > { %2679 = vst [vmem:[%s5038_s19 + $0x1a0] sm:$0xff] %v2615_v20  ;;  %v2520_v24 = vadd.f32 %v2519_v23, %v2230_v21  ;;  %v959_v21 = vld [vmem:[%s5038_s19 + $0x1f0] sm:$0xff] }
 0x2a5   : > { %v2232_v25 = vpop.f32.mrf.mxu0  ;;  %v2521_v26 = vpop.f32.mrf.mxu1 }
 0x2a6   : > { %v2616_v27 = vadd.f32 %v2520_v24, %v950_v22 }
 0x2a7   : > { %v2235_v28 = vpop.f32.mrf.mxu0  ;;  %v2524_v30 = vpop.f32.mrf.mxu1 }
 0x2a8   : > { %2680 = vst [vmem:[%s5038_s19 + $0x1a8] sm:$0xff] %v2616_v27  ;;  %v2525_v31 = vadd.f32 %v2524_v30, %v2235_v28  ;;  %v960_v28 = vld [vmem:[%s5038_s19 + $0x1f8] sm:$0xff] }
 0x2a9   : > { %v2237_v32 = vpop.f32.mrf.mxu0  ;;  %v2526_v33 = vpop.f32.mrf.mxu1 }
 0x2aa   : > { %v2617_v34 = vadd.f32 %v2525_v31, %v951_v29 }
 0x2ab   : > { %v2238_v35 = vpop.f32.mrf.mxu0  ;;  %v2527_v37 = vpop.f32.mrf.mxu1 }
 0x2ac   : > { %2681 = vst [vmem:[%s5038_s19 + $0x1b0] sm:$0xff] %v2617_v34  ;;  %v2528_v38 = vadd.f32 %v2527_v37, %v2238_v35 }
 0x2ad   : > { %v2240_v39 = vpop.f32.mrf.mxu0  ;;  %v2529_v40 = vpop.f32.mrf.mxu1 }
 0x2ae   : > { %v2618_v41 = vadd.f32 %v2528_v38, %v952_v36 }
 0x2af   : > { %v2243_v42 = vpop.f32.mrf.mxu0  ;;  %v2532_v44 = vpop.f32.mrf.mxu1 }
 0x2b0   : > { %2682 = vst [vmem:[%s5038_s19 + $0x1b8] sm:$0xff] %v2618_v41  ;;  %v2533_v45 = vadd.f32 %v2532_v44, %v2243_v42 }
 0x2b1   : > { %v2245_v46 = vpop.f32.mrf.mxu0  ;;  %v2534_v47 = vpop.f32.mrf.mxu1 }
 0x2b2   : > { %v2619_v48 = vadd.f32 %v2533_v45, %v953_v43 }
 0x2b3   : > { %v2246_v49 = vpop.f32.mrf.mxu0  ;;  %v2535_v51 = vpop.f32.mrf.mxu1 }
 0x2b4   : > { %2683 = vst [vmem:[%s5038_s19 + $0x1c0] sm:$0xff] %v2619_v48  ;;  %v2536_v52 = vadd.f32 %v2535_v51, %v2246_v49 }
 0x2b5   : > { %v2248_v53 = vpop.f32.mrf.mxu0  ;;  %v2537_v54 = vpop.f32.mrf.mxu1 }
 0x2b6   : > { %v2620_v55 = vadd.f32 %v2536_v52, %v954_v50 }
 0x2b7   : > { %v2251_v56 = vpop.f32.mrf.mxu0  ;;  %v2540_v58 = vpop.f32.mrf.mxu1 }
 0x2b8   : > { %2684 = vst [vmem:[%s5038_s19 + $0x1c8] sm:$0xff] %v2620_v55  ;;  %v2541_v59 = vadd.f32 %v2540_v58, %v2251_v56 }
 0x2b9   : > { %v2253_v60 = vpop.f32.mrf.mxu0  ;;  %v2542_v61 = vpop.f32.mrf.mxu1 }
 0x2ba   : > { %v2621_v62 = vadd.f32 %v2541_v59, %v955_v57 }
 0x2bb   : > { %v2254_v63 = vpop.f32.mrf.mxu0  ;;  %v2543_v1 = vpop.f32.mrf.mxu1 }
 0x2bc   : > { %2685 = vst [vmem:[%s5038_s19 + $0x1d0] sm:$0xff] %v2621_v62  ;;  %v2544_v2 = vadd.f32 %v2543_v1, %v2254_v63 }
 0x2bd   : > { %v2256_v3 = vpop.f32.mrf.mxu0  ;;  %v2545_v4 = vpop.f32.mrf.mxu1 }
 0x2be   : > { %v2622_v5 = vadd.f32 %v2544_v2, %v956_v0 }
 0x2bf   : > { %v2259_v6 = vpop.f32.mrf.mxu0  ;;  %v2548_v8 = vpop.f32.mrf.mxu1 }
 0x2c0   : > { %2686 = vst [vmem:[%s5038_s19 + $0x1d8] sm:$0xff] %v2622_v5  ;;  %v2549_v9 = vadd.f32 %v2548_v8, %v2259_v6 }
 0x2c1   : > { %v2261_v10 = vpop.f32.mrf.mxu0  ;;  %v2550_v11 = vpop.f32.mrf.mxu1 }
 0x2c2   : > { %v2623_v12 = vadd.f32 %v2549_v9, %v957_v7 }
 0x2c3   : > { %v2262_v13 = vpop.f32.mrf.mxu0  ;;  %v2551_v15 = vpop.f32.mrf.mxu1 }
 0x2c4   : > { %2687 = vst [vmem:[%s5038_s19 + $0x1e0] sm:$0xff] %v2623_v12  ;;  %v2552_v16 = vadd.f32 %v2551_v15, %v2262_v13 }
 0x2c5   : > { %v2264_v17 = vpop.f32.mrf.mxu0  ;;  %v2553_v18 = vpop.f32.mrf.mxu1 }
 0x2c6   : > { %v2624_v19 = vadd.f32 %v2552_v16, %v958_v14 }
 0x2c7   : > { %v2267_v20 = vpop.f32.mrf.mxu0  ;;  %v2556_v22 = vpop.f32.mrf.mxu1 }
 0x2c8   : > { %2688 = vst [vmem:[%s5038_s19 + $0x1e8] sm:$0xff] %v2624_v19  ;;  %v2557_v23 = vadd.f32 %v2556_v22, %v2267_v20 }
 0x2c9   : > { %v2269_v24 = vpop.f32.mrf.mxu0  ;;  %v2558_v25 = vpop.f32.mrf.mxu1 }
 0x2ca   : > { %v2625_v26 = vadd.f32 %v2557_v23, %v959_v21 }
 0x2cb   : > { %v2270_v27 = vpop.f32.mrf.mxu0  ;;  %v2559_v29 = vpop.f32.mrf.mxu1 }
 0x2cc   : > { %2689 = vst [vmem:[%s5038_s19 + $0x1f0] sm:$0xff] %v2625_v26  ;;  %v2560_v30 = vadd.f32 %v2559_v29, %v2270_v27  ;;  %2694 = sbr.rel (%p4071_p5) target bundleno = 999 (0x3e7), region = 108 }
 0x2cd   : > { %v2272_v31 = vpop.f32.mrf.mxu0  ;;  %v2561_v32 = vpop.f32.mrf.mxu1 }
 0x2ce   : > { %v2626_v33 = vadd.f32 %v2560_v30, %v960_v28 }
 0x2d0   : > { %2690 = vst [vmem:[%s5038_s19 + $0x1f8] sm:$0xff] %v2626_v33 }
 0x2d1   : > { %v5491_v34 = vld [vmem:[%s5038_s19] sm:$0xff]  ;;  %v5494_v35 = vld [vmem:[%s5038_s19 + $0x8] sm:$0xff]  ;;  %v5497_v36 = vld [vmem:[%s5038_s19 + $0x10] sm:$0xff] }
 0x2d2   : > { %v5500_v37 = vld [vmem:[%s5038_s19 + $0x18] sm:$0xff]  ;;  %v2759_v38 = vadd.f32 %v5494_v35, %v5491_v34  ;;  %v2830_v39 = vmul.f32 %v5491_v34, %v5491_v34  ;;  %v2831_v40 = vmul.f32 %v5494_v35, %v5494_v35  ;;  %v2832_v41 = vmul.f32 %v5497_v36, %v5497_v36  ;;  %v5511_v42 = vld [vmem:[%s5038_s19 + $0x20] sm:$0xff]  ;;  %v5517_v46 = vld [vmem:[%s5038_s19 + $0x28] sm:$0xff] }
 0x2d3   : > { %v2833_v44 = vmul.f32 %v5500_v37, %v5500_v37  ;;  %v2834_v48 = vmul.f32 %v5511_v42, %v5511_v42  ;;  %v5523_v50 = vld [vmem:[%s5038_s19 + $0x30] sm:$0xff]  ;;  %v2835_v52 = vmul.f32 %v5517_v46, %v5517_v46  ;;  %v5529_v54 = vld [vmem:[%s5038_s19 + $0x38] sm:$0xff]  ;;  %v5535_v58 = vld [vmem:[%s5038_s19 + $0x40] sm:$0xff] }
 0x2d4   : > { %v2760_v43 = vadd.f32 %v2759_v38, %v5497_v36  ;;  %v2894_v45 = vadd.f32 %v2831_v40, %v2830_v39  ;;  %v2836_v56 = vmul.f32 %v5523_v50, %v5523_v50  ;;  %v2837_v60 = vmul.f32 %v5529_v54, %v5529_v54  ;;  %v5541_v62 = vld [vmem:[%s5038_s19 + $0x48] sm:$0xff]  ;;  %v5547_v2 = vld [vmem:[%s5038_s19 + $0x50] sm:$0xff]  ;;  %v5553_v6 = vld [vmem:[%s5038_s19 + $0x58] sm:$0xff] }
 0x2d5   : > { %v2838_v0 = vmul.f32 %v5535_v58, %v5535_v58  ;;  %v2839_v4 = vmul.f32 %v5541_v62, %v5541_v62  ;;  %v2840_v8 = vmul.f32 %v5547_v2, %v5547_v2  ;;  %v5559_v10 = vld [vmem:[%s5038_s19 + $0x60] sm:$0xff]  ;;  %v2841_v12 = vmul.f32 %v5553_v6, %v5553_v6  ;;  %v5565_v14 = vld [vmem:[%s5038_s19 + $0x68] sm:$0xff]  ;;  %v5571_v18 = vld [vmem:[%s5038_s19 + $0x70] sm:$0xff] }
 0x2d6   : > { %v2761_v47 = vadd.f32 %v2760_v43, %v5500_v37  ;;  %v2895_v49 = vadd.f32 %v2894_v45, %v2832_v41  ;;  %v2842_v16 = vmul.f32 %v5559_v10, %v5559_v10  ;;  %v2843_v20 = vmul.f32 %v5565_v14, %v5565_v14  ;;  %v5577_v22 = vld [vmem:[%s5038_s19 + $0x78] sm:$0xff]  ;;  %v5583_v26 = vld [vmem:[%s5038_s19 + $0x80] sm:$0xff]  ;;  %v5589_v30 = vld [vmem:[%s5038_s19 + $0x88] sm:$0xff] }
 0x2d7   : > { %v2844_v24 = vmul.f32 %v5571_v18, %v5571_v18  ;;  %v2845_v28 = vmul.f32 %v5577_v22, %v5577_v22  ;;  %v2846_v32 = vmul.f32 %v5583_v26, %v5583_v26  ;;  %v5595_v38 = vld [vmem:[%s5038_s19 + $0x90] sm:$0xff]  ;;  %v2847_v40 = vmul.f32 %v5589_v30, %v5589_v30  ;;  %v5601_v43 = vld [vmem:[%s5038_s19 + $0x98] sm:$0xff] }
 0x2d8   : > { %v2762_v51 = vadd.f32 %v2761_v47, %v5511_v42  ;;  %v2896_v53 = vadd.f32 %v2895_v49, %v2833_v44  ;;  %v2848_v45 = vmul.f32 %v5595_v38, %v5595_v38 }
 0x2da   : > { %v2763_v55 = vadd.f32 %v2762_v51, %v5517_v46  ;;  %v2897_v57 = vadd.f32 %v2896_v53, %v2834_v48  ;;  %v5607_v48 = vld [vmem:[%s5038_s19 + $0xa0] sm:$0xff]  ;;  %v2849_v51 = vmul.f32 %v5601_v43, %v5601_v43  ;;  %v5613_v53 = vld [vmem:[%s5038_s19 + $0xa8] sm:$0xff] }
 0x2dc   : > { %v2764_v59 = vadd.f32 %v2763_v55, %v5523_v50  ;;  %v2898_v61 = vadd.f32 %v2897_v57, %v2835_v52 }
 0x2de   : > { %v2765_v63 = vadd.f32 %v2764_v59, %v5529_v54  ;;  %v2899_v1 = vadd.f32 %v2898_v61, %v2836_v56  ;;  %v2850_v56 = vmul.f32 %v5607_v48, %v5607_v48  ;;  %v5619_v59 = vld [vmem:[%s5038_s19 + $0xb0] sm:$0xff]  ;;  %v2851_v61 = vmul.f32 %v5613_v53, %v5613_v53 }
 0x2e0   : > { %v2766_v3 = vadd.f32 %v2765_v63, %v5535_v58  ;;  %v2900_v5 = vadd.f32 %v2899_v1, %v2837_v60 }
 0x2e2   : > { %v2767_v7 = vadd.f32 %v2766_v3, %v5541_v62  ;;  %v2901_v9 = vadd.f32 %v2900_v5, %v2838_v0  ;;  %v5625_v0 = vld [vmem:[%s5038_s19 + $0xb8] sm:$0xff]  ;;  %v2852_v3 = vmul.f32 %v5619_v59, %v5619_v59  ;;  %v5631_v5 = vld [vmem:[%s5038_s19 + $0xc0] sm:$0xff] }
 0x2e4   : > { %v2768_v11 = vadd.f32 %v2767_v7, %v5547_v2  ;;  %v2902_v13 = vadd.f32 %v2901_v9, %v2839_v4 }
 0x2e6   : > { %v2769_v15 = vadd.f32 %v2768_v11, %v5553_v6  ;;  %v2903_v17 = vadd.f32 %v2902_v13, %v2840_v8  ;;  %v2853_v8 = vmul.f32 %v5625_v0, %v5625_v0  ;;  %v5637_v11 = vld [vmem:[%s5038_s19 + $0xc8] sm:$0xff]  ;;  %v2854_v13 = vmul.f32 %v5631_v5, %v5631_v5 }
 0x2e8   : > { %v2770_v19 = vadd.f32 %v2769_v15, %v5559_v10  ;;  %v2904_v21 = vadd.f32 %v2903_v17, %v2841_v12 }
 0x2ea   : > { %v2771_v23 = vadd.f32 %v2770_v19, %v5565_v14  ;;  %v2905_v25 = vadd.f32 %v2904_v21, %v2842_v16  ;;  %v5643_v16 = vld [vmem:[%s5038_s19 + $0xd0] sm:$0xff]  ;;  %v2855_v19 = vmul.f32 %v5637_v11, %v5637_v11  ;;  %v5649_v21 = vld [vmem:[%s5038_s19 + $0xd8] sm:$0xff] }
 0x2ec   : > { %v2772_v27 = vadd.f32 %v2771_v23, %v5571_v18  ;;  %v2906_v29 = vadd.f32 %v2905_v25, %v2843_v20 }
 0x2ee   : > { %v2773_v31 = vadd.f32 %v2772_v27, %v5577_v22  ;;  %v2907_v33 = vadd.f32 %v2906_v29, %v2844_v24  ;;  %v2856_v24 = vmul.f32 %v5643_v16, %v5643_v16  ;;  %v5655_v27 = vld [vmem:[%s5038_s19 + $0xe0] sm:$0xff]  ;;  %v2857_v29 = vmul.f32 %v5649_v21, %v5649_v21 }
 0x2f0   : > { %v2774_v39 = vadd.f32 %v2773_v31, %v5583_v26  ;;  %v2908_v41 = vadd.f32 %v2907_v33, %v2845_v28 }
 0x2f2   : > { %v2775_v44 = vadd.f32 %v2774_v39, %v5589_v30  ;;  %v2909_v47 = vadd.f32 %v2908_v41, %v2846_v32  ;;  %v5661_v32 = vld [vmem:[%s5038_s19 + $0xe8] sm:$0xff]  ;;  %v2858_v39 = vmul.f32 %v5655_v27, %v5655_v27  ;;  %v5667_v41 = vld [vmem:[%s5038_s19 + $0xf0] sm:$0xff] }
 0x2f4   : > { %v2776_v49 = vadd.f32 %v2775_v44, %v5595_v38  ;;  %v2910_v52 = vadd.f32 %v2909_v47, %v2847_v40 }
 0x2f6   : > { %v2777_v55 = vadd.f32 %v2776_v49, %v5601_v43  ;;  %v2911_v57 = vadd.f32 %v2910_v52, %v2848_v45  ;;  %v2859_v45 = vmul.f32 %v5661_v32, %v5661_v32  ;;  %v5673_v49 = vld [vmem:[%s5038_s19 + $0xf8] sm:$0xff]  ;;  %v2860_v52 = vmul.f32 %v5667_v41, %v5667_v41 }
 0x2f8   : > { %v2778_v60 = vadd.f32 %v2777_v55, %v5607_v48  ;;  %v2912_v63 = vadd.f32 %v2911_v57, %v2849_v51 }
 0x2fa   : > { %v2779_v1 = vadd.f32 %v2778_v60, %v5613_v53  ;;  %v2913_v4 = vadd.f32 %v2912_v63, %v2850_v56  ;;  %v5679_v56 = vld [vmem:[%s5038_s19 + $0x100] sm:$0xff]  ;;  %v2861_v60 = vmul.f32 %v5673_v49, %v5673_v49  ;;  %v5685_v63 = vld [vmem:[%s5038_s19 + $0x108] sm:$0xff] }
 0x2fc   : > { %v2780_v7 = vadd.f32 %v2779_v1, %v5619_v59  ;;  %v2914_v9 = vadd.f32 %v2913_v4, %v2851_v61 }
 0x2fe   : > { %v2781_v12 = vadd.f32 %v2780_v7, %v5625_v0  ;;  %v2915_v15 = vadd.f32 %v2914_v9, %v2852_v3  ;;  %v2862_v3 = vmul.f32 %v5679_v56, %v5679_v56  ;;  %v5691_v7 = vld [vmem:[%s5038_s19 + $0x110] sm:$0xff]  ;;  %v2863_v9 = vmul.f32 %v5685_v63, %v5685_v63 }
 0x300   : > { %v2782_v17 = vadd.f32 %v2781_v12, %v5631_v5  ;;  %v2916_v20 = vadd.f32 %v2915_v15, %v2853_v8 }
 0x302   : > { %v2783_v23 = vadd.f32 %v2782_v17, %v5637_v11  ;;  %v2917_v25 = vadd.f32 %v2916_v20, %v2854_v13  ;;  %v5697_v13 = vld [vmem:[%s5038_s19 + $0x118] sm:$0xff]  ;;  %v2864_v17 = vmul.f32 %v5691_v7, %v5691_v7  ;;  %v5703_v20 = vld [vmem:[%s5038_s19 + $0x120] sm:$0xff] }
 0x304   : > { %v2784_v28 = vadd.f32 %v2783_v23, %v5643_v16  ;;  %v2918_v31 = vadd.f32 %v2917_v25, %v2855_v19 }
 0x306   : > { %v2785_v33 = vadd.f32 %v2784_v28, %v5649_v21  ;;  %v2919_v40 = vadd.f32 %v2918_v31, %v2856_v24  ;;  %v2865_v24 = vmul.f32 %v5697_v13, %v5697_v13  ;;  %v5709_v28 = vld [vmem:[%s5038_s19 + $0x128] sm:$0xff]  ;;  %v2866_v31 = vmul.f32 %v5703_v20, %v5703_v20 }
 0x308   : > { %v2786_v44 = vadd.f32 %v2785_v33, %v5655_v27  ;;  %v2920_v47 = vadd.f32 %v2919_v40, %v2857_v29 }
 0x30a   : > { %v2787_v51 = vadd.f32 %v2786_v44, %v5661_v32  ;;  %v2921_v55 = vadd.f32 %v2920_v47, %v2858_v39  ;;  %v5715_v39 = vld [vmem:[%s5038_s19 + $0x130] sm:$0xff]  ;;  %v2867_v44 = vmul.f32 %v5709_v28, %v5709_v28  ;;  %v5721_v47 = vld [vmem:[%s5038_s19 + $0x138] sm:$0xff] }
 0x30c   : > { %v2788_v57 = vadd.f32 %v2787_v51, %v5667_v41  ;;  %v2922_v61 = vadd.f32 %v2921_v55, %v2859_v45 }
 0x30e   : > { %v2789_v1 = vadd.f32 %v2788_v57, %v5673_v49  ;;  %v2923_v4 = vadd.f32 %v2922_v61, %v2860_v52  ;;  %v2868_v52 = vmul.f32 %v5715_v39, %v5715_v39  ;;  %v5727_v57 = vld [vmem:[%s5038_s19 + $0x140] sm:$0xff]  ;;  %v2869_v61 = vmul.f32 %v5721_v47, %v5721_v47 }
 0x310   : > { %v2790_v8 = vadd.f32 %v2789_v1, %v5679_v56  ;;  %v2924_v12 = vadd.f32 %v2923_v4, %v2861_v60 }
 0x312   : > { %v2791_v15 = vadd.f32 %v2790_v8, %v5685_v63  ;;  %v2925_v19 = vadd.f32 %v2924_v12, %v2862_v3  ;;  %v5733_v3 = vld [vmem:[%s5038_s19 + $0x148] sm:$0xff]  ;;  %v2870_v8 = vmul.f32 %v5727_v57, %v5727_v57  ;;  %v5739_v12 = vld [vmem:[%s5038_s19 + $0x150] sm:$0xff] }
 0x313   : > { %6702 = vst [vmem:[#allocation8_spill] sm:$0xff] %v5733_v3  ;;  %6703 = vst [vmem:[#allocation9_spill] sm:$0xff] %v5739_v12 }
 0x314   : > { %v2792_v23 = vadd.f32 %v2791_v15, %v5691_v7  ;;  %v2926_v25 = vadd.f32 %v2925_v19, %v2863_v9 }
 0x316   : > { %v2793_v29 = vadd.f32 %v2792_v23, %v5697_v13  ;;  %v2927_v33 = vadd.f32 %v2926_v25, %v2864_v17  ;;  %v2871_v17 = vmul.f32 %v5733_v3, %v5733_v3  ;;  %v5745_v23 = vld [vmem:[%s5038_s19 + $0x158] sm:$0xff]  ;;  %v2872_v25 = vmul.f32 %v5739_v12, %v5739_v12 }
 0x317   : > { %6704 = vst [vmem:[#allocation10_spill] sm:$0xff] %v5745_v23 }
 0x318   : > { %v2794_v40 = vadd.f32 %v2793_v29, %v5703_v20  ;;  %v2928_v45 = vadd.f32 %v2927_v33, %v2865_v24 }
 0x31a   : > { %v2795_v51 = vadd.f32 %v2794_v40, %v5709_v28  ;;  %v2929_v55 = vadd.f32 %v2928_v45, %v2866_v31  ;;  %v5751_v31 = vld [vmem:[%s5038_s19 + $0x160] sm:$0xff]  ;;  %v2873_v40 = vmul.f32 %v5745_v23, %v5745_v23  ;;  %v5757_v45 = vld [vmem:[%s5038_s19 + $0x168] sm:$0xff] }
 0x31b   : > { %6705 = vst [vmem:[#allocation11_spill] sm:$0xff] %v5751_v31  ;;  %6706 = vst [vmem:[#allocation12_spill] sm:$0xff] %v5757_v45 }
 0x31c   : > { %v2796_v60 = vadd.f32 %v2795_v51, %v5715_v39  ;;  %v2930_v1 = vadd.f32 %v2929_v55, %v2867_v44 }
 0x31e   : > { %v2797_v4 = vadd.f32 %v2796_v60, %v5721_v47  ;;  %v2931_v9 = vadd.f32 %v2930_v1, %v2868_v52  ;;  %v2874_v52 = vmul.f32 %v5751_v31, %v5751_v31  ;;  %v5763_v60 = vld [vmem:[%s5038_s19 + $0x170] sm:$0xff]  ;;  %v2875_v1 = vmul.f32 %v5757_v45, %v5757_v45 }
 0x31f   : > { %6707 = vst [vmem:[#allocation13_spill] sm:$0xff] %v5763_v60 }
 0x320   : > { %v2798_v15 = vadd.f32 %v2797_v4, %v5727_v57  ;;  %v2932_v19 = vadd.f32 %v2931_v9, %v2869_v61 }
 0x322   : > { %v2799_v24 = vadd.f32 %v2798_v15, %v5733_v3  ;;  %v2933_v29 = vadd.f32 %v2932_v19, %v2870_v8  ;;  %v5769_v8 = vld [vmem:[%s5038_s19 + $0x178] sm:$0xff]  ;;  %v2876_v15 = vmul.f32 %v5763_v60, %v5763_v60  ;;  %v5775_v19 = vld [vmem:[%s5038_s19 + $0x180] sm:$0xff] }
 0x323   : > { %6708 = vst [vmem:[#allocation14_spill] sm:$0xff] %v5769_v8  ;;  %6709 = vst [vmem:[#allocation15_spill] sm:$0xff] %v5775_v19 }
 0x324   : > { %v2800_v33 = vadd.f32 %v2799_v24, %v5739_v12  ;;  %v2934_v44 = vadd.f32 %v2933_v29, %v2871_v17 }
 0x326   : > { %v2801_v51 = vadd.f32 %v2800_v33, %v5745_v23  ;;  %v2935_v55 = vadd.f32 %v2934_v44, %v2872_v25  ;;  %v2877_v25 = vmul.f32 %v5769_v8, %v5769_v8  ;;  %v5781_v33 = vld [vmem:[%s5038_s19 + $0x188] sm:$0xff]  ;;  %v2878_v44 = vmul.f32 %v5775_v19, %v5775_v19 }
 0x327   : > { %6710 = vst [vmem:[#allocation16_spill] sm:$0xff] %v5781_v33 }
 0x328   : > { %v2802_v61 = vadd.f32 %v2801_v51, %v5751_v31  ;;  %v2936_v4 = vadd.f32 %v2935_v55, %v2873_v40  ;;  %v5787_v55 = vld [vmem:[%s5038_s19 + $0x190] sm:$0xff] }
 0x329   : > { %6711 = vst [vmem:[#allocation17_spill] sm:$0xff] %v5787_v55 }
 0x32a   : > { %v2803_v9 = vadd.f32 %v2802_v61, %v5757_v45  ;;  %v2937_v17 = vadd.f32 %v2936_v4, %v2874_v52  ;;  %v2879_v61 = vmul.f32 %v5781_v33, %v5781_v33 }
 0x32c   : > { %v2804_v24 = vadd.f32 %v2803_v9, %v5763_v60  ;;  %v2938_v29 = vadd.f32 %v2937_v17, %v2875_v1  ;;  %v5793_v9 = vld [vmem:[%s5038_s19 + $0x198] sm:$0xff]  ;;  %v2880_v17 = vmul.f32 %v5787_v55, %v5787_v55 }
 0x32d   : > { %6712 = vst [vmem:[#allocation18_spill] sm:$0xff] %v5793_v9 }
 0x32e   : > { %v2805_v40 = vadd.f32 %v2804_v24, %v5769_v8  ;;  %v2939_v51 = vadd.f32 %v2938_v29, %v2876_v15  ;;  %v5799_v8 = vld [vmem:[%s5038_s19 + $0x1a0] sm:$0xff]  ;;  %v2881_v29 = vmul.f32 %v5793_v9, %v5793_v9 }
 0x32f   : > { %6713 = vst [vmem:[#allocation19_spill] sm:$0xff] %v5799_v8 }
 0x330   : > { %v2806_v52 = vadd.f32 %v2805_v40, %v5775_v19  ;;  %v2940_v4 = vadd.f32 %v2939_v51, %v2877_v25  ;;  %v5805_v19 = vld [vmem:[%s5038_s19 + $0x1a8] sm:$0xff]  ;;  %v2882_v51 = vmul.f32 %v5799_v8, %v5799_v8 }
 0x331   : > { %6714 = vst [vmem:[#allocation20_spill] sm:$0xff] %v5805_v19 }
 0x332   : > { %v2807_v1 = vadd.f32 %v2806_v52, %v5781_v33  ;;  %v2941_v24 = vadd.f32 %v2940_v4, %v2878_v44  ;;  %v5811_v33 = vld [vmem:[%s5038_s19 + $0x1b0] sm:$0xff]  ;;  %v2883_v4 = vmul.f32 %v5805_v19, %v5805_v19 }
 0x333   : > { %6715 = vst [vmem:[#allocation21_spill] sm:$0xff] %v5811_v33 }
 0x334   : > { %v2808_v15 = vadd.f32 %v2807_v1, %v5787_v55  ;;  %v2942_v40 = vadd.f32 %v2941_v24, %v2879_v61  ;;  %v5817_v55 = vld [vmem:[%s5038_s19 + $0x1b8] sm:$0xff]  ;;  %v2884_v24 = vmul.f32 %v5811_v33, %v5811_v33 }
 0x335   : > { %6716 = vst [vmem:[#allocation22_spill] sm:$0xff] %v5817_v55 }
 0x336   : > { %v2809_v25 = vadd.f32 %v2808_v15, %v5793_v9  ;;  %v2943_v52 = vadd.f32 %v2942_v40, %v2880_v17  ;;  %v5823_v9 = vld [vmem:[%s5038_s19 + $0x1c0] sm:$0xff]  ;;  %v2885_v40 = vmul.f32 %v5817_v55, %v5817_v55 }
 0x337   : > { %6717 = vst [vmem:[#allocation23_spill] sm:$0xff] %v5823_v9 }
 0x338   : > { %v2810_v44 = vadd.f32 %v2809_v25, %v5799_v8  ;;  %v2944_v1 = vadd.f32 %v2943_v52, %v2881_v29  ;;  %v5829_v8 = vld [vmem:[%s5038_s19 + $0x1c8] sm:$0xff]  ;;  %v2886_v52 = vmul.f32 %v5823_v9, %v5823_v9 }
 0x339   : > { %6718 = vst [vmem:[#allocation24_spill] sm:$0xff] %v5829_v8 }
 0x33a   : > { %v2811_v61 = vadd.f32 %v2810_v44, %v5805_v19  ;;  %v2945_v15 = vadd.f32 %v2944_v1, %v2882_v51  ;;  %v5835_v19 = vld [vmem:[%s5038_s19 + $0x1d0] sm:$0xff]  ;;  %v2887_v1 = vmul.f32 %v5829_v8, %v5829_v8 }
 0x33b   : > { %6719 = vst [vmem:[#allocation25_spill] sm:$0xff] %v5835_v19 }
 0x33c   : > { %v2812_v17 = vadd.f32 %v2811_v61, %v5811_v33  ;;  %v2946_v25 = vadd.f32 %v2945_v15, %v2883_v4  ;;  %v5841_v33 = vld [vmem:[%s5038_s19 + $0x1d8] sm:$0xff]  ;;  %v2888_v15 = vmul.f32 %v5835_v19, %v5835_v19 }
 0x33d   : > { %6720 = vst [vmem:[#allocation26_spill] sm:$0xff] %v5841_v33 }
 0x33e   : > { %v2813_v29 = vadd.f32 %v2812_v17, %v5817_v55  ;;  %v2947_v44 = vadd.f32 %v2946_v25, %v2884_v24  ;;  %v5847_v55 = vld [vmem:[%s5038_s19 + $0x1e0] sm:$0xff]  ;;  %v2889_v25 = vmul.f32 %v5841_v33, %v5841_v33 }
 0x33f   : > { %6721 = vst [vmem:[#allocation27_spill] sm:$0xff] %v5847_v55 }
 0x340   : > { %v2814_v51 = vadd.f32 %v2813_v29, %v5823_v9  ;;  %v2948_v61 = vadd.f32 %v2947_v44, %v2885_v40  ;;  %v5853_v9 = vld [vmem:[%s5038_s19 + $0x1e8] sm:$0xff]  ;;  %v2890_v44 = vmul.f32 %v5847_v55, %v5847_v55 }
 0x341   : > { %6722 = vst [vmem:[#allocation28_spill] sm:$0xff] %v5853_v9 }
 0x342   : > { %v2815_v4 = vadd.f32 %v2814_v51, %v5829_v8  ;;  %v2949_v17 = vadd.f32 %v2948_v61, %v2886_v52  ;;  %v5859_v8 = vld [vmem:[%s5038_s19 + $0x1f0] sm:$0xff]  ;;  %v2891_v61 = vmul.f32 %v5853_v9, %v5853_v9 }
 0x343   : > { %6723 = vst [vmem:[#allocation29_spill] sm:$0xff] %v5859_v8 }
 0x344   : > { %v2816_v24 = vadd.f32 %v2815_v4, %v5835_v19  ;;  %v2950_v29 = vadd.f32 %v2949_v17, %v2887_v1  ;;  %v5865_v19 = vld [vmem:[%s5038_s19 + $0x1f8] sm:$0xff]  ;;  %v2892_v17 = vmul.f32 %v5859_v8, %v5859_v8 }
 0x345   : > { %6724 = vst [vmem:[#allocation30_spill] sm:$0xff] %v5865_v19 }
 0x346   : > { %v2817_v40 = vadd.f32 %v2816_v24, %v5841_v33  ;;  %v2951_v51 = vadd.f32 %v2950_v29, %v2888_v15  ;;  %v2893_v15 = vmul.f32 %v5865_v19, %v5865_v19 }
 0x348   : > { %v2818_v52 = vadd.f32 %v2817_v40, %v5847_v55  ;;  %v2952_v4 = vadd.f32 %v2951_v51, %v2889_v25 }
 0x34a   : > { %v2819_v1 = vadd.f32 %v2818_v52, %v5853_v9  ;;  %v2953_v24 = vadd.f32 %v2952_v4, %v2890_v44 }
 0x34c   : > { %v2820_v33 = vadd.f32 %v2819_v1, %v5859_v8  ;;  %v2954_v29 = vadd.f32 %v2953_v24, %v2891_v61 }
 0x34e   : > { %v2821_v40 = vadd.f32 %v2820_v33, %v5865_v19  ;;  %v2955_v55 = vadd.f32 %v2954_v29, %v2892_v17 }
 0x350   : > { %v2822_v60 = vrot.slane %v2821_v40, 4  ;;  %v2956_v45 = vadd.f32 %v2955_v55, %v2893_v15 }
 0x352   : > { %v2823_v25 = vadd.f32 %v2822_v60, %v2821_v40  ;;  %v2957_v51 = vrot.slane %v2956_v45, 4  ;;  %v6005_v60 = vld [vmem:[%s824_s9] ss:$0 sm:$0xff] }
 0x354   : > { %v2824_v31 = vrot.slane %v2823_v25, 2  ;;  %v2958_v23 = vadd.f32 %v2957_v51, %v2956_v45 }
 0x356   : > { %v2825_v52 = vadd.f32 %v2824_v31, %v2823_v25  ;;  %v2959_v9 = vrot.slane %v2958_v23, 2 }
 0x358   : > { %v2826_v12 = vrot.slane %v2825_v52, 1  ;;  %v2960_v3 = vadd.f32 %v2959_v9, %v2958_v23 }
 0x35a   : > { %v2827_v44 = vadd.f32 %v2826_v12, %v2825_v52  ;;  %v2961_v4 = vrot.slane %v2960_v3, 1 }
 0x35c   : > { %v5874_v1 = vmul.f32 0.001953125, %v2827_v44  ;;  %v2962_v8 = vadd.f32 %v2961_v4, %v2960_v3  ;;  %v6726_v44 = vld [vmem:[#allocation9_spill] sm:$0xff]  ;;  %v6727_v4 = vld [vmem:[#allocation10_spill] sm:$0xff] }
 0x35e   : > { %v2964_v61 = vmul.f32 %v5874_v1, %v5874_v1  ;;  %v2963_v33 = vmul.f32 0.001953125, %v2962_v8  ;;  %v6747_v12 = vsub.f32 %v5491_v34, %v5874_v1  ;;  %v6748_v55 = vsub.f32 %v5494_v35, %v5874_v1  ;;  %v6036_v34 = vld [vmem:[%s827_s27] ss:$0 sm:$0xff] }
 0x35f   : > { %v6749_v51 = vsub.f32 %v5497_v36, %v5874_v1  ;;  %v6750_v40 = vsub.f32 %v5500_v37, %v5874_v1  ;;  %v6751_v35 = vsub.f32 %v5511_v42, %v5874_v1  ;;  %v6752_v36 = vsub.f32 %v5517_v46, %v5874_v1 }
 0x360   : > { %v2965_v17 = vsub.f32 %v2963_v33, %v2964_v61  ;;  %v6728_v61 = vld [vmem:[#allocation11_spill] sm:$0xff]  ;;  %v6729_v33 = vld [vmem:[#allocation12_spill] sm:$0xff]  ;;  %v6753_v37 = vsub.f32 %v5523_v50, %v5874_v1 }
 0x362   : > { %v2966_v24 = vmax.f32 %v2965_v17, 0.0  ;;  %v6730_v17 = vld [vmem:[#allocation13_spill] sm:$0xff] }
 0x364   : > { %v3031_v45 = vadd.f32 1e-05, %v2966_v24  ;;  %v6731_v24 = vld [vmem:[#allocation14_spill] sm:$0xff] }
 0x366   : > { %4394 = vrsqrt.f32 %v3031_v45  ;;  %v6725_v45 = vld [vmem:[#allocation8_spill] sm:$0xff] }
 0x373   : > { %v5998_v31 = vpop.eup %4394 }
 0x374   : > { %v3033_v23 = vmul.f32 %v5998_v31, %v6747_v12  ;;  %v3034_v9 = vmul.f32 %v5998_v31, %v6748_v55  ;;  %v3035_v25 = vmul.f32 %v5998_v31, %v6749_v51  ;;  %v3036_v29 = vmul.f32 %v5998_v31, %v6750_v40 }
 0x375   : > { %v3037_v12 = vmul.f32 %v5998_v31, %v6751_v35  ;;  %v3038_v55 = vmul.f32 %v5998_v31, %v6752_v36  ;;  %v3039_v40 = vmul.f32 %v5998_v31, %v6753_v37  ;;  %v6754_v51 = vsub.f32 %v5529_v54, %v5874_v1 }
 0x376   : > { %v3104_v3 = vmul.f32 %v6005_v60, %v3033_v23  ;;  %v3105_v42 = vmul.f32 %v6005_v60, %v3034_v9  ;;  %v3106_v35 = vmul.f32 %v6005_v60, %v3035_v25  ;;  %v3107_v46 = vmul.f32 %v6005_v60, %v3036_v29 }
 0x377   : > { %v3040_v19 = vmul.f32 %v5998_v31, %v6754_v51  ;;  %v3108_v36 = vmul.f32 %v6005_v60, %v3037_v12  ;;  %v3109_v8 = vmul.f32 %v6005_v60, %v3038_v55  ;;  %v3110_v50 = vmul.f32 %v6005_v60, %v3039_v40 }
 0x378   : > { %v3175_v54 = vadd.f32 %v6036_v34, %v3104_v3  ;;  %v3176_v51 = vadd.f32 %v6036_v34, %v3105_v42  ;;  %v3177_v23 = vadd.f32 %v6036_v34, %v3106_v35  ;;  %v3178_v9 = vadd.f32 %v6036_v34, %v3107_v46 }
 0x379   : > { %v3111_v37 = vmul.f32 %v6005_v60, %v3040_v19  ;;  %v3179_v25 = vadd.f32 %v6036_v34, %v3108_v36  ;;  %v3180_v29 = vadd.f32 %v6036_v34, %v3109_v8  ;;  %v3181_v12 = vadd.f32 %v6036_v34, %v3110_v50 }
 0x37a   : > { %vm3239_vm0 = vcmp.gt.f32.partialorder %v3175_v54, 0.0  ;;  %v3303_v19 = vmul.f32 0.2, %v3175_v54  ;;  %vm3240_vm1 = vcmp.gt.f32.partialorder %v3176_v51, 0.0  ;;  %v3304_v3 = vmul.f32 0.2, %v3176_v51 }
 0x37b   : > { %v3182_v55 = vadd.f32 %v6036_v34, %v3111_v37  ;;  %vm3241_vm2 = vcmp.gt.f32.partialorder %v3177_v23, 0.0  ;;  %v3305_v40 = vmul.f32 0.2, %v3177_v23  ;;  %vm3242_vm3 = vcmp.gt.f32.partialorder %v3178_v9, 0.0 }
 0x37c   : > { %v3306_v42 = vmul.f32 0.2, %v3178_v9  ;;  %v3367_v35 = vsel %vm3239_vm0, %v3175_v54, %v3303_v19  ;;  %v3368_v46 = vsel %vm3240_vm1, %v3176_v51, %v3304_v3  ;;  %vm3243_vm4 = vcmp.gt.f32.partialorder %v3179_v25, 0.0 }
 0x37d   : > { %v3307_v8 = vmul.f32 0.2, %v3179_v25  ;;  %3431 = vst [vmem:[%s5038_s19] sm:$0xff] %v3367_v35  ;;  %3432 = vst [vmem:[%s5038_s19 + $0x8] sm:$0xff] %v3368_v46  ;;  %v3369_v36 = vsel %vm3241_vm2, %v3177_v23, %v3305_v40  ;;  %vm3244_vm5 = vcmp.gt.f32.partialorder %v3180_v29, 0.0  ;;  %v3308_v37 = vmul.f32 0.2, %v3180_v29 }
 0x37e   : > { %v3370_v50 = vsel %vm3242_vm3, %v3178_v9, %v3306_v42  ;;  %3433 = vst [vmem:[%s5038_s19 + $0x10] sm:$0xff] %v3369_v36  ;;  %vm3245_vm6 = vcmp.gt.f32.partialorder %v3181_v12, 0.0  ;;  %v3309_v15 = vmul.f32 0.2, %v3181_v12  ;;  %vm3246_vm7 = vcmp.gt.f32.partialorder %v3182_v55, 0.0 }
 0x37f   : > { %3434 = vst [vmem:[%s5038_s19 + $0x18] sm:$0xff] %v3370_v50  ;;  %v3371_v52 = vsel %vm3243_vm4, %v3179_v25, %v3307_v8  ;;  %v3372_v54 = vsel %vm3244_vm5, %v3180_v29, %v3308_v37  ;;  %v3310_v51 = vmul.f32 0.2, %v3182_v55  ;;  %v6755_v19 = vsub.f32 %v5535_v58, %v5874_v1 }
 0x380   : > { %3435 = vst [vmem:[%s5038_s19 + $0x20] sm:$0xff] %v3371_v52  ;;  %v6756_v23 = vsub.f32 %v5541_v62, %v5874_v1  ;;  %3436 = vst [vmem:[%s5038_s19 + $0x28] sm:$0xff] %v3372_v54  ;;  %v3373_v40 = vsel %vm3245_vm6, %v3181_v12, %v3309_v15  ;;  %v6757_v25 = vsub.f32 %v5547_v2, %v5874_v1 }
 0x381   : > { %v3041_v3 = vmul.f32 %v5998_v31, %v6755_v19  ;;  %v6758_v52 = vsub.f32 %v5553_v6, %v5874_v1  ;;  %v6759_v58 = vsub.f32 %v5559_v10, %v5874_v1  ;;  %3437 = vst [vmem:[%s5038_s19 + $0x30] sm:$0xff] %v3373_v40  ;;  %v3374_v62 = vsel %vm3246_vm7, %v3182_v55, %v3310_v51 }
 0x382   : > { %v3042_v9 = vmul.f32 %v5998_v31, %v6756_v23  ;;  %v3043_v42 = vmul.f32 %v5998_v31, %v6757_v25  ;;  %v6760_v2 = vsub.f32 %v5565_v14, %v5874_v1  ;;  %3438 = vst [vmem:[%s5038_s19 + $0x38] sm:$0xff] %v3374_v62  ;;  %v6761_v36 = vsub.f32 %v5571_v18, %v5874_v1 }
 0x383   : > { %v3044_v29 = vmul.f32 %v5998_v31, %v6758_v52  ;;  %v3045_v35 = vmul.f32 %v5998_v31, %v6759_v58  ;;  %v3112_v46 = vmul.f32 %v6005_v60, %v3041_v3  ;;  %v6762_v54 = vsub.f32 %v5577_v22, %v5874_v1 }
 0x384   : > { %v3113_v15 = vmul.f32 %v6005_v60, %v3042_v9  ;;  %v3046_v12 = vmul.f32 %v5998_v31, %v6760_v2  ;;  %v3114_v6 = vmul.f32 %v6005_v60, %v3043_v42  ;;  %v3047_v55 = vmul.f32 %v5998_v31, %v6761_v36 }
 0x385   : > { %v3115_v8 = vmul.f32 %v6005_v60, %v3044_v29  ;;  %v3116_v10 = vmul.f32 %v6005_v60, %v3045_v35  ;;  %v3183_v50 = vadd.f32 %v6036_v34, %v3112_v46  ;;  %v3048_v51 = vmul.f32 %v5998_v31, %v6762_v54 }
 0x386   : > { %v3184_v37 = vadd.f32 %v6036_v34, %v3113_v15  ;;  %v3117_v14 = vmul.f32 %v6005_v60, %v3046_v12  ;;  %v3185_v19 = vadd.f32 %v6036_v34, %v3114_v6  ;;  %v3118_v23 = vmul.f32 %v6005_v60, %v3047_v55 }
 0x387   : > { %v3186_v3 = vadd.f32 %v6036_v34, %v3115_v8  ;;  %v3187_v18 = vadd.f32 %v6036_v34, %v3116_v10  ;;  %vm3247_vm8 = vcmp.gt.f32.partialorder %v3183_v50, 0.0  ;;  %v3311_v9 = vmul.f32 0.2, %v3183_v50 }
 0x388   : > { %vm3248_vm9 = vcmp.gt.f32.partialorder %v3184_v37, 0.0  ;;  %v3312_v40 = vmul.f32 0.2, %v3184_v37  ;;  %vm3249_vm10 = vcmp.gt.f32.partialorder %v3185_v19, 0.0  ;;  %v3313_v22 = vmul.f32 0.2, %v3185_v19 }
 0x389   : > { %vm3250_vm11 = vcmp.gt.f32.partialorder %v3186_v3, 0.0  ;;  %v3314_v25 = vmul.f32 0.2, %v3186_v3  ;;  %v3375_v42 = vsel %vm3247_vm8, %v3183_v50, %v3311_v9  ;;  %vm3251_vm12 = vcmp.gt.f32.partialorder %v3187_v18, 0.0 }
 0x38a   : > { %v3376_v52 = vsel %vm3248_vm9, %v3184_v37, %v3312_v40  ;;  %v3315_v29 = vmul.f32 0.2, %v3187_v18  ;;  %3439 = vst [vmem:[%s5038_s19 + $0x40] sm:$0xff] %v3375_v42  ;;  %v3377_v58 = vsel %vm3249_vm10, %v3185_v19, %v3313_v22  ;;  %v3188_v62 = vadd.f32 %v6036_v34, %v3117_v14 }
 0x38b   : > { %3440 = vst [vmem:[%s5038_s19 + $0x48] sm:$0xff] %v3376_v52  ;;  %v3378_v35 = vsel %vm3250_vm11, %v3186_v3, %v3314_v25  ;;  %v3189_v46 = vadd.f32 %v6036_v34, %v3118_v23  ;;  %3441 = vst [vmem:[%s5038_s19 + $0x50] sm:$0xff] %v3377_v58  ;;  %v3119_v2 = vmul.f32 %v6005_v60, %v3048_v51 }
 0x38c   : > { %3442 = vst [vmem:[%s5038_s19 + $0x58] sm:$0xff] %v3378_v35  ;;  %v3379_v15 = vsel %vm3251_vm12, %v3187_v18, %v3315_v29  ;;  %v6763_v12 = vsub.f32 %v5583_v26, %v5874_v1  ;;  %v6764_v8 = vsub.f32 %v5589_v30, %v5874_v1  ;;  %vm3252_vm13 = vcmp.gt.f32.partialorder %v3188_v62, 0.0 }
 0x38d   : > { %3443 = vst [vmem:[%s5038_s19 + $0x60] sm:$0xff] %v3379_v15  ;;  %v3316_v36 = vmul.f32 0.2, %v3188_v62  ;;  %vm3253_vm14 = vcmp.gt.f32.partialorder %v3189_v46, 0.0  ;;  %v3317_v55 = vmul.f32 0.2, %v3189_v46  ;;  %v3190_v50 = vadd.f32 %v6036_v34, %v3119_v2 }
 0x38e   : > { %v3049_v6 = vmul.f32 %v5998_v31, %v6763_v12  ;;  %v3050_v10 = vmul.f32 %v5998_v31, %v6764_v8  ;;  %v6765_v14 = vsub.f32 %v5595_v38, %v5874_v1  ;;  %v6766_v19 = vsub.f32 %v5601_v43, %v5874_v1 }
 0x38f   : > { %v3380_v30 = vsel %vm3252_vm13, %v3188_v62, %v3316_v36  ;;  %v3381_v51 = vsel %vm3253_vm14, %v3189_v46, %v3317_v55  ;;  %v6767_v18 = vsub.f32 %v5607_v48, %v5874_v1  ;;  %vm3254_vm15 = vcmp.gt.f32.partialorder %v3190_v50, 0.0 }
 0x390   : > { %v3120_v37 = vmul.f32 %v6005_v60, %v3049_v6  ;;  %v3121_v26 = vmul.f32 %v6005_v60, %v3050_v10  ;;  %v3051_v54 = vmul.f32 %v5998_v31, %v6765_v14  ;;  %v3052_v3 = vmul.f32 %v5998_v31, %v6766_v19  ;;  %3444 = vst [vmem:[%s5038_s19 + $0x68] sm:$0xff] %v3380_v30 }
 0x391   : > { %v3053_v23 = vmul.f32 %v5998_v31, %v6767_v18  ;;  %3445 = vst [vmem:[%s5038_s19 + $0x70] sm:$0xff] %v3381_v51  ;;  %v3318_v9 = vmul.f32 0.2, %v3190_v50  ;;  %v6768_v48 = vsub.f32 %v5613_v53, %v5874_v1  ;;  %v6769_v53 = vsub.f32 %v5619_v59, %v5874_v1 }
 0x392   : > { %v3191_v38 = vadd.f32 %v6036_v34, %v3120_v37  ;;  %v3192_v40 = vadd.f32 %v6036_v34, %v3121_v26  ;;  %v3122_v22 = vmul.f32 %v6005_v60, %v3051_v54  ;;  %v3123_v43 = vmul.f32 %v6005_v60, %v3052_v3 }
 0x393   : > { %v3124_v25 = vmul.f32 %v6005_v60, %v3053_v23  ;;  %v3054_v42 = vmul.f32 %v5998_v31, %v6768_v48  ;;  %v3382_v52 = vsel %vm3254_vm15, %v3190_v50, %v3318_v9  ;;  %v3055_v12 = vmul.f32 %v5998_v31, %v6769_v53 }
 0x394   : > { %vm3255_vm0 = vcmp.gt.f32.partialorder %v3191_v38, 0.0  ;;  %v3319_v29 = vmul.f32 0.2, %v3191_v38  ;;  %vm3256_vm1 = vcmp.gt.f32.partialorder %v3192_v40, 0.0  ;;  %3446 = vst [vmem:[%s5038_s19 + $0x78] sm:$0xff] %v3382_v52  ;;  %v3193_v35 = vadd.f32 %v6036_v34, %v3122_v22 }
 0x395   : > { %v3320_v58 = vmul.f32 0.2, %v3192_v40  ;;  %v3194_v62 = vadd.f32 %v6036_v34, %v3123_v43  ;;  %v3195_v46 = vadd.f32 %v6036_v34, %v3124_v25  ;;  %v3125_v2 = vmul.f32 %v6005_v60, %v3054_v42 }
 0x396   : > { %v3383_v15 = vsel %vm3255_vm0, %v3191_v38, %v3319_v29  ;;  %v6770_v6 = vsub.f32 %v5625_v0, %v5874_v1  ;;  %vm3257_vm2 = vcmp.gt.f32.partialorder %v3193_v35, 0.0  ;;  %v3321_v36 = vmul.f32 0.2, %v3193_v35 }
 0x397   : > { %3447 = vst [vmem:[%s5038_s19 + $0x80] sm:$0xff] %v3383_v15  ;;  %v3384_v10 = vsel %vm3256_vm1, %v3192_v40, %v3320_v58  ;;  %vm3258_vm3 = vcmp.gt.f32.partialorder %v3194_v62, 0.0  ;;  %v3322_v55 = vmul.f32 0.2, %v3194_v62  ;;  %vm3259_vm4 = vcmp.gt.f32.partialorder %v3195_v46, 0.0 }
 0x398   : > { %v3056_v8 = vmul.f32 %v5998_v31, %v6770_v6  ;;  %3448 = vst [vmem:[%s5038_s19 + $0x88] sm:$0xff] %v3384_v10  ;;  %v3323_v50 = vmul.f32 0.2, %v3195_v46  ;;  %v3196_v59 = vadd.f32 %v6036_v34, %v3125_v2  ;;  %v3385_v37 = vsel %vm3257_vm2, %v3193_v35, %v3321_v36 }
 0x399   : > { %v3126_v26 = vmul.f32 %v6005_v60, %v3055_v12  ;;  %v6771_v14 = vsub.f32 %v5631_v5, %v5874_v1  ;;  %3449 = vst [vmem:[%s5038_s19 + $0x90] sm:$0xff] %v3385_v37  ;;  %v3386_v30 = vsel %vm3258_vm3, %v3194_v62, %v3322_v55  ;;  %v6772_v9 = vsub.f32 %v5637_v11, %v5874_v1 }
 0x39a   : > { %v3127_v0 = vmul.f32 %v6005_v60, %v3056_v8  ;;  %v3387_v51 = vsel %vm3259_vm4, %v3195_v46, %v3323_v50  ;;  %vm3260_vm5 = vcmp.gt.f32.partialorder %v3196_v59, 0.0  ;;  %v3324_v19 = vmul.f32 0.2, %v3196_v59  ;;  %3450 = vst [vmem:[%s5038_s19 + $0x98] sm:$0xff] %v3386_v30 }
 0x39b   : > { %v3057_v54 = vmul.f32 %v5998_v31, %v6771_v14  ;;  %3451 = vst [vmem:[%s5038_s19 + $0xa0] sm:$0xff] %v3387_v51  ;;  %v3197_v3 = vadd.f32 %v6036_v34, %v3126_v26  ;;  %v3058_v5 = vmul.f32 %v5998_v31, %v6772_v9  ;;  %v6773_v40 = vsub.f32 %v5643_v16, %v5874_v1 }
 0x39c   : > { %v3198_v18 = vadd.f32 %v6036_v34, %v3127_v0  ;;  %v3388_v38 = vsel %vm3260_vm5, %v3196_v59, %v3324_v19  ;;  %v6774_v43 = vsub.f32 %v5649_v21, %v5874_v1  ;;  %v6775_v48 = vsub.f32 %v5655_v27, %v5874_v1 }
 0x39d   : > { %v3128_v23 = vmul.f32 %v6005_v60, %v3057_v54  ;;  %v3059_v22 = vmul.f32 %v5998_v31, %v6773_v40  ;;  %3452 = vst [vmem:[%s5038_s19 + $0xa8] sm:$0xff] %v3388_v38  ;;  %vm3261_vm6 = vcmp.gt.f32.partialorder %v3197_v3, 0.0  ;;  %v3325_v42 = vmul.f32 0.2, %v3197_v3 }
 0x39e   : > { %v3060_v25 = vmul.f32 %v5998_v31, %v6774_v43  ;;  %v3061_v11 = vmul.f32 %v5998_v31, %v6775_v48  ;;  %vm3262_vm7 = vcmp.gt.f32.partialorder %v3198_v18, 0.0  ;;  %v3326_v52 = vmul.f32 0.2, %v3198_v18 }
 0x39f   : > { %v3199_v16 = vadd.f32 %v6036_v34, %v3128_v23  ;;  %v3129_v29 = vmul.f32 %v6005_v60, %v3058_v5  ;;  %v3130_v21 = vmul.f32 %v6005_v60, %v3059_v22  ;;  %v3389_v35 = vsel %vm3261_vm6, %v3197_v3, %v3325_v42 }
 0x3a0   : > { %v3131_v58 = vmul.f32 %v6005_v60, %v3060_v25  ;;  %v3390_v62 = vsel %vm3262_vm7, %v3198_v18, %v3326_v52  ;;  %v3132_v27 = vmul.f32 %v6005_v60, %v3061_v11  ;;  %v6776_v46 = vsub.f32 %v5661_v32, %v5874_v1  ;;  %3453 = vst [vmem:[%s5038_s19 + $0xb0] sm:$0xff] %v3389_v35 }
 0x3a1   : > { %3454 = vst [vmem:[%s5038_s19 + $0xb8] sm:$0xff] %v3390_v62  ;;  %vm3263_vm8 = vcmp.gt.f32.partialorder %v3199_v16, 0.0  ;;  %v3327_v2 = vmul.f32 0.2, %v3199_v16  ;;  %v3200_v53 = vadd.f32 %v6036_v34, %v3129_v29  ;;  %v3201_v12 = vadd.f32 %v6036_v34, %v3130_v21 }
 0x3a2   : > { %v3062_v15 = vmul.f32 %v5998_v31, %v6776_v46  ;;  %v3202_v6 = vadd.f32 %v6036_v34, %v3131_v58  ;;  %v3203_v8 = vadd.f32 %v6036_v34, %v3132_v27  ;;  %v6777_v32 = vsub.f32 %v5667_v41, %v5874_v1 }
 0x3a3   : > { %v3391_v55 = vsel %vm3263_vm8, %v3199_v16, %v3327_v2  ;;  %vm3264_vm9 = vcmp.gt.f32.partialorder %v3200_v53, 0.0  ;;  %v3328_v50 = vmul.f32 0.2, %v3200_v53  ;;  %vm3265_vm10 = vcmp.gt.f32.partialorder %v3201_v12, 0.0 }
 0x3a4   : > { %v3133_v10 = vmul.f32 %v6005_v60, %v3062_v15  ;;  %v3063_v36 = vmul.f32 %v5998_v31, %v6777_v32  ;;  %3455 = vst [vmem:[%s5038_s19 + $0xc0] sm:$0xff] %v3391_v55  ;;  %v3329_v59 = vmul.f32 0.2, %v3201_v12  ;;  %vm3266_vm11 = vcmp.gt.f32.partialorder %v3202_v6, 0.0 }
 0x3a5   : > { %v3330_v37 = vmul.f32 0.2, %v3202_v6  ;;  %vm3267_vm12 = vcmp.gt.f32.partialorder %v3203_v8, 0.0  ;;  %v3392_v26 = vsel %vm3264_vm9, %v3200_v53, %v3328_v50  ;;  %v3331_v0 = vmul.f32 0.2, %v3203_v8 }
 0x3a6   : > { %v3204_v14 = vadd.f32 %v6036_v34, %v3133_v10  ;;  %v3134_v41 = vmul.f32 %v6005_v60, %v3063_v36  ;;  %3456 = vst [vmem:[%s5038_s19 + $0xc8] sm:$0xff] %v3392_v26  ;;  %v3393_v54 = vsel %vm3265_vm10, %v3201_v12, %v3329_v59  ;;  %v6778_v51 = vsub.f32 %v5673_v49, %v5874_v1 }
 0x3a7   : > { %v3394_v30 = vsel %vm3266_vm11, %v3202_v6, %v3330_v37  ;;  %v6779_v3 = vsub.f32 %v5679_v56, %v5874_v1  ;;  %3457 = vst [vmem:[%s5038_s19 + $0xd0] sm:$0xff] %v3393_v54  ;;  %v3395_v23 = vsel %vm3267_vm12, %v3203_v8, %v3331_v0  ;;  %v6780_v40 = vsub.f32 %v5685_v63, %v5874_v1 }
 0x3a8   : > { %v3064_v19 = vmul.f32 %v5998_v31, %v6778_v51  ;;  %3458 = vst [vmem:[%s5038_s19 + $0xd8] sm:$0xff] %v3394_v30  ;;  %vm3268_vm13 = vcmp.gt.f32.partialorder %v3204_v14, 0.0  ;;  %v3332_v9 = vmul.f32 0.2, %v3204_v14  ;;  %v3205_v5 = vadd.f32 %v6036_v34, %v3134_v41  ;;  %3459 = vst [vmem:[%s5038_s19 + $0xe0] sm:$0xff] %v3395_v23 }
 0x3a9   : > { %v3065_v18 = vmul.f32 %v5998_v31, %v6779_v3  ;;  %v3066_v56 = vmul.f32 %v5998_v31, %v6780_v40  ;;  %v6781_v22 = vsub.f32 %v5691_v7, %v5874_v1  ;;  %v6782_v11 = vsub.f32 %v5697_v13, %v5874_v1 }
 0x3aa   : > { %v3135_v38 = vmul.f32 %v6005_v60, %v3064_v19  ;;  %v3396_v25 = vsel %vm3268_vm13, %v3204_v14, %v3332_v9  ;;  %vm3269_vm14 = vcmp.gt.f32.partialorder %v3205_v5, 0.0  ;;  %v3333_v48 = vmul.f32 0.2, %v3205_v5 }
 0x3ab   : > { %v3136_v49 = vmul.f32 %v6005_v60, %v3065_v18  ;;  %v3067_v43 = vmul.f32 %v5998_v31, %v6781_v22  ;;  %v3068_v42 = vmul.f32 %v5998_v31, %v6782_v11  ;;  %3460 = vst [vmem:[%s5038_s19 + $0xe8] sm:$0xff] %v3396_v25  ;;  %v3137_v16 = vmul.f32 %v6005_v60, %v3066_v56 }
 0x3ac   : > { %v3206_v52 = vadd.f32 %v6036_v34, %v3135_v38  ;;  %v3397_v7 = vsel %vm3269_vm14, %v3205_v5, %v3333_v48  ;;  %v6783_v58 = vsub.f32 %v5703_v20, %v5874_v1  ;;  %v6784_v35 = vsub.f32 %v5709_v28, %v5874_v1 }
 0x3ad   : > { %v3207_v63 = vadd.f32 %v6036_v34, %v3136_v49  ;;  %v3138_v29 = vmul.f32 %v6005_v60, %v3067_v43  ;;  %v3139_v21 = vmul.f32 %v6005_v60, %v3068_v42  ;;  %3461 = vst [vmem:[%s5038_s19 + $0xf0] sm:$0xff] %v3397_v7  ;;  %v3208_v15 = vadd.f32 %v6036_v34, %v3137_v16 }
 0x3ae   : > { %v3069_v13 = vmul.f32 %v5998_v31, %v6783_v58  ;;  %v3070_v62 = vmul.f32 %v5998_v31, %v6784_v35  ;;  %vm3270_vm15 = vcmp.gt.f32.partialorder %v3206_v52, 0.0  ;;  %v3334_v27 = vmul.f32 0.2, %v3206_v52 }
 0x3af   : > { %vm3271_vm0 = vcmp.gt.f32.partialorder %v3207_v63, 0.0  ;;  %v3335_v46 = vmul.f32 0.2, %v3207_v63  ;;  %v3209_v2 = vadd.f32 %v6036_v34, %v3138_v29  ;;  %v3210_v20 = vadd.f32 %v6036_v34, %v3139_v21 }
 0x3b0   : > { %v3140_v53 = vmul.f32 %v6005_v60, %v3069_v13  ;;  %v3398_v12 = vsel %vm3270_vm15, %v3206_v52, %v3334_v27  ;;  %v3141_v28 = vmul.f32 %v6005_v60, %v3070_v62  ;;  %v6785_v8 = vsub.f32 %v5715_v39, %v5874_v1 }
 0x3b1   : > { %v3399_v6 = vsel %vm3271_vm0, %v3207_v63, %v3335_v46  ;;  %3462 = vst [vmem:[%s5038_s19 + $0xf8] sm:$0xff] %v3398_v12  ;;  %vm3272_vm1 = vcmp.gt.f32.partialorder %v3208_v15, 0.0  ;;  %v3336_v32 = vmul.f32 0.2, %v3208_v15  ;;  %vm3273_vm2 = vcmp.gt.f32.partialorder %v3209_v2, 0.0 }
 0x3b2   : > { %v3071_v10 = vmul.f32 %v5998_v31, %v6785_v8  ;;  %3463 = vst [vmem:[%s5038_s19 + $0x100] sm:$0xff] %v3399_v6  ;;  %v3337_v36 = vmul.f32 0.2, %v3209_v2  ;;  %vm3274_vm3 = vcmp.gt.f32.partialorder %v3210_v20, 0.0  ;;  %v3338_v55 = vmul.f32 0.2, %v3210_v20 }
 0x3b3   : > { %v3211_v50 = vadd.f32 %v6036_v34, %v3140_v53  ;;  %v3212_v59 = vadd.f32 %v6036_v34, %v3141_v28  ;;  %v3400_v37 = vsel %vm3272_vm1, %v3208_v15, %v3336_v32  ;;  %v6786_v0 = vsub.f32 %v5721_v47, %v5874_v1 }
 0x3b4   : > { %v3401_v26 = vsel %vm3273_vm2, %v3209_v2, %v3337_v36  ;;  %v3142_v39 = vmul.f32 %v6005_v60, %v3071_v10  ;;  %3464 = vst [vmem:[%s5038_s19 + $0x108] sm:$0xff] %v3400_v37  ;;  %v3402_v41 = vsel %vm3274_vm3, %v3210_v20, %v3338_v55  ;;  %v6787_v3 = vsub.f32 %v5727_v57, %v5874_v1  ;;  %v6795_v36 = vld [vmem:[#allocation15_spill] sm:$0xff] }
 0x3b5   : > { %v3072_v14 = vmul.f32 %v5998_v31, %v6786_v0  ;;  %3465 = vst [vmem:[%s5038_s19 + $0x110] sm:$0xff] %v3401_v26  ;;  %vm3275_vm4 = vcmp.gt.f32.partialorder %v3211_v50, 0.0  ;;  %v3339_v54 = vmul.f32 0.2, %v3211_v50  ;;  %vm3276_vm5 = vcmp.gt.f32.partialorder %v3212_v59, 0.0  ;;  %3466 = vst [vmem:[%s5038_s19 + $0x118] sm:$0xff] %v3402_v41 }
 0x3b6   : > { %v3340_v30 = vmul.f32 0.2, %v3212_v59  ;;  %v3213_v51 = vadd.f32 %v6036_v34, %v3142_v39  ;;  %v3073_v47 = vmul.f32 %v5998_v31, %v6787_v3  ;;  %v6788_v23 = vsub.f32 %v6725_v45, %v5874_v1  ;;  %v6797_v26 = vld [vmem:[#allocation16_spill] sm:$0xff]  ;;  %v6799_v0 = vld [vmem:[#allocation17_spill] sm:$0xff] }
 0x3b7   : > { %v3143_v19 = vmul.f32 %v6005_v60, %v3072_v14  ;;  %v3403_v18 = vsel %vm3275_vm4, %v3211_v50, %v3339_v54  ;;  %v6789_v5 = vsub.f32 %v6726_v44, %v5874_v1  ;;  %v6790_v49 = vsub.f32 %v6727_v4, %v5874_v1 }
 0x3b8   : > { %v3074_v9 = vmul.f32 %v5998_v31, %v6788_v23  ;;  %3467 = vst [vmem:[%s5038_s19 + $0x120] sm:$0xff] %v3403_v18  ;;  %v3404_v57 = vsel %vm3276_vm5, %v3212_v59, %v3340_v30  ;;  %vm3277_vm6 = vcmp.gt.f32.partialorder %v3213_v51, 0.0  ;;  %v3341_v56 = vmul.f32 0.2, %v3213_v51 }
 0x3b9   : > { %v3075_v38 = vmul.f32 %v5998_v31, %v6789_v5  ;;  %v3076_v40 = vmul.f32 %v5998_v31, %v6790_v49  ;;  %v3214_v22 = vadd.f32 %v6036_v34, %v3143_v19  ;;  %3468 = vst [vmem:[%s5038_s19 + $0x128] sm:$0xff] %v3404_v57  ;;  %v3144_v45 = vmul.f32 %v6005_v60, %v3073_v47  ;;  %v6801_v5 = vld [vmem:[#allocation18_spill] sm:$0xff] }
 0x3ba   : > { %v3145_v43 = vmul.f32 %v6005_v60, %v3074_v9  ;;  %v3405_v4 = vsel %vm3277_vm6, %v3213_v51, %v3341_v56  ;;  %v6791_v11 = vsub.f32 %v6728_v61, %v5874_v1  ;;  %v6792_v58 = vsub.f32 %v6729_v33, %v5874_v1 }
 0x3bb   : > { %v3146_v44 = vmul.f32 %v6005_v60, %v3075_v38  ;;  %v3147_v25 = vmul.f32 %v6005_v60, %v3076_v40  ;;  %vm3278_vm7 = vcmp.gt.f32.partialorder %v3214_v22, 0.0  ;;  %v3342_v48 = vmul.f32 0.2, %v3214_v22  ;;  %3469 = vst [vmem:[%s5038_s19 + $0x130] sm:$0xff] %v3405_v4  ;;  %v6803_v4 = vld [vmem:[#allocation19_spill] sm:$0xff] }
 0x3bc   : > { %v3077_v42 = vmul.f32 %v5998_v31, %v6791_v11  ;;  %v3215_v52 = vadd.f32 %v6036_v34, %v3144_v45  ;;  %v3216_v63 = vadd.f32 %v6036_v34, %v3145_v43  ;;  %v3078_v61 = vmul.f32 %v5998_v31, %v6792_v58 }
 0x3bd   : > { %v3217_v16 = vadd.f32 %v6036_v34, %v3146_v44  ;;  %v3218_v29 = vadd.f32 %v6036_v34, %v3147_v25  ;;  %v3406_v7 = vsel %vm3278_vm7, %v3214_v22, %v3342_v48  ;;  %v6793_v13 = vsub.f32 %v6730_v17, %v5874_v1 }
 0x3be   : > { %v3148_v21 = vmul.f32 %v6005_v60, %v3077_v42  ;;  %3470 = vst [vmem:[%s5038_s19 + $0x138] sm:$0xff] %v3406_v7  ;;  %vm3279_vm8 = vcmp.gt.f32.partialorder %v3215_v52, 0.0  ;;  %v3343_v62 = vmul.f32 0.2, %v3215_v52  ;;  %vm3280_vm9 = vcmp.gt.f32.partialorder %v3216_v63, 0.0  ;;  %v6805_v7 = vld [vmem:[#allocation20_spill] sm:$0xff] }
 0x3bf   : > { %v3079_v35 = vmul.f32 %v5998_v31, %v6793_v13  ;;  %v3344_v27 = vmul.f32 0.2, %v3216_v63  ;;  %vm3281_vm10 = vcmp.gt.f32.partialorder %v3217_v16, 0.0  ;;  %v3345_v46 = vmul.f32 0.2, %v3217_v16 }
 0x3c0   : > { %vm3282_vm11 = vcmp.gt.f32.partialorder %v3218_v29, 0.0  ;;  %v3346_v33 = vmul.f32 0.2, %v3218_v29  ;;  %v3407_v15 = vsel %vm3279_vm8, %v3215_v52, %v3343_v62  ;;  %v3219_v20 = vadd.f32 %v6036_v34, %v3148_v21 }
 0x3c1   : > { %v3408_v2 = vsel %vm3280_vm9, %v3216_v63, %v3344_v27  ;;  %v3149_v17 = vmul.f32 %v6005_v60, %v3078_v61  ;;  %3471 = vst [vmem:[%s5038_s19 + $0x140] sm:$0xff] %v3407_v15  ;;  %v3409_v53 = vsel %vm3281_vm10, %v3217_v16, %v3345_v46  ;;  %v3150_v6 = vmul.f32 %v6005_v60, %v3079_v35  ;;  %v6807_v61 = vld [vmem:[#allocation21_spill] sm:$0xff]  ;;  %v6809_v46 = vld [vmem:[#allocation22_spill] sm:$0xff] }
 0x3c2   : > { %3472 = vst [vmem:[%s5038_s19 + $0x148] sm:$0xff] %v3408_v2  ;;  %v3410_v12 = vsel %vm3282_vm11, %v3218_v29, %v3346_v33  ;;  %v6794_v28 = vsub.f32 %v6731_v24, %v5874_v1  ;;  %3473 = vst [vmem:[%s5038_s19 + $0x150] sm:$0xff] %v3409_v53  ;;  %vm3283_vm12 = vcmp.gt.f32.partialorder %v3219_v20, 0.0  ;;  %v3347_v10 = vmul.f32 0.2, %v3219_v20  ;;  %v6811_v53 = vld [vmem:[#allocation23_spill] sm:$0xff] }
 0x3c3   : > { %3474 = vst [vmem:[%s5038_s19 + $0x158] sm:$0xff] %v3410_v12  ;;  %v3220_v32 = vadd.f32 %v6036_v34, %v3149_v17  ;;  %v6796_v55 = vsub.f32 %v6795_v36, %v5874_v1  ;;  %v3221_v59 = vadd.f32 %v6036_v34, %v3150_v6  ;;  %v6798_v24 = vsub.f32 %v6797_v26, %v5874_v1 }
 0x3c4   : > { %v3080_v8 = vmul.f32 %v5998_v31, %v6794_v28  ;;  %v6800_v14 = vsub.f32 %v6799_v0, %v5874_v1  ;;  %v3411_v54 = vsel %vm3283_vm12, %v3219_v20, %v3347_v10  ;;  %v6802_v38 = vsub.f32 %v6801_v5, %v5874_v1  ;;  %v6813_v10 = vld [vmem:[#allocation24_spill] sm:$0xff] }
 0x3c5   : > { %v3081_v50 = vmul.f32 %v5998_v31, %v6796_v55  ;;  %v3082_v39 = vmul.f32 %v5998_v31, %v6798_v24  ;;  %vm3284_vm13 = vcmp.gt.f32.partialorder %v3220_v32, 0.0  ;;  %v3348_v30 = vmul.f32 0.2, %v3220_v32  ;;  %3475 = vst [vmem:[%s5038_s19 + $0x160] sm:$0xff] %v3411_v54  ;;  %v6815_v55 = vld [vmem:[#allocation25_spill] sm:$0xff] }
 0x3c6   : > { %v3151_v37 = vmul.f32 %v6005_v60, %v3080_v8  ;;  %v3083_v41 = vmul.f32 %v5998_v31, %v6800_v14  ;;  %vm3285_vm14 = vcmp.gt.f32.partialorder %v3221_v59, 0.0  ;;  %v3349_v19 = vmul.f32 0.2, %v3221_v59 }
 0x3c7   : > { %v3152_v51 = vmul.f32 %v6005_v60, %v3081_v50  ;;  %v3153_v47 = vmul.f32 %v6005_v60, %v3082_v39  ;;  %v3412_v18 = vsel %vm3284_vm13, %v3220_v32, %v3348_v30  ;;  %v3084_v49 = vmul.f32 %v5998_v31, %v6802_v38 }
 0x3c8   : > { %v3222_v3 = vadd.f32 %v6036_v34, %v3151_v37  ;;  %v3154_v9 = vmul.f32 %v6005_v60, %v3083_v41  ;;  %3476 = vst [vmem:[%s5038_s19 + $0x168] sm:$0xff] %v3412_v18  ;;  %v3413_v40 = vsel %vm3285_vm14, %v3221_v59, %v3349_v19  ;;  %v6804_v48 = vsub.f32 %v6803_v4, %v5874_v1 }
 0x3c9   : > { %v3223_v23 = vadd.f32 %v6036_v34, %v3152_v51  ;;  %v3224_v56 = vadd.f32 %v6036_v34, %v3153_v47  ;;  %3477 = vst [vmem:[%s5038_s19 + $0x170] sm:$0xff] %v3413_v40  ;;  %v3155_v43 = vmul.f32 %v6005_v60, %v3084_v49  ;;  %v6806_v21 = vsub.f32 %v6805_v7, %v5874_v1 }
 0x3ca   : > { %vm3286_vm15 = vcmp.gt.f32.partialorder %v3222_v3, 0.0  ;;  %v3350_v57 = vmul.f32 0.2, %v3222_v3  ;;  %v3225_v45 = vadd.f32 %v6036_v34, %v3154_v9  ;;  %v3085_v11 = vmul.f32 %v5998_v31, %v6804_v48  ;;  %v6817_v9 = vld [vmem:[#allocation26_spill] sm:$0xff]  ;;  %v6821_v48 = vld [vmem:[#allocation28_spill] sm:$0xff] }
 0x3cb   : > { %vm3287_vm0 = vcmp.gt.f32.partialorder %v3223_v23, 0.0  ;;  %v3351_v22 = vmul.f32 0.2, %v3223_v23  ;;  %vm3288_vm1 = vcmp.gt.f32.partialorder %v3224_v56, 0.0  ;;  %v3352_v25 = vmul.f32 0.2, %v3224_v56 }
 0x3cc   : > { %v3414_v44 = vsel %vm3286_vm15, %v3222_v3, %v3350_v57  ;;  %vm3289_vm2 = vcmp.gt.f32.partialorder %v3225_v45, 0.0  ;;  %v3353_v52 = vmul.f32 0.2, %v3225_v45  ;;  %v3226_v63 = vadd.f32 %v6036_v34, %v3155_v43 }
 0x3cd   : > { %3478 = vst [vmem:[%s5038_s19 + $0x178] sm:$0xff] %v3414_v44  ;;  %v3415_v42 = vsel %vm3287_vm0, %v3223_v23, %v3351_v22  ;;  %v3416_v16 = vsel %vm3288_vm1, %v3224_v56, %v3352_v25  ;;  %v3156_v29 = vmul.f32 %v6005_v60, %v3085_v11  ;;  %v3086_v58 = vmul.f32 %v5998_v31, %v6806_v21  ;;  %v6819_v44 = vld [vmem:[#allocation27_spill] sm:$0xff]  ;;  %v6825_v21 = vld [vmem:[#allocation30_spill] sm:$0xff] }
 0x3ce   : > { %3479 = vst [vmem:[%s5038_s19 + $0x180] sm:$0xff] %v3415_v42  ;;  %v6808_v13 = vsub.f32 %v6807_v61, %v5874_v1  ;;  %3480 = vst [vmem:[%s5038_s19 + $0x188] sm:$0xff] %v3416_v16  ;;  %v3417_v62 = vsel %vm3289_vm2, %v3225_v45, %v3353_v52  ;;  %vm3290_vm3 = vcmp.gt.f32.partialorder %v3226_v63, 0.0  ;;  %v3354_v27 = vmul.f32 0.2, %v3226_v63  ;;  %v6823_v16 = vld [vmem:[#allocation29_spill] sm:$0xff] }
 0x3cf   : > { %v6810_v33 = vsub.f32 %v6809_v46, %v5874_v1  ;;  %3481 = vst [vmem:[%s5038_s19 + $0x190] sm:$0xff] %v3417_v62  ;;  %v3227_v2 = vadd.f32 %v6036_v34, %v3156_v29  ;;  %v3157_v20 = vmul.f32 %v6005_v60, %v3086_v58  ;;  %v6812_v12 = vsub.f32 %v6811_v53, %v5874_v1 }
 0x3d0   : > { %v3087_v35 = vmul.f32 %v5998_v31, %v6808_v13  ;;  %v3418_v28 = vsel %vm3290_vm3, %v3226_v63, %v3354_v27  ;;  %v6814_v32 = vsub.f32 %v6813_v10, %v5874_v1  ;;  %v6816_v50 = vsub.f32 %v6815_v55, %v5874_v1 }
 0x3d1   : > { %v3088_v15 = vmul.f32 %v5998_v31, %v6810_v33  ;;  %v3089_v6 = vmul.f32 %v5998_v31, %v6812_v12  ;;  %3482 = vst [vmem:[%s5038_s19 + $0x198] sm:$0xff] %v3418_v28  ;;  %vm3291_vm4 = vcmp.gt.f32.partialorder %v3227_v2, 0.0  ;;  %v3355_v37 = vmul.f32 0.2, %v3227_v2 }
 0x3d2   : > { %v3158_v17 = vmul.f32 %v6005_v60, %v3087_v35  ;;  %v3090_v36 = vmul.f32 %v5998_v31, %v6814_v32  ;;  %v3091_v59 = vmul.f32 %v5998_v31, %v6816_v50  ;;  %v3228_v26 = vadd.f32 %v6036_v34, %v3157_v20 }
 0x3d3   : > { %v3159_v8 = vmul.f32 %v6005_v60, %v3088_v15  ;;  %v3160_v0 = vmul.f32 %v6005_v60, %v3089_v6  ;;  %v3419_v54 = vsel %vm3291_vm4, %v3227_v2, %v3355_v37  ;;  %v6818_v5 = vsub.f32 %v6817_v9, %v5874_v1 }
 0x3d4   : > { %v3229_v24 = vadd.f32 %v6036_v34, %v3158_v17  ;;  %v3161_v14 = vmul.f32 %v6005_v60, %v3090_v36  ;;  %v3162_v41 = vmul.f32 %v6005_v60, %v3091_v59  ;;  %vm3292_vm5 = vcmp.gt.f32.partialorder %v3228_v26, 0.0  ;;  %3483 = vst [vmem:[%s5038_s19 + $0x1a0] sm:$0xff] %v3419_v54 }
 0x3d5   : > { %v3230_v39 = vadd.f32 %v6036_v34, %v3159_v8  ;;  %v3356_v30 = vmul.f32 0.2, %v3228_v26  ;;  %v3231_v3 = vadd.f32 %v6036_v34, %v3160_v0  ;;  %v3092_v38 = vmul.f32 %v5998_v31, %v6818_v5 }
 0x3d6   : > { %vm3293_vm6 = vcmp.gt.f32.partialorder %v3229_v24, 0.0  ;;  %v3357_v51 = vmul.f32 0.2, %v3229_v24  ;;  %v3232_v18 = vadd.f32 %v6036_v34, %v3161_v14  ;;  %v3233_v23 = vadd.f32 %v6036_v34, %v3162_v41 }
 0x3d7   : > { %vm3294_vm7 = vcmp.gt.f32.partialorder %v3230_v39, 0.0  ;;  %v3358_v19 = vmul.f32 0.2, %v3230_v39  ;;  %v3420_v47 = vsel %vm3292_vm5, %v3228_v26, %v3356_v30  ;;  %vm3295_vm8 = vcmp.gt.f32.partialorder %v3231_v3, 0.0 }
 0x3d8   : > { %3484 = vst [vmem:[%s5038_s19 + $0x1a8] sm:$0xff] %v3420_v47  ;;  %v3421_v49 = vsel %vm3293_vm6, %v3229_v24, %v3357_v51  ;;  %v3359_v57 = vmul.f32 0.2, %v3231_v3  ;;  %vm3296_vm9 = vcmp.gt.f32.partialorder %v3232_v18, 0.0  ;;  %v3360_v56 = vmul.f32 0.2, %v3232_v18 }
 0x3d9   : > { %v3422_v40 = vsel %vm3294_vm7, %v3230_v39, %v3358_v19  ;;  %3485 = vst [vmem:[%s5038_s19 + $0x1b0] sm:$0xff] %v3421_v49  ;;  %vm3297_vm10 = vcmp.gt.f32.partialorder %v3233_v23, 0.0  ;;  %v3361_v22 = vmul.f32 0.2, %v3233_v23  ;;  %v3163_v43 = vmul.f32 %v6005_v60, %v3092_v38 }
 0x3da   : > { %3486 = vst [vmem:[%s5038_s19 + $0x1b8] sm:$0xff] %v3422_v40  ;;  %v3423_v45 = vsel %vm3295_vm8, %v3231_v3, %v3359_v57  ;;  %v6820_v25 = vsub.f32 %v6819_v44, %v5874_v1  ;;  %v6822_v11 = vsub.f32 %v6821_v48, %v5874_v1  ;;  %v3424_v52 = vsel %vm3296_vm9, %v3232_v18, %v3360_v56 }
 0x3db   : > { %3487 = vst [vmem:[%s5038_s19 + $0x1c0] sm:$0xff] %v3423_v45  ;;  %v3425_v63 = vsel %vm3297_vm10, %v3233_v23, %v3361_v22  ;;  %v6824_v29 = vsub.f32 %v6823_v16, %v5874_v1  ;;  %v6826_v58 = vsub.f32 %v6825_v21, %v5874_v1  ;;  %3488 = vst [vmem:[%s5038_s19 + $0x1c8] sm:$0xff] %v3424_v52 }
 0x3dc   : > { %v3093_v4 = vmul.f32 %v5998_v31, %v6820_v25  ;;  %v3094_v42 = vmul.f32 %v5998_v31, %v6822_v11  ;;  %3489 = vst [vmem:[%s5038_s19 + $0x1d0] sm:$0xff] %v3425_v63  ;;  %v3234_v13 = vadd.f32 %v6036_v34, %v3163_v43 }
 0x3dd   : > { %v3095_v7 = vmul.f32 %v5998_v31, %v6824_v29  ;;  %v3096_v61 = vmul.f32 %v5998_v31, %v6826_v58 }
 0x3de   : > { %v3164_v35 = vmul.f32 %v6005_v60, %v3093_v4  ;;  %v3165_v62 = vmul.f32 %v6005_v60, %v3094_v42  ;;  %vm3298_vm11 = vcmp.gt.f32.partialorder %v3234_v13, 0.0  ;;  %v3362_v33 = vmul.f32 0.2, %v3234_v13 }
 0x3df   : > { %v3166_v27 = vmul.f32 %v6005_v60, %v3095_v7  ;;  %v3167_v46 = vmul.f32 %v6005_v60, %v3096_v61 }
 0x3e0   : > { %v3235_v1 = vadd.f32 %v6036_v34, %v3164_v35  ;;  %v3236_v31 = vadd.f32 %v6036_v34, %v3165_v62  ;;  %v3426_v20 = vsel %vm3298_vm11, %v3234_v13, %v3362_v33 }
 0x3e1   : > { %v3237_v15 = vadd.f32 %v6036_v34, %v3166_v27  ;;  %v3238_v2 = vadd.f32 %v6036_v34, %v3167_v46  ;;  %3490 = vst [vmem:[%s5038_s19 + $0x1d8] sm:$0xff] %v3426_v20 }
 0x3e2   : > { %vm3299_vm12 = vcmp.gt.f32.partialorder %v3235_v1, 0.0  ;;  %v3363_v17 = vmul.f32 0.2, %v3235_v1  ;;  %vm3300_vm13 = vcmp.gt.f32.partialorder %v3236_v31, 0.0  ;;  %v3364_v60 = vmul.f32 0.2, %v3236_v31 }
 0x3e3   : > { %vm3301_vm14 = vcmp.gt.f32.partialorder %v3237_v15, 0.0  ;;  %v3365_v53 = vmul.f32 0.2, %v3237_v15  ;;  %vm3302_vm15 = vcmp.gt.f32.partialorder %v3238_v2, 0.0  ;;  %v3366_v6 = vmul.f32 0.2, %v3238_v2 }
 0x3e4   : > { %v3427_v12 = vsel %vm3299_vm12, %v3235_v1, %v3363_v17  ;;  %v3428_v28 = vsel %vm3300_vm13, %v3236_v31, %v3364_v60 }
 0x3e5   : > { %3491 = vst [vmem:[%s5038_s19 + $0x1e0] sm:$0xff] %v3427_v12  ;;  %v3429_v8 = vsel %vm3301_vm14, %v3237_v15, %v3365_v53  ;;  %3492 = vst [vmem:[%s5038_s19 + $0x1e8] sm:$0xff] %v3428_v28  ;;  %v3430_v10 = vsel %vm3302_vm15, %v3238_v2, %v3366_v6 }
 0x3e6   : > { %3493 = vst [vmem:[%s5038_s19 + $0x1f0] sm:$0xff] %v3429_v8  ;;  %3494 = vst [vmem:[%s5038_s19 + $0x1f8] sm:$0xff] %v3430_v10 }
 0x3e7 PF: > { %3501 = sbr.rel (!%p4605_p12) target bundleno = 1033 (0x409), region = 112  ;;  %s4075_s27 = sshll.u32 (%p4605_p12), %s4470_s22, 3  ;;  %v3658_v34 = vld [vmem:[%s5038_s19] sm:$0xff] (%p4605_p12)  ;;  %v3660_v32 = vld [vmem:[%s5038_s19 + $0x8] sm:$0xff] (%p4605_p12)  ;;  %v3662_v36 = vld [vmem:[%s5038_s19 + $0x10] sm:$0xff] (%p4605_p12) }
 0x3e8   : > { %s6479_s26 = scalar_lea.vmem (%p4605_p12), %s6643_s4, %s4075_s27  ;;  %v3664_v55 = vld [vmem:[%s5038_s19 + $0x18] sm:$0xff] (%p4605_p12)  ;;  %v3666_v50 = vld [vmem:[%s5038_s19 + $0x20] sm:$0xff] (%p4605_p12)  ;;  %v3668_v59 = vld [vmem:[%s5038_s19 + $0x28] sm:$0xff] (%p4605_p12) }
 0x3e9   : > { %3659 = vst [vmem:[%s6479_s26] sm:$0xff] (%p4605_p12), %v3658_v34  ;;  %3661 = vst [vmem:[%s6479_s26 + $0x10] sm:$0xff] (%p4605_p12), %v3660_v32  ;;  %v3670_v37 = vld [vmem:[%s5038_s19 + $0x30] sm:$0xff] (%p4605_p12)  ;;  %v3672_v26 = vld [vmem:[%s5038_s19 + $0x38] sm:$0xff] (%p4605_p12) }
 0x3ea   : > { %3663 = vst [vmem:[%s6479_s26 + $0x20] sm:$0xff] (%p4605_p12), %v3662_v36  ;;  %3665 = vst [vmem:[%s6479_s26 + $0x30] sm:$0xff] (%p4605_p12), %v3664_v55  ;;  %v3674_v24 = vld [vmem:[%s5038_s19 + $0x40] sm:$0xff] (%p4605_p12)  ;;  %v3676_v39 = vld [vmem:[%s5038_s19 + $0x48] sm:$0xff] (%p4605_p12) }
 0x3eb   : > { %3667 = vst [vmem:[%s6479_s26 + $0x40] sm:$0xff] (%p4605_p12), %v3666_v50  ;;  %3669 = vst [vmem:[%s6479_s26 + $0x50] sm:$0xff] (%p4605_p12), %v3668_v59  ;;  %v3678_v0 = vld [vmem:[%s5038_s19 + $0x50] sm:$0xff] (%p4605_p12)  ;;  %v3680_v14 = vld [vmem:[%s5038_s19 + $0x58] sm:$0xff] (%p4605_p12) }
 0x3ec   : > { %3671 = vst [vmem:[%s6479_s26 + $0x60] sm:$0xff] %v3670_v37  ;;  %3673 = vst [vmem:[%s6479_s26 + $0x70] sm:$0xff] %v3672_v26  ;;  %v3682_v41 = vld [vmem:[%s5038_s19 + $0x60] sm:$0xff]  ;;  %v3684_v54 = vld [vmem:[%s5038_s19 + $0x68] sm:$0xff] }
 0x3ed   : > { %3675 = vst [vmem:[%s6479_s26 + $0x80] sm:$0xff] %v3674_v24  ;;  %3677 = vst [vmem:[%s6479_s26 + $0x90] sm:$0xff] %v3676_v39  ;;  %v3686_v30 = vld [vmem:[%s5038_s19 + $0x70] sm:$0xff]  ;;  %v3688_v51 = vld [vmem:[%s5038_s19 + $0x78] sm:$0xff] }
 0x3ee   : > { %3679 = vst [vmem:[%s6479_s26 + $0xa0] sm:$0xff] %v3678_v0  ;;  %3681 = vst [vmem:[%s6479_s26 + $0xb0] sm:$0xff] %v3680_v14  ;;  %v3690_v19 = vld [vmem:[%s5038_s19 + $0x80] sm:$0xff]  ;;  %v3692_v3 = vld [vmem:[%s5038_s19 + $0x88] sm:$0xff] }
 0x3ef   : > { %3683 = vst [vmem:[%s6479_s26 + $0xc0] sm:$0xff] %v3682_v41  ;;  %3685 = vst [vmem:[%s6479_s26 + $0xd0] sm:$0xff] %v3684_v54  ;;  %v3694_v47 = vld [vmem:[%s5038_s19 + $0x90] sm:$0xff]  ;;  %v3696_v18 = vld [vmem:[%s5038_s19 + $0x98] sm:$0xff] }
 0x3f0   : > { %3687 = vst [vmem:[%s6479_s26 + $0xe0] sm:$0xff] %v3686_v30  ;;  %3689 = vst [vmem:[%s6479_s26 + $0xf0] sm:$0xff] %v3688_v51  ;;  %v3698_v23 = vld [vmem:[%s5038_s19 + $0xa0] sm:$0xff]  ;;  %v3700_v9 = vld [vmem:[%s5038_s19 + $0xa8] sm:$0xff] }
 0x3f1   : > { %3691 = vst [vmem:[%s6479_s26 + $0x100] sm:$0xff] %v3690_v19  ;;  %3693 = vst [vmem:[%s6479_s26 + $0x110] sm:$0xff] %v3692_v3  ;;  %v3702_v5 = vld [vmem:[%s5038_s19 + $0xb0] sm:$0xff]  ;;  %v3704_v38 = vld [vmem:[%s5038_s19 + $0xb8] sm:$0xff] }
 0x3f2   : > { %3695 = vst [vmem:[%s6479_s26 + $0x120] sm:$0xff] %v3694_v47  ;;  %3697 = vst [vmem:[%s6479_s26 + $0x130] sm:$0xff] %v3696_v18  ;;  %v3706_v49 = vld [vmem:[%s5038_s19 + $0xc0] sm:$0xff]  ;;  %v3708_v40 = vld [vmem:[%s5038_s19 + $0xc8] sm:$0xff] }
 0x3f3   : > { %3699 = vst [vmem:[%s6479_s26 + $0x140] sm:$0xff] %v3698_v23  ;;  %3701 = vst [vmem:[%s6479_s26 + $0x150] sm:$0xff] %v3700_v9  ;;  %v3710_v57 = vld [vmem:[%s5038_s19 + $0xd0] sm:$0xff]  ;;  %v3712_v56 = vld [vmem:[%s5038_s19 + $0xd8] sm:$0xff] }
 0x3f4   : > { %3703 = vst [vmem:[%s6479_s26 + $0x160] sm:$0xff] %v3702_v5  ;;  %3705 = vst [vmem:[%s6479_s26 + $0x170] sm:$0xff] %v3704_v38  ;;  %v3714_v22 = vld [vmem:[%s5038_s19 + $0xe0] sm:$0xff]  ;;  %v3716_v45 = vld [vmem:[%s5038_s19 + $0xe8] sm:$0xff] }
 0x3f5   : > { %3707 = vst [vmem:[%s6479_s26 + $0x180] sm:$0xff] %v3706_v49  ;;  %3709 = vst [vmem:[%s6479_s26 + $0x190] sm:$0xff] %v3708_v40  ;;  %v3718_v43 = vld [vmem:[%s5038_s19 + $0xf0] sm:$0xff]  ;;  %v3720_v44 = vld [vmem:[%s5038_s19 + $0xf8] sm:$0xff] }
 0x3f6   : > { %3711 = vst [vmem:[%s6479_s26 + $0x1a0] sm:$0xff] %v3710_v57  ;;  %3713 = vst [vmem:[%s6479_s26 + $0x1b0] sm:$0xff] %v3712_v56  ;;  %v3722_v25 = vld [vmem:[%s5038_s19 + $0x100] sm:$0xff]  ;;  %v3724_v4 = vld [vmem:[%s5038_s19 + $0x108] sm:$0xff] }
 0x3f7   : > { %3715 = vst [vmem:[%s6479_s26 + $0x1c0] sm:$0xff] %v3714_v22  ;;  %3717 = vst [vmem:[%s6479_s26 + $0x1d0] sm:$0xff] %v3716_v45  ;;  %v3726_v48 = vld [vmem:[%s5038_s19 + $0x110] sm:$0xff]  ;;  %v3728_v11 = vld [vmem:[%s5038_s19 + $0x118] sm:$0xff] }
 0x3f8   : > { %3719 = vst [vmem:[%s6479_s26 + $0x1e0] sm:$0xff] %v3718_v43  ;;  %3721 = vst [vmem:[%s6479_s26 + $0x1f0] sm:$0xff] %v3720_v44  ;;  %v3730_v42 = vld [vmem:[%s5038_s19 + $0x120] sm:$0xff]  ;;  %v3732_v52 = vld [vmem:[%s5038_s19 + $0x128] sm:$0xff] }
 0x3f9   : > { %3723 = vst [vmem:[%s6479_s26 + $0x200] sm:$0xff] %v3722_v25  ;;  %3725 = vst [vmem:[%s6479_s26 + $0x210] sm:$0xff] %v3724_v4  ;;  %v3734_v63 = vld [vmem:[%s5038_s19 + $0x130] sm:$0xff]  ;;  %v3736_v16 = vld [vmem:[%s5038_s19 + $0x138] sm:$0xff] }
 0x3fa   : > { %3727 = vst [vmem:[%s6479_s26 + $0x220] sm:$0xff] %v3726_v48  ;;  %3729 = vst [vmem:[%s6479_s26 + $0x230] sm:$0xff] %v3728_v11  ;;  %v3738_v29 = vld [vmem:[%s5038_s19 + $0x140] sm:$0xff]  ;;  %v3740_v7 = vld [vmem:[%s5038_s19 + $0x148] sm:$0xff] }
 0x3fb   : > { %3731 = vst [vmem:[%s6479_s26 + $0x240] sm:$0xff] %v3730_v42  ;;  %3733 = vst [vmem:[%s6479_s26 + $0x250] sm:$0xff] %v3732_v52  ;;  %v3742_v21 = vld [vmem:[%s5038_s19 + $0x150] sm:$0xff]  ;;  %v3744_v58 = vld [vmem:[%s5038_s19 + $0x158] sm:$0xff] }
 0x3fc   : > { %3735 = vst [vmem:[%s6479_s26 + $0x260] sm:$0xff] %v3734_v63  ;;  %3737 = vst [vmem:[%s6479_s26 + $0x270] sm:$0xff] %v3736_v16  ;;  %v3746_v61 = vld [vmem:[%s5038_s19 + $0x160] sm:$0xff]  ;;  %v3748_v13 = vld [vmem:[%s5038_s19 + $0x168] sm:$0xff] }
 0x3fd   : > { %3739 = vst [vmem:[%s6479_s26 + $0x280] sm:$0xff] %v3738_v29  ;;  %3741 = vst [vmem:[%s6479_s26 + $0x290] sm:$0xff] %v3740_v7  ;;  %v3750_v35 = vld [vmem:[%s5038_s19 + $0x170] sm:$0xff]  ;;  %v3752_v62 = vld [vmem:[%s5038_s19 + $0x178] sm:$0xff] }
 0x3fe   : > { %3743 = vst [vmem:[%s6479_s26 + $0x2a0] sm:$0xff] %v3742_v21  ;;  %3745 = vst [vmem:[%s6479_s26 + $0x2b0] sm:$0xff] %v3744_v58  ;;  %v3754_v27 = vld [vmem:[%s5038_s19 + $0x180] sm:$0xff]  ;;  %v3756_v46 = vld [vmem:[%s5038_s19 + $0x188] sm:$0xff] }
 0x3ff   : > { %3747 = vst [vmem:[%s6479_s26 + $0x2c0] sm:$0xff] %v3746_v61  ;;  %3749 = vst [vmem:[%s6479_s26 + $0x2d0] sm:$0xff] %v3748_v13  ;;  %v3758_v33 = vld [vmem:[%s5038_s19 + $0x190] sm:$0xff]  ;;  %v3760_v1 = vld [vmem:[%s5038_s19 + $0x198] sm:$0xff] }
 0x400   : > { %3751 = vst [vmem:[%s6479_s26 + $0x2e0] sm:$0xff] %v3750_v35  ;;  %3753 = vst [vmem:[%s6479_s26 + $0x2f0] sm:$0xff] %v3752_v62  ;;  %v3762_v31 = vld [vmem:[%s5038_s19 + $0x1a0] sm:$0xff]  ;;  %v3764_v15 = vld [vmem:[%s5038_s19 + $0x1a8] sm:$0xff] }
 0x401   : > { %3755 = vst [vmem:[%s6479_s26 + $0x300] sm:$0xff] %v3754_v27  ;;  %3757 = vst [vmem:[%s6479_s26 + $0x310] sm:$0xff] %v3756_v46  ;;  %v3766_v2 = vld [vmem:[%s5038_s19 + $0x1b0] sm:$0xff]  ;;  %v3768_v20 = vld [vmem:[%s5038_s19 + $0x1b8] sm:$0xff] }
 0x402   : > { %3759 = vst [vmem:[%s6479_s26 + $0x320] sm:$0xff] %v3758_v33  ;;  %3761 = vst [vmem:[%s6479_s26 + $0x330] sm:$0xff] %v3760_v1  ;;  %v3770_v17 = vld [vmem:[%s5038_s19 + $0x1c0] sm:$0xff]  ;;  %v3772_v60 = vld [vmem:[%s5038_s19 + $0x1c8] sm:$0xff] }
 0x403   : > { %3763 = vst [vmem:[%s6479_s26 + $0x340] sm:$0xff] %v3762_v31  ;;  %3765 = vst [vmem:[%s6479_s26 + $0x350] sm:$0xff] %v3764_v15  ;;  %v3774_v53 = vld [vmem:[%s5038_s19 + $0x1d0] sm:$0xff]  ;;  %v3776_v12 = vld [vmem:[%s5038_s19 + $0x1d8] sm:$0xff] }
 0x404   : > { %3767 = vst [vmem:[%s6479_s26 + $0x360] sm:$0xff] %v3766_v2  ;;  %3769 = vst [vmem:[%s6479_s26 + $0x370] sm:$0xff] %v3768_v20  ;;  %v3778_v6 = vld [vmem:[%s5038_s19 + $0x1e0] sm:$0xff]  ;;  %v3780_v28 = vld [vmem:[%s5038_s19 + $0x1e8] sm:$0xff] }
 0x405   : > { %3771 = vst [vmem:[%s6479_s26 + $0x380] sm:$0xff] %v3770_v17  ;;  %3773 = vst [vmem:[%s6479_s26 + $0x390] sm:$0xff] %v3772_v60  ;;  %v3782_v8 = vld [vmem:[%s5038_s19 + $0x1f0] sm:$0xff]  ;;  %v3784_v10 = vld [vmem:[%s5038_s19 + $0x1f8] sm:$0xff] }
 0x406   : > { %3775 = vst [vmem:[%s6479_s26 + $0x3a0] sm:$0xff] %v3774_v53  ;;  %3777 = vst [vmem:[%s6479_s26 + $0x3b0] sm:$0xff] %v3776_v12 }
 0x407   : > { %3779 = vst [vmem:[%s6479_s26 + $0x3c0] sm:$0xff] %v3778_v6  ;;  %3781 = vst [vmem:[%s6479_s26 + $0x3d0] sm:$0xff] %v3780_v28 }
 0x408   : > { %3783 = vst [vmem:[%s6479_s26 + $0x3e0] sm:$0xff] %v3782_v8  ;;  %3785 = vst [vmem:[%s6479_s26 + $0x3f0] sm:$0xff] %v3784_v10 }
 0x409 PF: > { %s14_s25 = sadd.s32 1, %s4482_s25   ;;  %s6827_s22 = sld [smem:[#allocation5_spill]] }
 0x40a   : > { %p11_p6 = scmp.ge.s32.totalorder %s14_s25, 10   ;;  %s6828_s14 = sld [smem:[#allocation6_spill]] }
 0x40b   : > { %s6829_s24 = sld [smem:[#allocation7_spill]]  ;;  %s6830_s15 = smov %s4446_s16 }
 0x40c   : > { %s6831_s16 = smov %s4603_s13  ;;  %s6832_s17 = smov %s4454_s18 }
 0x40d   : > { %s6833_s18 = smov %s4600_s12  ;;  %s6834_s19 = smov %s4462_s20 }
 0x40e   : > { %s6835_s20 = smov %s4586_s7  ;;  %s6836_s21 = smov %s4474_s23 }
 0x40f   :  { %13 = sbr.rel (!%p11_p6) target bundleno = 9 (0x9), region = 195 }
 0x410   : > { %s6837_s23 = smov %s6828_s14 }

// kernel: discriminator_forward.6
= control target key start
LH: loop header
LB: loop body
LE: loop exit
PB: predicated region body
PF: predicated region fallthrough
CT: control target
= control target key end

     0   :  { %s3819_s0 = inlined_call_operand.vmem [shape: bf16[128,4096], index: 0, kind: input, shape index: {}]   ;;  %s3820_s1 = inlined_call_operand.vmem [shape: bf16[4096,512], index: 1, kind: input, shape index: {}]   ;;  %s3821_s2 = inlined_call_operand.vmem [shape: f32[1,512], index: 2, kind: input, shape index: {}]   ;;  %s3822_s3 = inlined_call_operand.vmem [shape: f32[1,512], index: 3, kind: input, shape index: {}]   ;;  %s3823_s4 = inlined_call_operand.vmem [shape: f32[128,512], index: 4, kind: output, shape index: {}]  }
   0x1   :  { %3826 = sst [smem:[#allocation7_spill]] %s3819_s0 }
   0x2   :  { %3827 = sst [smem:[#allocation8_spill]] %s3820_s1 }
   0x3   :  { %s2693_s15 = smov 0   ;;  %s2695_s16 = smov 0  }
   0x4   :  { %s2697_s17 = smov 0   ;;  %s2699_s18 = smov 0  }
   0x5   :  { %s2701_s19 = smov 0   ;;  %s2703_s20 = smov 0  }
   0x6   :  { %s2705_s21 = smov 0   ;;  %s2707_s22 = smov 0  }
   0x7   :  { %s2709_s23 = smov 0   ;;  %s2711_s24 = smov 0  }
   0x8   :  { %s2713_s25 = smov 0  }
   0x9 LB: > { %s2218_s26 = sadd.s32 4294967295, %s2665_s25   ;;  %s23_s27 = sadd.s32 1, %s2657_s23  ;;  %s2665_s25 = sphi %s2713_s25, %s14_s25   ;;  %s2661_s24 = sphi %s2711_s24, %s3857_s24   ;;  %s2657_s23 = sphi %s2709_s23, %s3856_s23   ;;  %s2653_s22 = sphi %s2707_s22, %s3855_s22   ;;  %s2649_s21 = sphi %s2705_s21, %s3854_s21   ;;  %s2645_s20 = sphi %s2703_s20, %s3853_s20   ;;  %s2641_s19 = sphi %s2701_s19, %s3852_s19   ;;  %s2637_s18 = sphi %s2699_s18, %s3851_s18   ;;  %s2633_s17 = sphi %s2697_s17, %s3850_s17   ;;  %s2629_s16 = sphi %s2695_s16, %s3849_s16   ;;  %s2625_s15 = sphi %s2693_s15, %s3848_s15  }
   0xa   : > { %p24_p0 = scmp.ge.s32.totalorder %s23_s27, 8  ;;  %s26_s28 = sadd.s32 1, %s2661_s24 }
   0xb   : > { %s33_s29 = sadd.s32 1, %s2645_s20  ;;  %p40_p1 = scmp.ne.s32.totalorder %s2645_s20, %s2641_s19 }
   0xc   : > { %s3859_s27 = smov (%p24_p0, %s23_s27), 0  ;;  %s3861_s28 = smov (!%p24_p0, %s26_s28), %s2661_s24 }
   0xd   : > { %3828 = sst [smem:[#allocation5_spill]] %s3859_s27  ;;  %s30_s30 = ssub.s32 %s2657_s23, %s3859_s27 }
   0xe   : > { %p41_p2 = scmp.eq.s32.totalorder %s2665_s25, 0  ;;  %p28_p3 = scmp.ge.s32.totalorder %s3861_s28, 2 }
   0xf   : > { %p31_p4 = scmp.eq.s32.totalorder %s30_s30, 0  ;;  %s61_s6 = sadd.s32 1, %s2637_s18 }
  0x10   : > { %p2760_p5 = por %p41_p2, %p40_p1  ;;  %s3863_s28 = smov (%p28_p3, %s3861_s28), 0 }
  0x11   : > { %3830 = sst [smem:[#allocation6_spill]] %s3863_s28  ;;  %s57_s8 = ssub.s32 %s2661_s24, %s3863_s28 }
  0x12   : > { %s2768_s7 = scalar_select %p31_p4, %s2645_s20, %s33_s29  }
  0x13   : > { %p68_p6 = scmp.ne.s32.totalorder %s2637_s18, %s2633_s17  ;;  %s58_s9 = sor.u32 %s57_s8, %s30_s30 }
  0x14   : > { %p137_p7 = scmp.eq.s32.totalorder %s57_s8, 0  ;;  %p59_p8 = scmp.eq.s32.totalorder %s58_s9, 0 }
  0x15   : > { %p2774_p9 = por %p68_p6, %p41_p2  ;;  %s139_s11 = sadd.s32 1, %s2629_s16 }
  0x16   : > { %p149_p10 = scmp.ne.s32.totalorder %s2629_s16, %s2625_s15  ;;  %p150_p11 = scmp.eq.s32.totalorder %s2218_s26, 15 }
  0x17   : > { %s2782_s12 = scalar_select %p59_p8, %s2637_s18, %s61_s6  }
  0x18   : > { %s2785_s13 = scalar_select %p137_p7, %s2629_s16, %s139_s11  }
  0x19   : > { %p2787_p12 = por %p150_p11, %p149_p10  ;;  %p2221_p13 = scmp.ge.s32.totalorder %s2665_s25, 16 }
  0x1b   : > { %172 = sbr.rel (%p2221_p13) target bundleno = 100 (0x64), region = 16 }
  0x20   : > { %175 = sbr.rel (!%p2760_p5) target bundleno = 58 (0x3a), region = 20  ;;  %s177_s29 = sand.u32 (%p2760_p5), 1, %s2645_s20  }
  0x21   : > { %s2339_s30 = sshll.u32 (%p2760_p5), %s2657_s23, 4  ;;  %s2222_s8 = sshll.u32 (%p2760_p5), %s177_s29, 8 }
  0x22   : > { %s3833_s0 = sld [smem:[#allocation7_spill]] (%p2760_p5)  ;;  %s2804_s26 = scalar_lea.vmem (%p2760_p5), [#allocation2], %s2222_s8 }
  0x28   : > { %s2799_s11 = scalar_lea.vmem %s3833_s0, %s2339_s30 }
  0x29   : > { %v195_v0 = vld [vmem:[%s2799_s11] sm:$0xff]  ;;  %v197_v1 = vld [vmem:[%s2799_s11 + $0x8] sm:$0xff] }
  0x2a   : > { %v199_v2 = vld [vmem:[%s2799_s11 + $0x80] sm:$0xff]  ;;  %196 = vst [vmem:[%s2804_s26] sm:$0xff] %v195_v0  ;;  %198 = vst [vmem:[%s2804_s26 + $0x8] sm:$0xff] %v197_v1  ;;  %v201_v3 = vld [vmem:[%s2799_s11 + $0x88] sm:$0xff] }
  0x2b   : > { %200 = vst [vmem:[%s2804_s26 + $0x10] sm:$0xff] %v199_v2  ;;  %v203_v4 = vld [vmem:[%s2799_s11 + $0x100] sm:$0xff]  ;;  %v205_v5 = vld [vmem:[%s2799_s11 + $0x108] sm:$0xff]  ;;  %202 = vst [vmem:[%s2804_s26 + $0x18] sm:$0xff] %v201_v3 }
  0x2c   : > { %204 = vst [vmem:[%s2804_s26 + $0x20] sm:$0xff] %v203_v4  ;;  %206 = vst [vmem:[%s2804_s26 + $0x28] sm:$0xff] %v205_v5  ;;  %v207_v6 = vld [vmem:[%s2799_s11 + $0x180] sm:$0xff]  ;;  %v209_v7 = vld [vmem:[%s2799_s11 + $0x188] sm:$0xff] }
  0x2d   : > { %v211_v8 = vld [vmem:[%s2799_s11 + $0x200] sm:$0xff]  ;;  %208 = vst [vmem:[%s2804_s26 + $0x30] sm:$0xff] %v207_v6  ;;  %210 = vst [vmem:[%s2804_s26 + $0x38] sm:$0xff] %v209_v7  ;;  %v213_v9 = vld [vmem:[%s2799_s11 + $0x208] sm:$0xff] }
  0x2e   : > { %212 = vst [vmem:[%s2804_s26 + $0x40] sm:$0xff] %v211_v8  ;;  %v215_v10 = vld [vmem:[%s2799_s11 + $0x280] sm:$0xff]  ;;  %v217_v11 = vld [vmem:[%s2799_s11 + $0x288] sm:$0xff]  ;;  %214 = vst [vmem:[%s2804_s26 + $0x48] sm:$0xff] %v213_v9 }
  0x2f   : > { %216 = vst [vmem:[%s2804_s26 + $0x50] sm:$0xff] %v215_v10  ;;  %218 = vst [vmem:[%s2804_s26 + $0x58] sm:$0xff] %v217_v11  ;;  %v219_v12 = vld [vmem:[%s2799_s11 + $0x300] sm:$0xff]  ;;  %v221_v13 = vld [vmem:[%s2799_s11 + $0x308] sm:$0xff] }
  0x30   : > { %v223_v14 = vld [vmem:[%s2799_s11 + $0x380] sm:$0xff]  ;;  %220 = vst [vmem:[%s2804_s26 + $0x60] sm:$0xff] %v219_v12  ;;  %222 = vst [vmem:[%s2804_s26 + $0x68] sm:$0xff] %v221_v13  ;;  %v225_v15 = vld [vmem:[%s2799_s11 + $0x388] sm:$0xff] }
  0x31   : > { %224 = vst [vmem:[%s2804_s26 + $0x70] sm:$0xff] %v223_v14  ;;  %v227_v16 = vld [vmem:[%s2799_s11 + $0x400] sm:$0xff]  ;;  %v229_v17 = vld [vmem:[%s2799_s11 + $0x408] sm:$0xff]  ;;  %226 = vst [vmem:[%s2804_s26 + $0x78] sm:$0xff] %v225_v15 }
  0x32   : > { %228 = vst [vmem:[%s2804_s26 + $0x80] sm:$0xff] %v227_v16  ;;  %230 = vst [vmem:[%s2804_s26 + $0x88] sm:$0xff] %v229_v17  ;;  %v231_v18 = vld [vmem:[%s2799_s11 + $0x480] sm:$0xff]  ;;  %v233_v19 = vld [vmem:[%s2799_s11 + $0x488] sm:$0xff] }
  0x33   : > { %v235_v20 = vld [vmem:[%s2799_s11 + $0x500] sm:$0xff]  ;;  %232 = vst [vmem:[%s2804_s26 + $0x90] sm:$0xff] %v231_v18  ;;  %234 = vst [vmem:[%s2804_s26 + $0x98] sm:$0xff] %v233_v19  ;;  %v237_v21 = vld [vmem:[%s2799_s11 + $0x508] sm:$0xff] }
  0x34   : > { %236 = vst [vmem:[%s2804_s26 + $0xa0] sm:$0xff] %v235_v20  ;;  %v239_v22 = vld [vmem:[%s2799_s11 + $0x580] sm:$0xff]  ;;  %v241_v23 = vld [vmem:[%s2799_s11 + $0x588] sm:$0xff]  ;;  %238 = vst [vmem:[%s2804_s26 + $0xa8] sm:$0xff] %v237_v21 }
  0x35   : > { %240 = vst [vmem:[%s2804_s26 + $0xb0] sm:$0xff] %v239_v22  ;;  %242 = vst [vmem:[%s2804_s26 + $0xb8] sm:$0xff] %v241_v23  ;;  %v243_v24 = vld [vmem:[%s2799_s11 + $0x600] sm:$0xff]  ;;  %v245_v25 = vld [vmem:[%s2799_s11 + $0x608] sm:$0xff] }
  0x36   : > { %v247_v26 = vld [vmem:[%s2799_s11 + $0x680] sm:$0xff]  ;;  %244 = vst [vmem:[%s2804_s26 + $0xc0] sm:$0xff] %v243_v24  ;;  %246 = vst [vmem:[%s2804_s26 + $0xc8] sm:$0xff] %v245_v25  ;;  %v249_v27 = vld [vmem:[%s2799_s11 + $0x688] sm:$0xff] }
  0x37   : > { %248 = vst [vmem:[%s2804_s26 + $0xd0] sm:$0xff] %v247_v26  ;;  %v251_v28 = vld [vmem:[%s2799_s11 + $0x700] sm:$0xff]  ;;  %v253_v29 = vld [vmem:[%s2799_s11 + $0x708] sm:$0xff]  ;;  %250 = vst [vmem:[%s2804_s26 + $0xd8] sm:$0xff] %v249_v27 }
  0x38   : > { %252 = vst [vmem:[%s2804_s26 + $0xe0] sm:$0xff] %v251_v28  ;;  %254 = vst [vmem:[%s2804_s26 + $0xe8] sm:$0xff] %v253_v29  ;;  %v255_v30 = vld [vmem:[%s2799_s11 + $0x780] sm:$0xff]  ;;  %v257_v31 = vld [vmem:[%s2799_s11 + $0x788] sm:$0xff] }
  0x39   : > { %256 = vst [vmem:[%s2804_s26 + $0xf0] sm:$0xff] %v255_v30  ;;  %258 = vst [vmem:[%s2804_s26 + $0xf8] sm:$0xff] %v257_v31 }
  0x3a PF: > { %264 = sbr.rel (!%p2774_p9) target bundleno = 100 (0x64), region = 43  ;;  %s266_s5 = sand.u32 (%p2774_p9), 1, %s2637_s18  }
  0x3b   : > { %s2227_s29 = sshll.u32 (%p2774_p9), %s2661_s24, 1  ;;  %s2225_s30 = sshll.u32 (%p2774_p9), %s266_s5, 9 }
  0x3c   : > { %s2340_s8 = sshll.u32 (%p2774_p9), %s2657_s23, 8  ;;  %s3834_s1 = sld [smem:[#allocation8_spill]] (%p2774_p9) }
  0x3d   : > { %s272_s6 = sadd.s32 (%p2774_p9), %s2340_s8, %s2227_s29  ;;  %s2880_s10 = scalar_lea.vmem (%p2774_p9), [#allocation3], %s2225_s30 }
  0x3e   : > { %s2229_s9 = sshll.u32 (%p2774_p9), %s272_s6, 2 }
  0x42   : > { %s2875_s27 = scalar_lea.vmem %s3834_s1, %s2229_s9 }
  0x43   : > { %v429_v32 = vld [vmem:[%s2875_s27] sm:$0xff]  ;;  %v431_v33 = vld [vmem:[%s2875_s27 + $0x10] sm:$0xff] }
  0x44   : > { %v433_v34 = vld [vmem:[%s2875_s27 + $0x20] sm:$0xff]  ;;  %430 = vst [vmem:[%s2880_s10] sm:$0xff] %v429_v32  ;;  %432 = vst [vmem:[%s2880_s10 + $0x8] sm:$0xff] %v431_v33  ;;  %v435_v35 = vld [vmem:[%s2875_s27 + $0x30] sm:$0xff] }
  0x45   : > { %434 = vst [vmem:[%s2880_s10 + $0x10] sm:$0xff] %v433_v34  ;;  %v437_v36 = vld [vmem:[%s2875_s27 + $0x40] sm:$0xff]  ;;  %v439_v37 = vld [vmem:[%s2875_s27 + $0x50] sm:$0xff]  ;;  %436 = vst [vmem:[%s2880_s10 + $0x18] sm:$0xff] %v435_v35 }
  0x46   : > { %438 = vst [vmem:[%s2880_s10 + $0x20] sm:$0xff] %v437_v36  ;;  %440 = vst [vmem:[%s2880_s10 + $0x28] sm:$0xff] %v439_v37  ;;  %v441_v38 = vld [vmem:[%s2875_s27 + $0x60] sm:$0xff]  ;;  %v443_v39 = vld [vmem:[%s2875_s27 + $0x70] sm:$0xff] }
  0x47   : > { %v445_v40 = vld [vmem:[%s2875_s27 + $0x80] sm:$0xff]  ;;  %442 = vst [vmem:[%s2880_s10 + $0x30] sm:$0xff] %v441_v38  ;;  %444 = vst [vmem:[%s2880_s10 + $0x38] sm:$0xff] %v443_v39  ;;  %v447_v41 = vld [vmem:[%s2875_s27 + $0x90] sm:$0xff] }
  0x48   : > { %446 = vst [vmem:[%s2880_s10 + $0x40] sm:$0xff] %v445_v40  ;;  %v449_v42 = vld [vmem:[%s2875_s27 + $0xa0] sm:$0xff]  ;;  %v451_v43 = vld [vmem:[%s2875_s27 + $0xb0] sm:$0xff]  ;;  %448 = vst [vmem:[%s2880_s10 + $0x48] sm:$0xff] %v447_v41 }
  0x49   : > { %450 = vst [vmem:[%s2880_s10 + $0x50] sm:$0xff] %v449_v42  ;;  %452 = vst [vmem:[%s2880_s10 + $0x58] sm:$0xff] %v451_v43  ;;  %v453_v44 = vld [vmem:[%s2875_s27 + $0xc0] sm:$0xff]  ;;  %v455_v45 = vld [vmem:[%s2875_s27 + $0xd0] sm:$0xff] }
  0x4a   : > { %v457_v46 = vld [vmem:[%s2875_s27 + $0xe0] sm:$0xff]  ;;  %454 = vst [vmem:[%s2880_s10 + $0x60] sm:$0xff] %v453_v44  ;;  %456 = vst [vmem:[%s2880_s10 + $0x68] sm:$0xff] %v455_v45  ;;  %v459_v47 = vld [vmem:[%s2875_s27 + $0xf0] sm:$0xff] }
  0x4b   : > { %458 = vst [vmem:[%s2880_s10 + $0x70] sm:$0xff] %v457_v46  ;;  %v461_v48 = vld [vmem:[%s2875_s27 + $0x100] sm:$0xff]  ;;  %v463_v49 = vld [vmem:[%s2875_s27 + $0x110] sm:$0xff]  ;;  %460 = vst [vmem:[%s2880_s10 + $0x78] sm:$0xff] %v459_v47 }
  0x4c   : > { %462 = vst [vmem:[%s2880_s10 + $0x80] sm:$0xff] %v461_v48  ;;  %464 = vst [vmem:[%s2880_s10 + $0x88] sm:$0xff] %v463_v49  ;;  %v465_v50 = vld [vmem:[%s2875_s27 + $0x120] sm:$0xff]  ;;  %v467_v51 = vld [vmem:[%s2875_s27 + $0x130] sm:$0xff] }
  0x4d   : > { %v469_v52 = vld [vmem:[%s2875_s27 + $0x140] sm:$0xff]  ;;  %466 = vst [vmem:[%s2880_s10 + $0x90] sm:$0xff] %v465_v50  ;;  %468 = vst [vmem:[%s2880_s10 + $0x98] sm:$0xff] %v467_v51  ;;  %v471_v53 = vld [vmem:[%s2875_s27 + $0x150] sm:$0xff] }
  0x4e   : > { %470 = vst [vmem:[%s2880_s10 + $0xa0] sm:$0xff] %v469_v52  ;;  %v473_v54 = vld [vmem:[%s2875_s27 + $0x160] sm:$0xff]  ;;  %v475_v55 = vld [vmem:[%s2875_s27 + $0x170] sm:$0xff]  ;;  %472 = vst [vmem:[%s2880_s10 + $0xa8] sm:$0xff] %v471_v53 }
  0x4f   : > { %474 = vst [vmem:[%s2880_s10 + $0xb0] sm:$0xff] %v473_v54  ;;  %476 = vst [vmem:[%s2880_s10 + $0xb8] sm:$0xff] %v475_v55  ;;  %v477_v56 = vld [vmem:[%s2875_s27 + $0x180] sm:$0xff]  ;;  %v479_v57 = vld [vmem:[%s2875_s27 + $0x190] sm:$0xff] }
  0x50   : > { %v481_v58 = vld [vmem:[%s2875_s27 + $0x1a0] sm:$0xff]  ;;  %478 = vst [vmem:[%s2880_s10 + $0xc0] sm:$0xff] %v477_v56  ;;  %480 = vst [vmem:[%s2880_s10 + $0xc8] sm:$0xff] %v479_v57  ;;  %v483_v59 = vld [vmem:[%s2875_s27 + $0x1b0] sm:$0xff] }
  0x51   : > { %482 = vst [vmem:[%s2880_s10 + $0xd0] sm:$0xff] %v481_v58  ;;  %v485_v60 = vld [vmem:[%s2875_s27 + $0x1c0] sm:$0xff]  ;;  %v487_v61 = vld [vmem:[%s2875_s27 + $0x1d0] sm:$0xff]  ;;  %484 = vst [vmem:[%s2880_s10 + $0xd8] sm:$0xff] %v483_v59 }
  0x52   : > { %486 = vst [vmem:[%s2880_s10 + $0xe0] sm:$0xff] %v485_v60  ;;  %488 = vst [vmem:[%s2880_s10 + $0xe8] sm:$0xff] %v487_v61  ;;  %v489_v62 = vld [vmem:[%s2875_s27 + $0x1e0] sm:$0xff]  ;;  %v491_v63 = vld [vmem:[%s2875_s27 + $0x1f0] sm:$0xff] }
  0x53   : > { %v493_v0 = vld [vmem:[%s2875_s27 + $0x200] sm:$0xff]  ;;  %490 = vst [vmem:[%s2880_s10 + $0xf0] sm:$0xff] %v489_v62  ;;  %492 = vst [vmem:[%s2880_s10 + $0xf8] sm:$0xff] %v491_v63  ;;  %v495_v1 = vld [vmem:[%s2875_s27 + $0x210] sm:$0xff] }
  0x54   : > { %494 = vst [vmem:[%s2880_s10 + $0x100] sm:$0xff] %v493_v0  ;;  %v497_v2 = vld [vmem:[%s2875_s27 + $0x220] sm:$0xff]  ;;  %v499_v3 = vld [vmem:[%s2875_s27 + $0x230] sm:$0xff]  ;;  %496 = vst [vmem:[%s2880_s10 + $0x108] sm:$0xff] %v495_v1 }
  0x55   : > { %498 = vst [vmem:[%s2880_s10 + $0x110] sm:$0xff] %v497_v2  ;;  %500 = vst [vmem:[%s2880_s10 + $0x118] sm:$0xff] %v499_v3  ;;  %v501_v4 = vld [vmem:[%s2875_s27 + $0x240] sm:$0xff]  ;;  %v503_v5 = vld [vmem:[%s2875_s27 + $0x250] sm:$0xff] }
  0x56   : > { %v505_v6 = vld [vmem:[%s2875_s27 + $0x260] sm:$0xff]  ;;  %502 = vst [vmem:[%s2880_s10 + $0x120] sm:$0xff] %v501_v4  ;;  %504 = vst [vmem:[%s2880_s10 + $0x128] sm:$0xff] %v503_v5  ;;  %v507_v7 = vld [vmem:[%s2875_s27 + $0x270] sm:$0xff] }
  0x57   : > { %506 = vst [vmem:[%s2880_s10 + $0x130] sm:$0xff] %v505_v6  ;;  %v509_v8 = vld [vmem:[%s2875_s27 + $0x280] sm:$0xff]  ;;  %v511_v9 = vld [vmem:[%s2875_s27 + $0x290] sm:$0xff]  ;;  %508 = vst [vmem:[%s2880_s10 + $0x138] sm:$0xff] %v507_v7 }
  0x58   : > { %510 = vst [vmem:[%s2880_s10 + $0x140] sm:$0xff] %v509_v8  ;;  %512 = vst [vmem:[%s2880_s10 + $0x148] sm:$0xff] %v511_v9  ;;  %v513_v10 = vld [vmem:[%s2875_s27 + $0x2a0] sm:$0xff]  ;;  %v515_v11 = vld [vmem:[%s2875_s27 + $0x2b0] sm:$0xff] }
  0x59   : > { %v517_v12 = vld [vmem:[%s2875_s27 + $0x2c0] sm:$0xff]  ;;  %514 = vst [vmem:[%s2880_s10 + $0x150] sm:$0xff] %v513_v10  ;;  %516 = vst [vmem:[%s2880_s10 + $0x158] sm:$0xff] %v515_v11  ;;  %v519_v13 = vld [vmem:[%s2875_s27 + $0x2d0] sm:$0xff] }
  0x5a   : > { %518 = vst [vmem:[%s2880_s10 + $0x160] sm:$0xff] %v517_v12  ;;  %v521_v14 = vld [vmem:[%s2875_s27 + $0x2e0] sm:$0xff]  ;;  %v523_v15 = vld [vmem:[%s2875_s27 + $0x2f0] sm:$0xff]  ;;  %520 = vst [vmem:[%s2880_s10 + $0x168] sm:$0xff] %v519_v13 }
  0x5b   : > { %522 = vst [vmem:[%s2880_s10 + $0x170] sm:$0xff] %v521_v14  ;;  %524 = vst [vmem:[%s2880_s10 + $0x178] sm:$0xff] %v523_v15  ;;  %v525_v16 = vld [vmem:[%s2875_s27 + $0x300] sm:$0xff]  ;;  %v527_v17 = vld [vmem:[%s2875_s27 + $0x310] sm:$0xff] }
  0x5c   : > { %v529_v18 = vld [vmem:[%s2875_s27 + $0x320] sm:$0xff]  ;;  %526 = vst [vmem:[%s2880_s10 + $0x180] sm:$0xff] %v525_v16  ;;  %528 = vst [vmem:[%s2880_s10 + $0x188] sm:$0xff] %v527_v17  ;;  %v531_v19 = vld [vmem:[%s2875_s27 + $0x330] sm:$0xff] }
  0x5d   : > { %530 = vst [vmem:[%s2880_s10 + $0x190] sm:$0xff] %v529_v18  ;;  %v533_v20 = vld [vmem:[%s2875_s27 + $0x340] sm:$0xff]  ;;  %v535_v21 = vld [vmem:[%s2875_s27 + $0x350] sm:$0xff]  ;;  %532 = vst [vmem:[%s2880_s10 + $0x198] sm:$0xff] %v531_v19 }
  0x5e   : > { %534 = vst [vmem:[%s2880_s10 + $0x1a0] sm:$0xff] %v533_v20  ;;  %536 = vst [vmem:[%s2880_s10 + $0x1a8] sm:$0xff] %v535_v21  ;;  %v537_v22 = vld [vmem:[%s2875_s27 + $0x360] sm:$0xff]  ;;  %v539_v23 = vld [vmem:[%s2875_s27 + $0x370] sm:$0xff] }
  0x5f   : > { %v541_v24 = vld [vmem:[%s2875_s27 + $0x380] sm:$0xff]  ;;  %538 = vst [vmem:[%s2880_s10 + $0x1b0] sm:$0xff] %v537_v22  ;;  %540 = vst [vmem:[%s2880_s10 + $0x1b8] sm:$0xff] %v539_v23  ;;  %v543_v25 = vld [vmem:[%s2875_s27 + $0x390] sm:$0xff] }
  0x60   : > { %542 = vst [vmem:[%s2880_s10 + $0x1c0] sm:$0xff] %v541_v24  ;;  %v545_v26 = vld [vmem:[%s2875_s27 + $0x3a0] sm:$0xff]  ;;  %v547_v27 = vld [vmem:[%s2875_s27 + $0x3b0] sm:$0xff]  ;;  %544 = vst [vmem:[%s2880_s10 + $0x1c8] sm:$0xff] %v543_v25 }
  0x61   : > { %546 = vst [vmem:[%s2880_s10 + $0x1d0] sm:$0xff] %v545_v26  ;;  %548 = vst [vmem:[%s2880_s10 + $0x1d8] sm:$0xff] %v547_v27  ;;  %v549_v28 = vld [vmem:[%s2875_s27 + $0x3c0] sm:$0xff]  ;;  %v551_v29 = vld [vmem:[%s2875_s27 + $0x3d0] sm:$0xff] }
  0x62   : > { %v553_v30 = vld [vmem:[%s2875_s27 + $0x3e0] sm:$0xff]  ;;  %550 = vst [vmem:[%s2880_s10 + $0x1e0] sm:$0xff] %v549_v28  ;;  %552 = vst [vmem:[%s2880_s10 + $0x1e8] sm:$0xff] %v551_v29  ;;  %v555_v31 = vld [vmem:[%s2875_s27 + $0x3f0] sm:$0xff] }
  0x63   : > { %554 = vst [vmem:[%s2880_s10 + $0x1f0] sm:$0xff] %v553_v30  ;;  %556 = vst [vmem:[%s2880_s10 + $0x1f8] sm:$0xff] %v555_v31 }
  0x64 PF: > { %p2230_p0 = scmp.ge.s32.totalorder %s2665_s25, 1  ;;  %p577_p1 = scmp.lt.s32.totalorder %s2665_s25, 17 }
  0x66   : > { %p578_p2 = pnand %p2230_p0, %p577_p1 }
  0x67   : > { %s584_s0 = sand.u32 (!%p578_p2), 1, %s2641_s19   ;;  %s591_s28 = sand.u32 (!%p578_p2), 1, %s2633_s17  }
  0x68   : > { %581 = sbr.rel (%p578_p2) target bundleno = 600 (0x258), region = 89  ;;  %s2231_s11 = sshll.u32 (!%p578_p2), %s584_s0, 8 }
  0x69   : > { %s2232_s26 = sshll.u32 (!%p578_p2), %s591_s28, 9  ;;  %s624_s5 = sand.u32 (!%p578_p2), 1, %s2625_s15  }
  0x6a   : > { %s2234_s29 = sshll.u32 (!%p578_p2), %s2653_s22, 1  ;;  %s2233_s27 = sshll.u32 (!%p578_p2), %s624_s5, 8 }
  0x6b   : > { %p631_p3 = scmp.lt.s32.totalorder (!%p578_p2), %s2234_s29, 3  ;;  %s3023_s19 = scalar_lea.vmem (!%p578_p2), [#allocation2], %s2231_s11 }
  0x6c   : > { %s3025_s17 = scalar_lea.vmem (!%p578_p2), [#allocation3], %s2232_s26  ;;  %s3027_s15 = scalar_lea.vmem (!%p578_p2), [#allocation4], %s2233_s27 }
  0x6d   : > { %s3865_s29 = smov (!%p631_p3, %s2234_s29), 3  ;;  %p2236_p4 = scmp.ne.s32.totalorder %s2649_s21, 0 }
  0x6e   : > { %s633_s6 = scalar_lea.vmem %s3821_s2, %s3865_s29  ;;  %s638_s1 = scalar_lea.vmem %s3822_s3, %s3865_s29 }
  0x6f   : > { %644 = sbr.rel (%p2236_p4) target bundleno = 133 (0x85), region = 101 }
  0x74   : > { %v2667_v32 = vmov 0.0  }
  0x75   : > { %645 = vst [vmem:[%s3027_s15] sm:$0xff] %v2667_v32  ;;  %646 = vst [vmem:[%s3027_s15 + $0x8] sm:$0xff] %v2667_v32 }
  0x76   : > { %647 = vst [vmem:[%s3027_s15 + $0x10] sm:$0xff] %v2667_v32  ;;  %648 = vst [vmem:[%s3027_s15 + $0x18] sm:$0xff] %v2667_v32 }
  0x77   : > { %649 = vst [vmem:[%s3027_s15 + $0x20] sm:$0xff] %v2667_v32  ;;  %650 = vst [vmem:[%s3027_s15 + $0x28] sm:$0xff] %v2667_v32 }
  0x78   : > { %651 = vst [vmem:[%s3027_s15 + $0x30] sm:$0xff] %v2667_v32  ;;  %652 = vst [vmem:[%s3027_s15 + $0x38] sm:$0xff] %v2667_v32 }
  0x79   : > { %653 = vst [vmem:[%s3027_s15 + $0x40] sm:$0xff] %v2667_v32  ;;  %654 = vst [vmem:[%s3027_s15 + $0x48] sm:$0xff] %v2667_v32 }
  0x7a   : > { %655 = vst [vmem:[%s3027_s15 + $0x50] sm:$0xff] %v2667_v32  ;;  %656 = vst [vmem:[%s3027_s15 + $0x58] sm:$0xff] %v2667_v32 }
  0x7b   : > { %657 = vst [vmem:[%s3027_s15 + $0x60] sm:$0xff] %v2667_v32  ;;  %658 = vst [vmem:[%s3027_s15 + $0x68] sm:$0xff] %v2667_v32 }
  0x7c   : > { %659 = vst [vmem:[%s3027_s15 + $0x70] sm:$0xff] %v2667_v32  ;;  %660 = vst [vmem:[%s3027_s15 + $0x78] sm:$0xff] %v2667_v32 }
  0x7d   : > { %661 = vst [vmem:[%s3027_s15 + $0x80] sm:$0xff] %v2667_v32  ;;  %662 = vst [vmem:[%s3027_s15 + $0x88] sm:$0xff] %v2667_v32 }
  0x7e   : > { %663 = vst [vmem:[%s3027_s15 + $0x90] sm:$0xff] %v2667_v32  ;;  %664 = vst [vmem:[%s3027_s15 + $0x98] sm:$0xff] %v2667_v32 }
  0x7f   : > { %665 = vst [vmem:[%s3027_s15 + $0xa0] sm:$0xff] %v2667_v32  ;;  %666 = vst [vmem:[%s3027_s15 + $0xa8] sm:$0xff] %v2667_v32 }
  0x80   : > { %667 = vst [vmem:[%s3027_s15 + $0xb0] sm:$0xff] %v2667_v32  ;;  %668 = vst [vmem:[%s3027_s15 + $0xb8] sm:$0xff] %v2667_v32 }
  0x81   : > { %669 = vst [vmem:[%s3027_s15 + $0xc0] sm:$0xff] %v2667_v32  ;;  %670 = vst [vmem:[%s3027_s15 + $0xc8] sm:$0xff] %v2667_v32 }
  0x82   : > { %671 = vst [vmem:[%s3027_s15 + $0xd0] sm:$0xff] %v2667_v32  ;;  %672 = vst [vmem:[%s3027_s15 + $0xd8] sm:$0xff] %v2667_v32 }
  0x83   : > { %673 = vst [vmem:[%s3027_s15 + $0xe0] sm:$0xff] %v2667_v32  ;;  %674 = vst [vmem:[%s3027_s15 + $0xe8] sm:$0xff] %v2667_v32 }
  0x84   : > { %675 = vst [vmem:[%s3027_s15 + $0xf0] sm:$0xff] %v2667_v32  ;;  %676 = vst [vmem:[%s3027_s15 + $0xf8] sm:$0xff] %v2667_v32 }
  0x85 PF: > { %v2431_v33 = vld [vmem:[%s3025_s17 + $0x74] ss:$8 sps:$4 sm:$0xff]   ;;  %v2435_v35 = vld [vmem:[%s3025_s17 + $0x70] ss:$8 sps:$4 sm:$0xff]   ;;  %v2437_v37 = vld [vmem:[%s3025_s17 + $0x64] ss:$8 sps:$4 sm:$0xff]  }
  0x86   : > { %v2433_v34 = vld [vmem:[%s3025_s17 + $0x174] ss:$8 sps:$4 sm:$0xff]   ;;  %1285 = vmatprep.subr.bf16.mxu0 %v2431_v33  ;;  %v2436_v36 = vld [vmem:[%s3025_s17 + $0x170] ss:$8 sps:$4 sm:$0xff]   ;;  %v2439_v38 = vld [vmem:[%s3025_s17 + $0x164] ss:$8 sps:$4 sm:$0xff]  }
  0x87   : > { %1398 = vmatprep.subr.bf16.mxu1 %v2433_v34  ;;  %1286 = vmatpush1.bf16.msra.mxu0 %v2435_v35  ;;  %v2441_v39 = vld [vmem:[%s3025_s17 + $0x60] ss:$8 sps:$4 sm:$0xff]   ;;  %v2443_v41 = vld [vmem:[%s3025_s17 + $0x54] ss:$8 sps:$4 sm:$0xff]   ;;  %v2447_v43 = vld [vmem:[%s3025_s17 + $0x50] ss:$8 sps:$4 sm:$0xff]  }
  0x88   : > { %1399 = vmatpush1.bf16.msra.mxu1 %v2436_v36  ;;  %1287 = vmatprep.subr.bf16.mxu0 %v2437_v37  ;;  %v2442_v40 = vld [vmem:[%s3025_s17 + $0x160] ss:$8 sps:$4 sm:$0xff]   ;;  %v2445_v42 = vld [vmem:[%s3025_s17 + $0x154] ss:$8 sps:$4 sm:$0xff]   ;;  %v2448_v44 = vld [vmem:[%s3025_s17 + $0x150] ss:$8 sps:$4 sm:$0xff]  }
  0x89   : > { %1400 = vmatprep.subr.bf16.mxu1 %v2439_v38  ;;  %v2449_v45 = vld [vmem:[%s3025_s17 + $0x44] ss:$8 sps:$4 sm:$0xff]   ;;  %v2453_v47 = vld [vmem:[%s3025_s17 + $0x40] ss:$8 sps:$4 sm:$0xff]   ;;  %v2455_v49 = vld [vmem:[%s3025_s17 + $0x34] ss:$8 sps:$4 sm:$0xff]  }
  0x8a   : > { %v2451_v46 = vld [vmem:[%s3025_s17 + $0x144] ss:$8 sps:$4 sm:$0xff]   ;;  %v2454_v48 = vld [vmem:[%s3025_s17 + $0x140] ss:$8 sps:$4 sm:$0xff]   ;;  %v2457_v50 = vld [vmem:[%s3025_s17 + $0x134] ss:$8 sps:$4 sm:$0xff]  }
  0x8b   : > { %1288 = vmatpush1.bf16.msra.mxu0 %v2441_v39  ;;  %v2459_v51 = vld [vmem:[%s3025_s17 + $0x30] ss:$8 sps:$4 sm:$0xff]   ;;  %v2461_v53 = vld [vmem:[%s3025_s17 + $0x24] ss:$8 sps:$4 sm:$0xff]   ;;  %v2465_v55 = vld [vmem:[%s3025_s17 + $0x20] ss:$8 sps:$4 sm:$0xff]  }
  0x8c   : > { %1401 = vmatpush1.bf16.msra.mxu1 %v2442_v40  ;;  %1289 = vmatprep.subr.bf16.mxu0 %v2443_v41  ;;  %v2460_v52 = vld [vmem:[%s3025_s17 + $0x130] ss:$8 sps:$4 sm:$0xff]   ;;  %v2463_v54 = vld [vmem:[%s3025_s17 + $0x124] ss:$8 sps:$4 sm:$0xff]   ;;  %v2466_v56 = vld [vmem:[%s3025_s17 + $0x120] ss:$8 sps:$4 sm:$0xff]  }
  0x8d   : > { %1402 = vmatprep.subr.bf16.mxu1 %v2445_v42  ;;  %v2467_v57 = vld [vmem:[%s3025_s17 + $0x14] ss:$8 sps:$4 sm:$0xff]   ;;  %v2471_v59 = vld [vmem:[%s3025_s17 + $0x10] ss:$8 sps:$4 sm:$0xff]   ;;  %v2473_v61 = vld [vmem:[%s3025_s17 + $0x4] ss:$8 sps:$4 sm:$0xff]  }
  0x8e   : > { %v2469_v58 = vld [vmem:[%s3025_s17 + $0x114] ss:$8 sps:$4 sm:$0xff]   ;;  %v2472_v60 = vld [vmem:[%s3025_s17 + $0x110] ss:$8 sps:$4 sm:$0xff]   ;;  %v2475_v62 = vld [vmem:[%s3025_s17 + $0x104] ss:$8 sps:$4 sm:$0xff]  }
  0x8f   : > { %1290 = vmatpush1.bf16.msra.mxu0 %v2447_v43  ;;  %v2477_v63 = vld [vmem:[%s3025_s17] ss:$8 sps:$4 sm:$0xff]   ;;  %v2479_v1 = vld [vmem:[%s3025_s17 + $0xf4] ss:$8 sps:$4 sm:$0xff]   ;;  %v2483_v3 = vld [vmem:[%s3025_s17 + $0xf0] ss:$8 sps:$4 sm:$0xff]  }
  0x90   : > { %1403 = vmatpush1.bf16.msra.mxu1 %v2448_v44  ;;  %1291 = vmatprep.subr.bf16.mxu0 %v2449_v45  ;;  %v2478_v0 = vld [vmem:[%s3025_s17 + $0x100] ss:$8 sps:$4 sm:$0xff]   ;;  %v2481_v2 = vld [vmem:[%s3025_s17 + $0x1f4] ss:$8 sps:$4 sm:$0xff]   ;;  %v2484_v4 = vld [vmem:[%s3025_s17 + $0x1f0] ss:$8 sps:$4 sm:$0xff]  }
  0x91   : > { %1404 = vmatprep.subr.bf16.mxu1 %v2451_v46  ;;  %v2485_v5 = vld [vmem:[%s3025_s17 + $0xe4] ss:$8 sps:$4 sm:$0xff]   ;;  %v2489_v7 = vld [vmem:[%s3025_s17 + $0xe0] ss:$8 sps:$4 sm:$0xff]   ;;  %v2491_v9 = vld [vmem:[%s3025_s17 + $0xd4] ss:$8 sps:$4 sm:$0xff]  }
  0x92   : > { %v2487_v6 = vld [vmem:[%s3025_s17 + $0x1e4] ss:$8 sps:$4 sm:$0xff]   ;;  %v2490_v8 = vld [vmem:[%s3025_s17 + $0x1e0] ss:$8 sps:$4 sm:$0xff]   ;;  %v2493_v10 = vld [vmem:[%s3025_s17 + $0x1d4] ss:$8 sps:$4 sm:$0xff]  }
  0x93   : > { %1292 = vmatpush1.bf16.msra.mxu0 %v2453_v47  ;;  %v2495_v11 = vld [vmem:[%s3025_s17 + $0xd0] ss:$8 sps:$4 sm:$0xff]   ;;  %v2497_v13 = vld [vmem:[%s3025_s17 + $0xc4] ss:$8 sps:$4 sm:$0xff]   ;;  %v2501_v15 = vld [vmem:[%s3025_s17 + $0xc0] ss:$8 sps:$4 sm:$0xff]  }
  0x94   : > { %1405 = vmatpush1.bf16.msra.mxu1 %v2454_v48  ;;  %1293 = vmatprep.subr.bf16.mxu0 %v2455_v49  ;;  %v2496_v12 = vld [vmem:[%s3025_s17 + $0x1d0] ss:$8 sps:$4 sm:$0xff]   ;;  %v2499_v14 = vld [vmem:[%s3025_s17 + $0x1c4] ss:$8 sps:$4 sm:$0xff]   ;;  %v2502_v16 = vld [vmem:[%s3025_s17 + $0x1c0] ss:$8 sps:$4 sm:$0xff]  }
  0x95   : > { %1406 = vmatprep.subr.bf16.mxu1 %v2457_v50  ;;  %v2503_v17 = vld [vmem:[%s3025_s17 + $0xb4] ss:$8 sps:$4 sm:$0xff]   ;;  %v2507_v21 = vld [vmem:[%s3025_s17 + $0xb0] ss:$8 sps:$4 sm:$0xff]   ;;  %v2509_v23 = vld [vmem:[%s3025_s17 + $0xa4] ss:$8 sps:$4 sm:$0xff]  }
  0x96   : > { %v2529_v18 = vld [vmem:[%s3023_s19 + $0x4] ss:$16 sps:$4 sm:$0xff]   ;;  %v2532_v20 = vld [vmem:[%s3023_s19 + $0xc] ss:$16 sps:$4 sm:$0xff]   ;;  %v2508_v22 = vld [vmem:[%s3025_s17 + $0x1b0] ss:$8 sps:$4 sm:$0xff]  }
  0x97   : > { %1294 = vmatpush1.bf16.msra.mxu0 %v2459_v51  ;;  %v2505_v19 = vld [vmem:[%s3025_s17 + $0x1b4] ss:$8 sps:$4 sm:$0xff]   ;;  %1317 = vmatprep.mubr.bf16.mxu0 %v2529_v18  ;;  %v2511_v24 = vld [vmem:[%s3025_s17 + $0x1a4] ss:$8 sps:$4 sm:$0xff]   ;;  %v2513_v25 = vld [vmem:[%s3025_s17 + $0xa0] ss:$8 sps:$4 sm:$0xff]  }
  0x98   : > { %1407 = vmatpush1.bf16.msra.mxu1 %v2460_v52  ;;  %1295 = vmatprep.subr.bf16.mxu0 %v2461_v53  ;;  %v2514_v26 = vld [vmem:[%s3025_s17 + $0x1a0] ss:$8 sps:$4 sm:$0xff]   ;;  %v2515_v27 = vld [vmem:[%s3025_s17 + $0x94] ss:$8 sps:$4 sm:$0xff]   ;;  %v2519_v29 = vld [vmem:[%s3025_s17 + $0x90] ss:$8 sps:$4 sm:$0xff]  }
  0x99   : > { %1408 = vmatprep.subr.bf16.mxu1 %v2463_v54  ;;  %1430 = vmatprep.mubr.bf16.mxu1 %v2532_v20  ;;  %v2517_v28 = vld [vmem:[%s3025_s17 + $0x194] ss:$8 sps:$4 sm:$0xff]   ;;  %v2520_v30 = vld [vmem:[%s3025_s17 + $0x190] ss:$8 sps:$4 sm:$0xff]   ;;  %v2521_v31 = vld [vmem:[%s3025_s17 + $0x84] ss:$8 sps:$4 sm:$0xff]  }
  0x9a   : > { %v2523_v32 = vld [vmem:[%s3025_s17 + $0x184] ss:$8 sps:$4 sm:$0xff]   ;;  %v2525_v33 = vld [vmem:[%s3025_s17 + $0x80] ss:$8 sps:$4 sm:$0xff]   ;;  %p2333_p5 = scmp.ne.s32.totalorder %s2649_s21, 7 }
  0x9b   : > { %1296 = vmatpush1.bf16.msra.mxu0 %v2465_v55  ;;  %v2526_v34 = vld [vmem:[%s3025_s17 + $0x180] ss:$8 sps:$4 sm:$0xff]   ;;  %v2533_v37 = vld [vmem:[%s3023_s19 + $0x24] ss:$16 sps:$4 sm:$0xff]   ;;  %v2535_v38 = vld [vmem:[%s3023_s19 + $0x2c] ss:$16 sps:$4 sm:$0xff]  }
  0x9c   : > { %1409 = vmatpush1.bf16.msra.mxu1 %v2466_v56  ;;  %1297 = vmatprep.subr.bf16.mxu0 %v2467_v57  ;;  %v2527_v35 = vld [vmem:[%s3023_s19] ss:$16 sps:$4 sm:$0xff]   ;;  %v2530_v36 = vld [vmem:[%s3023_s19 + $0x8] ss:$16 sps:$4 sm:$0xff]   ;;  %v2539_v41 = vld [vmem:[%s3023_s19 + $0x44] ss:$16 sps:$4 sm:$0xff]  }
  0x9d   : > { %1410 = vmatprep.subr.bf16.mxu1 %v2469_v58  ;;  %v2537_v39 = vld [vmem:[%s3023_s19 + $0x20] ss:$16 sps:$4 sm:$0xff]   ;;  %v2538_v40 = vld [vmem:[%s3023_s19 + $0x28] ss:$16 sps:$4 sm:$0xff]   ;;  %v2541_v42 = vld [vmem:[%s3023_s19 + $0x4c] ss:$16 sps:$4 sm:$0xff]  }
  0x9e   : > { %v2543_v43 = vld [vmem:[%s3023_s19 + $0x40] ss:$16 sps:$4 sm:$0xff]   ;;  %v2544_v44 = vld [vmem:[%s3023_s19 + $0x48] ss:$16 sps:$4 sm:$0xff]   ;;  %v2545_v45 = vld [vmem:[%s3023_s19 + $0x64] ss:$16 sps:$4 sm:$0xff]  }
  0x9f   : > { %1298 = vmatpush1.bf16.msra.mxu0 %v2471_v59  ;;  %v2547_v46 = vld [vmem:[%s3023_s19 + $0x6c] ss:$16 sps:$4 sm:$0xff]   ;;  %v2549_v47 = vld [vmem:[%s3023_s19 + $0x60] ss:$16 sps:$4 sm:$0xff]   ;;  %v2550_v48 = vld [vmem:[%s3023_s19 + $0x68] ss:$16 sps:$4 sm:$0xff]  }
  0xa0   : > { %1411 = vmatpush1.bf16.msra.mxu1 %v2472_v60  ;;  %1299 = vmatprep.subr.bf16.mxu0 %v2473_v61  ;;  %v2551_v49 = vld [vmem:[%s3023_s19 + $0x84] ss:$16 sps:$4 sm:$0xff]   ;;  %v2553_v50 = vld [vmem:[%s3023_s19 + $0x8c] ss:$16 sps:$4 sm:$0xff]   ;;  %v2555_v51 = vld [vmem:[%s3023_s19 + $0x80] ss:$16 sps:$4 sm:$0xff]  }
  0xa1   : > { %1412 = vmatprep.subr.bf16.mxu1 %v2475_v62  ;;  %v2556_v52 = vld [vmem:[%s3023_s19 + $0x88] ss:$16 sps:$4 sm:$0xff]   ;;  %v2557_v53 = vld [vmem:[%s3023_s19 + $0xa4] ss:$16 sps:$4 sm:$0xff]   ;;  %v2559_v54 = vld [vmem:[%s3023_s19 + $0xac] ss:$16 sps:$4 sm:$0xff]  }
  0xa2   : > { %v2561_v55 = vld [vmem:[%s3023_s19 + $0xa0] ss:$16 sps:$4 sm:$0xff]   ;;  %v2562_v56 = vld [vmem:[%s3023_s19 + $0xa8] ss:$16 sps:$4 sm:$0xff]   ;;  %v2563_v57 = vld [vmem:[%s3023_s19 + $0xc4] ss:$16 sps:$4 sm:$0xff]  }
  0xa3   : > { %1300 = vmatpush1.bf16.msra.mxu0 %v2477_v63  ;;  %v2565_v58 = vld [vmem:[%s3023_s19 + $0xcc] ss:$16 sps:$4 sm:$0xff]   ;;  %v2567_v59 = vld [vmem:[%s3023_s19 + $0xc0] ss:$16 sps:$4 sm:$0xff]   ;;  %v2568_v60 = vld [vmem:[%s3023_s19 + $0xc8] ss:$16 sps:$4 sm:$0xff]  }
  0xa4   : > { %1413 = vmatpush1.bf16.msra.mxu1 %v2478_v0  ;;  %1301 = vmatprep.subr.bf16.mxu0 %v2479_v1  ;;  %v2569_v61 = vld [vmem:[%s3023_s19 + $0xe4] ss:$16 sps:$4 sm:$0xff]   ;;  %v2571_v62 = vld [vmem:[%s3023_s19 + $0xec] ss:$16 sps:$4 sm:$0xff]   ;;  %v2573_v63 = vld [vmem:[%s3023_s19 + $0xe0] ss:$16 sps:$4 sm:$0xff]  }
  0xa5   : > { %1414 = vmatprep.subr.bf16.mxu1 %v2481_v2  ;;  %v2574_v0 = vld [vmem:[%s3023_s19 + $0xe8] ss:$16 sps:$4 sm:$0xff]   ;;  %v677_v2 = vld [vmem:[%s3027_s15] sm:$0xff] }
  0xa7   : > { %1302 = vmatpush2.bf16.msra.mxu0 %v2483_v3 }
  0xa8   : > { %1415 = vmatpush2.bf16.msra.mxu1 %v2484_v4  ;;  %1303 = vmatprep.subr.bf16.mxu0 %v2485_v5 }
  0xa9   : > { %1416 = vmatprep.subr.bf16.mxu1 %v2487_v6  ;;  %v678_v6 = vld [vmem:[%s3027_s15 + $0x8] sm:$0xff] }
  0xab   : > { %1304 = vmatpush2.bf16.msra.mxu0 %v2489_v7 }
  0xac   : > { %1417 = vmatpush2.bf16.msra.mxu1 %v2490_v8  ;;  %1305 = vmatprep.subr.bf16.mxu0 %v2491_v9 }
  0xad   : > { %1418 = vmatprep.subr.bf16.mxu1 %v2493_v10 }
  0xaf   : > { %1306 = vmatpush2.bf16.msra.mxu0 %v2495_v11  ;;  %v679_v11 = vld [vmem:[%s3027_s15 + $0x10] sm:$0xff] }
  0xb0   : > { %1419 = vmatpush2.bf16.msra.mxu1 %v2496_v12  ;;  %1307 = vmatprep.subr.bf16.mxu0 %v2497_v13 }
  0xb1   : > { %1420 = vmatprep.subr.bf16.mxu1 %v2499_v14 }
  0xb3   : > { %1308 = vmatpush2.bf16.msra.mxu0 %v2501_v15 }
  0xb4   : > { %1421 = vmatpush2.bf16.msra.mxu1 %v2502_v16  ;;  %1309 = vmatprep.subr.bf16.mxu0 %v2503_v17  ;;  %v680_v16 = vld [vmem:[%s3027_s15 + $0x18] sm:$0xff] }
  0xb5   : > { %1422 = vmatprep.subr.bf16.mxu1 %v2505_v19 }
  0xb7   : > { %1310 = vmatpush2.bf16.msra.mxu0 %v2507_v21  ;;  %v681_v21 = vld [vmem:[%s3027_s15 + $0x20] sm:$0xff] }
  0xb8   : > { %1423 = vmatpush2.bf16.msra.mxu1 %v2508_v22  ;;  %1311 = vmatprep.subr.bf16.mxu0 %v2509_v23 }
  0xb9   : > { %1424 = vmatprep.subr.bf16.mxu1 %v2511_v24 }
  0xbb   : > { %1312 = vmatpush2.bf16.msra.mxu0 %v2513_v25 }
  0xbc   : > { %1425 = vmatpush2.bf16.msra.mxu1 %v2514_v26  ;;  %1313 = vmatprep.subr.bf16.mxu0 %v2515_v27  ;;  %v682_v26 = vld [vmem:[%s3027_s15 + $0x28] sm:$0xff] }
  0xbd   : > { %1426 = vmatprep.subr.bf16.mxu1 %v2517_v28 }
  0xbf   : > { %1314 = vmatpush2.bf16.msra.mxu0 %v2519_v29 }
  0xc0   : > { %1427 = vmatpush2.bf16.msra.mxu1 %v2520_v30  ;;  %1315 = vmatprep.subr.bf16.mxu0 %v2521_v31  ;;  %v683_v31 = vld [vmem:[%s3027_s15 + $0x30] sm:$0xff] }
  0xc1   : > { %1428 = vmatprep.subr.bf16.mxu1 %v2523_v32 }
  0xc3   : > { %1316 = vmatpush2.bf16.msra.mxu0 %v2525_v33 }
  0xc4   : > { %1429 = vmatpush2.bf16.msra.mxu1 %v2526_v34 }
  0xc6   : > { %1318 = vmatmul.mubr.bf16.vlgmr.msra.gmra.mxu0 %v2527_v35 }
  0xc7   : > { %1431 = vmatmul.mubr.bf16.vlgmr.msra.gmra.mxu1 %v2530_v36  ;;  %1327 = vmatprep.mubr.bf16.mxu0 %v2533_v37  ;;  %v684_v36 = vld [vmem:[%s3027_s15 + $0x38] sm:$0xff] }
  0xc8   : > { %1440 = vmatprep.mubr.bf16.mxu1 %v2535_v38 }
  0xce   : > { %1328 = vmatmul.mubr.bf16.gmra.mxu0 %v2537_v39 }
  0xcf   : > { %1441 = vmatmul.mubr.bf16.gmra.mxu1 %v2538_v40  ;;  %1337 = vmatprep.mubr.bf16.mxu0 %v2539_v41  ;;  %v685_v41 = vld [vmem:[%s3027_s15 + $0x40] sm:$0xff] }
  0xd0   : > { %1450 = vmatprep.mubr.bf16.mxu1 %v2541_v42 }
  0xd6   : > { %1338 = vmatmul.mubr.bf16.gmra.mxu0 %v2543_v43 }
  0xd7   : > { %1451 = vmatmul.mubr.bf16.gmra.mxu1 %v2544_v44  ;;  %1347 = vmatprep.mubr.bf16.mxu0 %v2545_v45 }
  0xd8   : > { %1460 = vmatprep.mubr.bf16.mxu1 %v2547_v46  ;;  %v686_v46 = vld [vmem:[%s3027_s15 + $0x48] sm:$0xff] }
  0xde   : > { %1348 = vmatmul.mubr.bf16.gmra.mxu0 %v2549_v47 }
  0xdf   : > { %1461 = vmatmul.mubr.bf16.gmra.mxu1 %v2550_v48  ;;  %1357 = vmatprep.mubr.bf16.mxu0 %v2551_v49 }
  0xe0   : > { %1470 = vmatprep.mubr.bf16.mxu1 %v2553_v50 }
  0xe6   : > { %1358 = vmatmul.mubr.bf16.gmra.mxu0 %v2555_v51  ;;  %v687_v51 = vld [vmem:[%s3027_s15 + $0x50] sm:$0xff] }
  0xe7   : > { %1471 = vmatmul.mubr.bf16.gmra.mxu1 %v2556_v52  ;;  %1367 = vmatprep.mubr.bf16.mxu0 %v2557_v53 }
  0xe8   : > { %1480 = vmatprep.mubr.bf16.mxu1 %v2559_v54 }
  0xee   : > { %1368 = vmatmul.mubr.bf16.gmra.mxu0 %v2561_v55 }
  0xef   : > { %1481 = vmatmul.mubr.bf16.gmra.mxu1 %v2562_v56  ;;  %1377 = vmatprep.mubr.bf16.mxu0 %v2563_v57  ;;  %v688_v56 = vld [vmem:[%s3027_s15 + $0x58] sm:$0xff] }
  0xf0   : > { %1490 = vmatprep.mubr.bf16.mxu1 %v2565_v58 }
  0xf6   : > { %1378 = vmatmul.mubr.bf16.gmra.mxu0 %v2567_v59 }
  0xf7   : > { %1491 = vmatmul.mubr.bf16.gmra.mxu1 %v2568_v60  ;;  %1387 = vmatprep.mubr.bf16.mxu0 %v2569_v61  ;;  %v689_v61 = vld [vmem:[%s3027_s15 + $0x60] sm:$0xff] }
  0xf8   : > { %1500 = vmatprep.mubr.bf16.mxu1 %v2571_v62 }
  0xfe   : > { %1388 = vmatmul.mubr.bf16.gmra.mxu0 %v2573_v63 }
  0xff   : > { %1501 = vmatmul.mubr.bf16.gmra.mxu1 %v2574_v0 }
 0x186   : > { %v1319_v1 = vpop.f32.mrf.mxu0 }
 0x187   : > { %v1432_v3 = vpop.f32.mrf.mxu1 }
 0x188   : > { %v1433_v4 = vadd.f32 %v1432_v3, %v1319_v1  ;;  %v1321_v5 = vpop.f32.mrf.mxu0 }
 0x189   : > { %v1434_v7 = vpop.f32.mrf.mxu1 }
 0x18a   : > { %v1511_v8 = vadd.f32 %v1433_v4, %v677_v2  ;;  %v1435_v9 = vadd.f32 %v1434_v7, %v1321_v5  ;;  %v1323_v10 = vpop.f32.mrf.mxu0  ;;  %v690_v2 = vld [vmem:[%s3027_s15 + $0x68] sm:$0xff]  ;;  %v691_v7 = vld [vmem:[%s3027_s15 + $0x70] sm:$0xff] }
 0x18b   : > { %v1436_v12 = vpop.f32.mrf.mxu1 }
 0x18c   : > { %1543 = vst [vmem:[%s3027_s15] sm:$0xff] %v1511_v8  ;;  %v1512_v13 = vadd.f32 %v1435_v9, %v678_v6  ;;  %v1437_v14 = vadd.f32 %v1436_v12, %v1323_v10  ;;  %v1325_v15 = vpop.f32.mrf.mxu0  ;;  %v692_v12 = vld [vmem:[%s3027_s15 + $0x78] sm:$0xff] }
 0x18d   : > { %v1438_v17 = vpop.f32.mrf.mxu1 }
 0x18e   : > { %1544 = vst [vmem:[%s3027_s15 + $0x8] sm:$0xff] %v1512_v13  ;;  %v1513_v18 = vadd.f32 %v1437_v14, %v679_v11  ;;  %v1439_v19 = vadd.f32 %v1438_v17, %v1325_v15  ;;  %v1329_v20 = vpop.f32.mrf.mxu0  ;;  %v693_v17 = vld [vmem:[%s3027_s15 + $0x80] sm:$0xff] }
 0x18f   : > { %v1442_v22 = vpop.f32.mrf.mxu1 }
 0x190   : > { %1545 = vst [vmem:[%s3027_s15 + $0x10] sm:$0xff] %v1513_v18  ;;  %v1514_v23 = vadd.f32 %v1439_v19, %v680_v16  ;;  %v1443_v24 = vadd.f32 %v1442_v22, %v1329_v20  ;;  %v1331_v25 = vpop.f32.mrf.mxu0  ;;  %v694_v22 = vld [vmem:[%s3027_s15 + $0x88] sm:$0xff] }
 0x191   : > { %v1444_v27 = vpop.f32.mrf.mxu1 }
 0x192   : > { %1546 = vst [vmem:[%s3027_s15 + $0x18] sm:$0xff] %v1514_v23  ;;  %v1515_v28 = vadd.f32 %v1443_v24, %v681_v21  ;;  %v1445_v29 = vadd.f32 %v1444_v27, %v1331_v25  ;;  %v1333_v30 = vpop.f32.mrf.mxu0  ;;  %v695_v27 = vld [vmem:[%s3027_s15 + $0x90] sm:$0xff] }
 0x193   : > { %v1446_v32 = vpop.f32.mrf.mxu1 }
 0x194   : > { %1547 = vst [vmem:[%s3027_s15 + $0x20] sm:$0xff] %v1515_v28  ;;  %v1516_v33 = vadd.f32 %v1445_v29, %v682_v26  ;;  %v1447_v34 = vadd.f32 %v1446_v32, %v1333_v30  ;;  %v1335_v35 = vpop.f32.mrf.mxu0  ;;  %v696_v32 = vld [vmem:[%s3027_s15 + $0x98] sm:$0xff] }
 0x195   : > { %v1448_v37 = vpop.f32.mrf.mxu1 }
 0x196   : > { %1548 = vst [vmem:[%s3027_s15 + $0x28] sm:$0xff] %v1516_v33  ;;  %v1517_v38 = vadd.f32 %v1447_v34, %v683_v31  ;;  %v1449_v39 = vadd.f32 %v1448_v37, %v1335_v35  ;;  %v1339_v40 = vpop.f32.mrf.mxu0  ;;  %v697_v37 = vld [vmem:[%s3027_s15 + $0xa0] sm:$0xff] }
 0x197   : > { %v1452_v42 = vpop.f32.mrf.mxu1 }
 0x198   : > { %1549 = vst [vmem:[%s3027_s15 + $0x30] sm:$0xff] %v1517_v38  ;;  %v1518_v43 = vadd.f32 %v1449_v39, %v684_v36  ;;  %v1453_v44 = vadd.f32 %v1452_v42, %v1339_v40  ;;  %v1341_v45 = vpop.f32.mrf.mxu0  ;;  %v698_v42 = vld [vmem:[%s3027_s15 + $0xa8] sm:$0xff] }
 0x199   : > { %v1454_v47 = vpop.f32.mrf.mxu1 }
 0x19a   : > { %1550 = vst [vmem:[%s3027_s15 + $0x38] sm:$0xff] %v1518_v43  ;;  %v1519_v48 = vadd.f32 %v1453_v44, %v685_v41  ;;  %v1455_v49 = vadd.f32 %v1454_v47, %v1341_v45  ;;  %v1343_v50 = vpop.f32.mrf.mxu0  ;;  %v699_v47 = vld [vmem:[%s3027_s15 + $0xb0] sm:$0xff] }
 0x19b   : > { %v1456_v52 = vpop.f32.mrf.mxu1 }
 0x19c   : > { %1551 = vst [vmem:[%s3027_s15 + $0x40] sm:$0xff] %v1519_v48  ;;  %v1520_v53 = vadd.f32 %v1455_v49, %v686_v46  ;;  %v1457_v54 = vadd.f32 %v1456_v52, %v1343_v50  ;;  %v1345_v55 = vpop.f32.mrf.mxu0  ;;  %v700_v52 = vld [vmem:[%s3027_s15 + $0xb8] sm:$0xff] }
 0x19d   : > { %v1458_v57 = vpop.f32.mrf.mxu1 }
 0x19e   : > { %1552 = vst [vmem:[%s3027_s15 + $0x48] sm:$0xff] %v1520_v53  ;;  %v1521_v58 = vadd.f32 %v1457_v54, %v687_v51  ;;  %v1459_v59 = vadd.f32 %v1458_v57, %v1345_v55  ;;  %v1349_v60 = vpop.f32.mrf.mxu0  ;;  %v701_v57 = vld [vmem:[%s3027_s15 + $0xc0] sm:$0xff] }
 0x19f   : > { %v1462_v62 = vpop.f32.mrf.mxu1 }
 0x1a0   : > { %1553 = vst [vmem:[%s3027_s15 + $0x50] sm:$0xff] %v1521_v58  ;;  %v1522_v63 = vadd.f32 %v1459_v59, %v688_v56  ;;  %v1463_v0 = vadd.f32 %v1462_v62, %v1349_v60  ;;  %v1351_v1 = vpop.f32.mrf.mxu0  ;;  %v702_v62 = vld [vmem:[%s3027_s15 + $0xc8] sm:$0xff] }
 0x1a1   : > { %v1464_v3 = vpop.f32.mrf.mxu1 }
 0x1a2   : > { %1554 = vst [vmem:[%s3027_s15 + $0x58] sm:$0xff] %v1522_v63  ;;  %v1523_v4 = vadd.f32 %v1463_v0, %v689_v61  ;;  %v1465_v5 = vadd.f32 %v1464_v3, %v1351_v1  ;;  %v1353_v6 = vpop.f32.mrf.mxu0  ;;  %v703_v3 = vld [vmem:[%s3027_s15 + $0xd0] sm:$0xff] }
 0x1a3   : > { %v1466_v8 = vpop.f32.mrf.mxu1 }
 0x1a4   : > { %1555 = vst [vmem:[%s3027_s15 + $0x60] sm:$0xff] %v1523_v4  ;;  %v1524_v9 = vadd.f32 %v1465_v5, %v690_v2  ;;  %v1467_v10 = vadd.f32 %v1466_v8, %v1353_v6  ;;  %v1355_v11 = vpop.f32.mrf.mxu0  ;;  %v704_v8 = vld [vmem:[%s3027_s15 + $0xd8] sm:$0xff] }
 0x1a5   : > { %v1468_v13 = vpop.f32.mrf.mxu1 }
 0x1a6   : > { %1556 = vst [vmem:[%s3027_s15 + $0x68] sm:$0xff] %v1524_v9  ;;  %v1525_v14 = vadd.f32 %v1467_v10, %v691_v7  ;;  %v1469_v15 = vadd.f32 %v1468_v13, %v1355_v11  ;;  %v1359_v16 = vpop.f32.mrf.mxu0  ;;  %v705_v13 = vld [vmem:[%s3027_s15 + $0xe0] sm:$0xff] }
 0x1a7   : > { %v1472_v18 = vpop.f32.mrf.mxu1 }
 0x1a8   : > { %1557 = vst [vmem:[%s3027_s15 + $0x70] sm:$0xff] %v1525_v14  ;;  %v1526_v19 = vadd.f32 %v1469_v15, %v692_v12  ;;  %v1473_v20 = vadd.f32 %v1472_v18, %v1359_v16  ;;  %v1361_v21 = vpop.f32.mrf.mxu0  ;;  %v706_v18 = vld [vmem:[%s3027_s15 + $0xe8] sm:$0xff] }
 0x1a9   : > { %v1474_v23 = vpop.f32.mrf.mxu1 }
 0x1aa   : > { %1558 = vst [vmem:[%s3027_s15 + $0x78] sm:$0xff] %v1526_v19  ;;  %v1527_v24 = vadd.f32 %v1473_v20, %v693_v17  ;;  %v1475_v25 = vadd.f32 %v1474_v23, %v1361_v21  ;;  %v1363_v26 = vpop.f32.mrf.mxu0  ;;  %v707_v23 = vld [vmem:[%s3027_s15 + $0xf0] sm:$0xff] }
 0x1ab   : > { %v1476_v28 = vpop.f32.mrf.mxu1 }
 0x1ac   : > { %1559 = vst [vmem:[%s3027_s15 + $0x80] sm:$0xff] %v1527_v24  ;;  %v1528_v29 = vadd.f32 %v1475_v25, %v694_v22  ;;  %v1477_v30 = vadd.f32 %v1476_v28, %v1363_v26  ;;  %v1365_v31 = vpop.f32.mrf.mxu0  ;;  %v708_v28 = vld [vmem:[%s3027_s15 + $0xf8] sm:$0xff] }
 0x1ad   : > { %v1478_v33 = vpop.f32.mrf.mxu1 }
 0x1ae   : > { %1560 = vst [vmem:[%s3027_s15 + $0x88] sm:$0xff] %v1528_v29  ;;  %v1529_v34 = vadd.f32 %v1477_v30, %v695_v27  ;;  %v1479_v35 = vadd.f32 %v1478_v33, %v1365_v31  ;;  %v1369_v36 = vpop.f32.mrf.mxu0 }
 0x1af   : > { %v1482_v38 = vpop.f32.mrf.mxu1 }
 0x1b0   : > { %1561 = vst [vmem:[%s3027_s15 + $0x90] sm:$0xff] %v1529_v34  ;;  %v1530_v39 = vadd.f32 %v1479_v35, %v696_v32  ;;  %v1483_v40 = vadd.f32 %v1482_v38, %v1369_v36  ;;  %v1371_v41 = vpop.f32.mrf.mxu0 }
 0x1b1   : > { %v1484_v43 = vpop.f32.mrf.mxu1 }
 0x1b2   : > { %1562 = vst [vmem:[%s3027_s15 + $0x98] sm:$0xff] %v1530_v39  ;;  %v1531_v44 = vadd.f32 %v1483_v40, %v697_v37  ;;  %v1485_v45 = vadd.f32 %v1484_v43, %v1371_v41  ;;  %v1373_v46 = vpop.f32.mrf.mxu0 }
 0x1b3   : > { %v1486_v48 = vpop.f32.mrf.mxu1 }
 0x1b4   : > { %1563 = vst [vmem:[%s3027_s15 + $0xa0] sm:$0xff] %v1531_v44  ;;  %v1532_v49 = vadd.f32 %v1485_v45, %v698_v42  ;;  %v1487_v50 = vadd.f32 %v1486_v48, %v1373_v46  ;;  %v1375_v51 = vpop.f32.mrf.mxu0 }
 0x1b5   : > { %v1488_v53 = vpop.f32.mrf.mxu1 }
 0x1b6   : > { %1564 = vst [vmem:[%s3027_s15 + $0xa8] sm:$0xff] %v1532_v49  ;;  %v1533_v54 = vadd.f32 %v1487_v50, %v699_v47  ;;  %v1489_v55 = vadd.f32 %v1488_v53, %v1375_v51  ;;  %v1379_v56 = vpop.f32.mrf.mxu0 }
 0x1b7   : > { %v1492_v58 = vpop.f32.mrf.mxu1 }
 0x1b8   : > { %1565 = vst [vmem:[%s3027_s15 + $0xb0] sm:$0xff] %v1533_v54  ;;  %v1534_v59 = vadd.f32 %v1489_v55, %v700_v52  ;;  %v1493_v60 = vadd.f32 %v1492_v58, %v1379_v56  ;;  %v1381_v61 = vpop.f32.mrf.mxu0 }
 0x1b9   : > { %v1494_v63 = vpop.f32.mrf.mxu1 }
 0x1ba   : > { %1566 = vst [vmem:[%s3027_s15 + $0xb8] sm:$0xff] %v1534_v59  ;;  %v1535_v0 = vadd.f32 %v1493_v60, %v701_v57  ;;  %v1495_v1 = vadd.f32 %v1494_v63, %v1381_v61  ;;  %v1383_v2 = vpop.f32.mrf.mxu0 }
 0x1bb   : > { %v1496_v4 = vpop.f32.mrf.mxu1 }
 0x1bc   : > { %1567 = vst [vmem:[%s3027_s15 + $0xc0] sm:$0xff] %v1535_v0  ;;  %v1536_v5 = vadd.f32 %v1495_v1, %v702_v62  ;;  %v1497_v6 = vadd.f32 %v1496_v4, %v1383_v2  ;;  %v1385_v7 = vpop.f32.mrf.mxu0 }
 0x1bd   : > { %v1498_v9 = vpop.f32.mrf.mxu1 }
 0x1be   : > { %1568 = vst [vmem:[%s3027_s15 + $0xc8] sm:$0xff] %v1536_v5  ;;  %v1537_v10 = vadd.f32 %v1497_v6, %v703_v3  ;;  %v1499_v11 = vadd.f32 %v1498_v9, %v1385_v7  ;;  %v1389_v12 = vpop.f32.mrf.mxu0 }
 0x1bf   : > { %v1502_v14 = vpop.f32.mrf.mxu1 }
 0x1c0   : > { %1569 = vst [vmem:[%s3027_s15 + $0xd0] sm:$0xff] %v1537_v10  ;;  %v1538_v15 = vadd.f32 %v1499_v11, %v704_v8  ;;  %v1503_v16 = vadd.f32 %v1502_v14, %v1389_v12  ;;  %v1391_v17 = vpop.f32.mrf.mxu0 }
 0x1c1   : > { %v1504_v19 = vpop.f32.mrf.mxu1 }
 0x1c2   : > { %1570 = vst [vmem:[%s3027_s15 + $0xd8] sm:$0xff] %v1538_v15  ;;  %v1539_v20 = vadd.f32 %v1503_v16, %v705_v13  ;;  %v1505_v21 = vadd.f32 %v1504_v19, %v1391_v17  ;;  %v1393_v22 = vpop.f32.mrf.mxu0 }
 0x1c3   : > { %v1506_v24 = vpop.f32.mrf.mxu1 }
 0x1c4   : > { %1571 = vst [vmem:[%s3027_s15 + $0xe0] sm:$0xff] %v1539_v20  ;;  %v1540_v25 = vadd.f32 %v1505_v21, %v706_v18  ;;  %v1507_v26 = vadd.f32 %v1506_v24, %v1393_v22  ;;  %v1395_v27 = vpop.f32.mrf.mxu0 }
 0x1c5   : > { %v1508_v29 = vpop.f32.mrf.mxu1 }
 0x1c6   : > { %1572 = vst [vmem:[%s3027_s15 + $0xe8] sm:$0xff] %v1540_v25  ;;  %v1541_v30 = vadd.f32 %v1507_v26, %v707_v23  ;;  %v1509_v31 = vadd.f32 %v1508_v29, %v1395_v27  ;;  %1578 = sbr.rel (%p2333_p5) target bundleno = 582 (0x246), region = 105 }
 0x1c8   : > { %1573 = vst [vmem:[%s3027_s15 + $0xf0] sm:$0xff] %v1541_v30  ;;  %v1542_v32 = vadd.f32 %v1509_v31, %v708_v28 }
 0x1ca   : > { %1574 = vst [vmem:[%s3027_s15 + $0xf8] sm:$0xff] %v1542_v32 }
 0x1cb   : > { %v3224_v33 = vld [vmem:[%s3027_s15] sm:$0xff]  ;;  %v3227_v34 = vld [vmem:[%s3027_s15 + $0x10] sm:$0xff]  ;;  %v3256_v49 = vld [vmem:[%s3027_s15 + $0x8] sm:$0xff] }
 0x1cc   : > { %v3230_v35 = vld [vmem:[%s3027_s15 + $0x20] sm:$0xff]  ;;  %v3233_v36 = vld [vmem:[%s3027_s15 + $0x30] sm:$0xff]  ;;  %v1611_v37 = vadd.f32 %v3227_v34, %v3224_v33  ;;  %v1656_v38 = vmul.f32 %v3224_v33, %v3224_v33  ;;  %v1658_v39 = vmul.f32 %v3227_v34, %v3227_v34  ;;  %v3259_v50 = vld [vmem:[%s3027_s15 + $0x18] sm:$0xff]  ;;  %v1657_v0 = vmul.f32 %v3256_v49, %v3256_v49 }
 0x1cd   : > { %v1660_v40 = vmul.f32 %v3230_v35, %v3230_v35  ;;  %v3244_v41 = vld [vmem:[%s3027_s15 + $0x40] sm:$0xff]  ;;  %v1662_v43 = vmul.f32 %v3233_v36, %v3233_v36  ;;  %v3250_v45 = vld [vmem:[%s3027_s15 + $0x50] sm:$0xff]  ;;  %v3262_v51 = vld [vmem:[%s3027_s15 + $0x28] sm:$0xff]  ;;  %v1632_v54 = vadd.f32 %v3259_v50, %v3256_v49  ;;  %v1659_v1 = vmul.f32 %v3259_v50, %v3259_v50 }
 0x1ce   : > { %v1612_v42 = vadd.f32 %v1611_v37, %v3230_v35  ;;  %v1688_v44 = vadd.f32 %v1658_v39, %v1656_v38  ;;  %v1664_v47 = vmul.f32 %v3244_v41, %v3244_v41  ;;  %v3265_v52 = vld [vmem:[%s3027_s15 + $0x60] sm:$0xff]  ;;  %v1666_v55 = vmul.f32 %v3250_v45, %v3250_v45  ;;  %v3273_v57 = vld [vmem:[%s3027_s15 + $0x38] sm:$0xff]  ;;  %v3276_v58 = vld [vmem:[%s3027_s15 + $0x70] sm:$0xff] }
 0x1cf   : > { %v1633_v60 = vadd.f32 %v1632_v54, %v3262_v51  ;;  %v1668_v61 = vmul.f32 %v3265_v52, %v3265_v52  ;;  %v3283_v63 = vld [vmem:[%s3027_s15 + $0x48] sm:$0xff]  ;;  %v3290_v2 = vld [vmem:[%s3027_s15 + $0x80] sm:$0xff]  ;;  %v1670_v5 = vmul.f32 %v3276_v58, %v3276_v58  ;;  %v3297_v7 = vld [vmem:[%s3027_s15 + $0x58] sm:$0xff]  ;;  %v1661_v8 = vmul.f32 %v3262_v51, %v3262_v51 }
 0x1d0   : > { %v1613_v46 = vadd.f32 %v1612_v42, %v3233_v36  ;;  %v1689_v48 = vadd.f32 %v1688_v44, %v1660_v40  ;;  %v3302_v9 = vld [vmem:[%s3027_s15 + $0x90] sm:$0xff]  ;;  %v1672_v12 = vmul.f32 %v3290_v2, %v3290_v2  ;;  %v3309_v14 = vld [vmem:[%s3027_s15 + $0x68] sm:$0xff]  ;;  %v1663_v15 = vmul.f32 %v3273_v57, %v3273_v57  ;;  %v3314_v17 = vld [vmem:[%s3027_s15 + $0xa0] sm:$0xff] }
 0x1d1   : > { %v1634_v4 = vadd.f32 %v1633_v60, %v3273_v57  ;;  %v1709_v16 = vadd.f32 %v1659_v1, %v1657_v0  ;;  %v1674_v20 = vmul.f32 %v3302_v9, %v3302_v9  ;;  %v3321_v22 = vld [vmem:[%s3027_s15 + $0x78] sm:$0xff]  ;;  %v1665_v23 = vmul.f32 %v3283_v63, %v3283_v63  ;;  %v3326_v25 = vld [vmem:[%s3027_s15 + $0xb0] sm:$0xff]  ;;  %v3333_v30 = vld [vmem:[%s3027_s15 + $0x88] sm:$0xff] }
 0x1d2   : > { %v1614_v53 = vadd.f32 %v1613_v46, %v3244_v41  ;;  %v1690_v56 = vadd.f32 %v1689_v48, %v1662_v43  ;;  %v1676_v28 = vmul.f32 %v3314_v17, %v3314_v17  ;;  %v1667_v31 = vmul.f32 %v3297_v7, %v3297_v7  ;;  %v3338_v37 = vld [vmem:[%s3027_s15 + $0xc0] sm:$0xff]  ;;  %v3345_v43 = vld [vmem:[%s3027_s15 + $0x98] sm:$0xff] }
 0x1d3   : > { %v1635_v11 = vadd.f32 %v1634_v4, %v3283_v63  ;;  %v1710_v24 = vadd.f32 %v1709_v16, %v1661_v8  ;;  %v1678_v40 = vmul.f32 %v3326_v25, %v3326_v25  ;;  %v1669_v44 = vmul.f32 %v3309_v14, %v3309_v14  ;;  %v3369_v4 = vld [vmem:[%s3027_s15 + $0xb8] sm:$0xff]  ;;  %v3374_v8 = vld [vmem:[%s3027_s15 + $0xf0] sm:$0xff] }
 0x1d4   : > { %v1615_v59 = vadd.f32 %v1614_v53, %v3250_v45  ;;  %v1691_v62 = vadd.f32 %v1690_v56, %v1664_v47  ;;  %v3350_v47 = vld [vmem:[%s3027_s15 + $0xd0] sm:$0xff]  ;;  %v1680_v54 = vmul.f32 %v3338_v37, %v3338_v37  ;;  %v3357_v56 = vld [vmem:[%s3027_s15 + $0xa8] sm:$0xff]  ;;  %v1675_v16 = vmul.f32 %v3345_v43, %v3345_v43 }
 0x1d5   : > { %v1636_v19 = vadd.f32 %v1635_v11, %v3297_v7  ;;  %v1711_v32 = vadd.f32 %v1710_v24, %v1663_v15  ;;  %v1682_v1 = vmul.f32 %v3350_v47, %v3350_v47  ;;  %v3381_v15 = vld [vmem:[%s3027_s15 + $0xc8] sm:$0xff]  ;;  %v3390_v24 = vld [vmem:[%s3027_s15 + $0xd8] sm:$0xff] }
 0x1d6   : > { %v1616_v3 = vadd.f32 %v1615_v59, %v3265_v52  ;;  %v1692_v6 = vadd.f32 %v1691_v62, %v1666_v55  ;;  %v1671_v59 = vmul.f32 %v3321_v22, %v3321_v22 }
 0x1d7   : > { %v1637_v27 = vadd.f32 %v1636_v19, %v3309_v14  ;;  %v1712_v46 = vadd.f32 %v1711_v32, %v1665_v23  ;;  %v3397_v32 = vld [vmem:[%s3027_s15 + $0xe8] sm:$0xff] }
 0x1d8   : > { %v1617_v10 = vadd.f32 %v1616_v3, %v3276_v58  ;;  %v1693_v13 = vadd.f32 %v1692_v6, %v1668_v61  ;;  %v3362_v61 = vld [vmem:[%s3027_s15 + $0xe0] sm:$0xff] }
 0x1d9   : > { %v1638_v39 = vadd.f32 %v1637_v27, %v3321_v22  ;;  %v1713_v60 = vadd.f32 %v1712_v46, %v1667_v31  ;;  %v3403_v46 = vld [vmem:[%s3027_s15 + $0xf8] sm:$0xff] }
 0x1da   : > { %v1618_v18 = vadd.f32 %v1617_v10, %v3290_v2  ;;  %v1694_v21 = vadd.f32 %v1693_v13, %v1670_v5  ;;  %v1673_v5 = vmul.f32 %v3333_v30, %v3333_v30 }
 0x1db   : > { %v1639_v53 = vadd.f32 %v1638_v39, %v3333_v30  ;;  %v1714_v6 = vadd.f32 %v1713_v60, %v1669_v44  ;;  %v1683_v60 = vmul.f32 %v3390_v24, %v3390_v24 }
 0x1dc   : > { %v1619_v26 = vadd.f32 %v1618_v18, %v3302_v9  ;;  %v1695_v29 = vadd.f32 %v1694_v21, %v1672_v12  ;;  %v1684_v12 = vmul.f32 %v3362_v61, %v3362_v61  ;;  %v1686_v21 = vmul.f32 %v3374_v8, %v3374_v8 }
 0x1dd   : > { %v1640_v0 = vadd.f32 %v1639_v53, %v3345_v43  ;;  %v1715_v18 = vadd.f32 %v1714_v6, %v1671_v59 }
 0x1de   : > { %v1620_v38 = vadd.f32 %v1619_v26, %v3314_v17  ;;  %v1696_v42 = vadd.f32 %v1695_v29, %v1674_v20  ;;  %v1677_v26 = vmul.f32 %v3357_v56, %v3357_v56 }
 0x1df   : > { %v1641_v11 = vadd.f32 %v1640_v0, %v3357_v56  ;;  %v1716_v27 = vadd.f32 %v1715_v18, %v1673_v5  ;;  %v1685_v5 = vmul.f32 %v3397_v32, %v3397_v32 }
 0x1e0   : > { %v1621_v48 = vadd.f32 %v1620_v38, %v3326_v25  ;;  %v1697_v55 = vadd.f32 %v1696_v42, %v1676_v28  ;;  %v1679_v38 = vmul.f32 %v3369_v4, %v3369_v4 }
 0x1e1   : > { %v1642_v20 = vadd.f32 %v1641_v11, %v3369_v4  ;;  %v1717_v39 = vadd.f32 %v1716_v27, %v1675_v16 }
 0x1e2   : > { %v1622_v62 = vadd.f32 %v1621_v48, %v3338_v37  ;;  %v1698_v3 = vadd.f32 %v1697_v55, %v1678_v40  ;;  %v1681_v48 = vmul.f32 %v3381_v15, %v3381_v15 }
 0x1e3   : > { %v1643_v29 = vadd.f32 %v1642_v20, %v3381_v15  ;;  %v1718_v53 = vadd.f32 %v1717_v39, %v1677_v26 }
 0x1e4   : > { %v1623_v10 = vadd.f32 %v1622_v62, %v3350_v47  ;;  %v1699_v13 = vadd.f32 %v1698_v3, %v1680_v54 }
 0x1e5   : > { %v1644_v42 = vadd.f32 %v1643_v29, %v3390_v24  ;;  %v1719_v62 = vadd.f32 %v1718_v53, %v1679_v38 }
 0x1e6   : > { %v1624_v19 = vadd.f32 %v1623_v10, %v3362_v61  ;;  %v1700_v23 = vadd.f32 %v1699_v13, %v1682_v1  ;;  %v1687_v13 = vmul.f32 %v3403_v46, %v3403_v46 }
 0x1e7   : > { %v1645_v55 = vadd.f32 %v1644_v42, %v3397_v32  ;;  %v1720_v6 = vadd.f32 %v1719_v62, %v1681_v48  ;;  %v1808_v42 = vlaneseq }
 0x1e8   : > { %v1625_v28 = vadd.f32 %v1624_v19, %v3374_v8  ;;  %v1701_v31 = vadd.f32 %v1700_v23, %v1684_v12 }
 0x1e9   : > { %v1646_v1 = vadd.f32 %v1645_v55, %v3403_v46  ;;  %v1721_v16 = vadd.f32 %v1720_v6, %v1683_v60  ;;  %v1809_v60 = vshrl.u32 %v1808_v42, 7 }
 0x1ea   : > { %v1626_v40 = vrot.slane %v1625_v28, 4  ;;  %v1702_v44 = vadd.f32 %v1701_v31, %v1686_v21 }
 0x1eb   : > { %v1647_v11 = vrot.slane %v1646_v1, 4  ;;  %v1722_v21 = vadd.f32 %v1721_v16, %v1685_v5  ;;  %v1810_v6 = vsub.s32 0, %v1809_v60  ;;  %v1850_v16 = vld [vmem:[%s638_s1] sm:$0x3] }
 0x1ec   : > { %v1627_v54 = vadd.f32 %v1626_v40, %v1625_v28  ;;  %v1703_v59 = vrot.slane %v1702_v44, 4 }
 0x1ed   : > { %v1648_v19 = vadd.f32 %v1647_v11, %v1646_v1  ;;  %v1723_v28 = vadd.f32 %v1722_v21, %v1687_v13  ;;  %v1806_v13 = vld [vmem:[%s633_s6] sm:$0x3] }
 0x1ee   : > { %v1628_v0 = vrot.slane %v1627_v54, 2  ;;  %v1704_v3 = vadd.f32 %v1703_v59, %v1702_v44 }
 0x1ef   : > { %v1649_v26 = vrot.slane %v1648_v19, 2  ;;  %v1724_v39 = vrot.slane %v1723_v28, 4 }
 0x1f0   : > { %v1629_v10 = vadd.f32 %v1628_v0, %v1627_v54  ;;  %v1705_v12 = vrot.slane %v1704_v3, 2 }
 0x1f1   : > { %v1650_v31 = vadd.f32 %v1649_v26, %v1648_v19  ;;  %v1725_v53 = vadd.f32 %v1724_v39, %v1723_v28  ;;  %v3433_v19 = vrot.slane %v1806_v13, %v1810_v6 }
 0x1f2   : > { %v1630_v18 = vrot.slane %v1629_v10, 1  ;;  %v1706_v20 = vadd.f32 %v1705_v12, %v1704_v3  ;;  %v1814_v12 = vsub.s32 1, %v1809_v60 }
 0x1f3   : > { %v1651_v44 = vrot.slane %v1650_v31, 1  ;;  %v1726_v59 = vrot.slane %v1725_v53, 2 }
 0x1f4   : > { %v1631_v23 = vadd.f32 %v1630_v18, %v1629_v10  ;;  %v1707_v27 = vrot.slane %v1706_v20, 1 }
 0x1f5   : > { %v1652_v54 = vadd.f32 %v1651_v44, %v1650_v31  ;;  %v1727_v1 = vadd.f32 %v1726_v59, %v1725_v53 }
 0x1f6   : > { %v3415_v29 = vmul.f32 0.0078125, %v1631_v23  ;;  %v1708_v38 = vadd.f32 %v1707_v27, %v1706_v20  ;;  %v3435_v20 = vrot.slane %v1850_v16, %v1810_v6  ;;  %v3437_v23 = vrot.slane %v1806_v13, %v1814_v12 }
 0x1f7   : > { %v3419_v0 = vmul.f32 0.0078125, %v1652_v54  ;;  %v1728_v5 = vrot.slane %v1727_v1, 1  ;;  %v3441_v27 = vrot.slane %v1850_v16, %v1814_v12 }
 0x1f8   : > { %v1732_v40 = vmul.f32 %v3415_v29, %v3415_v29  ;;  %v1730_v48 = vmul.f32 0.0078125, %v1708_v38  ;;  %v1738_v26 = vsub.f32 %v3224_v33, %v3415_v29  ;;  %v1740_v28 = vsub.f32 %v3227_v34, %v3415_v29 }
 0x1f9   : > { %v1729_v10 = vadd.f32 %v1728_v5, %v1727_v1  ;;  %v1733_v11 = vmul.f32 %v3419_v0, %v3419_v0  ;;  %v1742_v31 = vsub.f32 %v3230_v35, %v3415_v29  ;;  %v1744_v39 = vsub.f32 %v3233_v36, %v3415_v29 }
 0x1fa   : > { %v1734_v55 = vsub.f32 %v1730_v48, %v1732_v40  ;;  %v1746_v40 = vsub.f32 %v3244_v41, %v3415_v29  ;;  %v1748_v42 = vsub.f32 %v3250_v45, %v3415_v29  ;;  %v1750_v33 = vsub.f32 %v3265_v52, %v3415_v29 }
 0x1fb   : > { %v1731_v18 = vmul.f32 0.0078125, %v1729_v10  ;;  %v1752_v44 = vsub.f32 %v3276_v58, %v3415_v29  ;;  %v1754_v34 = vsub.f32 %v3290_v2, %v3415_v29  ;;  %v1756_v35 = vsub.f32 %v3302_v9, %v3415_v29 }
 0x1fc   : > { %v1736_v62 = vmax.f32 %v1734_v55, 0.0  ;;  %v1758_v36 = vsub.f32 %v3314_v17, %v3415_v29  ;;  %v1739_v52 = vsub.f32 %v3256_v49, %v3419_v0  ;;  %v1741_v58 = vsub.f32 %v3259_v50, %v3419_v0 }
 0x1fd   : > { %v1735_v21 = vsub.f32 %v1731_v18, %v1733_v11  ;;  %v1743_v53 = vsub.f32 %v3262_v51, %v3419_v0  ;;  %v1745_v55 = vsub.f32 %v3273_v57, %v3419_v0  ;;  %v1747_v59 = vsub.f32 %v3283_v63, %v3419_v0 }
 0x1fe   : > { %v1770_v3 = vadd.f32 1e-05, %v1736_v62  ;;  %v1749_v60 = vsub.f32 %v3297_v7, %v3419_v0  ;;  %v1751_v62 = vsub.f32 %v3309_v14, %v3419_v0  ;;  %v1753_v1 = vsub.f32 %v3321_v22, %v3419_v0 }
 0x1ff   : > { %v1737_v38 = vmax.f32 %v1735_v21, 0.0  ;;  %v1757_v5 = vsub.f32 %v3345_v43, %v3419_v0 }
 0x200   : > { %2575 = vrsqrt.f32 %v1770_v3  ;;  %v1755_v3 = vsub.f32 %v3333_v30, %v3419_v0 }
 0x201   : > { %v1771_v48 = vadd.f32 1e-05, %v1737_v38 }
 0x203   : > { %2577 = vrsqrt.f32 %v1771_v48 }
 0x20d   : > { %v3497_v13 = vpop.eup %2575 }
 0x20e   : > { %v1774_v48 = vmul.f32 %v3497_v13, %v1738_v26  ;;  %v1776_v54 = vmul.f32 %v3497_v13, %v1740_v28  ;;  %v1778_v12 = vmul.f32 %v3497_v13, %v1742_v31  ;;  %v1780_v11 = vmul.f32 %v3497_v13, %v1744_v39 }
 0x20f   : > { %v1782_v45 = vmul.f32 %v3497_v13, %v1746_v40  ;;  %v1784_v16 = vmul.f32 %v3497_v13, %v1748_v42  ;;  %v1786_v18 = vmul.f32 %v3497_v13, %v1750_v33  ;;  %v1788_v10 = vmul.f32 %v3497_v13, %v1752_v44 }
 0x210   : > { %v1818_v21 = vmul.f32 %v3433_v19, %v1774_v48  ;;  %v1820_v38 = vmul.f32 %v3433_v19, %v1776_v54  ;;  %v1822_v26 = vmul.f32 %v3433_v19, %v1778_v12  ;;  %v1824_v28 = vmul.f32 %v3433_v19, %v1780_v11 }
 0x211   : > { %v1826_v31 = vmul.f32 %v3433_v19, %v1782_v45  ;;  %v1828_v39 = vmul.f32 %v3433_v19, %v1784_v16  ;;  %v1830_v40 = vmul.f32 %v3433_v19, %v1786_v18  ;;  %v1832_v42 = vmul.f32 %v3433_v19, %v1788_v10 }
 0x212   : > { %v1862_v33 = vadd.f32 %v3435_v20, %v1818_v21  ;;  %v1864_v44 = vadd.f32 %v3435_v20, %v1820_v38  ;;  %v1866_v48 = vadd.f32 %v3435_v20, %v1822_v26  ;;  %v1868_v54 = vadd.f32 %v3435_v20, %v1824_v28 }
 0x213   : > { %v1870_v12 = vadd.f32 %v3435_v20, %v1826_v31  ;;  %v1872_v11 = vadd.f32 %v3435_v20, %v1828_v39  ;;  %v1874_v45 = vadd.f32 %v3435_v20, %v1830_v40  ;;  %v3531_v16 = vadd.f32 %v3435_v20, %v1832_v42  ;;  %v3533_v39 = vpop.eup %2577 }
 0x214   : > { %vm1894_vm0 = vcmp.gt.f32.partialorder %v1862_v33, 0.0  ;;  %v1926_v10 = vmul.f32 0.2, %v1862_v33  ;;  %vm1896_vm1 = vcmp.gt.f32.partialorder %v1864_v44, 0.0  ;;  %v1928_v18 = vmul.f32 0.2, %v1864_v44 }
 0x215   : > { %vm1898_vm2 = vcmp.gt.f32.partialorder %v1866_v48, 0.0  ;;  %v1930_v21 = vmul.f32 0.2, %v1866_v48  ;;  %vm1900_vm3 = vcmp.gt.f32.partialorder %v1868_v54, 0.0  ;;  %v1932_v38 = vmul.f32 0.2, %v1868_v54 }
 0x216   : > { %v1958_v26 = vsel %vm1894_vm0, %v1862_v33, %v1926_v10  ;;  %v1960_v28 = vsel %vm1896_vm1, %v1864_v44, %v1928_v18  ;;  %vm1902_vm4 = vcmp.gt.f32.partialorder %v1870_v12, 0.0  ;;  %v1934_v31 = vmul.f32 0.2, %v1870_v12 }
 0x217   : > { %1990 = vst [vmem:[%s3027_s15] sm:$0xff] %v1958_v26  ;;  %1992 = vst [vmem:[%s3027_s15 + $0x10] sm:$0xff] %v1960_v28  ;;  %v1962_v40 = vsel %vm1898_vm2, %v1866_v48, %v1930_v21  ;;  %v1964_v42 = vsel %vm1900_vm3, %v1868_v54, %v1932_v38  ;;  %vm1904_vm5 = vcmp.gt.f32.partialorder %v1872_v11, 0.0  ;;  %v1936_v41 = vmul.f32 0.2, %v1872_v11 }
 0x218   : > { %v1775_v6 = vmul.f32 %v3533_v39, %v1739_v52  ;;  %v1777_v33 = vmul.f32 %v3533_v39, %v1741_v58  ;;  %1994 = vst [vmem:[%s3027_s15 + $0x20] sm:$0xff] %v1962_v40  ;;  %v1779_v44 = vmul.f32 %v3533_v39, %v1743_v53  ;;  %1996 = vst [vmem:[%s3027_s15 + $0x30] sm:$0xff] %v1964_v42  ;;  %vm1906_vm6 = vcmp.gt.f32.partialorder %v1874_v45, 0.0 }
 0x219   : > { %v1781_v49 = vmul.f32 %v3533_v39, %v1745_v55  ;;  %v1966_v48 = vsel %vm1902_vm4, %v1870_v12, %v1934_v31  ;;  %v1783_v50 = vmul.f32 %v3533_v39, %v1747_v59  ;;  %v1968_v52 = vsel %vm1904_vm5, %v1872_v11, %v1936_v41 }
 0x21a   : > { %v1785_v51 = vmul.f32 %v3533_v39, %v1749_v60  ;;  %v1819_v58 = vmul.f32 %v3437_v23, %v1775_v6  ;;  %v1821_v53 = vmul.f32 %v3437_v23, %v1777_v33  ;;  %v1823_v57 = vmul.f32 %v3437_v23, %v1779_v44  ;;  %1998 = vst [vmem:[%s3027_s15 + $0x40] sm:$0xff] %v1966_v48 }
 0x21b   : > { %v1825_v55 = vmul.f32 %v3437_v23, %v1781_v49  ;;  %2000 = vst [vmem:[%s3027_s15 + $0x50] sm:$0xff] %v1968_v52  ;;  %v1827_v63 = vmul.f32 %v3437_v23, %v1783_v50  ;;  %v1938_v59 = vmul.f32 0.2, %v1874_v45  ;;  %v1787_v18 = vmul.f32 %v3533_v39, %v1751_v62 }
 0x21c   : > { %v1829_v41 = vmul.f32 %v3437_v23, %v1785_v51  ;;  %v1863_v7 = vadd.f32 %v3441_v27, %v1819_v58  ;;  %v1865_v60 = vadd.f32 %v3441_v27, %v1821_v53  ;;  %v1867_v6 = vadd.f32 %v3441_v27, %v1823_v57 }
 0x21d   : > { %v1869_v54 = vadd.f32 %v3441_v27, %v1825_v55  ;;  %v1871_v12 = vadd.f32 %v3441_v27, %v1827_v63  ;;  %v1970_v10 = vsel %vm1906_vm6, %v1874_v45, %v1938_v59  ;;  %v1831_v44 = vmul.f32 %v3437_v23, %v1787_v18 }
 0x21e   : > { %v1873_v11 = vadd.f32 %v3441_v27, %v1829_v41  ;;  %vm1895_vm7 = vcmp.gt.f32.partialorder %v1863_v7, 0.0  ;;  %v1927_v21 = vmul.f32 0.2, %v1863_v7  ;;  %vm1897_vm8 = vcmp.gt.f32.partialorder %v1865_v60, 0.0  ;;  %2002 = vst [vmem:[%s3027_s15 + $0x60] sm:$0xff] %v1970_v10 }
 0x21f   : > { %v1929_v38 = vmul.f32 0.2, %v1865_v60  ;;  %vm1899_vm9 = vcmp.gt.f32.partialorder %v1867_v6, 0.0  ;;  %v1931_v26 = vmul.f32 0.2, %v1867_v6  ;;  %vm1901_vm10 = vcmp.gt.f32.partialorder %v1869_v54, 0.0 }
 0x220   : > { %v1933_v28 = vmul.f32 0.2, %v1869_v54  ;;  %v1959_v31 = vsel %vm1895_vm7, %v1863_v7, %v1927_v21  ;;  %vm1903_vm11 = vcmp.gt.f32.partialorder %v1871_v12, 0.0  ;;  %v1935_v40 = vmul.f32 0.2, %v1871_v12 }
 0x221   : > { %v1961_v45 = vsel %vm1897_vm8, %v1865_v60, %v1929_v38  ;;  %1991 = vst [vmem:[%s3027_s15 + $0x8] sm:$0xff] %v1959_v31  ;;  %v1963_v14 = vsel %vm1899_vm9, %v1867_v6, %v1931_v26  ;;  %vm1905_vm12 = vcmp.gt.f32.partialorder %v1873_v11, 0.0  ;;  %v1937_v42 = vmul.f32 0.2, %v1873_v11 }
 0x222   : > { %1993 = vst [vmem:[%s3027_s15 + $0x18] sm:$0xff] %v1961_v45  ;;  %v1965_v62 = vsel %vm1901_vm10, %v1869_v54, %v1933_v28  ;;  %1995 = vst [vmem:[%s3027_s15 + $0x28] sm:$0xff] %v1963_v14  ;;  %v1967_v33 = vsel %vm1903_vm11, %v1871_v12, %v1935_v40  ;;  %vm1908_vm13 = vcmp.gt.f32.partialorder %v3531_v16, 0.0  ;;  %v1940_v49 = vmul.f32 0.2, %v3531_v16 }
 0x223   : > { %1997 = vst [vmem:[%s3027_s15 + $0x38] sm:$0xff] %v1965_v62  ;;  %1999 = vst [vmem:[%s3027_s15 + $0x48] sm:$0xff] %v1967_v33  ;;  %v1969_v48 = vsel %vm1905_vm12, %v1873_v11, %v1937_v42  ;;  %v1789_v50 = vmul.f32 %v3533_v39, %v1753_v1  ;;  %v1790_v52 = vmul.f32 %v3497_v13, %v1754_v34 }
 0x224   : > { %v1791_v51 = vmul.f32 %v3533_v39, %v1755_v3  ;;  %2001 = vst [vmem:[%s3027_s15 + $0x58] sm:$0xff] %v1969_v48  ;;  %v1875_v58 = vadd.f32 %v3441_v27, %v1831_v44  ;;  %v1972_v53 = vsel %vm1908_vm13, %v3531_v16, %v1940_v49  ;;  %v1792_v22 = vmul.f32 %v3497_v13, %v1756_v35 }
 0x225   : > { %v1793_v2 = vmul.f32 %v3533_v39, %v1757_v5  ;;  %2004 = vst [vmem:[%s3027_s15 + $0x70] sm:$0xff] %v1972_v53  ;;  %v1833_v30 = vmul.f32 %v3437_v23, %v1789_v50  ;;  %v1834_v34 = vmul.f32 %v3433_v19, %v1790_v52  ;;  %v1794_v9 = vmul.f32 %v3497_v13, %v1758_v36 }
 0x226   : > { %v1835_v1 = vmul.f32 %v3437_v23, %v1791_v51  ;;  %vm1907_vm14 = vcmp.gt.f32.partialorder %v1875_v58, 0.0  ;;  %v1939_v35 = vmul.f32 0.2, %v1875_v58  ;;  %v1836_v3 = vmul.f32 %v3433_v19, %v1792_v22 }
 0x227   : > { %v1837_v43 = vmul.f32 %v3437_v23, %v1793_v2  ;;  %v1877_v5 = vadd.f32 %v3441_v27, %v1833_v30  ;;  %v1878_v16 = vadd.f32 %v3435_v20, %v1834_v34  ;;  %v1838_v55 = vmul.f32 %v3433_v19, %v1794_v9 }
 0x228   : > { %v1879_v57 = vadd.f32 %v3441_v27, %v1835_v1  ;;  %v1971_v63 = vsel %vm1907_vm14, %v1875_v58, %v1939_v35  ;;  %v1880_v41 = vadd.f32 %v3435_v20, %v1836_v3  ;;  %v3835_v36 = vsub.f32 %v3357_v56, %v3419_v0 }
 0x229   : > { %v1881_v17 = vadd.f32 %v3441_v27, %v1837_v43  ;;  %2003 = vst [vmem:[%s3027_s15 + $0x68] sm:$0xff] %v1971_v63  ;;  %vm1909_vm15 = vcmp.gt.f32.partialorder %v1877_v5, 0.0  ;;  %v1941_v7 = vmul.f32 0.2, %v1877_v5  ;;  %vm1910_vm0 = vcmp.gt.f32.partialorder %v1878_v16, 0.0 }
 0x22a   : > { %v1795_v59 = vmul.f32 %v3533_v39, %v3835_v36  ;;  %v1942_v60 = vmul.f32 0.2, %v1878_v16  ;;  %vm1911_vm1 = vcmp.gt.f32.partialorder %v1879_v57, 0.0  ;;  %v1943_v6 = vmul.f32 0.2, %v1879_v57 }
 0x22b   : > { %vm1912_vm2 = vcmp.gt.f32.partialorder %v1880_v41, 0.0  ;;  %v1944_v54 = vmul.f32 0.2, %v1880_v41  ;;  %v1973_v12 = vsel %vm1909_vm15, %v1877_v5, %v1941_v7  ;;  %vm1913_vm3 = vcmp.gt.f32.partialorder %v1881_v17, 0.0 }
 0x22c   : > { %v1974_v11 = vsel %vm1910_vm0, %v1878_v16, %v1942_v60  ;;  %v1945_v10 = vmul.f32 0.2, %v1881_v17  ;;  %2005 = vst [vmem:[%s3027_s15 + $0x78] sm:$0xff] %v1973_v12  ;;  %v1975_v56 = vsel %vm1911_vm1, %v1879_v57, %v1943_v6  ;;  %v1882_v21 = vadd.f32 %v3435_v20, %v1838_v55 }
 0x22d   : > { %2006 = vst [vmem:[%s3027_s15 + $0x80] sm:$0xff] %v1974_v11  ;;  %v1976_v18 = vsel %vm1912_vm2, %v1880_v41, %v1944_v54  ;;  %v1839_v38 = vmul.f32 %v3437_v23, %v1795_v59  ;;  %2007 = vst [vmem:[%s3027_s15 + $0x88] sm:$0xff] %v1975_v56  ;;  %v3836_v28 = vsub.f32 %v3326_v25, %v3415_v29 }
 0x22e   : > { %2008 = vst [vmem:[%s3027_s15 + $0x90] sm:$0xff] %v1976_v18  ;;  %v1977_v26 = vsel %vm1913_vm3, %v1881_v17, %v1945_v10  ;;  %v3837_v45 = vsub.f32 %v3369_v4, %v3419_v0  ;;  %v3838_v14 = vsub.f32 %v3338_v37, %v3415_v29  ;;  %vm1914_vm4 = vcmp.gt.f32.partialorder %v1882_v21, 0.0 }
 0x22f   : > { %v1796_v31 = vmul.f32 %v3497_v13, %v3836_v28  ;;  %2009 = vst [vmem:[%s3027_s15 + $0x98] sm:$0xff] %v1977_v26  ;;  %v1946_v42 = vmul.f32 0.2, %v1882_v21  ;;  %v1883_v33 = vadd.f32 %v3441_v27, %v1839_v38  ;;  %v3839_v25 = vsub.f32 %v3381_v15, %v3419_v0 }
 0x230   : > { %v1797_v40 = vmul.f32 %v3533_v39, %v3837_v45  ;;  %v1798_v62 = vmul.f32 %v3497_v13, %v3838_v14  ;;  %v3840_v37 = vsub.f32 %v3350_v47, %v3415_v29  ;;  %v3841_v47 = vsub.f32 %v3390_v24, %v3419_v0 }
 0x231   : > { %v1799_v44 = vmul.f32 %v3533_v39, %v3839_v25  ;;  %v1840_v4 = vmul.f32 %v3433_v19, %v1796_v31  ;;  %v1978_v52 = vsel %vm1914_vm4, %v1882_v21, %v1946_v42  ;;  %vm1915_vm5 = vcmp.gt.f32.partialorder %v1883_v33, 0.0 }
 0x232   : > { %v1841_v49 = vmul.f32 %v3437_v23, %v1797_v40  ;;  %v1842_v48 = vmul.f32 %v3433_v19, %v1798_v62  ;;  %v1800_v50 = vmul.f32 %v3497_v13, %v3840_v37  ;;  %v1947_v51 = vmul.f32 0.2, %v1883_v33  ;;  %2010 = vst [vmem:[%s3027_s15 + $0xa0] sm:$0xff] %v1978_v52 }
 0x233   : > { %v1843_v58 = vmul.f32 %v3437_v23, %v1799_v44  ;;  %v1884_v15 = vadd.f32 %v3435_v20, %v1840_v4  ;;  %v1801_v1 = vmul.f32 %v3533_v39, %v3841_v47  ;;  %v3842_v9 = vsub.f32 %v3362_v61, %v3415_v29 }
 0x234   : > { %v1885_v53 = vadd.f32 %v3441_v27, %v1841_v49  ;;  %v1886_v22 = vadd.f32 %v3435_v20, %v1842_v48  ;;  %v1844_v2 = vmul.f32 %v3433_v19, %v1800_v50  ;;  %v1979_v30 = vsel %vm1915_vm5, %v1883_v33, %v1947_v51 }
 0x235   : > { %v1887_v34 = vadd.f32 %v3441_v27, %v1843_v58  ;;  %v1802_v35 = vmul.f32 %v3497_v13, %v3842_v9  ;;  %2011 = vst [vmem:[%s3027_s15 + $0xa8] sm:$0xff] %v1979_v30  ;;  %vm1916_vm6 = vcmp.gt.f32.partialorder %v1884_v15, 0.0  ;;  %v1948_v3 = vmul.f32 0.2, %v1884_v15 }
 0x236   : > { %vm1917_vm7 = vcmp.gt.f32.partialorder %v1885_v53, 0.0  ;;  %v1949_v43 = vmul.f32 0.2, %v1885_v53  ;;  %vm1918_vm8 = vcmp.gt.f32.partialorder %v1886_v22, 0.0  ;;  %v1950_v5 = vmul.f32 0.2, %v1886_v22 }
 0x237   : > { %vm1919_vm9 = vcmp.gt.f32.partialorder %v1887_v34, 0.0  ;;  %v1951_v24 = vmul.f32 0.2, %v1887_v34  ;;  %v1980_v16 = vsel %vm1916_vm6, %v1884_v15, %v1948_v3  ;;  %v1888_v55 = vadd.f32 %v3435_v20, %v1844_v2 }
 0x238   : > { %v1981_v57 = vsel %vm1917_vm7, %v1885_v53, %v1949_v43  ;;  %v1845_v61 = vmul.f32 %v3437_v23, %v1801_v1  ;;  %2012 = vst [vmem:[%s3027_s15 + $0xb0] sm:$0xff] %v1980_v16  ;;  %v1982_v63 = vsel %vm1918_vm8, %v1886_v22, %v1950_v5  ;;  %v1846_v17 = vmul.f32 %v3433_v19, %v1802_v35 }
 0x239   : > { %2013 = vst [vmem:[%s3027_s15 + $0xb8] sm:$0xff] %v1981_v57  ;;  %v1983_v41 = vsel %vm1919_vm9, %v1887_v34, %v1951_v24  ;;  %v3843_v36 = vsub.f32 %v3397_v32, %v3419_v0  ;;  %2014 = vst [vmem:[%s3027_s15 + $0xc0] sm:$0xff] %v1982_v63  ;;  %vm1920_vm10 = vcmp.gt.f32.partialorder %v1888_v55, 0.0  ;;  %v1952_v7 = vmul.f32 0.2, %v1888_v55 }
 0x23a   : > { %2015 = vst [vmem:[%s3027_s15 + $0xc8] sm:$0xff] %v1983_v41  ;;  %v1889_v60 = vadd.f32 %v3441_v27, %v1845_v61  ;;  %v3844_v6 = vsub.f32 %v3374_v8, %v3415_v29  ;;  %v1890_v12 = vadd.f32 %v3435_v20, %v1846_v17  ;;  %v3845_v32 = vsub.f32 %v3403_v46, %v3419_v0 }
 0x23b   : > { %v1803_v59 = vmul.f32 %v3533_v39, %v3843_v36  ;;  %v1984_v56 = vsel %vm1920_vm10, %v1888_v55, %v1952_v7 }
 0x23c   : > { %v1804_v54 = vmul.f32 %v3497_v13, %v3844_v6  ;;  %v1805_v10 = vmul.f32 %v3533_v39, %v3845_v32  ;;  %vm1921_vm11 = vcmp.gt.f32.partialorder %v1889_v60, 0.0  ;;  %v1953_v18 = vmul.f32 0.2, %v1889_v60  ;;  %2016 = vst [vmem:[%s3027_s15 + $0xd0] sm:$0xff] %v1984_v56 }
 0x23d   : > { %v1847_v11 = vmul.f32 %v3437_v23, %v1803_v59  ;;  %vm1922_vm12 = vcmp.gt.f32.partialorder %v1890_v12, 0.0  ;;  %v1954_v8 = vmul.f32 0.2, %v1890_v12 }
 0x23e   : > { %v1848_v21 = vmul.f32 %v3433_v19, %v1804_v54  ;;  %v1849_v13 = vmul.f32 %v3437_v23, %v1805_v10  ;;  %v1985_v38 = vsel %vm1921_vm11, %v1889_v60, %v1953_v18 }
 0x23f   : > { %v1891_v29 = vadd.f32 %v3441_v27, %v1847_v11  ;;  %2017 = vst [vmem:[%s3027_s15 + $0xd8] sm:$0xff] %v1985_v38  ;;  %v1986_v0 = vsel %vm1922_vm12, %v1890_v12, %v1954_v8 }
 0x240   : > { %v1892_v46 = vadd.f32 %v3435_v20, %v1848_v21  ;;  %v1893_v26 = vadd.f32 %v3441_v27, %v1849_v13  ;;  %2018 = vst [vmem:[%s3027_s15 + $0xe0] sm:$0xff] %v1986_v0 }
 0x241   : > { %vm1923_vm13 = vcmp.gt.f32.partialorder %v1891_v29, 0.0  ;;  %v1955_v39 = vmul.f32 0.2, %v1891_v29 }
 0x242   : > { %vm1924_vm14 = vcmp.gt.f32.partialorder %v1892_v46, 0.0  ;;  %v1956_v19 = vmul.f32 0.2, %v1892_v46  ;;  %vm1925_vm15 = vcmp.gt.f32.partialorder %v1893_v26, 0.0  ;;  %v1957_v31 = vmul.f32 0.2, %v1893_v26 }
 0x243   : > { %v1987_v28 = vsel %vm1923_vm13, %v1891_v29, %v1955_v39 }
 0x244   : > { %2019 = vst [vmem:[%s3027_s15 + $0xe8] sm:$0xff] %v1987_v28  ;;  %v1988_v45 = vsel %vm1924_vm14, %v1892_v46, %v1956_v19  ;;  %v1989_v23 = vsel %vm1925_vm15, %v1893_v26, %v1957_v31 }
 0x245   : > { %2020 = vst [vmem:[%s3027_s15 + $0xf0] sm:$0xff] %v1988_v45  ;;  %2021 = vst [vmem:[%s3027_s15 + $0xf8] sm:$0xff] %v1989_v23 }
 0x246 PF: > { %2028 = sbr.rel (!%p2787_p12) target bundleno = 600 (0x258), region = 109  ;;  %s2341_s1 = sshll.u32 (%p2787_p12), %s2653_s22, 4  ;;  %v2044_v20 = vld [vmem:[%s3027_s15] sm:$0xff] (%p2787_p12)  ;;  %v2046_v27 = vld [vmem:[%s3027_s15 + $0x8] sm:$0xff] (%p2787_p12)  ;;  %v2048_v40 = vld [vmem:[%s3027_s15 + $0x10] sm:$0xff] (%p2787_p12) }
 0x247   : > { %s3723_s29 = scalar_lea.vmem (%p2787_p12), %s3823_s4, %s2341_s1  ;;  %v2050_v14 = vld [vmem:[%s3027_s15 + $0x18] sm:$0xff] (%p2787_p12)  ;;  %v2052_v62 = vld [vmem:[%s3027_s15 + $0x20] sm:$0xff] (%p2787_p12)  ;;  %v2054_v42 = vld [vmem:[%s3027_s15 + $0x28] sm:$0xff] (%p2787_p12) }
 0x248   : > { %2045 = vst [vmem:[%s3723_s29] sm:$0xff] (%p2787_p12), %v2044_v20  ;;  %2047 = vst [vmem:[%s3723_s29 + $0x8] sm:$0xff] (%p2787_p12), %v2046_v27  ;;  %v2056_v33 = vld [vmem:[%s3027_s15 + $0x30] sm:$0xff] (%p2787_p12)  ;;  %v2058_v25 = vld [vmem:[%s3027_s15 + $0x38] sm:$0xff] (%p2787_p12) }
 0x249   : > { %2049 = vst [vmem:[%s3723_s29 + $0x20] sm:$0xff] (%p2787_p12), %v2048_v40  ;;  %2051 = vst [vmem:[%s3723_s29 + $0x28] sm:$0xff] (%p2787_p12), %v2050_v14  ;;  %v2060_v44 = vld [vmem:[%s3027_s15 + $0x40] sm:$0xff] (%p2787_p12)  ;;  %v2062_v4 = vld [vmem:[%s3027_s15 + $0x48] sm:$0xff] (%p2787_p12) }
 0x24a   : > { %2053 = vst [vmem:[%s3723_s29 + $0x40] sm:$0xff] (%p2787_p12), %v2052_v62  ;;  %2055 = vst [vmem:[%s3723_s29 + $0x48] sm:$0xff] (%p2787_p12), %v2054_v42  ;;  %v2064_v49 = vld [vmem:[%s3027_s15 + $0x50] sm:$0xff] (%p2787_p12)  ;;  %v2066_v48 = vld [vmem:[%s3027_s15 + $0x58] sm:$0xff] (%p2787_p12) }
 0x24b   : > { %2057 = vst [vmem:[%s3723_s29 + $0x60] sm:$0xff] %v2056_v33  ;;  %2059 = vst [vmem:[%s3723_s29 + $0x68] sm:$0xff] %v2058_v25  ;;  %v2068_v37 = vld [vmem:[%s3027_s15 + $0x60] sm:$0xff]  ;;  %v2070_v50 = vld [vmem:[%s3027_s15 + $0x68] sm:$0xff] }
 0x24c   : > { %2061 = vst [vmem:[%s3723_s29 + $0x80] sm:$0xff] %v2060_v44  ;;  %2063 = vst [vmem:[%s3723_s29 + $0x88] sm:$0xff] %v2062_v4  ;;  %v2072_v52 = vld [vmem:[%s3027_s15 + $0x70] sm:$0xff]  ;;  %v2074_v51 = vld [vmem:[%s3027_s15 + $0x78] sm:$0xff] }
 0x24d   : > { %2065 = vst [vmem:[%s3723_s29 + $0xa0] sm:$0xff] %v2064_v49  ;;  %2067 = vst [vmem:[%s3723_s29 + $0xa8] sm:$0xff] %v2066_v48  ;;  %v2076_v58 = vld [vmem:[%s3027_s15 + $0x80] sm:$0xff]  ;;  %v2078_v15 = vld [vmem:[%s3027_s15 + $0x88] sm:$0xff] }
 0x24e   : > { %2069 = vst [vmem:[%s3723_s29 + $0xc0] sm:$0xff] %v2068_v37  ;;  %2071 = vst [vmem:[%s3723_s29 + $0xc8] sm:$0xff] %v2070_v50  ;;  %v2080_v53 = vld [vmem:[%s3027_s15 + $0x90] sm:$0xff]  ;;  %v2082_v22 = vld [vmem:[%s3027_s15 + $0x98] sm:$0xff] }
 0x24f   : > { %2073 = vst [vmem:[%s3723_s29 + $0xe0] sm:$0xff] %v2072_v52  ;;  %2075 = vst [vmem:[%s3723_s29 + $0xe8] sm:$0xff] %v2074_v51  ;;  %v2084_v2 = vld [vmem:[%s3027_s15 + $0xa0] sm:$0xff]  ;;  %v2086_v30 = vld [vmem:[%s3027_s15 + $0xa8] sm:$0xff] }
 0x250   : > { %2077 = vst [vmem:[%s3723_s29 + $0x100] sm:$0xff] %v2076_v58  ;;  %2079 = vst [vmem:[%s3723_s29 + $0x108] sm:$0xff] %v2078_v15  ;;  %v2088_v34 = vld [vmem:[%s3027_s15 + $0xb0] sm:$0xff]  ;;  %v2090_v47 = vld [vmem:[%s3027_s15 + $0xb8] sm:$0xff] }
 0x251   : > { %2081 = vst [vmem:[%s3723_s29 + $0x120] sm:$0xff] %v2080_v53  ;;  %2083 = vst [vmem:[%s3723_s29 + $0x128] sm:$0xff] %v2082_v22  ;;  %v2092_v1 = vld [vmem:[%s3027_s15 + $0xc0] sm:$0xff]  ;;  %v2094_v9 = vld [vmem:[%s3027_s15 + $0xc8] sm:$0xff] }
 0x252   : > { %2085 = vst [vmem:[%s3723_s29 + $0x140] sm:$0xff] %v2084_v2  ;;  %2087 = vst [vmem:[%s3723_s29 + $0x148] sm:$0xff] %v2086_v30  ;;  %v2096_v35 = vld [vmem:[%s3027_s15 + $0xd0] sm:$0xff]  ;;  %v2098_v3 = vld [vmem:[%s3027_s15 + $0xd8] sm:$0xff] }
 0x253   : > { %2089 = vst [vmem:[%s3723_s29 + $0x160] sm:$0xff] %v2088_v34  ;;  %2091 = vst [vmem:[%s3723_s29 + $0x168] sm:$0xff] %v2090_v47  ;;  %v2100_v43 = vld [vmem:[%s3027_s15 + $0xe0] sm:$0xff]  ;;  %v2102_v5 = vld [vmem:[%s3027_s15 + $0xe8] sm:$0xff] }
 0x254   : > { %2093 = vst [vmem:[%s3723_s29 + $0x180] sm:$0xff] %v2092_v1  ;;  %2095 = vst [vmem:[%s3723_s29 + $0x188] sm:$0xff] %v2094_v9  ;;  %v2104_v24 = vld [vmem:[%s3027_s15 + $0xf0] sm:$0xff]  ;;  %v2106_v16 = vld [vmem:[%s3027_s15 + $0xf8] sm:$0xff] }
 0x255   : > { %2097 = vst [vmem:[%s3723_s29 + $0x1a0] sm:$0xff] %v2096_v35  ;;  %2099 = vst [vmem:[%s3723_s29 + $0x1a8] sm:$0xff] %v2098_v3 }
 0x256   : > { %2101 = vst [vmem:[%s3723_s29 + $0x1c0] sm:$0xff] %v2100_v43  ;;  %2103 = vst [vmem:[%s3723_s29 + $0x1c8] sm:$0xff] %v2102_v5 }
 0x257   : > { %2105 = vst [vmem:[%s3723_s29 + $0x1e0] sm:$0xff] %v2104_v24  ;;  %2107 = vst [vmem:[%s3723_s29 + $0x1e8] sm:$0xff] %v2106_v16 }
 0x258 PF: > { %s14_s25 = sadd.s32 1, %s2665_s25   ;;  %s3846_s14 = sld [smem:[#allocation5_spill]] }
 0x259   : > { %p11_p6 = scmp.ge.s32.totalorder %s14_s25, 18   ;;  %s3847_s27 = sld [smem:[#allocation6_spill]] }
 0x25a   : > { %s3848_s15 = smov %s2629_s16  ;;  %s3849_s16 = smov %s2785_s13 }
 0x25b   : > { %s3850_s17 = smov %s2637_s18  ;;  %s3851_s18 = smov %s2782_s12 }
 0x25c   : > { %s3852_s19 = smov %s2645_s20  ;;  %s3853_s20 = smov %s2768_s7 }
 0x25d   : > { %s3854_s21 = smov %s2657_s23  ;;  %s3855_s22 = smov %s2661_s24 }
 0x25e   : > { %s3856_s23 = smov %s3846_s14  ;;  %13 = sbr.rel (!%p11_p6) target bundleno = 9 (0x9), region = 177 }
 0x25f   : > { %s3857_s24 = smov %s3847_s27 }

// kernel: discriminator_forward.7
= control target key start
LH: loop header
LB: loop body
LE: loop exit
PB: predicated region body
PF: predicated region fallthrough
CT: control target
= control target key end

     0   :  { %s3612_s0 = inlined_call_operand.vmem [shape: bf16[32,8192], index: 0, kind: input, shape index: {}]   ;;  %s3613_s1 = inlined_call_operand.vmem [shape: bf16[8192,1024], index: 1, kind: input, shape index: {}]   ;;  %s3614_s2 = inlined_call_operand.vmem [shape: f32[1,1024], index: 2, kind: input, shape index: {}]   ;;  %s3615_s3 = inlined_call_operand.vmem [shape: f32[1,1024], index: 3, kind: input, shape index: {}]   ;;  %s3616_s4 = inlined_call_operand.vmem [shape: f32[32,1024], index: 4, kind: output, shape index: {}]  }
   0x1   :  { %3619 = sst [smem:[#allocation7_spill]] %s3612_s0 }
   0x2   :  { %3620 = sst [smem:[#allocation8_spill]] %s3613_s1 }
   0x3   :  { %s2727_s15 = smov 0   ;;  %s2729_s16 = smov 0  }
   0x4   :  { %s2731_s17 = smov 0   ;;  %s2733_s18 = smov 0  }
   0x5   :  { %s2735_s19 = smov 0   ;;  %s2737_s20 = smov 0  }
   0x6   :  { %s2739_s21 = smov 0   ;;  %s2741_s22 = smov 0  }
   0x7   :  { %s2743_s23 = smov 0   ;;  %s2745_s24 = smov 0  }
   0x8   :  { %s2747_s25 = smov 0  }
   0x9 LB: > { %s2148_s26 = sadd.s32 4294967295, %s2699_s25   ;;  %s23_s27 = sadd.s32 1, %s2691_s23  ;;  %s2699_s25 = sphi %s2747_s25, %s14_s25   ;;  %s2695_s24 = sphi %s2745_s24, %s3639_s24   ;;  %s2691_s23 = sphi %s2743_s23, %s3638_s23   ;;  %s2687_s22 = sphi %s2741_s22, %s3637_s22   ;;  %s2683_s21 = sphi %s2739_s21, %s3636_s21   ;;  %s2679_s20 = sphi %s2737_s20, %s3635_s20   ;;  %s2675_s19 = sphi %s2735_s19, %s3634_s19   ;;  %s2671_s18 = sphi %s2733_s18, %s3633_s18   ;;  %s2667_s17 = sphi %s2731_s17, %s3632_s17   ;;  %s2663_s16 = sphi %s2729_s16, %s3631_s16   ;;  %s2659_s15 = sphi %s2727_s15, %s3630_s15  }
   0xa   : > { %p24_p0 = scmp.ge.s32.totalorder %s23_s27, 16  ;;  %s26_s28 = sadd.s32 1, %s2695_s24 }
   0xb   : > { %s33_s29 = sadd.s32 1, %s2679_s20  ;;  %p40_p1 = scmp.ne.s32.totalorder %s2679_s20, %s2675_s19 }
   0xc   : > { %s3641_s27 = smov (%p24_p0, %s23_s27), 0  ;;  %s3643_s28 = smov (!%p24_p0, %s26_s28), %s2695_s24 }
   0xd   : > { %3621 = sst [smem:[#allocation5_spill]] %s3641_s27  ;;  %s30_s30 = ssub.s32 %s2691_s23, %s3641_s27 }
   0xe   : > { %p41_p2 = scmp.eq.s32.totalorder %s2699_s25, 0  ;;  %p28_p3 = scmp.ge.s32.totalorder %s3643_s28, 2 }
   0xf   : > { %p31_p4 = scmp.eq.s32.totalorder %s30_s30, 0  ;;  %s61_s6 = sadd.s32 1, %s2671_s18 }
  0x10   : > { %p2794_p5 = por %p41_p2, %p40_p1  ;;  %s3645_s28 = smov (%p28_p3, %s3643_s28), 0 }
  0x11   : > { %3623 = sst [smem:[#allocation6_spill]] %s3645_s28  ;;  %s57_s8 = ssub.s32 %s2695_s24, %s3645_s28 }
  0x12   : > { %s2802_s7 = scalar_select %p31_p4, %s2679_s20, %s33_s29  }
  0x13   : > { %p68_p6 = scmp.ne.s32.totalorder %s2671_s18, %s2667_s17  ;;  %s58_s9 = sor.u32 %s57_s8, %s30_s30 }
  0x14   : > { %p137_p7 = scmp.eq.s32.totalorder %s57_s8, 0  ;;  %p59_p8 = scmp.eq.s32.totalorder %s58_s9, 0 }
  0x15   : > { %p2808_p9 = por %p68_p6, %p41_p2  ;;  %s139_s11 = sadd.s32 1, %s2663_s16 }
  0x16   : > { %p149_p10 = scmp.ne.s32.totalorder %s2663_s16, %s2659_s15  ;;  %p150_p11 = scmp.eq.s32.totalorder %s2148_s26, 31 }
  0x17   : > { %s2816_s12 = scalar_select %p59_p8, %s2671_s18, %s61_s6  }
  0x18   : > { %s2819_s13 = scalar_select %p137_p7, %s2663_s16, %s139_s11  }
  0x19   : > { %p2821_p12 = por %p150_p11, %p149_p10  ;;  %p2151_p13 = scmp.ge.s32.totalorder %s2699_s25, 32 }
  0x1b   : > { %172 = sbr.rel (%p2151_p13) target bundleno = 120 (0x78), region = 16 }
  0x20   : > { %175 = sbr.rel (!%p2794_p5) target bundleno = 46 (0x2e), region = 20  ;;  %s177_s29 = sand.u32 (%p2794_p5), 1, %s2679_s20  }
  0x21   : > { %s2309_s30 = sshll.u32 (%p2794_p5), %s2691_s23, 4  ;;  %s2152_s8 = sshll.u32 (%p2794_p5), %s177_s29, 6 }
  0x22   : > { %s3626_s0 = sld [smem:[#allocation7_spill]] (%p2794_p5)  ;;  %s179_s26 = scalar_lea.vmem (%p2794_p5), [#allocation2], %s2152_s8 }
  0x28   : > { %s182_s11 = scalar_lea.vmem %s3626_s0, %s2309_s30 }
  0x29   : > { %v195_v0 = vld [vmem:[%s182_s11] sm:$0xff]  ;;  %v197_v1 = vld [vmem:[%s182_s11 + $0x8] sm:$0xff] }
  0x2a   : > { %v199_v2 = vld [vmem:[%s182_s11 + $0x100] sm:$0xff]  ;;  %196 = vst [vmem:[%s179_s26] sm:$0xff] %v195_v0  ;;  %198 = vst [vmem:[%s179_s26 + $0x8] sm:$0xff] %v197_v1  ;;  %v201_v3 = vld [vmem:[%s182_s11 + $0x108] sm:$0xff] }
  0x2b   : > { %200 = vst [vmem:[%s179_s26 + $0x10] sm:$0xff] %v199_v2  ;;  %v203_v4 = vld [vmem:[%s182_s11 + $0x200] sm:$0xff]  ;;  %v205_v5 = vld [vmem:[%s182_s11 + $0x208] sm:$0xff]  ;;  %202 = vst [vmem:[%s179_s26 + $0x18] sm:$0xff] %v201_v3 }
  0x2c   : > { %204 = vst [vmem:[%s179_s26 + $0x20] sm:$0xff] %v203_v4  ;;  %206 = vst [vmem:[%s179_s26 + $0x28] sm:$0xff] %v205_v5  ;;  %v207_v6 = vld [vmem:[%s182_s11 + $0x300] sm:$0xff]  ;;  %v209_v7 = vld [vmem:[%s182_s11 + $0x308] sm:$0xff] }
  0x2d   : > { %208 = vst [vmem:[%s179_s26 + $0x30] sm:$0xff] %v207_v6  ;;  %210 = vst [vmem:[%s179_s26 + $0x38] sm:$0xff] %v209_v7 }
  0x2e PF: > { %216 = sbr.rel (!%p2808_p9) target bundleno = 120 (0x78), region = 43  ;;  %s218_s5 = sand.u32 (%p2808_p9), 1, %s2671_s18  }
  0x2f   : > { %s2157_s29 = sshll.u32 (%p2808_p9), %s2695_s24, 2  ;;  %s2155_s30 = sshll.u32 (%p2808_p9), %s218_s5, 10 }
  0x30   : > { %s2310_s8 = sshll.u32 (%p2808_p9), %s2691_s23, 9  ;;  %s3627_s1 = sld [smem:[#allocation8_spill]] (%p2808_p9) }
  0x31   : > { %s224_s6 = sadd.s32 (%p2808_p9), %s2310_s8, %s2157_s29  ;;  %s2846_s10 = scalar_lea.vmem (%p2808_p9), [#allocation3], %s2155_s30 }
  0x32   : > { %s2159_s9 = sshll.u32 (%p2808_p9), %s224_s6, 2 }
  0x36   : > { %s2841_s27 = scalar_lea.vmem %s3627_s1, %s2159_s9 }
  0x37   : > { %v239_v8 = vld [vmem:[%s2841_s27] sm:$0xff]  ;;  %v241_v9 = vld [vmem:[%s2841_s27 + $0x8] sm:$0xff] }
  0x38   : > { %v243_v10 = vld [vmem:[%s2841_s27 + $0x20] sm:$0xff]  ;;  %240 = vst [vmem:[%s2846_s10] sm:$0xff] %v239_v8  ;;  %242 = vst [vmem:[%s2846_s10 + $0x8] sm:$0xff] %v241_v9  ;;  %v245_v11 = vld [vmem:[%s2841_s27 + $0x28] sm:$0xff] }
  0x39   : > { %244 = vst [vmem:[%s2846_s10 + $0x10] sm:$0xff] %v243_v10  ;;  %v247_v12 = vld [vmem:[%s2841_s27 + $0x40] sm:$0xff]  ;;  %v249_v13 = vld [vmem:[%s2841_s27 + $0x48] sm:$0xff]  ;;  %246 = vst [vmem:[%s2846_s10 + $0x18] sm:$0xff] %v245_v11 }
  0x3a   : > { %248 = vst [vmem:[%s2846_s10 + $0x20] sm:$0xff] %v247_v12  ;;  %250 = vst [vmem:[%s2846_s10 + $0x28] sm:$0xff] %v249_v13  ;;  %v251_v14 = vld [vmem:[%s2841_s27 + $0x60] sm:$0xff]  ;;  %v253_v15 = vld [vmem:[%s2841_s27 + $0x68] sm:$0xff] }
  0x3b   : > { %v255_v16 = vld [vmem:[%s2841_s27 + $0x80] sm:$0xff]  ;;  %252 = vst [vmem:[%s2846_s10 + $0x30] sm:$0xff] %v251_v14  ;;  %254 = vst [vmem:[%s2846_s10 + $0x38] sm:$0xff] %v253_v15  ;;  %v257_v17 = vld [vmem:[%s2841_s27 + $0x88] sm:$0xff] }
  0x3c   : > { %256 = vst [vmem:[%s2846_s10 + $0x40] sm:$0xff] %v255_v16  ;;  %v259_v18 = vld [vmem:[%s2841_s27 + $0xa0] sm:$0xff]  ;;  %v261_v19 = vld [vmem:[%s2841_s27 + $0xa8] sm:$0xff]  ;;  %258 = vst [vmem:[%s2846_s10 + $0x48] sm:$0xff] %v257_v17 }
  0x3d   : > { %260 = vst [vmem:[%s2846_s10 + $0x50] sm:$0xff] %v259_v18  ;;  %262 = vst [vmem:[%s2846_s10 + $0x58] sm:$0xff] %v261_v19  ;;  %v263_v20 = vld [vmem:[%s2841_s27 + $0xc0] sm:$0xff]  ;;  %v265_v21 = vld [vmem:[%s2841_s27 + $0xc8] sm:$0xff] }
  0x3e   : > { %v267_v22 = vld [vmem:[%s2841_s27 + $0xe0] sm:$0xff]  ;;  %264 = vst [vmem:[%s2846_s10 + $0x60] sm:$0xff] %v263_v20  ;;  %266 = vst [vmem:[%s2846_s10 + $0x68] sm:$0xff] %v265_v21  ;;  %v269_v23 = vld [vmem:[%s2841_s27 + $0xe8] sm:$0xff] }
  0x3f   : > { %268 = vst [vmem:[%s2846_s10 + $0x70] sm:$0xff] %v267_v22  ;;  %v271_v24 = vld [vmem:[%s2841_s27 + $0x100] sm:$0xff]  ;;  %v273_v25 = vld [vmem:[%s2841_s27 + $0x108] sm:$0xff]  ;;  %270 = vst [vmem:[%s2846_s10 + $0x78] sm:$0xff] %v269_v23 }
  0x40   : > { %272 = vst [vmem:[%s2846_s10 + $0x80] sm:$0xff] %v271_v24  ;;  %274 = vst [vmem:[%s2846_s10 + $0x88] sm:$0xff] %v273_v25  ;;  %v275_v26 = vld [vmem:[%s2841_s27 + $0x120] sm:$0xff]  ;;  %v277_v27 = vld [vmem:[%s2841_s27 + $0x128] sm:$0xff] }
  0x41   : > { %v279_v28 = vld [vmem:[%s2841_s27 + $0x140] sm:$0xff]  ;;  %276 = vst [vmem:[%s2846_s10 + $0x90] sm:$0xff] %v275_v26  ;;  %278 = vst [vmem:[%s2846_s10 + $0x98] sm:$0xff] %v277_v27  ;;  %v281_v29 = vld [vmem:[%s2841_s27 + $0x148] sm:$0xff] }
  0x42   : > { %280 = vst [vmem:[%s2846_s10 + $0xa0] sm:$0xff] %v279_v28  ;;  %v283_v30 = vld [vmem:[%s2841_s27 + $0x160] sm:$0xff]  ;;  %v285_v31 = vld [vmem:[%s2841_s27 + $0x168] sm:$0xff]  ;;  %282 = vst [vmem:[%s2846_s10 + $0xa8] sm:$0xff] %v281_v29 }
  0x43   : > { %284 = vst [vmem:[%s2846_s10 + $0xb0] sm:$0xff] %v283_v30  ;;  %286 = vst [vmem:[%s2846_s10 + $0xb8] sm:$0xff] %v285_v31  ;;  %v287_v32 = vld [vmem:[%s2841_s27 + $0x180] sm:$0xff]  ;;  %v289_v33 = vld [vmem:[%s2841_s27 + $0x188] sm:$0xff] }
  0x44   : > { %v291_v34 = vld [vmem:[%s2841_s27 + $0x1a0] sm:$0xff]  ;;  %288 = vst [vmem:[%s2846_s10 + $0xc0] sm:$0xff] %v287_v32  ;;  %290 = vst [vmem:[%s2846_s10 + $0xc8] sm:$0xff] %v289_v33  ;;  %v293_v35 = vld [vmem:[%s2841_s27 + $0x1a8] sm:$0xff] }
  0x45   : > { %292 = vst [vmem:[%s2846_s10 + $0xd0] sm:$0xff] %v291_v34  ;;  %v295_v36 = vld [vmem:[%s2841_s27 + $0x1c0] sm:$0xff]  ;;  %v297_v37 = vld [vmem:[%s2841_s27 + $0x1c8] sm:$0xff]  ;;  %294 = vst [vmem:[%s2846_s10 + $0xd8] sm:$0xff] %v293_v35 }
  0x46   : > { %296 = vst [vmem:[%s2846_s10 + $0xe0] sm:$0xff] %v295_v36  ;;  %298 = vst [vmem:[%s2846_s10 + $0xe8] sm:$0xff] %v297_v37  ;;  %v299_v38 = vld [vmem:[%s2841_s27 + $0x1e0] sm:$0xff]  ;;  %v301_v39 = vld [vmem:[%s2841_s27 + $0x1e8] sm:$0xff] }
  0x47   : > { %v303_v40 = vld [vmem:[%s2841_s27 + $0x200] sm:$0xff]  ;;  %300 = vst [vmem:[%s2846_s10 + $0xf0] sm:$0xff] %v299_v38  ;;  %302 = vst [vmem:[%s2846_s10 + $0xf8] sm:$0xff] %v301_v39  ;;  %v305_v41 = vld [vmem:[%s2841_s27 + $0x208] sm:$0xff] }
  0x48   : > { %304 = vst [vmem:[%s2846_s10 + $0x100] sm:$0xff] %v303_v40  ;;  %v307_v42 = vld [vmem:[%s2841_s27 + $0x220] sm:$0xff]  ;;  %v309_v43 = vld [vmem:[%s2841_s27 + $0x228] sm:$0xff]  ;;  %306 = vst [vmem:[%s2846_s10 + $0x108] sm:$0xff] %v305_v41 }
  0x49   : > { %308 = vst [vmem:[%s2846_s10 + $0x110] sm:$0xff] %v307_v42  ;;  %310 = vst [vmem:[%s2846_s10 + $0x118] sm:$0xff] %v309_v43  ;;  %v311_v44 = vld [vmem:[%s2841_s27 + $0x240] sm:$0xff]  ;;  %v313_v45 = vld [vmem:[%s2841_s27 + $0x248] sm:$0xff] }
  0x4a   : > { %v315_v46 = vld [vmem:[%s2841_s27 + $0x260] sm:$0xff]  ;;  %312 = vst [vmem:[%s2846_s10 + $0x120] sm:$0xff] %v311_v44  ;;  %314 = vst [vmem:[%s2846_s10 + $0x128] sm:$0xff] %v313_v45  ;;  %v317_v47 = vld [vmem:[%s2841_s27 + $0x268] sm:$0xff] }
  0x4b   : > { %316 = vst [vmem:[%s2846_s10 + $0x130] sm:$0xff] %v315_v46  ;;  %v319_v48 = vld [vmem:[%s2841_s27 + $0x280] sm:$0xff]  ;;  %v321_v49 = vld [vmem:[%s2841_s27 + $0x288] sm:$0xff]  ;;  %318 = vst [vmem:[%s2846_s10 + $0x138] sm:$0xff] %v317_v47 }
  0x4c   : > { %320 = vst [vmem:[%s2846_s10 + $0x140] sm:$0xff] %v319_v48  ;;  %322 = vst [vmem:[%s2846_s10 + $0x148] sm:$0xff] %v321_v49  ;;  %v323_v50 = vld [vmem:[%s2841_s27 + $0x2a0] sm:$0xff]  ;;  %v325_v51 = vld [vmem:[%s2841_s27 + $0x2a8] sm:$0xff] }
  0x4d   : > { %v327_v52 = vld [vmem:[%s2841_s27 + $0x2c0] sm:$0xff]  ;;  %324 = vst [vmem:[%s2846_s10 + $0x150] sm:$0xff] %v323_v50  ;;  %326 = vst [vmem:[%s2846_s10 + $0x158] sm:$0xff] %v325_v51  ;;  %v329_v53 = vld [vmem:[%s2841_s27 + $0x2c8] sm:$0xff] }
  0x4e   : > { %328 = vst [vmem:[%s2846_s10 + $0x160] sm:$0xff] %v327_v52  ;;  %v331_v54 = vld [vmem:[%s2841_s27 + $0x2e0] sm:$0xff]  ;;  %v333_v55 = vld [vmem:[%s2841_s27 + $0x2e8] sm:$0xff]  ;;  %330 = vst [vmem:[%s2846_s10 + $0x168] sm:$0xff] %v329_v53 }
  0x4f   : > { %332 = vst [vmem:[%s2846_s10 + $0x170] sm:$0xff] %v331_v54  ;;  %334 = vst [vmem:[%s2846_s10 + $0x178] sm:$0xff] %v333_v55  ;;  %v335_v56 = vld [vmem:[%s2841_s27 + $0x300] sm:$0xff]  ;;  %v337_v57 = vld [vmem:[%s2841_s27 + $0x308] sm:$0xff] }
  0x50   : > { %v339_v58 = vld [vmem:[%s2841_s27 + $0x320] sm:$0xff]  ;;  %336 = vst [vmem:[%s2846_s10 + $0x180] sm:$0xff] %v335_v56  ;;  %338 = vst [vmem:[%s2846_s10 + $0x188] sm:$0xff] %v337_v57  ;;  %v341_v59 = vld [vmem:[%s2841_s27 + $0x328] sm:$0xff] }
  0x51   : > { %340 = vst [vmem:[%s2846_s10 + $0x190] sm:$0xff] %v339_v58  ;;  %v343_v60 = vld [vmem:[%s2841_s27 + $0x340] sm:$0xff]  ;;  %v345_v61 = vld [vmem:[%s2841_s27 + $0x348] sm:$0xff]  ;;  %342 = vst [vmem:[%s2846_s10 + $0x198] sm:$0xff] %v341_v59 }
  0x52   : > { %344 = vst [vmem:[%s2846_s10 + $0x1a0] sm:$0xff] %v343_v60  ;;  %346 = vst [vmem:[%s2846_s10 + $0x1a8] sm:$0xff] %v345_v61  ;;  %v347_v62 = vld [vmem:[%s2841_s27 + $0x360] sm:$0xff]  ;;  %v349_v63 = vld [vmem:[%s2841_s27 + $0x368] sm:$0xff] }
  0x53   : > { %v351_v0 = vld [vmem:[%s2841_s27 + $0x380] sm:$0xff]  ;;  %348 = vst [vmem:[%s2846_s10 + $0x1b0] sm:$0xff] %v347_v62  ;;  %350 = vst [vmem:[%s2846_s10 + $0x1b8] sm:$0xff] %v349_v63  ;;  %v353_v1 = vld [vmem:[%s2841_s27 + $0x388] sm:$0xff] }
  0x54   : > { %352 = vst [vmem:[%s2846_s10 + $0x1c0] sm:$0xff] %v351_v0  ;;  %v355_v2 = vld [vmem:[%s2841_s27 + $0x3a0] sm:$0xff]  ;;  %v357_v3 = vld [vmem:[%s2841_s27 + $0x3a8] sm:$0xff]  ;;  %354 = vst [vmem:[%s2846_s10 + $0x1c8] sm:$0xff] %v353_v1 }
  0x55   : > { %356 = vst [vmem:[%s2846_s10 + $0x1d0] sm:$0xff] %v355_v2  ;;  %358 = vst [vmem:[%s2846_s10 + $0x1d8] sm:$0xff] %v357_v3  ;;  %v359_v4 = vld [vmem:[%s2841_s27 + $0x3c0] sm:$0xff]  ;;  %v361_v5 = vld [vmem:[%s2841_s27 + $0x3c8] sm:$0xff] }
  0x56   : > { %v363_v6 = vld [vmem:[%s2841_s27 + $0x3e0] sm:$0xff]  ;;  %360 = vst [vmem:[%s2846_s10 + $0x1e0] sm:$0xff] %v359_v4  ;;  %362 = vst [vmem:[%s2846_s10 + $0x1e8] sm:$0xff] %v361_v5  ;;  %v365_v7 = vld [vmem:[%s2841_s27 + $0x3e8] sm:$0xff] }
  0x57   : > { %364 = vst [vmem:[%s2846_s10 + $0x1f0] sm:$0xff] %v363_v6  ;;  %v367_v8 = vld [vmem:[%s2841_s27 + $0x400] sm:$0xff]  ;;  %v369_v9 = vld [vmem:[%s2841_s27 + $0x408] sm:$0xff]  ;;  %366 = vst [vmem:[%s2846_s10 + $0x1f8] sm:$0xff] %v365_v7 }
  0x58   : > { %368 = vst [vmem:[%s2846_s10 + $0x200] sm:$0xff] %v367_v8  ;;  %370 = vst [vmem:[%s2846_s10 + $0x208] sm:$0xff] %v369_v9  ;;  %v371_v10 = vld [vmem:[%s2841_s27 + $0x420] sm:$0xff]  ;;  %v373_v11 = vld [vmem:[%s2841_s27 + $0x428] sm:$0xff] }
  0x59   : > { %v375_v12 = vld [vmem:[%s2841_s27 + $0x440] sm:$0xff]  ;;  %372 = vst [vmem:[%s2846_s10 + $0x210] sm:$0xff] %v371_v10  ;;  %374 = vst [vmem:[%s2846_s10 + $0x218] sm:$0xff] %v373_v11  ;;  %v377_v13 = vld [vmem:[%s2841_s27 + $0x448] sm:$0xff] }
  0x5a   : > { %376 = vst [vmem:[%s2846_s10 + $0x220] sm:$0xff] %v375_v12  ;;  %v379_v14 = vld [vmem:[%s2841_s27 + $0x460] sm:$0xff]  ;;  %v381_v15 = vld [vmem:[%s2841_s27 + $0x468] sm:$0xff]  ;;  %378 = vst [vmem:[%s2846_s10 + $0x228] sm:$0xff] %v377_v13 }
  0x5b   : > { %380 = vst [vmem:[%s2846_s10 + $0x230] sm:$0xff] %v379_v14  ;;  %382 = vst [vmem:[%s2846_s10 + $0x238] sm:$0xff] %v381_v15  ;;  %v383_v16 = vld [vmem:[%s2841_s27 + $0x480] sm:$0xff]  ;;  %v385_v17 = vld [vmem:[%s2841_s27 + $0x488] sm:$0xff] }
  0x5c   : > { %v387_v18 = vld [vmem:[%s2841_s27 + $0x4a0] sm:$0xff]  ;;  %384 = vst [vmem:[%s2846_s10 + $0x240] sm:$0xff] %v383_v16  ;;  %386 = vst [vmem:[%s2846_s10 + $0x248] sm:$0xff] %v385_v17  ;;  %v389_v19 = vld [vmem:[%s2841_s27 + $0x4a8] sm:$0xff] }
  0x5d   : > { %388 = vst [vmem:[%s2846_s10 + $0x250] sm:$0xff] %v387_v18  ;;  %v391_v20 = vld [vmem:[%s2841_s27 + $0x4c0] sm:$0xff]  ;;  %v393_v21 = vld [vmem:[%s2841_s27 + $0x4c8] sm:$0xff]  ;;  %390 = vst [vmem:[%s2846_s10 + $0x258] sm:$0xff] %v389_v19 }
  0x5e   : > { %392 = vst [vmem:[%s2846_s10 + $0x260] sm:$0xff] %v391_v20  ;;  %394 = vst [vmem:[%s2846_s10 + $0x268] sm:$0xff] %v393_v21  ;;  %v395_v22 = vld [vmem:[%s2841_s27 + $0x4e0] sm:$0xff]  ;;  %v397_v23 = vld [vmem:[%s2841_s27 + $0x4e8] sm:$0xff] }
  0x5f   : > { %v399_v24 = vld [vmem:[%s2841_s27 + $0x500] sm:$0xff]  ;;  %396 = vst [vmem:[%s2846_s10 + $0x270] sm:$0xff] %v395_v22  ;;  %398 = vst [vmem:[%s2846_s10 + $0x278] sm:$0xff] %v397_v23  ;;  %v401_v25 = vld [vmem:[%s2841_s27 + $0x508] sm:$0xff] }
  0x60   : > { %400 = vst [vmem:[%s2846_s10 + $0x280] sm:$0xff] %v399_v24  ;;  %v403_v26 = vld [vmem:[%s2841_s27 + $0x520] sm:$0xff]  ;;  %v405_v27 = vld [vmem:[%s2841_s27 + $0x528] sm:$0xff]  ;;  %402 = vst [vmem:[%s2846_s10 + $0x288] sm:$0xff] %v401_v25 }
  0x61   : > { %404 = vst [vmem:[%s2846_s10 + $0x290] sm:$0xff] %v403_v26  ;;  %406 = vst [vmem:[%s2846_s10 + $0x298] sm:$0xff] %v405_v27  ;;  %v407_v28 = vld [vmem:[%s2841_s27 + $0x540] sm:$0xff]  ;;  %v409_v29 = vld [vmem:[%s2841_s27 + $0x548] sm:$0xff] }
  0x62   : > { %v411_v30 = vld [vmem:[%s2841_s27 + $0x560] sm:$0xff]  ;;  %408 = vst [vmem:[%s2846_s10 + $0x2a0] sm:$0xff] %v407_v28  ;;  %410 = vst [vmem:[%s2846_s10 + $0x2a8] sm:$0xff] %v409_v29  ;;  %v413_v31 = vld [vmem:[%s2841_s27 + $0x568] sm:$0xff] }
  0x63   : > { %412 = vst [vmem:[%s2846_s10 + $0x2b0] sm:$0xff] %v411_v30  ;;  %v415_v32 = vld [vmem:[%s2841_s27 + $0x580] sm:$0xff]  ;;  %v417_v33 = vld [vmem:[%s2841_s27 + $0x588] sm:$0xff]  ;;  %414 = vst [vmem:[%s2846_s10 + $0x2b8] sm:$0xff] %v413_v31 }
  0x64   : > { %416 = vst [vmem:[%s2846_s10 + $0x2c0] sm:$0xff] %v415_v32  ;;  %418 = vst [vmem:[%s2846_s10 + $0x2c8] sm:$0xff] %v417_v33  ;;  %v419_v34 = vld [vmem:[%s2841_s27 + $0x5a0] sm:$0xff]  ;;  %v421_v35 = vld [vmem:[%s2841_s27 + $0x5a8] sm:$0xff] }
  0x65   : > { %v423_v36 = vld [vmem:[%s2841_s27 + $0x5c0] sm:$0xff]  ;;  %420 = vst [vmem:[%s2846_s10 + $0x2d0] sm:$0xff] %v419_v34  ;;  %422 = vst [vmem:[%s2846_s10 + $0x2d8] sm:$0xff] %v421_v35  ;;  %v425_v37 = vld [vmem:[%s2841_s27 + $0x5c8] sm:$0xff] }
  0x66   : > { %424 = vst [vmem:[%s2846_s10 + $0x2e0] sm:$0xff] %v423_v36  ;;  %v427_v38 = vld [vmem:[%s2841_s27 + $0x5e0] sm:$0xff]  ;;  %v429_v39 = vld [vmem:[%s2841_s27 + $0x5e8] sm:$0xff]  ;;  %426 = vst [vmem:[%s2846_s10 + $0x2e8] sm:$0xff] %v425_v37 }
  0x67   : > { %428 = vst [vmem:[%s2846_s10 + $0x2f0] sm:$0xff] %v427_v38  ;;  %430 = vst [vmem:[%s2846_s10 + $0x2f8] sm:$0xff] %v429_v39  ;;  %v431_v40 = vld [vmem:[%s2841_s27 + $0x600] sm:$0xff]  ;;  %v433_v41 = vld [vmem:[%s2841_s27 + $0x608] sm:$0xff] }
  0x68   : > { %v435_v42 = vld [vmem:[%s2841_s27 + $0x620] sm:$0xff]  ;;  %432 = vst [vmem:[%s2846_s10 + $0x300] sm:$0xff] %v431_v40  ;;  %434 = vst [vmem:[%s2846_s10 + $0x308] sm:$0xff] %v433_v41  ;;  %v437_v43 = vld [vmem:[%s2841_s27 + $0x628] sm:$0xff] }
  0x69   : > { %436 = vst [vmem:[%s2846_s10 + $0x310] sm:$0xff] %v435_v42  ;;  %v439_v44 = vld [vmem:[%s2841_s27 + $0x640] sm:$0xff]  ;;  %v441_v45 = vld [vmem:[%s2841_s27 + $0x648] sm:$0xff]  ;;  %438 = vst [vmem:[%s2846_s10 + $0x318] sm:$0xff] %v437_v43 }
  0x6a   : > { %440 = vst [vmem:[%s2846_s10 + $0x320] sm:$0xff] %v439_v44  ;;  %442 = vst [vmem:[%s2846_s10 + $0x328] sm:$0xff] %v441_v45  ;;  %v443_v46 = vld [vmem:[%s2841_s27 + $0x660] sm:$0xff]  ;;  %v445_v47 = vld [vmem:[%s2841_s27 + $0x668] sm:$0xff] }
  0x6b   : > { %v447_v48 = vld [vmem:[%s2841_s27 + $0x680] sm:$0xff]  ;;  %444 = vst [vmem:[%s2846_s10 + $0x330] sm:$0xff] %v443_v46  ;;  %446 = vst [vmem:[%s2846_s10 + $0x338] sm:$0xff] %v445_v47  ;;  %v449_v49 = vld [vmem:[%s2841_s27 + $0x688] sm:$0xff] }
  0x6c   : > { %448 = vst [vmem:[%s2846_s10 + $0x340] sm:$0xff] %v447_v48  ;;  %v451_v50 = vld [vmem:[%s2841_s27 + $0x6a0] sm:$0xff]  ;;  %v453_v51 = vld [vmem:[%s2841_s27 + $0x6a8] sm:$0xff]  ;;  %450 = vst [vmem:[%s2846_s10 + $0x348] sm:$0xff] %v449_v49 }
  0x6d   : > { %452 = vst [vmem:[%s2846_s10 + $0x350] sm:$0xff] %v451_v50  ;;  %454 = vst [vmem:[%s2846_s10 + $0x358] sm:$0xff] %v453_v51  ;;  %v455_v52 = vld [vmem:[%s2841_s27 + $0x6c0] sm:$0xff]  ;;  %v457_v53 = vld [vmem:[%s2841_s27 + $0x6c8] sm:$0xff] }
  0x6e   : > { %v459_v54 = vld [vmem:[%s2841_s27 + $0x6e0] sm:$0xff]  ;;  %456 = vst [vmem:[%s2846_s10 + $0x360] sm:$0xff] %v455_v52  ;;  %458 = vst [vmem:[%s2846_s10 + $0x368] sm:$0xff] %v457_v53  ;;  %v461_v55 = vld [vmem:[%s2841_s27 + $0x6e8] sm:$0xff] }
  0x6f   : > { %460 = vst [vmem:[%s2846_s10 + $0x370] sm:$0xff] %v459_v54  ;;  %v463_v56 = vld [vmem:[%s2841_s27 + $0x700] sm:$0xff]  ;;  %v465_v57 = vld [vmem:[%s2841_s27 + $0x708] sm:$0xff]  ;;  %462 = vst [vmem:[%s2846_s10 + $0x378] sm:$0xff] %v461_v55 }
  0x70   : > { %464 = vst [vmem:[%s2846_s10 + $0x380] sm:$0xff] %v463_v56  ;;  %466 = vst [vmem:[%s2846_s10 + $0x388] sm:$0xff] %v465_v57  ;;  %v467_v58 = vld [vmem:[%s2841_s27 + $0x720] sm:$0xff]  ;;  %v469_v59 = vld [vmem:[%s2841_s27 + $0x728] sm:$0xff] }
  0x71   : > { %v471_v60 = vld [vmem:[%s2841_s27 + $0x740] sm:$0xff]  ;;  %468 = vst [vmem:[%s2846_s10 + $0x390] sm:$0xff] %v467_v58  ;;  %470 = vst [vmem:[%s2846_s10 + $0x398] sm:$0xff] %v469_v59  ;;  %v473_v61 = vld [vmem:[%s2841_s27 + $0x748] sm:$0xff] }
  0x72   : > { %472 = vst [vmem:[%s2846_s10 + $0x3a0] sm:$0xff] %v471_v60  ;;  %v475_v62 = vld [vmem:[%s2841_s27 + $0x760] sm:$0xff]  ;;  %v477_v63 = vld [vmem:[%s2841_s27 + $0x768] sm:$0xff]  ;;  %474 = vst [vmem:[%s2846_s10 + $0x3a8] sm:$0xff] %v473_v61 }
  0x73   : > { %476 = vst [vmem:[%s2846_s10 + $0x3b0] sm:$0xff] %v475_v62  ;;  %478 = vst [vmem:[%s2846_s10 + $0x3b8] sm:$0xff] %v477_v63  ;;  %v479_v0 = vld [vmem:[%s2841_s27 + $0x780] sm:$0xff]  ;;  %v481_v1 = vld [vmem:[%s2841_s27 + $0x788] sm:$0xff] }
  0x74   : > { %v483_v2 = vld [vmem:[%s2841_s27 + $0x7a0] sm:$0xff]  ;;  %480 = vst [vmem:[%s2846_s10 + $0x3c0] sm:$0xff] %v479_v0  ;;  %482 = vst [vmem:[%s2846_s10 + $0x3c8] sm:$0xff] %v481_v1  ;;  %v485_v3 = vld [vmem:[%s2841_s27 + $0x7a8] sm:$0xff] }
  0x75   : > { %484 = vst [vmem:[%s2846_s10 + $0x3d0] sm:$0xff] %v483_v2  ;;  %v487_v4 = vld [vmem:[%s2841_s27 + $0x7c0] sm:$0xff]  ;;  %v489_v5 = vld [vmem:[%s2841_s27 + $0x7c8] sm:$0xff]  ;;  %486 = vst [vmem:[%s2846_s10 + $0x3d8] sm:$0xff] %v485_v3 }
  0x76   : > { %488 = vst [vmem:[%s2846_s10 + $0x3e0] sm:$0xff] %v487_v4  ;;  %490 = vst [vmem:[%s2846_s10 + $0x3e8] sm:$0xff] %v489_v5  ;;  %v491_v6 = vld [vmem:[%s2841_s27 + $0x7e0] sm:$0xff]  ;;  %v493_v7 = vld [vmem:[%s2841_s27 + $0x7e8] sm:$0xff] }
  0x77   : > { %492 = vst [vmem:[%s2846_s10 + $0x3f0] sm:$0xff] %v491_v6  ;;  %494 = vst [vmem:[%s2846_s10 + $0x3f8] sm:$0xff] %v493_v7 }
  0x78 PF: > { %p2160_p0 = scmp.ge.s32.totalorder %s2699_s25, 1  ;;  %p515_p1 = scmp.lt.s32.totalorder %s2699_s25, 33 }
  0x7a   : > { %p516_p2 = pnand %p2160_p0, %p515_p1 }
  0x7b   : > { %s522_s0 = sand.u32 (!%p516_p2), 1, %s2675_s19   ;;  %s529_s28 = sand.u32 (!%p516_p2), 1, %s2667_s17  }
  0x7c   : > { %519 = sbr.rel (%p516_p2) target bundleno = 570 (0x23a), region = 74  ;;  %s2161_s11 = sshll.u32 (!%p516_p2), %s522_s0, 6 }
  0x7d   : > { %s2162_s26 = sshll.u32 (!%p516_p2), %s529_s28, 10  ;;  %s562_s5 = sand.u32 (!%p516_p2), 1, %s2659_s15  }
  0x7e   : > { %s2164_s27 = sshll.u32 (!%p516_p2), %s2687_s22, 2  ;;  %s2163_s29 = sshll.u32 (!%p516_p2), %s562_s5, 7 }
  0x7f   : > { %p569_p3 = scmp.lt.s32.totalorder (!%p516_p2), %s2164_s27, 7  ;;  %s3117_s19 = scalar_lea.vmem (!%p516_p2), [#allocation2], %s2161_s11 }
  0x80   : > { %s3119_s17 = scalar_lea.vmem (!%p516_p2), [#allocation3], %s2162_s26  ;;  %s3121_s15 = scalar_lea.vmem (!%p516_p2), [#allocation4], %s2163_s29 }
  0x81   : > { %s3647_s27 = smov (!%p569_p3, %s2164_s27), 7  ;;  %p2166_p4 = scmp.ne.s32.totalorder %s2683_s21, 0 }
  0x82   : > { %s571_s6 = scalar_lea.vmem %s3614_s2, %s3647_s27  ;;  %s576_s1 = scalar_lea.vmem %s3615_s3, %s3647_s27 }
  0x83   : > { %582 = sbr.rel (%p2166_p4) target bundleno = 145 (0x91), region = 86 }
  0x88   : > { %v2701_v8 = vmov 0.0  }
  0x89   : > { %583 = vst [vmem:[%s3121_s15] sm:$0xff] %v2701_v8  ;;  %584 = vst [vmem:[%s3121_s15 + $0x8] sm:$0xff] %v2701_v8 }
  0x8a   : > { %585 = vst [vmem:[%s3121_s15 + $0x10] sm:$0xff] %v2701_v8  ;;  %586 = vst [vmem:[%s3121_s15 + $0x18] sm:$0xff] %v2701_v8 }
  0x8b   : > { %587 = vst [vmem:[%s3121_s15 + $0x20] sm:$0xff] %v2701_v8  ;;  %588 = vst [vmem:[%s3121_s15 + $0x28] sm:$0xff] %v2701_v8 }
  0x8c   : > { %589 = vst [vmem:[%s3121_s15 + $0x30] sm:$0xff] %v2701_v8  ;;  %590 = vst [vmem:[%s3121_s15 + $0x38] sm:$0xff] %v2701_v8 }
  0x8d   : > { %591 = vst [vmem:[%s3121_s15 + $0x40] sm:$0xff] %v2701_v8  ;;  %592 = vst [vmem:[%s3121_s15 + $0x48] sm:$0xff] %v2701_v8 }
  0x8e   : > { %593 = vst [vmem:[%s3121_s15 + $0x50] sm:$0xff] %v2701_v8  ;;  %594 = vst [vmem:[%s3121_s15 + $0x58] sm:$0xff] %v2701_v8 }
  0x8f   : > { %595 = vst [vmem:[%s3121_s15 + $0x60] sm:$0xff] %v2701_v8  ;;  %596 = vst [vmem:[%s3121_s15 + $0x68] sm:$0xff] %v2701_v8 }
  0x90   : > { %597 = vst [vmem:[%s3121_s15 + $0x70] sm:$0xff] %v2701_v8  ;;  %598 = vst [vmem:[%s3121_s15 + $0x78] sm:$0xff] %v2701_v8 }
  0x91 PF: > { %v2401_v9 = vld [vmem:[%s3119_s17 + $0xe4] ss:$16 sps:$4 sm:$0xff]   ;;  %v2405_v11 = vld [vmem:[%s3119_s17 + $0xe0] ss:$16 sps:$4 sm:$0xff]   ;;  %v3194_v60 = vld [vmem:[%s3117_s19 + $0xc] ss:$16 sps:$4 sm:$0xff]  }
  0x92   : > { %v2403_v10 = vld [vmem:[%s3119_s17 + $0x2e4] ss:$16 sps:$4 sm:$0xff]   ;;  %1431 = vmatprep.subr.bf16.mxu0 %v2401_v9  ;;  %v2406_v12 = vld [vmem:[%s3119_s17 + $0x2e0] ss:$16 sps:$4 sm:$0xff]   ;;  %1516 = vmatprep.mubr.bf16.mxu1 %v3194_v60  ;;  %p2303_p5 = scmp.ne.s32.totalorder %s2683_s21, 15 }
  0x93   : > { %1484 = vmatprep.subr.bf16.mxu1 %v2403_v10  ;;  %v2407_v13 = vld [vmem:[%s3119_s17 + $0xc4] ss:$16 sps:$4 sm:$0xff]   ;;  %1432 = vmatpush1.bf16.msra.mxu0 %v2405_v11  ;;  %v2411_v15 = vld [vmem:[%s3119_s17 + $0xc0] ss:$16 sps:$4 sm:$0xff]   ;;  %v2505_v11 = vld [vmem:[%s3119_s17 + $0xec] ss:$16 sps:$4 sm:$0xff]  }
  0x94   : > { %1485 = vmatpush1.bf16.msra.mxu1 %v2406_v12  ;;  %v2409_v14 = vld [vmem:[%s3119_s17 + $0x2c4] ss:$16 sps:$4 sm:$0xff]   ;;  %1433 = vmatprep.subr.bf16.mxu0 %v2407_v13  ;;  %v2412_v16 = vld [vmem:[%s3119_s17 + $0x2c0] ss:$16 sps:$4 sm:$0xff]   ;;  %v2508_v12 = vld [vmem:[%s3119_s17 + $0x2ec] ss:$16 sps:$4 sm:$0xff]  }
  0x95   : > { %1486 = vmatprep.subr.bf16.mxu1 %v2409_v14  ;;  %v2413_v17 = vld [vmem:[%s3119_s17 + $0xa4] ss:$16 sps:$4 sm:$0xff]   ;;  %v2417_v19 = vld [vmem:[%s3119_s17 + $0xa0] ss:$16 sps:$4 sm:$0xff]   ;;  %v3218_v14 = vld [vmem:[%s3117_s19 + $0x8] ss:$16 sps:$4 sm:$0xff]  }
  0x96   : > { %v2415_v18 = vld [vmem:[%s3119_s17 + $0x2a4] ss:$16 sps:$4 sm:$0xff]   ;;  %v2418_v20 = vld [vmem:[%s3119_s17 + $0x2a0] ss:$16 sps:$4 sm:$0xff]  }
  0x97   : > { %1434 = vmatpush1.bf16.msra.mxu0 %v2411_v15  ;;  %v2419_v21 = vld [vmem:[%s3119_s17 + $0x84] ss:$16 sps:$4 sm:$0xff]   ;;  %v2423_v23 = vld [vmem:[%s3119_s17 + $0x80] ss:$16 sps:$4 sm:$0xff]   ;;  %v2503_v15 = vld [vmem:[%s3119_s17 + $0xe8] ss:$16 sps:$4 sm:$0xff]  }
  0x98   : > { %1487 = vmatpush1.bf16.msra.mxu1 %v2412_v16  ;;  %1435 = vmatprep.subr.bf16.mxu0 %v2413_v17  ;;  %v2421_v22 = vld [vmem:[%s3119_s17 + $0x284] ss:$16 sps:$4 sm:$0xff]   ;;  %v2424_v24 = vld [vmem:[%s3119_s17 + $0x280] ss:$16 sps:$4 sm:$0xff]   ;;  %v2506_v16 = vld [vmem:[%s3119_s17 + $0x2e8] ss:$16 sps:$4 sm:$0xff]  }
  0x99   : > { %1488 = vmatprep.subr.bf16.mxu1 %v2415_v18  ;;  %v2425_v25 = vld [vmem:[%s3119_s17 + $0x64] ss:$16 sps:$4 sm:$0xff]   ;;  %v2429_v27 = vld [vmem:[%s3119_s17 + $0x60] ss:$16 sps:$4 sm:$0xff]   ;;  %v2511_v17 = vld [vmem:[%s3119_s17 + $0xcc] ss:$16 sps:$4 sm:$0xff]  }
  0x9a   : > { %v2427_v26 = vld [vmem:[%s3119_s17 + $0x264] ss:$16 sps:$4 sm:$0xff]   ;;  %v2430_v28 = vld [vmem:[%s3119_s17 + $0x260] ss:$16 sps:$4 sm:$0xff]   ;;  %v2514_v18 = vld [vmem:[%s3119_s17 + $0x2cc] ss:$16 sps:$4 sm:$0xff]  }
  0x9b   : > { %1436 = vmatpush1.bf16.msra.mxu0 %v2417_v19  ;;  %v2431_v29 = vld [vmem:[%s3119_s17 + $0x44] ss:$16 sps:$4 sm:$0xff]   ;;  %v2435_v31 = vld [vmem:[%s3119_s17 + $0x40] ss:$16 sps:$4 sm:$0xff]   ;;  %v2509_v19 = vld [vmem:[%s3119_s17 + $0xc8] ss:$16 sps:$4 sm:$0xff]  }
  0x9c   : > { %1489 = vmatpush1.bf16.msra.mxu1 %v2418_v20  ;;  %1437 = vmatprep.subr.bf16.mxu0 %v2419_v21  ;;  %v2433_v30 = vld [vmem:[%s3119_s17 + $0x244] ss:$16 sps:$4 sm:$0xff]   ;;  %v2436_v32 = vld [vmem:[%s3119_s17 + $0x240] ss:$16 sps:$4 sm:$0xff]   ;;  %v2512_v20 = vld [vmem:[%s3119_s17 + $0x2c8] ss:$16 sps:$4 sm:$0xff]  }
  0x9d   : > { %1490 = vmatprep.subr.bf16.mxu1 %v2421_v22  ;;  %v2437_v33 = vld [vmem:[%s3119_s17 + $0x24] ss:$16 sps:$4 sm:$0xff]   ;;  %v2441_v35 = vld [vmem:[%s3119_s17 + $0x20] ss:$16 sps:$4 sm:$0xff]   ;;  %v2517_v21 = vld [vmem:[%s3119_s17 + $0xac] ss:$16 sps:$4 sm:$0xff]  }
  0x9e   : > { %v2439_v34 = vld [vmem:[%s3119_s17 + $0x224] ss:$16 sps:$4 sm:$0xff]   ;;  %v2442_v36 = vld [vmem:[%s3119_s17 + $0x220] ss:$16 sps:$4 sm:$0xff]   ;;  %v2520_v22 = vld [vmem:[%s3119_s17 + $0x2ac] ss:$16 sps:$4 sm:$0xff]  }
  0x9f   : > { %1438 = vmatpush1.bf16.msra.mxu0 %v2423_v23  ;;  %v2443_v37 = vld [vmem:[%s3119_s17 + $0x4] ss:$16 sps:$4 sm:$0xff]   ;;  %v2447_v39 = vld [vmem:[%s3119_s17] ss:$16 sps:$4 sm:$0xff]   ;;  %v2515_v23 = vld [vmem:[%s3119_s17 + $0xa8] ss:$16 sps:$4 sm:$0xff]  }
  0xa0   : > { %1491 = vmatpush1.bf16.msra.mxu1 %v2424_v24  ;;  %1439 = vmatprep.subr.bf16.mxu0 %v2425_v25  ;;  %v2445_v38 = vld [vmem:[%s3119_s17 + $0x204] ss:$16 sps:$4 sm:$0xff]   ;;  %v2448_v40 = vld [vmem:[%s3119_s17 + $0x200] ss:$16 sps:$4 sm:$0xff]   ;;  %v2518_v24 = vld [vmem:[%s3119_s17 + $0x2a8] ss:$16 sps:$4 sm:$0xff]  }
  0xa1   : > { %1492 = vmatprep.subr.bf16.mxu1 %v2427_v26  ;;  %v2449_v41 = vld [vmem:[%s3119_s17 + $0x1e4] ss:$16 sps:$4 sm:$0xff]   ;;  %v2453_v43 = vld [vmem:[%s3119_s17 + $0x1e0] ss:$16 sps:$4 sm:$0xff]   ;;  %v2523_v25 = vld [vmem:[%s3119_s17 + $0x8c] ss:$16 sps:$4 sm:$0xff]  }
  0xa2   : > { %v2451_v42 = vld [vmem:[%s3119_s17 + $0x3e4] ss:$16 sps:$4 sm:$0xff]   ;;  %v2454_v44 = vld [vmem:[%s3119_s17 + $0x3e0] ss:$16 sps:$4 sm:$0xff]   ;;  %v2526_v26 = vld [vmem:[%s3119_s17 + $0x28c] ss:$16 sps:$4 sm:$0xff]  }
  0xa3   : > { %1440 = vmatpush1.bf16.msra.mxu0 %v2429_v27  ;;  %v2455_v45 = vld [vmem:[%s3119_s17 + $0x1c4] ss:$16 sps:$4 sm:$0xff]   ;;  %v2459_v47 = vld [vmem:[%s3119_s17 + $0x1c0] ss:$16 sps:$4 sm:$0xff]   ;;  %v2521_v27 = vld [vmem:[%s3119_s17 + $0x88] ss:$16 sps:$4 sm:$0xff]  }
  0xa4   : > { %1493 = vmatpush1.bf16.msra.mxu1 %v2430_v28  ;;  %1441 = vmatprep.subr.bf16.mxu0 %v2431_v29  ;;  %v2457_v46 = vld [vmem:[%s3119_s17 + $0x3c4] ss:$16 sps:$4 sm:$0xff]   ;;  %v2460_v48 = vld [vmem:[%s3119_s17 + $0x3c0] ss:$16 sps:$4 sm:$0xff]   ;;  %v2524_v28 = vld [vmem:[%s3119_s17 + $0x288] ss:$16 sps:$4 sm:$0xff]  }
  0xa5   : > { %1494 = vmatprep.subr.bf16.mxu1 %v2433_v30  ;;  %v2461_v49 = vld [vmem:[%s3119_s17 + $0x1a4] ss:$16 sps:$4 sm:$0xff]   ;;  %v2465_v51 = vld [vmem:[%s3119_s17 + $0x1a0] ss:$16 sps:$4 sm:$0xff]   ;;  %v2529_v29 = vld [vmem:[%s3119_s17 + $0x6c] ss:$16 sps:$4 sm:$0xff]  }
  0xa6   : > { %v2463_v50 = vld [vmem:[%s3119_s17 + $0x3a4] ss:$16 sps:$4 sm:$0xff]   ;;  %v2466_v52 = vld [vmem:[%s3119_s17 + $0x3a0] ss:$16 sps:$4 sm:$0xff]   ;;  %v2532_v30 = vld [vmem:[%s3119_s17 + $0x26c] ss:$16 sps:$4 sm:$0xff]  }
  0xa7   : > { %1442 = vmatpush1.bf16.msra.mxu0 %v2435_v31  ;;  %v2467_v53 = vld [vmem:[%s3119_s17 + $0x184] ss:$16 sps:$4 sm:$0xff]   ;;  %v2471_v55 = vld [vmem:[%s3119_s17 + $0x180] ss:$16 sps:$4 sm:$0xff]   ;;  %v2527_v31 = vld [vmem:[%s3119_s17 + $0x68] ss:$16 sps:$4 sm:$0xff]  }
  0xa8   : > { %1495 = vmatpush1.bf16.msra.mxu1 %v2436_v32  ;;  %1443 = vmatprep.subr.bf16.mxu0 %v2437_v33  ;;  %v2469_v54 = vld [vmem:[%s3119_s17 + $0x384] ss:$16 sps:$4 sm:$0xff]   ;;  %v2472_v56 = vld [vmem:[%s3119_s17 + $0x380] ss:$16 sps:$4 sm:$0xff]   ;;  %v2530_v32 = vld [vmem:[%s3119_s17 + $0x268] ss:$16 sps:$4 sm:$0xff]  }
  0xa9   : > { %1496 = vmatprep.subr.bf16.mxu1 %v2439_v34  ;;  %v2473_v57 = vld [vmem:[%s3119_s17 + $0x164] ss:$16 sps:$4 sm:$0xff]   ;;  %v2477_v61 = vld [vmem:[%s3119_s17 + $0x160] ss:$16 sps:$4 sm:$0xff]   ;;  %v2535_v33 = vld [vmem:[%s3119_s17 + $0x4c] ss:$16 sps:$4 sm:$0xff]  }
  0xaa   : > { %v3190_v58 = vld [vmem:[%s3117_s19 + $0x4] ss:$16 sps:$4 sm:$0xff]   ;;  %v2478_v62 = vld [vmem:[%s3119_s17 + $0x360] ss:$16 sps:$4 sm:$0xff]   ;;  %v2538_v34 = vld [vmem:[%s3119_s17 + $0x24c] ss:$16 sps:$4 sm:$0xff]  }
  0xab   : > { %1444 = vmatpush1.bf16.msra.mxu0 %v2441_v35  ;;  %v2475_v59 = vld [vmem:[%s3119_s17 + $0x364] ss:$16 sps:$4 sm:$0xff]   ;;  %1463 = vmatprep.mubr.bf16.mxu0 %v3190_v58  ;;  %v2483_v1 = vld [vmem:[%s3119_s17 + $0x140] ss:$16 sps:$4 sm:$0xff]  }
  0xac   : > { %1497 = vmatpush1.bf16.msra.mxu1 %v2442_v36  ;;  %1445 = vmatprep.subr.bf16.mxu0 %v2443_v37  ;;  %v2479_v63 = vld [vmem:[%s3119_s17 + $0x144] ss:$16 sps:$4 sm:$0xff]   ;;  %v2484_v2 = vld [vmem:[%s3119_s17 + $0x340] ss:$16 sps:$4 sm:$0xff]   ;;  %v3246_v36 = vld [vmem:[%s3117_s19 + $0x2c] ss:$16 sps:$4 sm:$0xff]  }
  0xad   : > { %1498 = vmatprep.subr.bf16.mxu1 %v2445_v38  ;;  %v2481_v0 = vld [vmem:[%s3119_s17 + $0x344] ss:$16 sps:$4 sm:$0xff]   ;;  %v2489_v5 = vld [vmem:[%s3119_s17 + $0x120] ss:$16 sps:$4 sm:$0xff]   ;;  %v3253_v38 = vld [vmem:[%s3117_s19 + $0x28] ss:$16 sps:$4 sm:$0xff]  }
  0xae   : > { %v2485_v3 = vld [vmem:[%s3119_s17 + $0x124] ss:$16 sps:$4 sm:$0xff]   ;;  %v2490_v6 = vld [vmem:[%s3119_s17 + $0x320] ss:$16 sps:$4 sm:$0xff]  }
  0xaf   : > { %1446 = vmatpush1.bf16.msra.mxu0 %v2447_v39  ;;  %v2487_v4 = vld [vmem:[%s3119_s17 + $0x324] ss:$16 sps:$4 sm:$0xff]   ;;  %v2495_v9 = vld [vmem:[%s3119_s17 + $0x100] ss:$16 sps:$4 sm:$0xff]   ;;  %v2533_v39 = vld [vmem:[%s3119_s17 + $0x48] ss:$16 sps:$4 sm:$0xff]  }
  0xb0   : > { %1499 = vmatpush1.bf16.msra.mxu1 %v2448_v40  ;;  %1447 = vmatprep.subr.bf16.mxu0 %v2449_v41  ;;  %v2491_v7 = vld [vmem:[%s3119_s17 + $0x104] ss:$16 sps:$4 sm:$0xff]   ;;  %v2496_v10 = vld [vmem:[%s3119_s17 + $0x300] ss:$16 sps:$4 sm:$0xff]   ;;  %v2536_v40 = vld [vmem:[%s3119_s17 + $0x248] ss:$16 sps:$4 sm:$0xff]  }
  0xb1   : > { %1500 = vmatprep.subr.bf16.mxu1 %v2451_v42  ;;  %v2493_v8 = vld [vmem:[%s3119_s17 + $0x304] ss:$16 sps:$4 sm:$0xff]   ;;  %v3215_v13 = vld [vmem:[%s3117_s19] ss:$16 sps:$4 sm:$0xff]   ;;  %v2541_v41 = vld [vmem:[%s3119_s17 + $0x2c] ss:$16 sps:$4 sm:$0xff]  }
  0xb2   : > { %v3243_v35 = vld [vmem:[%s3117_s19 + $0x24] ss:$16 sps:$4 sm:$0xff]   ;;  %v3250_v37 = vld [vmem:[%s3117_s19 + $0x20] ss:$16 sps:$4 sm:$0xff]   ;;  %v2544_v42 = vld [vmem:[%s3119_s17 + $0x22c] ss:$16 sps:$4 sm:$0xff]  }
  0xb3   : > { %1448 = vmatpush2.bf16.msra.mxu0 %v2453_v43  ;;  %v2539_v43 = vld [vmem:[%s3119_s17 + $0x28] ss:$16 sps:$4 sm:$0xff]  }
  0xb4   : > { %1501 = vmatpush2.bf16.msra.mxu1 %v2454_v44  ;;  %1449 = vmatprep.subr.bf16.mxu0 %v2455_v45  ;;  %v2542_v44 = vld [vmem:[%s3119_s17 + $0x228] ss:$16 sps:$4 sm:$0xff]   ;;  %v2547_v45 = vld [vmem:[%s3119_s17 + $0xc] ss:$16 sps:$4 sm:$0xff]  }
  0xb5   : > { %1502 = vmatprep.subr.bf16.mxu1 %v2457_v46  ;;  %v2550_v46 = vld [vmem:[%s3119_s17 + $0x20c] ss:$16 sps:$4 sm:$0xff]  }
  0xb7   : > { %1450 = vmatpush2.bf16.msra.mxu0 %v2459_v47  ;;  %v2545_v47 = vld [vmem:[%s3119_s17 + $0x8] ss:$16 sps:$4 sm:$0xff]  }
  0xb8   : > { %1503 = vmatpush2.bf16.msra.mxu1 %v2460_v48  ;;  %1451 = vmatprep.subr.bf16.mxu0 %v2461_v49  ;;  %v2548_v48 = vld [vmem:[%s3119_s17 + $0x208] ss:$16 sps:$4 sm:$0xff]   ;;  %v2553_v49 = vld [vmem:[%s3119_s17 + $0x1ec] ss:$16 sps:$4 sm:$0xff]  }
  0xb9   : > { %1504 = vmatprep.subr.bf16.mxu1 %v2463_v50  ;;  %v2556_v50 = vld [vmem:[%s3119_s17 + $0x3ec] ss:$16 sps:$4 sm:$0xff]  }
  0xbb   : > { %1452 = vmatpush2.bf16.msra.mxu0 %v2465_v51  ;;  %v2551_v51 = vld [vmem:[%s3119_s17 + $0x1e8] ss:$16 sps:$4 sm:$0xff]  }
  0xbc   : > { %1505 = vmatpush2.bf16.msra.mxu1 %v2466_v52  ;;  %1453 = vmatprep.subr.bf16.mxu0 %v2467_v53  ;;  %v2554_v52 = vld [vmem:[%s3119_s17 + $0x3e8] ss:$16 sps:$4 sm:$0xff]   ;;  %v2559_v53 = vld [vmem:[%s3119_s17 + $0x1cc] ss:$16 sps:$4 sm:$0xff]  }
  0xbd   : > { %1506 = vmatprep.subr.bf16.mxu1 %v2469_v54  ;;  %v2562_v54 = vld [vmem:[%s3119_s17 + $0x3cc] ss:$16 sps:$4 sm:$0xff]  }
  0xbf   : > { %1454 = vmatpush2.bf16.msra.mxu0 %v2471_v55  ;;  %v2557_v55 = vld [vmem:[%s3119_s17 + $0x1c8] ss:$16 sps:$4 sm:$0xff]  }
  0xc0   : > { %1507 = vmatpush2.bf16.msra.mxu1 %v2472_v56  ;;  %1455 = vmatprep.subr.bf16.mxu0 %v2473_v57  ;;  %v2560_v56 = vld [vmem:[%s3119_s17 + $0x3c8] ss:$16 sps:$4 sm:$0xff]   ;;  %v2565_v57 = vld [vmem:[%s3119_s17 + $0x1ac] ss:$16 sps:$4 sm:$0xff]  }
  0xc1   : > { %1508 = vmatprep.subr.bf16.mxu1 %v2475_v59  ;;  %v2563_v59 = vld [vmem:[%s3119_s17 + $0x1a8] ss:$16 sps:$4 sm:$0xff]  }
  0xc3   : > { %1456 = vmatpush2.bf16.msra.mxu0 %v2477_v61  ;;  %v2571_v61 = vld [vmem:[%s3119_s17 + $0x18c] ss:$16 sps:$4 sm:$0xff]  }
  0xc4   : > { %1509 = vmatpush2.bf16.msra.mxu1 %v2478_v62  ;;  %1457 = vmatprep.subr.bf16.mxu0 %v2479_v63  ;;  %v2574_v62 = vld [vmem:[%s3119_s17 + $0x38c] ss:$16 sps:$4 sm:$0xff]   ;;  %v2569_v63 = vld [vmem:[%s3119_s17 + $0x188] ss:$16 sps:$4 sm:$0xff]  }
  0xc5   : > { %1510 = vmatprep.subr.bf16.mxu1 %v2481_v0  ;;  %v2572_v0 = vld [vmem:[%s3119_s17 + $0x388] ss:$16 sps:$4 sm:$0xff]  }
  0xc7   : > { %1458 = vmatpush2.bf16.msra.mxu0 %v2483_v1  ;;  %v2577_v1 = vld [vmem:[%s3119_s17 + $0x16c] ss:$16 sps:$4 sm:$0xff]  }
  0xc8   : > { %1511 = vmatpush2.bf16.msra.mxu1 %v2484_v2  ;;  %1459 = vmatprep.subr.bf16.mxu0 %v2485_v3  ;;  %v2580_v2 = vld [vmem:[%s3119_s17 + $0x36c] ss:$16 sps:$4 sm:$0xff]   ;;  %v2575_v3 = vld [vmem:[%s3119_s17 + $0x168] ss:$16 sps:$4 sm:$0xff]  }
  0xc9   : > { %1512 = vmatprep.subr.bf16.mxu1 %v2487_v4  ;;  %v2578_v4 = vld [vmem:[%s3119_s17 + $0x368] ss:$16 sps:$4 sm:$0xff]  }
  0xcb   : > { %1460 = vmatpush2.bf16.msra.mxu0 %v2489_v5  ;;  %v2589_v5 = vld [vmem:[%s3119_s17 + $0x14c] ss:$16 sps:$4 sm:$0xff]  }
  0xcc   : > { %1513 = vmatpush2.bf16.msra.mxu1 %v2490_v6  ;;  %1461 = vmatprep.subr.bf16.mxu0 %v2491_v7  ;;  %v2592_v6 = vld [vmem:[%s3119_s17 + $0x34c] ss:$16 sps:$4 sm:$0xff]   ;;  %v2587_v7 = vld [vmem:[%s3119_s17 + $0x148] ss:$16 sps:$4 sm:$0xff]  }
  0xcd   : > { %1514 = vmatprep.subr.bf16.mxu1 %v2493_v8  ;;  %v2590_v8 = vld [vmem:[%s3119_s17 + $0x348] ss:$16 sps:$4 sm:$0xff]  }
  0xcf   : > { %1462 = vmatpush2.bf16.msra.mxu0 %v2495_v9  ;;  %v2595_v9 = vld [vmem:[%s3119_s17 + $0x12c] ss:$16 sps:$4 sm:$0xff]  }
  0xd0   : > { %1515 = vmatpush2.bf16.msra.mxu1 %v2496_v10  ;;  %1537 = vmatprep.subr.bf16.mxu0 %v2505_v11  ;;  %v2598_v10 = vld [vmem:[%s3119_s17 + $0x32c] ss:$16 sps:$4 sm:$0xff]   ;;  %v2593_v11 = vld [vmem:[%s3119_s17 + $0x128] ss:$16 sps:$4 sm:$0xff]  }
  0xd1   : > { %1590 = vmatprep.subr.bf16.mxu1 %v2508_v12  ;;  %v2596_v12 = vld [vmem:[%s3119_s17 + $0x328] ss:$16 sps:$4 sm:$0xff]  }
  0xd2   : > { %1464 = vmatmul.mubr.bf16.vlgmr.msra.gmra.mxu0 %v3215_v13 }
  0xd3   : > { %1517 = vmatmul.mubr.bf16.vlgmr.msra.gmra.mxu1 %v3218_v14  ;;  %1538 = vmatpush1.bf16.msra.mxu0 %v2503_v15  ;;  %v2601_v15 = vld [vmem:[%s3119_s17 + $0x10c] ss:$16 sps:$4 sm:$0xff]  }
  0xd4   : > { %1591 = vmatpush1.bf16.msra.mxu1 %v2506_v16  ;;  %1539 = vmatprep.subr.bf16.mxu0 %v2511_v17  ;;  %v2604_v16 = vld [vmem:[%s3119_s17 + $0x30c] ss:$16 sps:$4 sm:$0xff]   ;;  %v2599_v17 = vld [vmem:[%s3119_s17 + $0x108] ss:$16 sps:$4 sm:$0xff]  }
  0xd5   : > { %1592 = vmatprep.subr.bf16.mxu1 %v2514_v18  ;;  %1473 = vmatprep.mubr.bf16.mxu0 %v3243_v35  ;;  %v2602_v18 = vld [vmem:[%s3119_s17 + $0x308] ss:$16 sps:$4 sm:$0xff]  }
  0xd6   : > { %1526 = vmatprep.mubr.bf16.mxu1 %v3246_v36 }
  0xd7   : > { %1540 = vmatpush1.bf16.msra.mxu0 %v2509_v19 }
  0xd8   : > { %1593 = vmatpush1.bf16.msra.mxu1 %v2512_v20  ;;  %1541 = vmatprep.subr.bf16.mxu0 %v2517_v21  ;;  %v599_v20 = vld [vmem:[%s3121_s15] sm:$0xff] }
  0xd9   : > { %1594 = vmatprep.subr.bf16.mxu1 %v2520_v22 }
  0xda   : > { %1474 = vmatmul.mubr.bf16.gmra.mxu0 %v3250_v37 }
  0xdb   : > { %1542 = vmatpush1.bf16.msra.mxu0 %v2515_v23  ;;  %1527 = vmatmul.mubr.bf16.gmra.mxu1 %v3253_v38 }
  0xdc   : > { %1595 = vmatpush1.bf16.msra.mxu1 %v2518_v24  ;;  %1543 = vmatprep.subr.bf16.mxu0 %v2523_v25 }
  0xdd   : > { %1596 = vmatprep.subr.bf16.mxu1 %v2526_v26  ;;  %1569 = vmatprep.mubr.bf16.mxu0 %v3190_v58  ;;  %v2568_v58 = vld [vmem:[%s3119_s17 + $0x3ac] ss:$16 sps:$4 sm:$0xff]  }
  0xde   : > { %1622 = vmatprep.mubr.bf16.mxu1 %v3194_v60  ;;  %v2566_v60 = vld [vmem:[%s3119_s17 + $0x3a8] ss:$16 sps:$4 sm:$0xff]  }
  0xdf   : > { %1544 = vmatpush1.bf16.msra.mxu0 %v2521_v27  ;;  %v603_v27 = vld [vmem:[%s3121_s15 + $0x20] sm:$0xff] }
  0xe0   : > { %1597 = vmatpush1.bf16.msra.mxu1 %v2524_v28  ;;  %1545 = vmatprep.subr.bf16.mxu0 %v2529_v29 }
  0xe1   : > { %1598 = vmatprep.subr.bf16.mxu1 %v2532_v30 }
  0xe3   : > { %1546 = vmatpush1.bf16.msra.mxu0 %v2527_v31 }
  0xe4   : > { %1599 = vmatpush1.bf16.msra.mxu1 %v2530_v32  ;;  %1547 = vmatprep.subr.bf16.mxu0 %v2535_v33  ;;  %v604_v32 = vld [vmem:[%s3121_s15 + $0x28] sm:$0xff] }
  0xe5   : > { %1600 = vmatprep.subr.bf16.mxu1 %v2538_v34 }
  0xe7   : > { %1548 = vmatpush1.bf16.msra.mxu0 %v2533_v39 }
  0xe8   : > { %1601 = vmatpush1.bf16.msra.mxu1 %v2536_v40  ;;  %1549 = vmatprep.subr.bf16.mxu0 %v2541_v41 }
  0xe9   : > { %1602 = vmatprep.subr.bf16.mxu1 %v2544_v42  ;;  %v608_v42 = vld [vmem:[%s3121_s15 + $0x48] sm:$0xff] }
  0xeb   : > { %1550 = vmatpush1.bf16.msra.mxu0 %v2539_v43 }
  0xec   : > { %1603 = vmatpush1.bf16.msra.mxu1 %v2542_v44  ;;  %1551 = vmatprep.subr.bf16.mxu0 %v2547_v45 }
  0xed   : > { %1604 = vmatprep.subr.bf16.mxu1 %v2550_v46 }
  0xef   : > { %1552 = vmatpush1.bf16.msra.mxu0 %v2545_v47  ;;  %v611_v47 = vld [vmem:[%s3121_s15 + $0x60] sm:$0xff] }
  0xf0   : > { %1605 = vmatpush1.bf16.msra.mxu1 %v2548_v48  ;;  %1553 = vmatprep.subr.bf16.mxu0 %v2553_v49 }
  0xf1   : > { %1606 = vmatprep.subr.bf16.mxu1 %v2556_v50 }
  0xf3   : > { %1554 = vmatpush2.bf16.msra.mxu0 %v2551_v51 }
  0xf4   : > { %1607 = vmatpush2.bf16.msra.mxu1 %v2554_v52  ;;  %1555 = vmatprep.subr.bf16.mxu0 %v2559_v53  ;;  %v612_v52 = vld [vmem:[%s3121_s15 + $0x68] sm:$0xff] }
  0xf5   : > { %1608 = vmatprep.subr.bf16.mxu1 %v2562_v54 }
  0xf7   : > { %1556 = vmatpush2.bf16.msra.mxu0 %v2557_v55 }
  0xf8   : > { %1609 = vmatpush2.bf16.msra.mxu1 %v2560_v56  ;;  %1557 = vmatprep.subr.bf16.mxu0 %v2565_v57 }
  0xf9   : > { %1610 = vmatprep.subr.bf16.mxu1 %v2568_v58  ;;  %v601_v58 = vld [vmem:[%s3121_s15 + $0x10] sm:$0xff] }
  0xfb   : > { %1558 = vmatpush2.bf16.msra.mxu0 %v2563_v59 }
  0xfc   : > { %1611 = vmatpush2.bf16.msra.mxu1 %v2566_v60  ;;  %1559 = vmatprep.subr.bf16.mxu0 %v2571_v61 }
  0xfd   : > { %1612 = vmatprep.subr.bf16.mxu1 %v2574_v62  ;;  %v602_v62 = vld [vmem:[%s3121_s15 + $0x18] sm:$0xff] }
  0xff   : > { %1560 = vmatpush2.bf16.msra.mxu0 %v2569_v63 }
 0x100   : > { %1613 = vmatpush2.bf16.msra.mxu1 %v2572_v0  ;;  %1561 = vmatprep.subr.bf16.mxu0 %v2577_v1 }
 0x101   : > { %1614 = vmatprep.subr.bf16.mxu1 %v2580_v2 }
 0x103   : > { %1562 = vmatpush2.bf16.msra.mxu0 %v2575_v3  ;;  %v605_v3 = vld [vmem:[%s3121_s15 + $0x30] sm:$0xff] }
 0x104   : > { %1615 = vmatpush2.bf16.msra.mxu1 %v2578_v4  ;;  %1563 = vmatprep.subr.bf16.mxu0 %v2589_v5 }
 0x105   : > { %1616 = vmatprep.subr.bf16.mxu1 %v2592_v6 }
 0x107   : > { %1564 = vmatpush2.bf16.msra.mxu0 %v2587_v7 }
 0x108   : > { %1617 = vmatpush2.bf16.msra.mxu1 %v2590_v8  ;;  %1565 = vmatprep.subr.bf16.mxu0 %v2595_v9  ;;  %v606_v8 = vld [vmem:[%s3121_s15 + $0x38] sm:$0xff] }
 0x109   : > { %1618 = vmatprep.subr.bf16.mxu1 %v2598_v10 }
 0x10b   : > { %1566 = vmatpush2.bf16.msra.mxu0 %v2593_v11 }
 0x10c   : > { %1619 = vmatpush2.bf16.msra.mxu1 %v2596_v12  ;;  %1567 = vmatprep.subr.bf16.mxu0 %v2601_v15  ;;  %v609_v15 = vld [vmem:[%s3121_s15 + $0x50] sm:$0xff] }
 0x10d   : > { %1620 = vmatprep.subr.bf16.mxu1 %v2604_v16 }
 0x10f   : > { %1568 = vmatpush2.bf16.msra.mxu0 %v2599_v17 }
 0x110   : > { %1621 = vmatpush2.bf16.msra.mxu1 %v2602_v18 }
 0x112   : > { %1570 = vmatmul.mubr.bf16.vlgmr.msra.gmra.mxu0 %v3215_v13  ;;  %v600_v13 = vld [vmem:[%s3121_s15 + $0x8] sm:$0xff] }
 0x113   : > { %1623 = vmatmul.mubr.bf16.vlgmr.msra.gmra.mxu1 %v3218_v14  ;;  %1579 = vmatprep.mubr.bf16.mxu0 %v3243_v35 }
 0x114   : > { %1632 = vmatprep.mubr.bf16.mxu1 %v3246_v36 }
 0x11a   : > { %1580 = vmatmul.mubr.bf16.gmra.mxu0 %v3250_v37 }
 0x11b   : > { %1633 = vmatmul.mubr.bf16.gmra.mxu1 %v3253_v38  ;;  %v607_v38 = vld [vmem:[%s3121_s15 + $0x40] sm:$0xff] }
 0x192   : > { %v1465_v19 = vpop.f32.mrf.mxu0 }
 0x193   : > { %v1518_v21 = vpop.f32.mrf.mxu1 }
 0x194   : > { %v1519_v22 = vadd.f32 %v1518_v21, %v1465_v19  ;;  %v1467_v23 = vpop.f32.mrf.mxu0 }
 0x195   : > { %v1520_v24 = vpop.f32.mrf.mxu1 }
 0x196   : > { %v1643_v14 = vadd.f32 %v1519_v22, %v599_v20  ;;  %v1521_v25 = vadd.f32 %v1520_v24, %v1467_v23  ;;  %v1469_v26 = vpop.f32.mrf.mxu0  ;;  %v610_v20 = vld [vmem:[%s3121_s15 + $0x58] sm:$0xff]  ;;  %v613_v24 = vld [vmem:[%s3121_s15 + $0x70] sm:$0xff] }
 0x197   : > { %v1522_v28 = vpop.f32.mrf.mxu1 }
 0x198   : > { %1659 = vst [vmem:[%s3121_s15] sm:$0xff] %v1643_v14  ;;  %v1644_v29 = vadd.f32 %v1521_v25, %v600_v13  ;;  %v1523_v30 = vadd.f32 %v1522_v28, %v1469_v26  ;;  %v1471_v31 = vpop.f32.mrf.mxu0  ;;  %v614_v28 = vld [vmem:[%s3121_s15 + $0x78] sm:$0xff] }
 0x199   : > { %v1524_v33 = vpop.f32.mrf.mxu1 }
 0x19a   : > { %1660 = vst [vmem:[%s3121_s15 + $0x8] sm:$0xff] %v1644_v29  ;;  %v1647_v34 = vadd.f32 %v1523_v30, %v603_v27  ;;  %v1525_v35 = vadd.f32 %v1524_v33, %v1471_v31  ;;  %v1475_v37 = vpop.f32.mrf.mxu0 }
 0x19b   : > { %v1528_v39 = vpop.f32.mrf.mxu1 }
 0x19c   : > { %1663 = vst [vmem:[%s3121_s15 + $0x20] sm:$0xff] %v1647_v34  ;;  %v1648_v36 = vadd.f32 %v1525_v35, %v604_v32  ;;  %v1529_v40 = vadd.f32 %v1528_v39, %v1475_v37  ;;  %v1477_v41 = vpop.f32.mrf.mxu0 }
 0x19d   : > { %v1530_v43 = vpop.f32.mrf.mxu1 }
 0x19e   : > { %1664 = vst [vmem:[%s3121_s15 + $0x28] sm:$0xff] %v1648_v36  ;;  %v1651_v44 = vadd.f32 %v1529_v40, %v607_v38  ;;  %v1531_v45 = vadd.f32 %v1530_v43, %v1477_v41  ;;  %v1479_v46 = vpop.f32.mrf.mxu0 }
 0x19f   : > { %v1532_v48 = vpop.f32.mrf.mxu1 }
 0x1a0   : > { %1667 = vst [vmem:[%s3121_s15 + $0x40] sm:$0xff] %v1651_v44  ;;  %v1652_v49 = vadd.f32 %v1531_v45, %v608_v42  ;;  %v1533_v50 = vadd.f32 %v1532_v48, %v1479_v46  ;;  %v1481_v51 = vpop.f32.mrf.mxu0 }
 0x1a1   : > { %v1534_v53 = vpop.f32.mrf.mxu1 }
 0x1a2   : > { %1668 = vst [vmem:[%s3121_s15 + $0x48] sm:$0xff] %v1652_v49  ;;  %v1655_v54 = vadd.f32 %v1533_v50, %v611_v47  ;;  %v1535_v55 = vadd.f32 %v1534_v53, %v1481_v51 }
 0x1a4   : > { %1671 = vst [vmem:[%s3121_s15 + $0x60] sm:$0xff] %v1655_v54  ;;  %v1656_v56 = vadd.f32 %v1535_v55, %v612_v52 }
 0x1a6   : > { %1672 = vst [vmem:[%s3121_s15 + $0x68] sm:$0xff] %v1656_v56 }
 0x1d2   : > { %v1571_v57 = vpop.f32.mrf.mxu0 }
 0x1d3   : > { %v1624_v59 = vpop.f32.mrf.mxu1 }
 0x1d4   : > { %v1625_v60 = vadd.f32 %v1624_v59, %v1571_v57  ;;  %v1573_v61 = vpop.f32.mrf.mxu0 }
 0x1d5   : > { %v1626_v63 = vpop.f32.mrf.mxu1 }
 0x1d6   : > { %v1645_v0 = vadd.f32 %v1625_v60, %v601_v58  ;;  %v1627_v1 = vadd.f32 %v1626_v63, %v1573_v61  ;;  %v1575_v2 = vpop.f32.mrf.mxu0 }
 0x1d7   : > { %v1628_v4 = vpop.f32.mrf.mxu1 }
 0x1d8   : > { %1661 = vst [vmem:[%s3121_s15 + $0x10] sm:$0xff] %v1645_v0  ;;  %v1646_v5 = vadd.f32 %v1627_v1, %v602_v62  ;;  %v1629_v6 = vadd.f32 %v1628_v4, %v1575_v2  ;;  %v1577_v7 = vpop.f32.mrf.mxu0 }
 0x1d9   : > { %v1630_v9 = vpop.f32.mrf.mxu1 }
 0x1da   : > { %1662 = vst [vmem:[%s3121_s15 + $0x18] sm:$0xff] %v1646_v5  ;;  %v1649_v10 = vadd.f32 %v1629_v6, %v605_v3  ;;  %v1631_v11 = vadd.f32 %v1630_v9, %v1577_v7  ;;  %v1581_v12 = vpop.f32.mrf.mxu0 }
 0x1db   : > { %v1634_v16 = vpop.f32.mrf.mxu1 }
 0x1dc   : > { %1665 = vst [vmem:[%s3121_s15 + $0x30] sm:$0xff] %v1649_v10  ;;  %v1650_v17 = vadd.f32 %v1631_v11, %v606_v8  ;;  %v1635_v18 = vadd.f32 %v1634_v16, %v1581_v12  ;;  %v1583_v19 = vpop.f32.mrf.mxu0 }
 0x1dd   : > { %v1636_v21 = vpop.f32.mrf.mxu1 }
 0x1de   : > { %1666 = vst [vmem:[%s3121_s15 + $0x38] sm:$0xff] %v1650_v17  ;;  %v1653_v22 = vadd.f32 %v1635_v18, %v609_v15  ;;  %v1637_v23 = vadd.f32 %v1636_v21, %v1583_v19  ;;  %v1585_v13 = vpop.f32.mrf.mxu0 }
 0x1df   : > { %v1638_v14 = vpop.f32.mrf.mxu1 }
 0x1e0   : > { %1669 = vst [vmem:[%s3121_s15 + $0x50] sm:$0xff] %v1653_v22  ;;  %v1654_v25 = vadd.f32 %v1637_v23, %v610_v20  ;;  %v1639_v26 = vadd.f32 %v1638_v14, %v1585_v13  ;;  %v1587_v27 = vpop.f32.mrf.mxu0 }
 0x1e1   : > { %v1640_v29 = vpop.f32.mrf.mxu1 }
 0x1e2   : > { %1670 = vst [vmem:[%s3121_s15 + $0x58] sm:$0xff] %v1654_v25  ;;  %v1657_v30 = vadd.f32 %v1639_v26, %v613_v24  ;;  %v1641_v31 = vadd.f32 %v1640_v29, %v1587_v27  ;;  %1678 = sbr.rel (%p2303_p5) target bundleno = 560 (0x230), region = 90 }
 0x1e4   : > { %1673 = vst [vmem:[%s3121_s15 + $0x70] sm:$0xff] %v1657_v30  ;;  %v1658_v32 = vadd.f32 %v1641_v31, %v614_v28 }
 0x1e6   : > { %1674 = vst [vmem:[%s3121_s15 + $0x78] sm:$0xff] %v1658_v32 }
 0x1e7   : > { %v3342_v33 = vld [vmem:[%s3121_s15] sm:$0xff]  ;;  %v3364_v42 = vld [vmem:[%s3121_s15 + $0x8] sm:$0xff]  ;;  %v3381_v50 = vld [vmem:[%s3121_s15 + $0x10] sm:$0xff] }
 0x1e8   : > { %v3345_v34 = vld [vmem:[%s3121_s15 + $0x20] sm:$0xff]  ;;  %v1736_v38 = vmul.f32 %v3342_v33, %v3342_v33  ;;  %v3367_v43 = vld [vmem:[%s3121_s15 + $0x28] sm:$0xff]  ;;  %v1737_v49 = vmul.f32 %v3364_v42, %v3364_v42  ;;  %v3384_v51 = vld [vmem:[%s3121_s15 + $0x30] sm:$0xff]  ;;  %v1738_v3 = vmul.f32 %v3381_v50, %v3381_v50 }
 0x1e9   : > { %v3348_v35 = vld [vmem:[%s3121_s15 + $0x40] sm:$0xff]  ;;  %v1695_v37 = vadd.f32 %v3345_v34, %v3342_v33  ;;  %v1740_v39 = vmul.f32 %v3345_v34, %v3345_v34  ;;  %v3370_v44 = vld [vmem:[%s3121_s15 + $0x48] sm:$0xff]  ;;  %v1704_v48 = vadd.f32 %v3367_v43, %v3364_v42  ;;  %v1741_v52 = vmul.f32 %v3367_v43, %v3367_v43  ;;  %v3393_v57 = vld [vmem:[%s3121_s15 + $0x50] sm:$0xff] }
 0x1ea   : > { %v3351_v36 = vld [vmem:[%s3121_s15 + $0x60] sm:$0xff]  ;;  %v1744_v40 = vmul.f32 %v3348_v35, %v3348_v35  ;;  %v3374_v47 = vld [vmem:[%s3121_s15 + $0x68] sm:$0xff]  ;;  %v1745_v53 = vmul.f32 %v3370_v44, %v3370_v44  ;;  %v1713_v60 = vadd.f32 %v3384_v51, %v3381_v50  ;;  %v1742_v7 = vmul.f32 %v3384_v51, %v3384_v51  ;;  %v3409_v8 = vld [vmem:[%s3121_s15 + $0x18] sm:$0xff] }
 0x1eb   : > { %v1748_v41 = vmul.f32 %v3351_v36, %v3351_v36  ;;  %v1696_v45 = vadd.f32 %v1695_v37, %v3348_v35  ;;  %v1752_v46 = vadd.f32 %v1740_v39, %v1736_v38  ;;  %v1705_v56 = vadd.f32 %v1704_v48, %v3370_v44  ;;  %v3401_v0 = vld [vmem:[%s3121_s15 + $0x70] sm:$0xff]  ;;  %v3412_v9 = vld [vmem:[%s3121_s15 + $0x38] sm:$0xff] }
 0x1ec   : > { %v1749_v58 = vmul.f32 %v3374_v47, %v3374_v47  ;;  %v1761_v59 = vadd.f32 %v1741_v52, %v1737_v49  ;;  %v1714_v2 = vadd.f32 %v1713_v60, %v3393_v57  ;;  %v1746_v12 = vmul.f32 %v3393_v57, %v3393_v57  ;;  %v3422_v25 = vld [vmem:[%s3121_s15 + $0x58] sm:$0xff] }
 0x1ed   : > { %v1697_v54 = vadd.f32 %v1696_v45, %v3351_v36  ;;  %v1753_v55 = vadd.f32 %v1752_v46, %v1744_v40  ;;  %v1706_v63 = vadd.f32 %v1705_v56, %v3374_v47  ;;  %v1750_v15 = vmul.f32 %v3401_v0, %v3401_v0  ;;  %v3425_v32 = vld [vmem:[%s3121_s15 + $0x78] sm:$0xff] }
 0x1ee   : > { %v1762_v1 = vadd.f32 %v1761_v59, %v1745_v53  ;;  %v1715_v11 = vadd.f32 %v1714_v2, %v3401_v0  ;;  %v1770_v19 = vadd.f32 %v1742_v7, %v1738_v3  ;;  %v1722_v22 = vadd.f32 %v3412_v9, %v3409_v8 }
 0x1ef   : > { %v1698_v61 = vrot.slane %v1697_v54, 4  ;;  %v1754_v62 = vadd.f32 %v1753_v55, %v1748_v41  ;;  %v1707_v6 = vrot.slane %v1706_v63, 4  ;;  %v1743_v2 = vmul.f32 %v3412_v9, %v3412_v9 }
 0x1f0   : > { %v1763_v10 = vadd.f32 %v1762_v1, %v1749_v58  ;;  %v1716_v21 = vrot.slane %v1715_v11, 4  ;;  %v1771_v14 = vadd.f32 %v1770_v19, %v1746_v12  ;;  %v1723_v39 = vadd.f32 %v1722_v22, %v3422_v25 }
 0x1f1   : > { %v1699_v4 = vadd.f32 %v1698_v61, %v1697_v54  ;;  %v1755_v5 = vrot.slane %v1754_v62, 4  ;;  %v1708_v18 = vadd.f32 %v1707_v6, %v1706_v63  ;;  %v1739_v61 = vmul.f32 %v3409_v8, %v3409_v8 }
 0x1f2   : > { %v1764_v20 = vrot.slane %v1763_v10, 4  ;;  %v1717_v27 = vadd.f32 %v1716_v21, %v1715_v11  ;;  %v1772_v31 = vadd.f32 %v1771_v14, %v1750_v15  ;;  %v1724_v52 = vadd.f32 %v1723_v39, %v3425_v32 }
 0x1f3   : > { %v1700_v16 = vrot.slane %v1699_v4, 2  ;;  %v1756_v17 = vadd.f32 %v1755_v5, %v1754_v62  ;;  %v1709_v24 = vrot.slane %v1708_v18, 2  ;;  %v1747_v11 = vmul.f32 %v3422_v25, %v3422_v25 }
 0x1f4   : > { %v1765_v26 = vadd.f32 %v1764_v20, %v1763_v10  ;;  %v1718_v38 = vrot.slane %v1717_v27, 2  ;;  %v1773_v46 = vrot.slane %v1772_v31, 4  ;;  %v1725_v60 = vrot.slane %v1724_v52, 4 }
 0x1f5   : > { %v1701_v23 = vadd.f32 %v1700_v16, %v1699_v4  ;;  %v1757_v13 = vrot.slane %v1756_v17, 2  ;;  %v1710_v30 = vadd.f32 %v1709_v24, %v1708_v18  ;;  %v1751_v19 = vmul.f32 %v3425_v32, %v3425_v32 }
 0x1f6   : > { %v1766_v37 = vrot.slane %v1765_v26, 2  ;;  %v1719_v49 = vadd.f32 %v1718_v38, %v1717_v27  ;;  %v1774_v56 = vadd.f32 %v1773_v46, %v1772_v31  ;;  %v1726_v6 = vadd.f32 %v1725_v60, %v1724_v52  ;;  %v3458_v52 = vld [vmem:[%s571_s6] sm:$0xf] }
 0x1f7   : > { %v1702_v28 = vrot.slane %v1701_v23, 1  ;;  %v1758_v29 = vadd.f32 %v1757_v13, %v1756_v17  ;;  %v1711_v45 = vrot.slane %v1710_v30, 1  ;;  %v1779_v20 = vadd.f32 %v1743_v2, %v1739_v61 }
 0x1f8   : > { %v1767_v48 = vadd.f32 %v1766_v37, %v1765_v26  ;;  %v1720_v59 = vrot.slane %v1719_v49, 1  ;;  %v1775_v5 = vrot.slane %v1774_v56, 2  ;;  %v1727_v17 = vrot.slane %v1726_v6, 2 }
 0x1f9   : > { %v1703_v40 = vadd.f32 %v1702_v28, %v1701_v23  ;;  %v1759_v41 = vrot.slane %v1758_v29, 1  ;;  %v1712_v55 = vadd.f32 %v1711_v45, %v1710_v30  ;;  %v1846_v21 = vlaneseq }
 0x1fa   : > { %v1768_v58 = vrot.slane %v1767_v48, 1  ;;  %v1721_v4 = vadd.f32 %v1720_v59, %v1719_v49  ;;  %v1776_v16 = vadd.f32 %v1775_v5, %v1774_v56  ;;  %v1728_v24 = vadd.f32 %v1727_v17, %v1726_v6 }
 0x1fb   : > { %v3429_v53 = vmul.f32 0.03125, %v1703_v40  ;;  %v1760_v54 = vadd.f32 %v1759_v41, %v1758_v29  ;;  %v3435_v1 = vmul.f32 0.03125, %v1712_v55  ;;  %v1780_v14 = vadd.f32 %v1779_v20, %v1747_v11 }
 0x1fc   : > { %v1769_v3 = vadd.f32 %v1768_v58, %v1767_v48  ;;  %v3443_v15 = vmul.f32 0.03125, %v1721_v4  ;;  %v1777_v23 = vrot.slane %v1776_v16, 1  ;;  %v1729_v29 = vrot.slane %v1728_v24, 1 }
 0x1fd   : > { %v1788_v62 = vmul.f32 0.03125, %v1760_v54  ;;  %v1792_v63 = vmul.f32 %v3429_v53, %v3429_v53  ;;  %v1793_v10 = vmul.f32 %v3435_v1, %v3435_v1  ;;  %v1781_v30 = vadd.f32 %v1780_v14, %v1751_v19  ;;  %v3465_v54 = vld [vmem:[%s576_s1] sm:$0xf] }
 0x1fe   : > { %v1789_v12 = vmul.f32 0.03125, %v1769_v3  ;;  %v1778_v27 = vadd.f32 %v1777_v23, %v1776_v16  ;;  %v1794_v28 = vmul.f32 %v3443_v15, %v3443_v15  ;;  %v3449_v31 = vshrl.u32 %v1846_v21, 7 }
 0x1ff   : > { %v1796_v7 = vsub.f32 %v1788_v62, %v1792_v63  ;;  %v1782_v39 = vrot.slane %v1781_v30, 4  ;;  %v1730_v41 = vadd.f32 %v1729_v29, %v1728_v24  ;;  %v1804_v2 = vsub.f32 %v3342_v33, %v3429_v53 }
 0x200   : > { %v1797_v22 = vsub.f32 %v1789_v12, %v1793_v10  ;;  %v1790_v38 = vmul.f32 0.03125, %v1778_v27  ;;  %v1848_v46 = vsub.s32 0, %v3449_v31  ;;  %v1852_v48 = vsub.s32 1, %v3449_v31 }
 0x201   : > { %v1800_v18 = vmax.f32 %v1796_v7, 0.0  ;;  %v1783_v45 = vadd.f32 %v1782_v39, %v1781_v30  ;;  %v1856_v58 = vsub.s32 2, %v3449_v31  ;;  %v3468_v59 = vmul.f32 0.03125, %v1730_v41 }
 0x202   : > { %v1801_v26 = vmax.f32 %v1797_v22, 0.0  ;;  %v1798_v40 = vsub.f32 %v1790_v38, %v1794_v28  ;;  %v1849_v61 = vrot.slane %v3458_v52, %v1848_v46  ;;  %v1887_v62 = vrot.slane %v3465_v54, %v1848_v46 }
 0x203   : > { %v1820_v13 = vadd.f32 1e-05, %v1800_v18  ;;  %v1784_v55 = vrot.slane %v1783_v45, 2  ;;  %v3473_v63 = vrot.slane %v3458_v52, %v1852_v48  ;;  %v1808_v4 = vsub.f32 %v3345_v34, %v3429_v53 }
 0x204   : > { %v1821_v37 = vadd.f32 1e-05, %v1801_v26  ;;  %v1802_v49 = vmax.f32 %v1798_v40, 0.0  ;;  %v1812_v5 = vsub.f32 %v3348_v35, %v3429_v53  ;;  %v3482_v6 = vrot.slane %v3465_v54, %v1852_v48 }
 0x205   : > { %2605 = vrsqrt.f32 %v1820_v13  ;;  %v1785_v60 = vadd.f32 %v1784_v55, %v1783_v45  ;;  %v3485_v7 = vrot.slane %v3458_v52, %v1856_v58  ;;  %v3488_v10 = vrot.slane %v3465_v54, %v1856_v58 }
 0x206   : > { %2607 = vrsqrt.f32 %v1821_v37  ;;  %v1822_v56 = vadd.f32 1e-05, %v1802_v49  ;;  %v1816_v11 = vsub.f32 %v3351_v36, %v3429_v53  ;;  %v1805_v33 = vsub.f32 %v3364_v42, %v3435_v1 }
 0x207   : > { %v1786_v3 = vrot.slane %v1785_v60, 1  ;;  %v1795_v34 = vmul.f32 %v3468_v59, %v3468_v59  ;;  %v1860_v35 = vsub.s32 3, %v3449_v31  ;;  %v1806_v17 = vsub.f32 %v3381_v50, %v3443_v15 }
 0x208   : > { %2609 = vrsqrt.f32 %v1822_v56  ;;  %v1809_v18 = vsub.f32 %v3367_v43, %v3435_v1  ;;  %v1810_v19 = vsub.f32 %v3384_v51, %v3443_v15  ;;  %v1813_v36 = vsub.f32 %v3370_v44, %v3435_v1 }
 0x209   : > { %v1787_v12 = vadd.f32 %v1786_v3, %v1785_v60  ;;  %v1814_v22 = vsub.f32 %v3393_v57, %v3443_v15  ;;  %v1817_v50 = vsub.f32 %v3374_v47, %v3435_v1  ;;  %v1818_v43 = vsub.f32 %v3401_v0, %v3443_v15 }
 0x20b   : > { %v1791_v53 = vmul.f32 0.03125, %v1787_v12 }
 0x20d   : > { %v1799_v51 = vsub.f32 %v1791_v53, %v1795_v34 }
 0x20f   : > { %v1803_v37 = vmax.f32 %v1799_v51, 0.0  ;;  %v1811_v51 = vsub.f32 %v3412_v9, %v3468_v59  ;;  %v1819_v9 = vsub.f32 %v3425_v32, %v3468_v59 }
 0x211   : > { %v1823_v40 = vadd.f32 1e-05, %v1803_v37 }
 0x212   : > { %v2606_v16 = vpop.eup %2605 }
 0x213   : > { %v1828_v42 = vmul.f32 %v2606_v16, %v1804_v2  ;;  %v1832_v20 = vmul.f32 %v2606_v16, %v1808_v4  ;;  %v1836_v21 = vmul.f32 %v2606_v16, %v1812_v5  ;;  %v1840_v23 = vmul.f32 %v2606_v16, %v1816_v11  ;;  %v2608_v13 = vpop.eup %2607 }
 0x214   : > { %v1829_v44 = vmul.f32 %v2608_v13, %v1805_v33  ;;  %v1833_v27 = vmul.f32 %v2608_v13, %v1809_v18  ;;  %v1837_v28 = vmul.f32 %v2608_v13, %v1813_v36  ;;  %2611 = vrsqrt.f32 %v1823_v40 }
 0x215   : > { %v1866_v24 = vmul.f32 %v1849_v61, %v1828_v42  ;;  %v1870_v14 = vmul.f32 %v1849_v61, %v1832_v20  ;;  %v1874_v26 = vmul.f32 %v1849_v61, %v1836_v21  ;;  %v1878_v29 = vmul.f32 %v1849_v61, %v1840_v23  ;;  %v2610_v48 = vpop.eup %2609 }
 0x216   : > { %v1867_v39 = vmul.f32 %v3473_v63, %v1829_v44  ;;  %v1871_v47 = vmul.f32 %v3473_v63, %v1833_v27  ;;  %v1875_v0 = vmul.f32 %v3473_v63, %v1837_v28  ;;  %v1830_v60 = vmul.f32 %v2610_v48, %v1806_v17 }
 0x217   : > { %v1904_v30 = vadd.f32 %v1887_v62, %v1866_v24  ;;  %v1908_v38 = vadd.f32 %v1887_v62, %v1870_v14  ;;  %v1912_v57 = vadd.f32 %v1887_v62, %v1874_v26  ;;  %v1916_v1 = vadd.f32 %v1887_v62, %v1878_v29 }
 0x218   : > { %v1905_v41 = vadd.f32 %v3482_v6, %v1867_v39  ;;  %v1909_v46 = vadd.f32 %v3482_v6, %v1871_v47  ;;  %v1913_v56 = vadd.f32 %v3482_v6, %v1875_v0  ;;  %v1834_v2 = vmul.f32 %v2610_v48, %v1810_v19 }
 0x219   : > { %vm1920_vm0 = vcmp.gt.f32.partialorder %v1904_v30, 0.0  ;;  %v1936_v15 = vmul.f32 0.2, %v1904_v30  ;;  %vm1924_vm1 = vcmp.gt.f32.partialorder %v1908_v38, 0.0  ;;  %v1940_v45 = vmul.f32 0.2, %v1908_v38 }
 0x21a   : > { %vm1928_vm2 = vcmp.gt.f32.partialorder %v1912_v57, 0.0  ;;  %v1944_v55 = vmul.f32 0.2, %v1912_v57  ;;  %vm1921_vm3 = vcmp.gt.f32.partialorder %v1905_v41, 0.0  ;;  %v1937_v58 = vmul.f32 0.2, %v1905_v41 }
 0x21b   : > { %v1952_v49 = vsel %vm1920_vm0, %v1904_v30, %v1936_v15  ;;  %v1956_v61 = vsel %vm1924_vm1, %v1908_v38, %v1940_v45  ;;  %vm1925_vm4 = vcmp.gt.f32.partialorder %v1909_v46, 0.0  ;;  %v1941_v62 = vmul.f32 0.2, %v1909_v46 }
 0x21c   : > { %1968 = vst [vmem:[%s3121_s15] sm:$0xff] %v1952_v49  ;;  %1972 = vst [vmem:[%s3121_s15 + $0x20] sm:$0xff] %v1956_v61  ;;  %v1960_v3 = vsel %vm1928_vm2, %v1912_v57, %v1944_v55  ;;  %v1953_v4 = vsel %vm1921_vm3, %v1905_v41, %v1937_v58  ;;  %v1868_v5 = vmul.f32 %v3485_v7, %v1830_v60  ;;  %vm1929_vm5 = vcmp.gt.f32.partialorder %v1913_v56, 0.0 }
 0x21d   : > { %1976 = vst [vmem:[%s3121_s15 + $0x40] sm:$0xff] %v1960_v3  ;;  %v1945_v11 = vmul.f32 0.2, %v1913_v56  ;;  %1969 = vst [vmem:[%s3121_s15 + $0x8] sm:$0xff] %v1953_v4  ;;  %v1957_v33 = vsel %vm1925_vm4, %v1909_v46, %v1941_v62  ;;  %v1872_v12 = vmul.f32 %v3485_v7, %v1834_v2  ;;  %v1838_v34 = vmul.f32 %v2610_v48, %v1814_v22 }
 0x21e   : > { %vm1932_vm6 = vcmp.gt.f32.partialorder %v1916_v1, 0.0  ;;  %v1906_v16 = vadd.f32 %v3488_v10, %v1868_v5  ;;  %1973 = vst [vmem:[%s3121_s15 + $0x28] sm:$0xff] %v1957_v33  ;;  %v1948_v18 = vmul.f32 0.2, %v1916_v1  ;;  %v1841_v19 = vmul.f32 %v2608_v13, %v1817_v50 }
 0x21f   : > { %v1961_v17 = vsel %vm1929_vm5, %v1913_v56, %v1945_v11  ;;  %v1807_v36 = vsub.f32 %v3409_v8, %v3468_v59  ;;  %v1910_v42 = vadd.f32 %v3488_v10, %v1872_v12  ;;  %v1876_v53 = vmul.f32 %v3485_v7, %v1838_v34 }
 0x220   : > { %1977 = vst [vmem:[%s3121_s15 + $0x48] sm:$0xff] %v1961_v17  ;;  %v1842_v20 = vmul.f32 %v2610_v48, %v1818_v43  ;;  %vm1922_vm7 = vcmp.gt.f32.partialorder %v1906_v16, 0.0  ;;  %v1938_v21 = vmul.f32 0.2, %v1906_v16  ;;  %v1964_v22 = vsel %vm1932_vm6, %v1916_v1, %v1948_v18 }
 0x221   : > { %v1879_v23 = vmul.f32 %v3473_v63, %v1841_v19  ;;  %vm1926_vm8 = vcmp.gt.f32.partialorder %v1910_v42, 0.0  ;;  %v1942_v24 = vmul.f32 0.2, %v1910_v42  ;;  %v1914_v50 = vadd.f32 %v3488_v10, %v1876_v53  ;;  %1980 = vst [vmem:[%s3121_s15 + $0x60] sm:$0xff] %v1964_v22  ;;  %v2612_v28 = vpop.eup %2611 }
 0x222   : > { %v1880_v8 = vmul.f32 %v3485_v7, %v1842_v20  ;;  %v1954_v13 = vsel %vm1922_vm7, %v1906_v16, %v1938_v21  ;;  %v1815_v43 = vsub.f32 %v3422_v25, %v3468_v59  ;;  %v1861_v25 = vrot.slane %v3458_v52, %v1860_v35 }
 0x223   : > { %v1917_v14 = vadd.f32 %v3482_v6, %v1879_v23  ;;  %1970 = vst [vmem:[%s3121_s15 + $0x10] sm:$0xff] %v1954_v13  ;;  %v1958_v26 = vsel %vm1926_vm8, %v1910_v42, %v1942_v24  ;;  %vm1930_vm9 = vcmp.gt.f32.partialorder %v1914_v50, 0.0  ;;  %v1946_v63 = vmul.f32 0.2, %v1914_v50 }
 0x224   : > { %v1918_v44 = vadd.f32 %v3488_v10, %v1880_v8  ;;  %1974 = vst [vmem:[%s3121_s15 + $0x30] sm:$0xff] %v1958_v26  ;;  %v1899_v10 = vrot.slane %v3465_v54, %v1860_v35  ;;  %v1831_v30 = vmul.f32 %v2612_v28, %v1807_v36  ;;  %v1835_v37 = vmul.f32 %v2612_v28, %v1811_v51 }
 0x225   : > { %vm1933_vm10 = vcmp.gt.f32.partialorder %v1917_v14, 0.0  ;;  %v1949_v7 = vmul.f32 0.2, %v1917_v14  ;;  %v1962_v6 = vsel %vm1930_vm9, %v1914_v50, %v1946_v63  ;;  %v1839_v38 = vmul.f32 %v2612_v28, %v1815_v43 }
 0x226   : > { %vm1934_vm11 = vcmp.gt.f32.partialorder %v1918_v44, 0.0  ;;  %v1950_v27 = vmul.f32 0.2, %v1918_v44  ;;  %1978 = vst [vmem:[%s3121_s15 + $0x50] sm:$0xff] %v1962_v6  ;;  %v1843_v32 = vmul.f32 %v2612_v28, %v1819_v9  ;;  %v1869_v59 = vmul.f32 %v1861_v25, %v1831_v30 }
 0x227   : > { %v1965_v29 = vsel %vm1933_vm10, %v1917_v14, %v1949_v7  ;;  %v1873_v39 = vmul.f32 %v1861_v25, %v1835_v37  ;;  %v1877_v52 = vmul.f32 %v1861_v25, %v1839_v38 }
 0x228   : > { %1981 = vst [vmem:[%s3121_s15 + $0x68] sm:$0xff] %v1965_v29  ;;  %v1966_v57 = vsel %vm1934_vm11, %v1918_v44, %v1950_v27  ;;  %v1881_v47 = vmul.f32 %v1861_v25, %v1843_v32  ;;  %v1907_v0 = vadd.f32 %v1899_v10, %v1869_v59 }
 0x229   : > { %1982 = vst [vmem:[%s3121_s15 + $0x70] sm:$0xff] %v1966_v57  ;;  %v1911_v1 = vadd.f32 %v1899_v10, %v1873_v39  ;;  %v1915_v31 = vadd.f32 %v1899_v10, %v1877_v52 }
 0x22a   : > { %v1919_v54 = vadd.f32 %v1899_v10, %v1881_v47  ;;  %vm1923_vm12 = vcmp.gt.f32.partialorder %v1907_v0, 0.0  ;;  %v1939_v35 = vmul.f32 0.2, %v1907_v0 }
 0x22b   : > { %vm1927_vm13 = vcmp.gt.f32.partialorder %v1911_v1, 0.0  ;;  %v1943_v15 = vmul.f32 0.2, %v1911_v1  ;;  %vm1931_vm14 = vcmp.gt.f32.partialorder %v1915_v31, 0.0  ;;  %v1947_v40 = vmul.f32 0.2, %v1915_v31 }
 0x22c   : > { %vm1935_vm15 = vcmp.gt.f32.partialorder %v1919_v54, 0.0  ;;  %v1951_v41 = vmul.f32 0.2, %v1919_v54  ;;  %v1955_v45 = vsel %vm1923_vm12, %v1907_v0, %v1939_v35 }
 0x22d   : > { %v1959_v46 = vsel %vm1927_vm13, %v1911_v1, %v1943_v15  ;;  %1971 = vst [vmem:[%s3121_s15 + $0x18] sm:$0xff] %v1955_v45  ;;  %v1963_v48 = vsel %vm1931_vm14, %v1915_v31, %v1947_v40 }
 0x22e   : > { %1975 = vst [vmem:[%s3121_s15 + $0x38] sm:$0xff] %v1959_v46  ;;  %v1967_v49 = vsel %vm1935_vm15, %v1919_v54, %v1951_v41  ;;  %1979 = vst [vmem:[%s3121_s15 + $0x58] sm:$0xff] %v1963_v48 }
 0x22f   : > { %1983 = vst [vmem:[%s3121_s15 + $0x78] sm:$0xff] %v1967_v49 }
 0x230 PF: > { %1990 = sbr.rel (!%p2821_p12) target bundleno = 570 (0x23a), region = 94  ;;  %s2311_s1 = sshll.u32 (%p2821_p12), %s2687_s22, 5  ;;  %v2006_v55 = vld [vmem:[%s3121_s15] sm:$0xff] (%p2821_p12)  ;;  %v2008_v56 = vld [vmem:[%s3121_s15 + $0x8] sm:$0xff] (%p2821_p12)  ;;  %v2010_v58 = vld [vmem:[%s3121_s15 + $0x10] sm:$0xff] (%p2821_p12) }
 0x231   : > { %s1993_s27 = scalar_lea.vmem (%p2821_p12), %s3616_s4, %s2311_s1  ;;  %v2014_v61 = vld [vmem:[%s3121_s15 + $0x20] sm:$0xff] (%p2821_p12)  ;;  %v2016_v62 = vld [vmem:[%s3121_s15 + $0x28] sm:$0xff] (%p2821_p12)  ;;  %v2018_v2 = vld [vmem:[%s3121_s15 + $0x30] sm:$0xff] (%p2821_p12) }
 0x232   : > { %2007 = vst [vmem:[%s1993_s27] sm:$0xff] (%p2821_p12), %v2006_v55  ;;  %2009 = vst [vmem:[%s1993_s27 + $0x8] sm:$0xff] (%p2821_p12), %v2008_v56  ;;  %v2022_v4 = vld [vmem:[%s3121_s15 + $0x40] sm:$0xff] (%p2821_p12)  ;;  %v2024_v5 = vld [vmem:[%s3121_s15 + $0x48] sm:$0xff] (%p2821_p12) }
 0x233   : > { %2011 = vst [vmem:[%s1993_s27 + $0x10] sm:$0xff] (%p2821_p12), %v2010_v58  ;;  %2015 = vst [vmem:[%s1993_s27 + $0x40] sm:$0xff] (%p2821_p12), %v2014_v61  ;;  %v2026_v11 = vld [vmem:[%s3121_s15 + $0x50] sm:$0xff] (%p2821_p12)  ;;  %v2030_v12 = vld [vmem:[%s3121_s15 + $0x60] sm:$0xff] (%p2821_p12) }
 0x234   : > { %v2012_v60 = vld [vmem:[%s3121_s15 + $0x18] sm:$0xff] (%p2821_p12)  ;;  %2017 = vst [vmem:[%s1993_s27 + $0x48] sm:$0xff] (%p2821_p12), %v2016_v62  ;;  %2019 = vst [vmem:[%s1993_s27 + $0x50] sm:$0xff] (%p2821_p12), %v2018_v2  ;;  %v2032_v34 = vld [vmem:[%s3121_s15 + $0x68] sm:$0xff] (%p2821_p12) }
 0x235   : > { %2013 = vst [vmem:[%s1993_s27 + $0x18] sm:$0xff] %v2012_v60  ;;  %v2020_v3 = vld [vmem:[%s3121_s15 + $0x38] sm:$0xff]  ;;  %2023 = vst [vmem:[%s1993_s27 + $0x80] sm:$0xff] %v2022_v4  ;;  %v2034_v16 = vld [vmem:[%s3121_s15 + $0x70] sm:$0xff] }
 0x236   : > { %2021 = vst [vmem:[%s1993_s27 + $0x58] sm:$0xff] %v2020_v3  ;;  %v2028_v33 = vld [vmem:[%s3121_s15 + $0x58] sm:$0xff]  ;;  %2025 = vst [vmem:[%s1993_s27 + $0x88] sm:$0xff] %v2024_v5 }
 0x237   : > { %2027 = vst [vmem:[%s1993_s27 + $0x90] sm:$0xff] %v2026_v11  ;;  %2029 = vst [vmem:[%s1993_s27 + $0x98] sm:$0xff] %v2028_v33  ;;  %v2036_v17 = vld [vmem:[%s3121_s15 + $0x78] sm:$0xff] }
 0x238   : > { %2031 = vst [vmem:[%s1993_s27 + $0xc0] sm:$0xff] %v2030_v12  ;;  %2033 = vst [vmem:[%s1993_s27 + $0xc8] sm:$0xff] %v2032_v34 }
 0x239   : > { %2035 = vst [vmem:[%s1993_s27 + $0xd0] sm:$0xff] %v2034_v16  ;;  %2037 = vst [vmem:[%s1993_s27 + $0xd8] sm:$0xff] %v2036_v17 }
 0x23a PF: > { %s14_s25 = sadd.s32 1, %s2699_s25   ;;  %s3628_s14 = sld [smem:[#allocation5_spill]] }
 0x23b   : > { %p11_p6 = scmp.ge.s32.totalorder %s14_s25, 34   ;;  %s3629_s29 = sld [smem:[#allocation6_spill]] }
 0x23c   : > { %s3630_s15 = smov %s2663_s16  ;;  %s3631_s16 = smov %s2819_s13 }
 0x23d   : > { %s3632_s17 = smov %s2671_s18  ;;  %s3633_s18 = smov %s2816_s12 }
 0x23e   : > { %s3634_s19 = smov %s2679_s20  ;;  %s3635_s20 = smov %s2802_s7 }
 0x23f   : > { %s3636_s21 = smov %s2691_s23  ;;  %s3637_s22 = smov %s2695_s24 }
 0x240   : > { %s3638_s23 = smov %s3628_s14  ;;  %13 = sbr.rel (!%p11_p6) target bundleno = 9 (0x9), region = 162 }
 0x241   : > { %s3639_s24 = smov %s3629_s29 }

</bundles_post_ra>
